<compile_context>
chip_gen: v7x
topology: tpu7x:2x2x1
jax: 0.10.0
libtpu: 0.0.40
codegen_flags: <defaults>
</compile_context>

<pallas_src>
import math
import jax
import jax.numpy as jnp
from jax import lax
from jax.experimental import pallas as pl
from jax.experimental.pallas import tpu as pltpu

_NEG = -1e9


def _gelu_tanh(x):
    # TODO(synk): PyTorch nn.GELU() default is the exact erf form; the tanh approximation
    # (max abs err ~1e-3) is used because erf lowering in Mosaic is not guaranteed.
    c = math.sqrt(2.0 / math.pi)
    return 0.5 * x * (1.0 + jnp.tanh(c * (x + 0.044715 * x * x * x)))


def make_transformer_block(B, T1, T2, H, heads, B_tile):
    """Fused TransformerBlock forward.

    Host-side packing (all linear weights stored as (in, out) == nn.Linear.weight.T):
      wqf/bqf : per-head fused feats-input QKV [q_vv|k_vv|v_vv|q_lv|k_vl|v_vl],
                (heads, H, 6E) bf16 / (heads, 1, 6E) f32, E**-0.25 scale folded in.
      wqi/bqi : per-head fused inps-input  QKV [k_lv|v_lv|q_vl|q_ll|k_ll|v_ll], same layout.
      wu/bu   : unify-heads [v, l] split per head   (2, heads, E, H) f32 / (2, 1, H) f32
      wff/bff : feed-forward [v1, v2, l1, l2]       (4, H, H) bf16 / (4, 1, H) f32
      lng/lnb : LayerNorm    [n1v, n2v, n1l, n2l]   (4, 1, H) f32
    """
    assert H % heads == 0 and B % B_tile == 0
    E = H // heads
    T = T1 + T2
    G = B // B_tile                  # grid steps
    Rf = B_tile * T1                 # visual rows per grid step
    Ri = B_tile * T2                 # language rows per grid step
    KT = Rf + Ri                     # key columns per grid step ([feats | inps])
    assert Rf % 8 == 0 and Ri % 8 == 0, "tile rows must be sublane aligned"

    f32 = jnp.float32
    bf16 = jnp.bfloat16

    def kernel(feats_ref, inps_ref, bias_v_ref, bias_l_ref,
               wqf_ref, bqf_ref, wqi_ref, bqi_ref,
               wu_ref, bu_ref, wff_ref, bff_ref, lng_ref, lnb_ref,
               feats_out_ref, inps_out_ref):
        x_f = feats_ref[...]                       # (Rf, H) f32 — residual path stays f32
        x_i = inps_ref[...]                        # (Ri, H) f32

        # ---- Per-head fused QKV projections (weights packed per head on the host).
        # `heads` small MXU matmuls + ONE stack per stream; no cross-lane head split.
        xf_b = x_f.astype(bf16)
        xi_b = x_i.astype(bf16)
        qkv_f = jnp.stack([jnp.dot(xf_b, wqf_ref[h], preferred_element_type=f32)
                           for h in range(heads)]) + bqf_ref[...]   # (heads, Rf, 6E) f32
        qkv_i = jnp.stack([jnp.dot(xi_b, wqi_ref[h], preferred_element_type=f32)
                           for h in range(heads)]) + bqi_ref[...]   # (heads, Ri, 6E) f32

        def col(x, j):                             # j-th fused tensor: (heads, rows, E)
            return x[:, :, j * E:(j + 1) * E]

        q_vv, k_vv, v_vv, q_lv, k_vl, v_vl = (col(qkv_f, j) for j in range(6))
        k_lv, v_lv, q_vl, q_ll, k_ll, v_ll = (col(qkv_i, j) for j in range(6))

        # Additive bias (precomputed host-side): -1e9 at key-padding positions AND at
        # cross-batch (query, key) pairs, so all B_tile batch elements are processed in
        # one set of heads-batched einsums (no per-batch loop / slices / concats).
        bias_v = bias_v_ref[0]                     # (Rf, KT) f32
        bias_l = bias_l_ref[0]                     # (Ri, KT) f32

        def joint_attention(q_a, k_a, v_a, q_b, k_b, v_b, bias):
            # Softmax over the concatenated key axis [feats | inps] computed in split
            # form (shared max / shared denominator) — identical to softmax(concat).
            # Everything stays f32: the contractions have K <= 32, so bf16 buys no MXU
            # time and would only add VPU pack/unpack work.
            s_a = jnp.einsum('hqe,hke->hqk', q_a, k_a,
                             preferred_element_type=f32) + bias[:, :Rf]
            s_b = jnp.einsum('hqe,hke->hqk', q_b, k_b,
                             preferred_element_type=f32) + bias[:, Rf:]
            m = jnp.maximum(jnp.max(s_a, axis=-1, keepdims=True),
                            jnp.max(s_b, axis=-1, keepdims=True))
            p_a = jnp.exp(s_a - m)
            p_b = jnp.exp(s_b - m)
            inv = pl.reciprocal(jnp.sum(p_a, axis=-1, keepdims=True)
                                + jnp.sum(p_b, axis=-1, keepdims=True), approx=True)
            ctx = (jnp.einsum('hqk,hke->hqe', p_a, v_a, preferred_element_type=f32)
                   + jnp.einsum('hqk,hke->hqe', p_b, v_b, preferred_element_type=f32))
            return ctx * inv                       # (heads, rows, E) f32

        # visual stream: T1 queries over [feats | inps] keys
        ctx_v = joint_attention(q_vv, k_vv, v_vv, q_lv, k_lv, v_lv, bias_v)
        # language stream: T2 queries over [feats | inps] keys
        ctx_l = joint_attention(q_vl, k_vl, v_vl, q_ll, k_ll, v_ll, bias_l)

        # ---- Unify-heads with the head-merge folded into the (heads, E, H) weight:
        # attended[r, o] = sum_h sum_e ctx[h, r, e] * Wu[h, e, o].  Expressed as a
        # heads-batched matmul + static adds (instead of a 2-contracting-dim
        # dot_general) so it lowers cleanly; no head -> lane concatenate needed.
        def unify(ctx, w3, b):
            parts = jnp.einsum('hre,heo->hro', ctx, w3, preferred_element_type=f32)
            att = parts[0]
            for h in range(1, heads):
                att = att + parts[h]
            return att + b

        attended_v = unify(ctx_v, wu_ref[0], bu_ref[0])
        attended_l = unify(ctx_l, wu_ref[1], bu_ref[1])
        # dropout_v / dropout_l / block dropouts: identity in eval mode.

        def layer_norm(x, idx):                    # BertLayerNorm, eps=1e-12, f32 math
            g = lng_ref[idx]
            beta = lnb_ref[idx]
            u = jnp.mean(x, axis=-1, keepdims=True)
            d = x - u
            var = jnp.mean(d * d, axis=-1, keepdims=True)
            return g * (d * lax.rsqrt(var + 1e-12)) + beta

        def ffn(x, w1, b1, w2, b2):
            h1 = jnp.dot(x.astype(bf16), w1, preferred_element_type=f32) + b1
            h1 = _gelu_tanh(h1)
            return jnp.dot(h1.astype(bf16), w2, preferred_element_type=f32) + b2

        # visual branch
        f1 = layer_norm(attended_v + x_f, 0)                                   # norm1_v
        feats_out_ref[...] = layer_norm(
            ffn(f1, wff_ref[0], bff_ref[0], wff_ref[1], bff_ref[1]) + f1, 1)   # norm2_v
        # language branch
        l1 = layer_norm(attended_l + x_i, 2)                                   # norm1_l
        inps_out_ref[...] = layer_norm(
            ffn(l1, wff_ref[2], bff_ref[2], wff_ref[3], bff_ref[3]) + l1, 3)   # norm2_l

        # TODO(synk): H=32 (<128 lanes) so these stores are masked partial vst; a
        # lane-dense (B_tile, T*H) output layout would need an in-kernel sublane->lane
        # reshape that is not guaranteed to lower, so it is intentionally not done here.

    def fullspec(shape):
        return pl.BlockSpec(shape, lambda i: (0,) * len(shape))

    grid_spec = pltpu.PrefetchScalarGridSpec(
        num_scalar_prefetch=0,
        grid=(G,),
        in_specs=[
            pl.BlockSpec((Rf, H), lambda i: (i, 0)),           # feats rows (batch*token)
            pl.BlockSpec((Ri, H), lambda i: (i, 0)),           # inps rows
            pl.BlockSpec((1, Rf, KT), lambda i: (i, 0, 0)),    # visual additive bias
            pl.BlockSpec((1, Ri, KT), lambda i: (i, 0, 0)),    # language additive bias
            fullspec((heads, H, 6 * E)), fullspec((heads, 1, 6 * E)),  # feats-input QKV
            fullspec((heads, H, 6 * E)), fullspec((heads, 1, 6 * E)),  # inps-input QKV
            fullspec((2, heads, E, H)), fullspec((2, 1, H)),           # unify-heads
            fullspec((4, H, H)), fullspec((4, 1, H)),                  # feed-forward
            fullspec((4, 1, H)), fullspec((4, 1, H)),                  # LayerNorm g / b
        ],
        out_specs=[
            pl.BlockSpec((Rf, H), lambda i: (i, 0)),
            pl.BlockSpec((Ri, H), lambda i: (i, 0)),
        ],
    )

    call = pl.pallas_call(
        kernel,
        out_shape=(jax.ShapeDtypeStruct((B * T1, H), f32),
                   jax.ShapeDtypeStruct((B * T2, H), f32)),
        grid_spec=grid_spec,
        compiler_params=pltpu.CompilerParams(
            dimension_semantics=("parallel",),
            # TODO(synk): for production hidden sizes, tile the fused-QKV / FFN weight
            # output dims over an extra "arbitrary" grid axis (and keep B_tile small so
            # the block-diagonal score bias stays modest) instead of keeping all weights
            # resident — must stay well under v7x's 64 MiB VMEM.
            vmem_limit_bytes=32 * 1024 * 1024,
        ),
    )

    def apply(feats, inps, mask, wqf, bqf, wqi, bqi, wu, bu, wff, bff, lng, lnb):
        # Flatten (batch, token) -> rows outside the kernel so QKV / unify / FFN /
        # LayerNorm are batched over the whole B_tile block.
        f2 = feats.reshape(B * T1, H)
        i2 = inps.reshape(B * T2, H)

        # Host-built additive attention bias: -1e9 at masked keys and at cross-batch
        # (query, key) pairs of the B_tile block; key columns ordered [feats | inps].
        key_mask = mask.reshape(B, T) > 0.0
        km_f = key_mask[:, :T1].reshape(G, B_tile, T1)
        km_i = key_mask[:, T1:].reshape(G, B_tile, T2)
        same = jnp.eye(B_tile, dtype=bool)[None, :, None, :, None]  # (1, bq, 1, bk, 1)

        def half(km_k, Tq):
            Tk = km_k.shape[-1]
            bias = jnp.broadcast_to(jnp.where(km_k, _NEG, 0.0)[:, None, None, :, :],
                                    (G, B_tile, Tq, B_tile, Tk))
            bias = jnp.where(same, bias, _NEG)
            return bias.reshape(G, B_tile * Tq, B_tile * Tk)

        bias_v = jnp.concatenate([half(km_f, T1), half(km_i, T1)], axis=-1).astype(jnp.float32)
        bias_l = jnp.concatenate([half(km_f, T2), half(km_i, T2)], axis=-1).astype(jnp.float32)

        fo, io = call(f2, i2, bias_v, bias_l,
                      wqf, bqf, wqi, bqi, wu, bu, wff, bff, lng, lnb)
        return fo.reshape(B, T1, H), io.reshape(B, T2, H)

    return jax.jit(apply)


def _reference_block(feats, inps, mask_bool, p, heads):
    """Pure-JAX f32 reference of TransformerBlock.forward (tanh-GELU, eval mode)."""
    B, T1, H = feats.shape
    T2 = inps.shape[1]
    E = H // heads
    scale = float(E) ** 0.25

    def lin(x, name):
        return x @ p['w_' + name] + p['b_' + name]

    def split(y):  # (B, T, H) -> (B, heads, T, E), scaled like the PyTorch code
        Bx, Tx, _ = y.shape
        return y.reshape(Bx, Tx, heads, E).transpose(0, 2, 1, 3) / scale

    q_vv = split(lin(feats, 'q_vv')); k_vv = split(lin(feats, 'k_vv')); v_vv = split(lin(feats, 'v_vv'))
    q_lv = split(lin(feats, 'q_lv')); k_lv = split(lin(inps, 'k_lv'));  v_lv = split(lin(inps, 'v_lv'))
    q_vl = split(lin(inps, 'q_vl'));  k_vl = split(lin(feats, 'k_vl')); v_vl = split(lin(feats, 'v_vl'))
    q_ll = split(lin(inps, 'q_ll'));  k_ll = split(lin(inps, 'k_ll'));  v_ll = split(lin(inps, 'v_ll'))

    att_v = jnp.concatenate([jnp.einsum('bhqe,bhke->bhqk', q_vv, k_vv),
                             jnp.einsum('bhqe,bhke->bhqk', q_lv, k_lv)], axis=-1)
    att_l = jnp.concatenate([jnp.einsum('bhqe,bhke->bhqk', q_vl, k_vl),
                             jnp.einsum('bhqe,bhke->bhqk', q_ll, k_ll)], axis=-1)
    m4 = mask_bool[:, :, None, :]                     # (B, 1, 1, T1+T2)
    att_v = jax.nn.softmax(jnp.where(m4, -1e9, att_v), axis=-1)
    att_l = jax.nn.softmax(jnp.where(m4, -1e9, att_l), axis=-1)

    vals_v = jnp.concatenate([v_vv, v_lv], axis=2)
    vals_l = jnp.concatenate([v_vl, v_ll], axis=2)
    ctx_v = jnp.einsum('bhqk,bhke->bhqe', att_v, vals_v).transpose(0, 2, 1, 3).reshape(B, T1, H)
    ctx_l = jnp.einsum('bhqk,bhke->bhqe', att_l, vals_l).transpose(0, 2, 1, 3).reshape(B, T2, H)

    attended_v = ctx_v @ p['w_uv'] + p['b_uv']
    attended_l = ctx_l @ p['w_ul'] + p['b_ul']

    def ln(x, g, b):
        u = jnp.mean(x, -1, keepdims=True)
        s = jnp.mean((x - u) ** 2, -1, keepdims=True)
        return g * (x - u) / jnp.sqrt(s + 1e-12) + b

    f1 = ln(attended_v + feats, p['g_1v'], p['be_1v'])
    ff = _gelu_tanh(f1 @ p['w_ffv1'] + p['b_ffv1']) @ p['w_ffv2'] + p['b_ffv2']
    feats_out = ln(ff + f1, p['g_2v'], p['be_2v'])

    l1 = ln(attended_l + inps, p['g_1l'], p['be_1l'])
    ff = _gelu_tanh(l1 @ p['w_ffl1'] + p['b_ffl1']) @ p['w_ffl2'] + p['b_ffl2']
    inps_out = ln(ff + l1, p['g_2l'], p['be_2l'])
    return feats_out, inps_out


if __name__ == "__main__":
    B, T1, T2, H, HEADS = 4, 16, 8, 32, 4     # hidden_size=32, num_attention_heads=4
    T = T1 + T2
    E = H // HEADS

    # Per-generation grid choice: dual-TensorCore v7x wants >=2 "parallel" grid steps
    # (one per TC); single-TC v5e/v6e are fastest with grid=1 (each extra step costs
    # ~0.35 us of pipeline overhead on a kernel that is only a few us).
    try:
        _kind = jax.devices()[0].device_kind.lower()
    except Exception:
        _kind = ""
    B_TILE = (B // 2) if (("v7" in _kind or "7x" in _kind) and B % 2 == 0) else B

    keys = iter(jax.random.split(jax.random.PRNGKey(0), 80))

    feats = jax.random.normal(next(keys), (B, T1, H), jnp.float32)
    inps = jax.random.normal(next(keys), (B, T2, H), jnp.float32)

    # Key-padding mask (broadcastable to (B, heads, t_q, T1+T2)); mask a few tokens.
    mask_bool = jnp.zeros((B, 1, T), dtype=bool)
    mask_bool = mask_bool.at[1, 0, T - 3:].set(True)
    mask_bool = mask_bool.at[3, 0, T1 - 2:T1].set(True)
    mask = mask_bool.astype(jnp.float32)

    # Per-linear parameters, layout (in, out) == nn.Linear.weight.T
    names_f = ['q_vv', 'k_vv', 'v_vv', 'q_lv', 'k_vl', 'v_vl']   # inputs = feats
    names_i = ['k_lv', 'v_lv', 'q_vl', 'q_ll', 'k_ll', 'v_ll']   # inputs = inps
    p = {}
    for n in names_f + names_i + ['uv', 'ul', 'ffv1', 'ffv2', 'ffl1', 'ffl2']:
        p['w_' + n] = 0.02 * jax.random.normal(next(keys), (H, H), jnp.float32)
        p['b_' + n] = 0.02 * jax.random.normal(next(keys), (H,), jnp.float32)
    for n in ['1v', '2v', '1l', '2l']:
        p['g_' + n] = 1.0 + 0.1 * jax.random.normal(next(keys), (H,), jnp.float32)
        p['be_' + n] = 0.05 * jax.random.normal(next(keys), (H,), jnp.float32)

    # Host-side packing: per-head fused QKV weights with E**-0.25 folded in (the module
    # also scales V), bf16 matmul weights, per-head unify-heads weights.
    scale = float(E) ** (-0.25)

    def pack_qkv(names):
        w = jnp.stack([jnp.concatenate([p['w_' + n][:, h * E:(h + 1) * E] for n in names],
                                       axis=1) for h in range(HEADS)])         # (heads, H, 6E)
        b = jnp.stack([jnp.concatenate([p['b_' + n][h * E:(h + 1) * E] for n in names],
                                       axis=0) for h in range(HEADS)])[:, None, :]
        return (scale * w).astype(jnp.bfloat16), (scale * b).astype(jnp.float32)

    wqf, bqf = pack_qkv(names_f)
    wqi, bqi = pack_qkv(names_i)
    wu = jnp.stack([p['w_uv'].reshape(HEADS, E, H),
                    p['w_ul'].reshape(HEADS, E, H)])              # (2, heads, E, H) f32
    bu = jnp.stack([p['b_uv'], p['b_ul']])[:, None, :]
    wff = jnp.stack([p['w_ffv1'], p['w_ffv2'], p['w_ffl1'], p['w_ffl2']]).astype(jnp.bfloat16)
    bff = jnp.stack([p['b_ffv1'], p['b_ffv2'], p['b_ffl1'], p['b_ffl2']])[:, None, :]
    lng = jnp.stack([p['g_1v'], p['g_2v'], p['g_1l'], p['g_2l']])[:, None, :]
    lnb = jnp.stack([p['be_1v'], p['be_2v'], p['be_1l'], p['be_2l']])[:, None, :]

    block = make_transformer_block(B, T1, T2, H, HEADS, B_TILE)
    feats_out, inps_out = block(feats, inps, mask,
                                wqf, bqf, wqi, bqi, wu, bu, wff, bff, lng, lnb)
    jax.block_until_ready((feats_out, inps_out))

    assert feats_out.shape == (B, T1, H) and inps_out.shape == (B, T2, H)
    assert bool(jnp.all(jnp.isfinite(feats_out))) and bool(jnp.all(jnp.isfinite(inps_out)))

    # Sanity check vs an f32 pure-JAX reference of the same forward (kernel runs its
    # big matmuls with bf16 inputs + approx reciprocal, so the tolerance is coarse).
    ref_f, ref_i = _reference_block(feats, inps, mask_bool, p, HEADS)
    err = max(float(jnp.max(jnp.abs(feats_out - ref_f))),
              float(jnp.max(jnp.abs(inps_out - ref_i))))
    assert err < 0.1, f"kernel deviates from reference: max abs err {err}"
    print("KERNEL_OK")
</pallas_src>

<mosaic_0001>
module attributes {stable_mosaic.version = 11 : i64} {
  func.func @kernel(%arg0: i32, %arg1: memref<64x32xf32, #tpu.memory_space<vmem>>, %arg2: memref<32x32xf32, #tpu.memory_space<vmem>>, %arg3: memref<1x64x96xf32, #tpu.memory_space<vmem>>, %arg4: memref<1x32x96xf32, #tpu.memory_space<vmem>>, %arg5: memref<4x32x48xbf16, #tpu.memory_space<vmem>>, %arg6: memref<4x1x48xf32, #tpu.memory_space<vmem>>, %arg7: memref<4x32x48xbf16, #tpu.memory_space<vmem>>, %arg8: memref<4x1x48xf32, #tpu.memory_space<vmem>>, %arg9: memref<2x4x8x32xf32, #tpu.memory_space<vmem>>, %arg10: memref<2x1x32xf32, #tpu.memory_space<vmem>>, %arg11: memref<4x32x32xbf16, #tpu.memory_space<vmem>>, %arg12: memref<4x1x32xf32, #tpu.memory_space<vmem>>, %arg13: memref<4x1x32xf32, #tpu.memory_space<vmem>>, %arg14: memref<4x1x32xf32, #tpu.memory_space<vmem>>, %arg15: memref<64x32xf32, #tpu.memory_space<vmem>>, %arg16: memref<32x32xf32, #tpu.memory_space<vmem>>) attributes {dimension_semantics = [#tpu.dimension_semantics<parallel>], iteration_bounds = array<i64: 1>, scalar_prefetch = 0 : i64, scratch_operands = 0 : i64, tpu.core_type = #tpu.core_type<tc>, window_params = [{transform_indices = @transform_0, window_bounds = array<i64: 64, 32>}, {transform_indices = @transform_1, window_bounds = array<i64: 32, 32>}, {transform_indices = @transform_2, window_bounds = array<i64: 1, 64, 96>}, {transform_indices = @transform_3, window_bounds = array<i64: 1, 32, 96>}, {pipeline_mode = #tpu.pipeline_mode<synchronous>, transform_indices = @transform_4, window_bounds = array<i64: 4, 32, 48>}, {pipeline_mode = #tpu.pipeline_mode<synchronous>, transform_indices = @transform_5, window_bounds = array<i64: 4, 1, 48>}, {pipeline_mode = #tpu.pipeline_mode<synchronous>, transform_indices = @transform_6, window_bounds = array<i64: 4, 32, 48>}, {pipeline_mode = #tpu.pipeline_mode<synchronous>, transform_indices = @transform_7, window_bounds = array<i64: 4, 1, 48>}, {pipeline_mode = #tpu.pipeline_mode<synchronous>, transform_indices = @transform_8, window_bounds = array<i64: 2, 4, 8, 32>}, {pipeline_mode = #tpu.pipeline_mode<synchronous>, transform_indices = @transform_9, window_bounds = array<i64: 2, 1, 32>}, {pipeline_mode = #tpu.pipeline_mode<synchronous>, transform_indices = @transform_10, window_bounds = array<i64: 4, 32, 32>}, {pipeline_mode = #tpu.pipeline_mode<synchronous>, transform_indices = @transform_11, window_bounds = array<i64: 4, 1, 32>}, {pipeline_mode = #tpu.pipeline_mode<synchronous>, transform_indices = @transform_12, window_bounds = array<i64: 4, 1, 32>}, {pipeline_mode = #tpu.pipeline_mode<synchronous>, transform_indices = @transform_13, window_bounds = array<i64: 4, 1, 32>}, {transform_indices = @transform_14, window_bounds = array<i64: 64, 32>}, {transform_indices = @transform_15, window_bounds = array<i64: 32, 32>}]} {
    %c0 = arith.constant 0 : index
    %c0_0 = arith.constant 0 : index
    %0 = vector.load %arg1[%c0, %c0_0] : memref<64x32xf32, #tpu.memory_space<vmem>>, vector<64x32xf32>
    %c0_1 = arith.constant 0 : index
    %c0_2 = arith.constant 0 : index
    %1 = vector.load %arg2[%c0_1, %c0_2] : memref<32x32xf32, #tpu.memory_space<vmem>>, vector<32x32xf32>
    %2 = arith.truncf %0 : vector<64x32xf32> to vector<64x32xbf16>
    %3 = arith.truncf %1 : vector<32x32xf32> to vector<32x32xbf16>
    %c0_3 = arith.constant 0 : index
    %c0_4 = arith.constant 0 : index
    %c0_5 = arith.constant 0 : index
    %4 = vector.load %arg5[%c0_3, %c0_4, %c0_5] : memref<4x32x48xbf16, #tpu.memory_space<vmem>>, vector<1x32x48xbf16>
    %5 = vector.shape_cast %4 : vector<1x32x48xbf16> to vector<32x48xbf16>
    %cst = arith.constant dense<0.000000e+00> : vector<64x48xf32>
    %6 = tpu.matmul %2, %5, %cst {dimension_numbers = #tpu.dot_dimension_numbers<[1], [0], [0], [1], [0, 0, 1, 1], [], []>} : vector<64x32xbf16>, vector<32x48xbf16>, vector<64x48xf32> -> vector<64x48xf32>
    %c1 = arith.constant 1 : index
    %c0_6 = arith.constant 0 : index
    %c0_7 = arith.constant 0 : index
    %7 = vector.load %arg5[%c1, %c0_6, %c0_7] : memref<4x32x48xbf16, #tpu.memory_space<vmem>>, vector<1x32x48xbf16>
    %8 = vector.shape_cast %7 : vector<1x32x48xbf16> to vector<32x48xbf16>
    %cst_8 = arith.constant dense<0.000000e+00> : vector<64x48xf32>
    %9 = tpu.matmul %2, %8, %cst_8 {dimension_numbers = #tpu.dot_dimension_numbers<[1], [0], [0], [1], [0, 0, 1, 1], [], []>} : vector<64x32xbf16>, vector<32x48xbf16>, vector<64x48xf32> -> vector<64x48xf32>
    %c2 = arith.constant 2 : index
    %c0_9 = arith.constant 0 : index
    %c0_10 = arith.constant 0 : index
    %10 = vector.load %arg5[%c2, %c0_9, %c0_10] : memref<4x32x48xbf16, #tpu.memory_space<vmem>>, vector<1x32x48xbf16>
    %11 = vector.shape_cast %10 : vector<1x32x48xbf16> to vector<32x48xbf16>
    %cst_11 = arith.constant dense<0.000000e+00> : vector<64x48xf32>
    %12 = tpu.matmul %2, %11, %cst_11 {dimension_numbers = #tpu.dot_dimension_numbers<[1], [0], [0], [1], [0, 0, 1, 1], [], []>} : vector<64x32xbf16>, vector<32x48xbf16>, vector<64x48xf32> -> vector<64x48xf32>
    %c3 = arith.constant 3 : index
    %c0_12 = arith.constant 0 : index
    %c0_13 = arith.constant 0 : index
    %13 = vector.load %arg5[%c3, %c0_12, %c0_13] : memref<4x32x48xbf16, #tpu.memory_space<vmem>>, vector<1x32x48xbf16>
    %14 = vector.shape_cast %13 : vector<1x32x48xbf16> to vector<32x48xbf16>
    %cst_14 = arith.constant dense<0.000000e+00> : vector<64x48xf32>
    %15 = tpu.matmul %2, %14, %cst_14 {dimension_numbers = #tpu.dot_dimension_numbers<[1], [0], [0], [1], [0, 0, 1, 1], [], []>} : vector<64x32xbf16>, vector<32x48xbf16>, vector<64x48xf32> -> vector<64x48xf32>
    %16 = vector.shape_cast %6 : vector<64x48xf32> to vector<1x64x48xf32>
    %17 = vector.shape_cast %9 : vector<64x48xf32> to vector<1x64x48xf32>
    %18 = vector.shape_cast %12 : vector<64x48xf32> to vector<1x64x48xf32>
    %19 = vector.shape_cast %15 : vector<64x48xf32> to vector<1x64x48xf32>
    %20 = tpu.concatenate %16, %17, %18, %19 in 0 : vector<1x64x48xf32>, vector<1x64x48xf32>, vector<1x64x48xf32>, vector<1x64x48xf32> -> vector<4x64x48xf32>
    %c0_15 = arith.constant 0 : index
    %c0_16 = arith.constant 0 : index
    %c0_17 = arith.constant 0 : index
    %21 = vector.load %arg6[%c0_15, %c0_16, %c0_17] : memref<4x1x48xf32, #tpu.memory_space<vmem>>, vector<4x1x48xf32>
    %22 = vector.broadcast %21 : vector<4x1x48xf32> to vector<4x64x48xf32>
    %23 = arith.addf %20, %22 : vector<4x64x48xf32>
    %c0_18 = arith.constant 0 : index
    %c0_19 = arith.constant 0 : index
    %c0_20 = arith.constant 0 : index
    %24 = vector.load %arg7[%c0_18, %c0_19, %c0_20] : memref<4x32x48xbf16, #tpu.memory_space<vmem>>, vector<1x32x48xbf16>
    %25 = vector.shape_cast %24 : vector<1x32x48xbf16> to vector<32x48xbf16>
    %cst_21 = arith.constant dense<0.000000e+00> : vector<32x48xf32>
    %26 = tpu.matmul %3, %25, %cst_21 {dimension_numbers = #tpu.dot_dimension_numbers<[1], [0], [0], [1], [0, 0, 1, 1], [], []>} : vector<32x32xbf16>, vector<32x48xbf16>, vector<32x48xf32> -> vector<32x48xf32>
    %c1_22 = arith.constant 1 : index
    %c0_23 = arith.constant 0 : index
    %c0_24 = arith.constant 0 : index
    %27 = vector.load %arg7[%c1_22, %c0_23, %c0_24] : memref<4x32x48xbf16, #tpu.memory_space<vmem>>, vector<1x32x48xbf16>
    %28 = vector.shape_cast %27 : vector<1x32x48xbf16> to vector<32x48xbf16>
    %cst_25 = arith.constant dense<0.000000e+00> : vector<32x48xf32>
    %29 = tpu.matmul %3, %28, %cst_25 {dimension_numbers = #tpu.dot_dimension_numbers<[1], [0], [0], [1], [0, 0, 1, 1], [], []>} : vector<32x32xbf16>, vector<32x48xbf16>, vector<32x48xf32> -> vector<32x48xf32>
    %c2_26 = arith.constant 2 : index
    %c0_27 = arith.constant 0 : index
    %c0_28 = arith.constant 0 : index
    %30 = vector.load %arg7[%c2_26, %c0_27, %c0_28] : memref<4x32x48xbf16, #tpu.memory_space<vmem>>, vector<1x32x48xbf16>
    %31 = vector.shape_cast %30 : vector<1x32x48xbf16> to vector<32x48xbf16>
    %cst_29 = arith.constant dense<0.000000e+00> : vector<32x48xf32>
    %32 = tpu.matmul %3, %31, %cst_29 {dimension_numbers = #tpu.dot_dimension_numbers<[1], [0], [0], [1], [0, 0, 1, 1], [], []>} : vector<32x32xbf16>, vector<32x48xbf16>, vector<32x48xf32> -> vector<32x48xf32>
    %c3_30 = arith.constant 3 : index
    %c0_31 = arith.constant 0 : index
    %c0_32 = arith.constant 0 : index
    %33 = vector.load %arg7[%c3_30, %c0_31, %c0_32] : memref<4x32x48xbf16, #tpu.memory_space<vmem>>, vector<1x32x48xbf16>
    %34 = vector.shape_cast %33 : vector<1x32x48xbf16> to vector<32x48xbf16>
    %cst_33 = arith.constant dense<0.000000e+00> : vector<32x48xf32>
    %35 = tpu.matmul %3, %34, %cst_33 {dimension_numbers = #tpu.dot_dimension_numbers<[1], [0], [0], [1], [0, 0, 1, 1], [], []>} : vector<32x32xbf16>, vector<32x48xbf16>, vector<32x48xf32> -> vector<32x48xf32>
    %36 = vector.shape_cast %26 : vector<32x48xf32> to vector<1x32x48xf32>
    %37 = vector.shape_cast %29 : vector<32x48xf32> to vector<1x32x48xf32>
    %38 = vector.shape_cast %32 : vector<32x48xf32> to vector<1x32x48xf32>
    %39 = vector.shape_cast %35 : vector<32x48xf32> to vector<1x32x48xf32>
    %40 = tpu.concatenate %36, %37, %38, %39 in 0 : vector<1x32x48xf32>, vector<1x32x48xf32>, vector<1x32x48xf32>, vector<1x32x48xf32> -> vector<4x32x48xf32>
    %c0_34 = arith.constant 0 : index
    %c0_35 = arith.constant 0 : index
    %c0_36 = arith.constant 0 : index
    %41 = vector.load %arg8[%c0_34, %c0_35, %c0_36] : memref<4x1x48xf32, #tpu.memory_space<vmem>>, vector<4x1x48xf32>
    %42 = vector.broadcast %41 : vector<4x1x48xf32> to vector<4x32x48xf32>
    %43 = arith.addf %40, %42 : vector<4x32x48xf32>
    %44 = vector.extract_strided_slice %23 {offsets = [0, 0, 0], sizes = [4, 64, 8], strides = [1, 1, 1]} : vector<4x64x48xf32> to vector<4x64x8xf32>
    %45 = vector.extract_strided_slice %23 {offsets = [0, 0, 8], sizes = [4, 64, 8], strides = [1, 1, 1]} : vector<4x64x48xf32> to vector<4x64x8xf32>
    %46 = vector.extract_strided_slice %23 {offsets = [0, 0, 16], sizes = [4, 64, 8], strides = [1, 1, 1]} : vector<4x64x48xf32> to vector<4x64x8xf32>
    %47 = vector.extract_strided_slice %23 {offsets = [0, 0, 24], sizes = [4, 64, 8], strides = [1, 1, 1]} : vector<4x64x48xf32> to vector<4x64x8xf32>
    %48 = vector.extract_strided_slice %23 {offsets = [0, 0, 32], sizes = [4, 64, 8], strides = [1, 1, 1]} : vector<4x64x48xf32> to vector<4x64x8xf32>
    %49 = vector.extract_strided_slice %23 {offsets = [0, 0, 40], sizes = [4, 64, 8], strides = [1, 1, 1]} : vector<4x64x48xf32> to vector<4x64x8xf32>
    %50 = vector.extract_strided_slice %43 {offsets = [0, 0, 0], sizes = [4, 32, 8], strides = [1, 1, 1]} : vector<4x32x48xf32> to vector<4x32x8xf32>
    %51 = vector.extract_strided_slice %43 {offsets = [0, 0, 8], sizes = [4, 32, 8], strides = [1, 1, 1]} : vector<4x32x48xf32> to vector<4x32x8xf32>
    %52 = vector.extract_strided_slice %43 {offsets = [0, 0, 16], sizes = [4, 32, 8], strides = [1, 1, 1]} : vector<4x32x48xf32> to vector<4x32x8xf32>
    %53 = vector.extract_strided_slice %43 {offsets = [0, 0, 24], sizes = [4, 32, 8], strides = [1, 1, 1]} : vector<4x32x48xf32> to vector<4x32x8xf32>
    %54 = vector.extract_strided_slice %43 {offsets = [0, 0, 32], sizes = [4, 32, 8], strides = [1, 1, 1]} : vector<4x32x48xf32> to vector<4x32x8xf32>
    %55 = vector.extract_strided_slice %43 {offsets = [0, 0, 40], sizes = [4, 32, 8], strides = [1, 1, 1]} : vector<4x32x48xf32> to vector<4x32x8xf32>
    %c0_37 = arith.constant 0 : index
    %c0_38 = arith.constant 0 : index
    %c0_39 = arith.constant 0 : index
    %56 = vector.load %arg3[%c0_37, %c0_38, %c0_39] : memref<1x64x96xf32, #tpu.memory_space<vmem>>, vector<1x64x96xf32>
    %57 = vector.shape_cast %56 : vector<1x64x96xf32> to vector<64x96xf32>
    %c0_40 = arith.constant 0 : index
    %c0_41 = arith.constant 0 : index
    %c0_42 = arith.constant 0 : index
    %58 = vector.load %arg4[%c0_40, %c0_41, %c0_42] : memref<1x32x96xf32, #tpu.memory_space<vmem>>, vector<1x32x96xf32>
    %59 = vector.shape_cast %58 : vector<1x32x96xf32> to vector<32x96xf32>
    "tpu.trace_start"() <{level = 10 : i32, message = "hqe,hke->hqk"}> : () -> ()
    %cst_43 = arith.constant dense<0.000000e+00> : vector<4x64x64xf32>
    %60 = tpu.matmul %44, %45, %cst_43 {dimension_numbers = #tpu.dot_dimension_numbers<[2], [2], [1], [1], [0, 0, 0, 1, 1, 1], [0], [0]>} : vector<4x64x8xf32>, vector<4x64x8xf32>, vector<4x64x64xf32> -> vector<4x64x64xf32>
    "tpu.trace_stop"() : () -> ()
    %61 = vector.extract_strided_slice %57 {offsets = [0, 0], sizes = [64, 64], strides = [1, 1]} : vector<64x96xf32> to vector<64x64xf32>
    %62 = vector.shape_cast %61 : vector<64x64xf32> to vector<1x64x64xf32>
    %63 = vector.broadcast %62 : vector<1x64x64xf32> to vector<4x64x64xf32>
    %64 = arith.addf %60, %63 : vector<4x64x64xf32>
    "tpu.trace_start"() <{level = 10 : i32, message = "hqe,hke->hqk"}> : () -> ()
    %cst_44 = arith.constant dense<0.000000e+00> : vector<4x64x32xf32>
    %65 = tpu.matmul %47, %50, %cst_44 {dimension_numbers = #tpu.dot_dimension_numbers<[2], [2], [1], [1], [0, 0, 0, 1, 1, 1], [0], [0]>} : vector<4x64x8xf32>, vector<4x32x8xf32>, vector<4x64x32xf32> -> vector<4x64x32xf32>
    "tpu.trace_stop"() : () -> ()
    %66 = vector.extract_strided_slice %57 {offsets = [0, 64], sizes = [64, 32], strides = [1, 1]} : vector<64x96xf32> to vector<64x32xf32>
    %67 = vector.shape_cast %66 : vector<64x32xf32> to vector<1x64x32xf32>
    %68 = vector.broadcast %67 : vector<1x64x32xf32> to vector<4x64x32xf32>
    %69 = arith.addf %65, %68 : vector<4x64x32xf32>
    %cst_45 = arith.constant dense<0xFF800000> : vector<4x64xf32>
    %70 = vector.multi_reduction <maximumf>, %64, %cst_45 [2] : vector<4x64x64xf32> to vector<4x64xf32>
    %71 = vector.shape_cast %70 : vector<4x64xf32> to vector<4x64x1xf32>
    %cst_46 = arith.constant dense<0xFF800000> : vector<4x64xf32>
    %72 = vector.multi_reduction <maximumf>, %69, %cst_46 [2] : vector<4x64x32xf32> to vector<4x64xf32>
    %73 = vector.shape_cast %72 : vector<4x64xf32> to vector<4x64x1xf32>
    %74 = arith.maximumf %71, %73 : vector<4x64x1xf32>
    %75 = vector.broadcast %74 : vector<4x64x1xf32> to vector<4x64x64xf32>
    %76 = arith.subf %64, %75 : vector<4x64x64xf32>
    %77 = math.exp %76 : vector<4x64x64xf32>
    %78 = vector.broadcast %74 : vector<4x64x1xf32> to vector<4x64x32xf32>
    %79 = arith.subf %69, %78 : vector<4x64x32xf32>
    %80 = math.exp %79 : vector<4x64x32xf32>
    %cst_47 = arith.constant dense<0.000000e+00> : vector<4x64xf32>
    %81 = vector.multi_reduction <add>, %77, %cst_47 [2] : vector<4x64x64xf32> to vector<4x64xf32>
    %82 = vector.shape_cast %81 : vector<4x64xf32> to vector<4x64x1xf32>
    %cst_48 = arith.constant dense<0.000000e+00> : vector<4x64xf32>
    %83 = vector.multi_reduction <add>, %80, %cst_48 [2] : vector<4x64x32xf32> to vector<4x64xf32>
    %84 = vector.shape_cast %83 : vector<4x64xf32> to vector<4x64x1xf32>
    %85 = arith.addf %82, %84 : vector<4x64x1xf32>
    %86 = tpu.reciprocal %85 {approx = true} : vector<4x64x1xf32> -> vector<4x64x1xf32>
    "tpu.trace_start"() <{level = 10 : i32, message = "hqk,hke->hqe"}> : () -> ()
    %cst_49 = arith.constant dense<0.000000e+00> : vector<4x64x8xf32>
    %87 = tpu.matmul %77, %46, %cst_49 {dimension_numbers = #tpu.dot_dimension_numbers<[2], [1], [1], [2], [0, 0, 0, 1, 1, 2], [0], [0]>} : vector<4x64x64xf32>, vector<4x64x8xf32>, vector<4x64x8xf32> -> vector<4x64x8xf32>
    %cst_50 = arith.constant dense<0.000000e+00> : vector<4x64x8xf32>
    %88 = tpu.matmul %80, %51, %cst_50 {dimension_numbers = #tpu.dot_dimension_numbers<[2], [1], [1], [2], [0, 0, 0, 1, 1, 2], [0], [0]>} : vector<4x64x32xf32>, vector<4x32x8xf32>, vector<4x64x8xf32> -> vector<4x64x8xf32>
    "tpu.trace_stop"() : () -> ()
    %89 = arith.addf %87, %88 : vector<4x64x8xf32>
    %90 = vector.broadcast %86 : vector<4x64x1xf32> to vector<4x64x8xf32>
    %91 = arith.mulf %89, %90 : vector<4x64x8xf32>
    "tpu.trace_start"() <{level = 10 : i32, message = "hqe,hke->hqk"}> : () -> ()
    %cst_51 = arith.constant dense<0.000000e+00> : vector<4x32x64xf32>
    %92 = tpu.matmul %52, %48, %cst_51 {dimension_numbers = #tpu.dot_dimension_numbers<[2], [2], [1], [1], [0, 0, 0, 1, 1, 1], [0], [0]>} : vector<4x32x8xf32>, vector<4x64x8xf32>, vector<4x32x64xf32> -> vector<4x32x64xf32>
    "tpu.trace_stop"() : () -> ()
    %93 = vector.extract_strided_slice %59 {offsets = [0, 0], sizes = [32, 64], strides = [1, 1]} : vector<32x96xf32> to vector<32x64xf32>
    %94 = vector.shape_cast %93 : vector<32x64xf32> to vector<1x32x64xf32>
    %95 = vector.broadcast %94 : vector<1x32x64xf32> to vector<4x32x64xf32>
    %96 = arith.addf %92, %95 : vector<4x32x64xf32>
    "tpu.trace_start"() <{level = 10 : i32, message = "hqe,hke->hqk"}> : () -> ()
    %cst_52 = arith.constant dense<0.000000e+00> : vector<4x32x32xf32>
    %97 = tpu.matmul %53, %54, %cst_52 {dimension_numbers = #tpu.dot_dimension_numbers<[2], [2], [1], [1], [0, 0, 0, 1, 1, 1], [0], [0]>} : vector<4x32x8xf32>, vector<4x32x8xf32>, vector<4x32x32xf32> -> vector<4x32x32xf32>
    "tpu.trace_stop"() : () -> ()
    %98 = vector.extract_strided_slice %59 {offsets = [0, 64], sizes = [32, 32], strides = [1, 1]} : vector<32x96xf32> to vector<32x32xf32>
    %99 = vector.shape_cast %98 : vector<32x32xf32> to vector<1x32x32xf32>
    %100 = vector.broadcast %99 : vector<1x32x32xf32> to vector<4x32x32xf32>
    %101 = arith.addf %97, %100 : vector<4x32x32xf32>
    %cst_53 = arith.constant dense<0xFF800000> : vector<4x32xf32>
    %102 = vector.multi_reduction <maximumf>, %96, %cst_53 [2] : vector<4x32x64xf32> to vector<4x32xf32>
    %103 = vector.shape_cast %102 : vector<4x32xf32> to vector<4x32x1xf32>
    %cst_54 = arith.constant dense<0xFF800000> : vector<4x32xf32>
    %104 = vector.multi_reduction <maximumf>, %101, %cst_54 [2] : vector<4x32x32xf32> to vector<4x32xf32>
    %105 = vector.shape_cast %104 : vector<4x32xf32> to vector<4x32x1xf32>
    %106 = arith.maximumf %103, %105 : vector<4x32x1xf32>
    %107 = vector.broadcast %106 : vector<4x32x1xf32> to vector<4x32x64xf32>
    %108 = arith.subf %96, %107 : vector<4x32x64xf32>
    %109 = math.exp %108 : vector<4x32x64xf32>
    %110 = vector.broadcast %106 : vector<4x32x1xf32> to vector<4x32x32xf32>
    %111 = arith.subf %101, %110 : vector<4x32x32xf32>
    %112 = math.exp %111 : vector<4x32x32xf32>
    %cst_55 = arith.constant dense<0.000000e+00> : vector<4x32xf32>
    %113 = vector.multi_reduction <add>, %109, %cst_55 [2] : vector<4x32x64xf32> to vector<4x32xf32>
    %114 = vector.shape_cast %113 : vector<4x32xf32> to vector<4x32x1xf32>
    %cst_56 = arith.constant dense<0.000000e+00> : vector<4x32xf32>
    %115 = vector.multi_reduction <add>, %112, %cst_56 [2] : vector<4x32x32xf32> to vector<4x32xf32>
    %116 = vector.shape_cast %115 : vector<4x32xf32> to vector<4x32x1xf32>
    %117 = arith.addf %114, %116 : vector<4x32x1xf32>
    %118 = tpu.reciprocal %117 {approx = true} : vector<4x32x1xf32> -> vector<4x32x1xf32>
    "tpu.trace_start"() <{level = 10 : i32, message = "hqk,hke->hqe"}> : () -> ()
    %cst_57 = arith.constant dense<0.000000e+00> : vector<4x32x8xf32>
    %119 = tpu.matmul %109, %49, %cst_57 {dimension_numbers = #tpu.dot_dimension_numbers<[2], [1], [1], [2], [0, 0, 0, 1, 1, 2], [0], [0]>} : vector<4x32x64xf32>, vector<4x64x8xf32>, vector<4x32x8xf32> -> vector<4x32x8xf32>
    %cst_58 = arith.constant dense<0.000000e+00> : vector<4x32x8xf32>
    %120 = tpu.matmul %112, %55, %cst_58 {dimension_numbers = #tpu.dot_dimension_numbers<[2], [1], [1], [2], [0, 0, 0, 1, 1, 2], [0], [0]>} : vector<4x32x32xf32>, vector<4x32x8xf32>, vector<4x32x8xf32> -> vector<4x32x8xf32>
    "tpu.trace_stop"() : () -> ()
    %121 = arith.addf %119, %120 : vector<4x32x8xf32>
    %122 = vector.broadcast %118 : vector<4x32x1xf32> to vector<4x32x8xf32>
    %123 = arith.mulf %121, %122 : vector<4x32x8xf32>
    %c0_59 = arith.constant 0 : index
    %c0_60 = arith.constant 0 : index
    %c0_61 = arith.constant 0 : index
    %c0_62 = arith.constant 0 : index
    %124 = vector.load %arg9[%c0_59, %c0_60, %c0_61, %c0_62] : memref<2x4x8x32xf32, #tpu.memory_space<vmem>>, vector<1x4x8x32xf32>
    %125 = vector.shape_cast %124 : vector<1x4x8x32xf32> to vector<4x8x32xf32>
    %c0_63 = arith.constant 0 : index
    %c0_64 = arith.constant 0 : index
    %c0_65 = arith.constant 0 : index
    %126 = vector.load %arg10[%c0_63, %c0_64, %c0_65] : memref<2x1x32xf32, #tpu.memory_space<vmem>>, vector<1x1x32xf32>
    %127 = vector.shape_cast %126 : vector<1x1x32xf32> to vector<1x32xf32>
    "tpu.trace_start"() <{level = 10 : i32, message = "hre,heo->hro"}> : () -> ()
    %cst_66 = arith.constant dense<0.000000e+00> : vector<4x64x32xf32>
    %128 = tpu.matmul %91, %125, %cst_66 {dimension_numbers = #tpu.dot_dimension_numbers<[2], [1], [1], [2], [0, 0, 0, 1, 1, 2], [0], [0]>} : vector<4x64x8xf32>, vector<4x8x32xf32>, vector<4x64x32xf32> -> vector<4x64x32xf32>
    "tpu.trace_stop"() : () -> ()
    %129 = vector.extract_strided_slice %128 {offsets = [0, 0, 0], sizes = [1, 64, 32], strides = [1, 1, 1]} : vector<4x64x32xf32> to vector<1x64x32xf32>
    %130 = vector.shape_cast %129 : vector<1x64x32xf32> to vector<64x32xf32>
    %131 = vector.extract_strided_slice %128 {offsets = [1, 0, 0], sizes = [1, 64, 32], strides = [1, 1, 1]} : vector<4x64x32xf32> to vector<1x64x32xf32>
    %132 = vector.shape_cast %131 : vector<1x64x32xf32> to vector<64x32xf32>
    %133 = arith.addf %130, %132 : vector<64x32xf32>
    %134 = vector.extract_strided_slice %128 {offsets = [2, 0, 0], sizes = [1, 64, 32], strides = [1, 1, 1]} : vector<4x64x32xf32> to vector<1x64x32xf32>
    %135 = vector.shape_cast %134 : vector<1x64x32xf32> to vector<64x32xf32>
    %136 = arith.addf %133, %135 : vector<64x32xf32>
    %137 = vector.extract_strided_slice %128 {offsets = [3, 0, 0], sizes = [1, 64, 32], strides = [1, 1, 1]} : vector<4x64x32xf32> to vector<1x64x32xf32>
    %138 = vector.shape_cast %137 : vector<1x64x32xf32> to vector<64x32xf32>
    %139 = arith.addf %136, %138 : vector<64x32xf32>
    %140 = vector.broadcast %127 : vector<1x32xf32> to vector<64x32xf32>
    %141 = arith.addf %139, %140 : vector<64x32xf32>
    %c1_67 = arith.constant 1 : index
    %c0_68 = arith.constant 0 : index
    %c0_69 = arith.constant 0 : index
    %c0_70 = arith.constant 0 : index
    %142 = vector.load %arg9[%c1_67, %c0_68, %c0_69, %c0_70] : memref<2x4x8x32xf32, #tpu.memory_space<vmem>>, vector<1x4x8x32xf32>
    %143 = vector.shape_cast %142 : vector<1x4x8x32xf32> to vector<4x8x32xf32>
    %c1_71 = arith.constant 1 : index
    %c0_72 = arith.constant 0 : index
    %c0_73 = arith.constant 0 : index
    %144 = vector.load %arg10[%c1_71, %c0_72, %c0_73] : memref<2x1x32xf32, #tpu.memory_space<vmem>>, vector<1x1x32xf32>
    %145 = vector.shape_cast %144 : vector<1x1x32xf32> to vector<1x32xf32>
    "tpu.trace_start"() <{level = 10 : i32, message = "hre,heo->hro"}> : () -> ()
    %cst_74 = arith.constant dense<0.000000e+00> : vector<4x32x32xf32>
    %146 = tpu.matmul %123, %143, %cst_74 {dimension_numbers = #tpu.dot_dimension_numbers<[2], [1], [1], [2], [0, 0, 0, 1, 1, 2], [0], [0]>} : vector<4x32x8xf32>, vector<4x8x32xf32>, vector<4x32x32xf32> -> vector<4x32x32xf32>
    "tpu.trace_stop"() : () -> ()
    %147 = vector.extract_strided_slice %146 {offsets = [0, 0, 0], sizes = [1, 32, 32], strides = [1, 1, 1]} : vector<4x32x32xf32> to vector<1x32x32xf32>
    %148 = vector.shape_cast %147 : vector<1x32x32xf32> to vector<32x32xf32>
    %149 = vector.extract_strided_slice %146 {offsets = [1, 0, 0], sizes = [1, 32, 32], strides = [1, 1, 1]} : vector<4x32x32xf32> to vector<1x32x32xf32>
    %150 = vector.shape_cast %149 : vector<1x32x32xf32> to vector<32x32xf32>
    %151 = arith.addf %148, %150 : vector<32x32xf32>
    %152 = vector.extract_strided_slice %146 {offsets = [2, 0, 0], sizes = [1, 32, 32], strides = [1, 1, 1]} : vector<4x32x32xf32> to vector<1x32x32xf32>
    %153 = vector.shape_cast %152 : vector<1x32x32xf32> to vector<32x32xf32>
    %154 = arith.addf %151, %153 : vector<32x32xf32>
    %155 = vector.extract_strided_slice %146 {offsets = [3, 0, 0], sizes = [1, 32, 32], strides = [1, 1, 1]} : vector<4x32x32xf32> to vector<1x32x32xf32>
    %156 = vector.shape_cast %155 : vector<1x32x32xf32> to vector<32x32xf32>
    %157 = arith.addf %154, %156 : vector<32x32xf32>
    %158 = vector.broadcast %145 : vector<1x32xf32> to vector<32x32xf32>
    %159 = arith.addf %157, %158 : vector<32x32xf32>
    %160 = arith.addf %141, %0 : vector<64x32xf32>
    %c0_75 = arith.constant 0 : index
    %c0_76 = arith.constant 0 : index
    %c0_77 = arith.constant 0 : index
    %161 = vector.load %arg13[%c0_75, %c0_76, %c0_77] : memref<4x1x32xf32, #tpu.memory_space<vmem>>, vector<1x1x32xf32>
    %162 = vector.shape_cast %161 : vector<1x1x32xf32> to vector<1x32xf32>
    %c0_78 = arith.constant 0 : index
    %c0_79 = arith.constant 0 : index
    %c0_80 = arith.constant 0 : index
    %163 = vector.load %arg14[%c0_78, %c0_79, %c0_80] : memref<4x1x32xf32, #tpu.memory_space<vmem>>, vector<1x1x32xf32>
    %164 = vector.shape_cast %163 : vector<1x1x32xf32> to vector<1x32xf32>
    %cst_81 = arith.constant dense<0.000000e+00> : vector<64xf32>
    %165 = vector.multi_reduction <add>, %160, %cst_81 [1] : vector<64x32xf32> to vector<64xf32>
    %166 = vector.shape_cast %165 : vector<64xf32> to vector<64x1xf32>
    %cst_82 = arith.constant 3.200000e+01 : f32
    %167 = vector.broadcast %cst_82 : f32 to vector<64x1xf32>
    %168 = arith.divf %166, %167 : vector<64x1xf32>
    %169 = vector.broadcast %168 : vector<64x1xf32> to vector<64x32xf32>
    %170 = arith.subf %160, %169 : vector<64x32xf32>
    %171 = arith.mulf %170, %170 : vector<64x32xf32>
    %cst_83 = arith.constant dense<0.000000e+00> : vector<64xf32>
    %172 = vector.multi_reduction <add>, %171, %cst_83 [1] : vector<64x32xf32> to vector<64xf32>
    %173 = vector.shape_cast %172 : vector<64xf32> to vector<64x1xf32>
    %cst_84 = arith.constant 3.200000e+01 : f32
    %174 = vector.broadcast %cst_84 : f32 to vector<64x1xf32>
    %175 = arith.divf %173, %174 : vector<64x1xf32>
    %cst_85 = arith.constant 9.99999996E-13 : f32
    %176 = vector.broadcast %cst_85 : f32 to vector<64x1xf32>
    %177 = arith.addf %175, %176 : vector<64x1xf32>
    %178 = math.rsqrt %177 : vector<64x1xf32>
    %179 = vector.broadcast %178 : vector<64x1xf32> to vector<64x32xf32>
    %180 = arith.mulf %170, %179 : vector<64x32xf32>
    %181 = vector.broadcast %162 : vector<1x32xf32> to vector<64x32xf32>
    %182 = arith.mulf %181, %180 : vector<64x32xf32>
    %183 = vector.broadcast %164 : vector<1x32xf32> to vector<64x32xf32>
    %184 = arith.addf %182, %183 : vector<64x32xf32>
    %c0_86 = arith.constant 0 : index
    %c0_87 = arith.constant 0 : index
    %c0_88 = arith.constant 0 : index
    %185 = vector.load %arg11[%c0_86, %c0_87, %c0_88] : memref<4x32x32xbf16, #tpu.memory_space<vmem>>, vector<1x32x32xbf16>
    %186 = vector.shape_cast %185 : vector<1x32x32xbf16> to vector<32x32xbf16>
    %c0_89 = arith.constant 0 : index
    %c0_90 = arith.constant 0 : index
    %c0_91 = arith.constant 0 : index
    %187 = vector.load %arg12[%c0_89, %c0_90, %c0_91] : memref<4x1x32xf32, #tpu.memory_space<vmem>>, vector<1x1x32xf32>
    %188 = vector.shape_cast %187 : vector<1x1x32xf32> to vector<1x32xf32>
    %c1_92 = arith.constant 1 : index
    %c0_93 = arith.constant 0 : index
    %c0_94 = arith.constant 0 : index
    %189 = vector.load %arg11[%c1_92, %c0_93, %c0_94] : memref<4x32x32xbf16, #tpu.memory_space<vmem>>, vector<1x32x32xbf16>
    %190 = vector.shape_cast %189 : vector<1x32x32xbf16> to vector<32x32xbf16>
    %c1_95 = arith.constant 1 : index
    %c0_96 = arith.constant 0 : index
    %c0_97 = arith.constant 0 : index
    %191 = vector.load %arg12[%c1_95, %c0_96, %c0_97] : memref<4x1x32xf32, #tpu.memory_space<vmem>>, vector<1x1x32xf32>
    %192 = vector.shape_cast %191 : vector<1x1x32xf32> to vector<1x32xf32>
    %193 = arith.truncf %184 : vector<64x32xf32> to vector<64x32xbf16>
    %cst_98 = arith.constant dense<0.000000e+00> : vector<64x32xf32>
    %194 = tpu.matmul %193, %186, %cst_98 {dimension_numbers = #tpu.dot_dimension_numbers<[1], [0], [0], [1], [0, 0, 1, 1], [], []>} : vector<64x32xbf16>, vector<32x32xbf16>, vector<64x32xf32> -> vector<64x32xf32>
    %195 = vector.broadcast %188 : vector<1x32xf32> to vector<64x32xf32>
    %196 = arith.addf %194, %195 : vector<64x32xf32>
    %cst_99 = arith.constant 5.000000e-01 : f32
    %197 = vector.broadcast %cst_99 : f32 to vector<64x32xf32>
    %198 = arith.mulf %197, %196 : vector<64x32xf32>
    %cst_100 = arith.constant 4.471500e-02 : f32
    %199 = vector.broadcast %cst_100 : f32 to vector<64x32xf32>
    %200 = arith.mulf %199, %196 : vector<64x32xf32>
    %201 = arith.mulf %200, %196 : vector<64x32xf32>
    %202 = arith.mulf %201, %196 : vector<64x32xf32>
    %203 = arith.addf %196, %202 : vector<64x32xf32>
    %cst_101 = arith.constant 0.797884583 : f32
    %204 = vector.broadcast %cst_101 : f32 to vector<64x32xf32>
    %205 = arith.mulf %204, %203 : vector<64x32xf32>
    %206 = math.tanh %205 : vector<64x32xf32>
    %cst_102 = arith.constant 1.000000e+00 : f32
    %207 = vector.broadcast %cst_102 : f32 to vector<64x32xf32>
    %208 = arith.addf %207, %206 : vector<64x32xf32>
    %209 = arith.mulf %198, %208 : vector<64x32xf32>
    %210 = arith.truncf %209 : vector<64x32xf32> to vector<64x32xbf16>
    %cst_103 = arith.constant dense<0.000000e+00> : vector<64x32xf32>
    %211 = tpu.matmul %210, %190, %cst_103 {dimension_numbers = #tpu.dot_dimension_numbers<[1], [0], [0], [1], [0, 0, 1, 1], [], []>} : vector<64x32xbf16>, vector<32x32xbf16>, vector<64x32xf32> -> vector<64x32xf32>
    %212 = vector.broadcast %192 : vector<1x32xf32> to vector<64x32xf32>
    %213 = arith.addf %211, %212 : vector<64x32xf32>
    %214 = arith.addf %213, %184 : vector<64x32xf32>
    %c1_104 = arith.constant 1 : index
    %c0_105 = arith.constant 0 : index
    %c0_106 = arith.constant 0 : index
    %215 = vector.load %arg13[%c1_104, %c0_105, %c0_106] : memref<4x1x32xf32, #tpu.memory_space<vmem>>, vector<1x1x32xf32>
    %216 = vector.shape_cast %215 : vector<1x1x32xf32> to vector<1x32xf32>
    %c1_107 = arith.constant 1 : index
    %c0_108 = arith.constant 0 : index
    %c0_109 = arith.constant 0 : index
    %217 = vector.load %arg14[%c1_107, %c0_108, %c0_109] : memref<4x1x32xf32, #tpu.memory_space<vmem>>, vector<1x1x32xf32>
    %218 = vector.shape_cast %217 : vector<1x1x32xf32> to vector<1x32xf32>
    %cst_110 = arith.constant dense<0.000000e+00> : vector<64xf32>
    %219 = vector.multi_reduction <add>, %214, %cst_110 [1] : vector<64x32xf32> to vector<64xf32>
    %220 = vector.shape_cast %219 : vector<64xf32> to vector<64x1xf32>
    %cst_111 = arith.constant 3.200000e+01 : f32
    %221 = vector.broadcast %cst_111 : f32 to vector<64x1xf32>
    %222 = arith.divf %220, %221 : vector<64x1xf32>
    %223 = vector.broadcast %222 : vector<64x1xf32> to vector<64x32xf32>
    %224 = arith.subf %214, %223 : vector<64x32xf32>
    %225 = arith.mulf %224, %224 : vector<64x32xf32>
    %cst_112 = arith.constant dense<0.000000e+00> : vector<64xf32>
    %226 = vector.multi_reduction <add>, %225, %cst_112 [1] : vector<64x32xf32> to vector<64xf32>
    %227 = vector.shape_cast %226 : vector<64xf32> to vector<64x1xf32>
    %cst_113 = arith.constant 3.200000e+01 : f32
    %228 = vector.broadcast %cst_113 : f32 to vector<64x1xf32>
    %229 = arith.divf %227, %228 : vector<64x1xf32>
    %cst_114 = arith.constant 9.99999996E-13 : f32
    %230 = vector.broadcast %cst_114 : f32 to vector<64x1xf32>
    %231 = arith.addf %229, %230 : vector<64x1xf32>
    %232 = math.rsqrt %231 : vector<64x1xf32>
    %233 = vector.broadcast %232 : vector<64x1xf32> to vector<64x32xf32>
    %234 = arith.mulf %224, %233 : vector<64x32xf32>
    %235 = vector.broadcast %216 : vector<1x32xf32> to vector<64x32xf32>
    %236 = arith.mulf %235, %234 : vector<64x32xf32>
    %237 = vector.broadcast %218 : vector<1x32xf32> to vector<64x32xf32>
    %238 = arith.addf %236, %237 : vector<64x32xf32>
    %c0_115 = arith.constant 0 : index
    %c0_116 = arith.constant 0 : index
    %239 = vector.load %arg15[%c0_115, %c0_116] : memref<64x32xf32, #tpu.memory_space<vmem>>, vector<64x32xf32>
    tpu.vector_store %arg15[%c0_115, %c0_116], %238 {strides = array<i32>} : memref<64x32xf32, #tpu.memory_space<vmem>>, vector<64x32xf32>,
    %240 = arith.addf %159, %1 : vector<32x32xf32>
    %c2_117 = arith.constant 2 : index
    %c0_118 = arith.constant 0 : index
    %c0_119 = arith.constant 0 : index
    %241 = vector.load %arg13[%c2_117, %c0_118, %c0_119] : memref<4x1x32xf32, #tpu.memory_space<vmem>>, vector<1x1x32xf32>
    %242 = vector.shape_cast %241 : vector<1x1x32xf32> to vector<1x32xf32>
    %c2_120 = arith.constant 2 : index
    %c0_121 = arith.constant 0 : index
    %c0_122 = arith.constant 0 : index
    %243 = vector.load %arg14[%c2_120, %c0_121, %c0_122] : memref<4x1x32xf32, #tpu.memory_space<vmem>>, vector<1x1x32xf32>
    %244 = vector.shape_cast %243 : vector<1x1x32xf32> to vector<1x32xf32>
    %cst_123 = arith.constant dense<0.000000e+00> : vector<32xf32>
    %245 = vector.multi_reduction <add>, %240, %cst_123 [1] : vector<32x32xf32> to vector<32xf32>
    %246 = vector.shape_cast %245 : vector<32xf32> to vector<32x1xf32>
    %cst_124 = arith.constant 3.200000e+01 : f32
    %247 = vector.broadcast %cst_124 : f32 to vector<32x1xf32>
    %248 = arith.divf %246, %247 : vector<32x1xf32>
    %249 = vector.broadcast %248 : vector<32x1xf32> to vector<32x32xf32>
    %250 = arith.subf %240, %249 : vector<32x32xf32>
    %251 = arith.mulf %250, %250 : vector<32x32xf32>
    %cst_125 = arith.constant dense<0.000000e+00> : vector<32xf32>
    %252 = vector.multi_reduction <add>, %251, %cst_125 [1] : vector<32x32xf32> to vector<32xf32>
    %253 = vector.shape_cast %252 : vector<32xf32> to vector<32x1xf32>
    %cst_126 = arith.constant 3.200000e+01 : f32
    %254 = vector.broadcast %cst_126 : f32 to vector<32x1xf32>
    %255 = arith.divf %253, %254 : vector<32x1xf32>
    %cst_127 = arith.constant 9.99999996E-13 : f32
    %256 = vector.broadcast %cst_127 : f32 to vector<32x1xf32>
    %257 = arith.addf %255, %256 : vector<32x1xf32>
    %258 = math.rsqrt %257 : vector<32x1xf32>
    %259 = vector.broadcast %258 : vector<32x1xf32> to vector<32x32xf32>
    %260 = arith.mulf %250, %259 : vector<32x32xf32>
    %261 = vector.broadcast %242 : vector<1x32xf32> to vector<32x32xf32>
    %262 = arith.mulf %261, %260 : vector<32x32xf32>
    %263 = vector.broadcast %244 : vector<1x32xf32> to vector<32x32xf32>
    %264 = arith.addf %262, %263 : vector<32x32xf32>
    %c2_128 = arith.constant 2 : index
    %c0_129 = arith.constant 0 : index
    %c0_130 = arith.constant 0 : index
    %265 = vector.load %arg11[%c2_128, %c0_129, %c0_130] : memref<4x32x32xbf16, #tpu.memory_space<vmem>>, vector<1x32x32xbf16>
    %266 = vector.shape_cast %265 : vector<1x32x32xbf16> to vector<32x32xbf16>
    %c2_131 = arith.constant 2 : index
    %c0_132 = arith.constant 0 : index
    %c0_133 = arith.constant 0 : index
    %267 = vector.load %arg12[%c2_131, %c0_132, %c0_133] : memref<4x1x32xf32, #tpu.memory_space<vmem>>, vector<1x1x32xf32>
    %268 = vector.shape_cast %267 : vector<1x1x32xf32> to vector<1x32xf32>
    %c3_134 = arith.constant 3 : index
    %c0_135 = arith.constant 0 : index
    %c0_136 = arith.constant 0 : index
    %269 = vector.load %arg11[%c3_134, %c0_135, %c0_136] : memref<4x32x32xbf16, #tpu.memory_space<vmem>>, vector<1x32x32xbf16>
    %270 = vector.shape_cast %269 : vector<1x32x32xbf16> to vector<32x32xbf16>
    %c3_137 = arith.constant 3 : index
    %c0_138 = arith.constant 0 : index
    %c0_139 = arith.constant 0 : index
    %271 = vector.load %arg12[%c3_137, %c0_138, %c0_139] : memref<4x1x32xf32, #tpu.memory_space<vmem>>, vector<1x1x32xf32>
    %272 = vector.shape_cast %271 : vector<1x1x32xf32> to vector<1x32xf32>
    %273 = arith.truncf %264 : vector<32x32xf32> to vector<32x32xbf16>
    %cst_140 = arith.constant dense<0.000000e+00> : vector<32x32xf32>
    %274 = tpu.matmul %273, %266, %cst_140 {dimension_numbers = #tpu.dot_dimension_numbers<[1], [0], [0], [1], [0, 0, 1, 1], [], []>} : vector<32x32xbf16>, vector<32x32xbf16>, vector<32x32xf32> -> vector<32x32xf32>
    %275 = vector.broadcast %268 : vector<1x32xf32> to vector<32x32xf32>
    %276 = arith.addf %274, %275 : vector<32x32xf32>
    %cst_141 = arith.constant 5.000000e-01 : f32
    %277 = vector.broadcast %cst_141 : f32 to vector<32x32xf32>
    %278 = arith.mulf %277, %276 : vector<32x32xf32>
    %cst_142 = arith.constant 4.471500e-02 : f32
    %279 = vector.broadcast %cst_142 : f32 to vector<32x32xf32>
    %280 = arith.mulf %279, %276 : vector<32x32xf32>
    %281 = arith.mulf %280, %276 : vector<32x32xf32>
    %282 = arith.mulf %281, %276 : vector<32x32xf32>
    %283 = arith.addf %276, %282 : vector<32x32xf32>
    %cst_143 = arith.constant 0.797884583 : f32
    %284 = vector.broadcast %cst_143 : f32 to vector<32x32xf32>
    %285 = arith.mulf %284, %283 : vector<32x32xf32>
    %286 = math.tanh %285 : vector<32x32xf32>
    %cst_144 = arith.constant 1.000000e+00 : f32
    %287 = vector.broadcast %cst_144 : f32 to vector<32x32xf32>
    %288 = arith.addf %287, %286 : vector<32x32xf32>
    %289 = arith.mulf %278, %288 : vector<32x32xf32>
    %290 = arith.truncf %289 : vector<32x32xf32> to vector<32x32xbf16>
    %cst_145 = arith.constant dense<0.000000e+00> : vector<32x32xf32>
    %291 = tpu.matmul %290, %270, %cst_145 {dimension_numbers = #tpu.dot_dimension_numbers<[1], [0], [0], [1], [0, 0, 1, 1], [], []>} : vector<32x32xbf16>, vector<32x32xbf16>, vector<32x32xf32> -> vector<32x32xf32>
    %292 = vector.broadcast %272 : vector<1x32xf32> to vector<32x32xf32>
    %293 = arith.addf %291, %292 : vector<32x32xf32>
    %294 = arith.addf %293, %264 : vector<32x32xf32>
    %c3_146 = arith.constant 3 : index
    %c0_147 = arith.constant 0 : index
    %c0_148 = arith.constant 0 : index
    %295 = vector.load %arg13[%c3_146, %c0_147, %c0_148] : memref<4x1x32xf32, #tpu.memory_space<vmem>>, vector<1x1x32xf32>
    %296 = vector.shape_cast %295 : vector<1x1x32xf32> to vector<1x32xf32>
    %c3_149 = arith.constant 3 : index
    %c0_150 = arith.constant 0 : index
    %c0_151 = arith.constant 0 : index
    %297 = vector.load %arg14[%c3_149, %c0_150, %c0_151] : memref<4x1x32xf32, #tpu.memory_space<vmem>>, vector<1x1x32xf32>
    %298 = vector.shape_cast %297 : vector<1x1x32xf32> to vector<1x32xf32>
    %cst_152 = arith.constant dense<0.000000e+00> : vector<32xf32>
    %299 = vector.multi_reduction <add>, %294, %cst_152 [1] : vector<32x32xf32> to vector<32xf32>
    %300 = vector.shape_cast %299 : vector<32xf32> to vector<32x1xf32>
    %cst_153 = arith.constant 3.200000e+01 : f32
    %301 = vector.broadcast %cst_153 : f32 to vector<32x1xf32>
    %302 = arith.divf %300, %301 : vector<32x1xf32>
    %303 = vector.broadcast %302 : vector<32x1xf32> to vector<32x32xf32>
    %304 = arith.subf %294, %303 : vector<32x32xf32>
    %305 = arith.mulf %304, %304 : vector<32x32xf32>
    %cst_154 = arith.constant dense<0.000000e+00> : vector<32xf32>
    %306 = vector.multi_reduction <add>, %305, %cst_154 [1] : vector<32x32xf32> to vector<32xf32>
    %307 = vector.shape_cast %306 : vector<32xf32> to vector<32x1xf32>
    %cst_155 = arith.constant 3.200000e+01 : f32
    %308 = vector.broadcast %cst_155 : f32 to vector<32x1xf32>
    %309 = arith.divf %307, %308 : vector<32x1xf32>
    %cst_156 = arith.constant 9.99999996E-13 : f32
    %310 = vector.broadcast %cst_156 : f32 to vector<32x1xf32>
    %311 = arith.addf %309, %310 : vector<32x1xf32>
    %312 = math.rsqrt %311 : vector<32x1xf32>
    %313 = vector.broadcast %312 : vector<32x1xf32> to vector<32x32xf32>
    %314 = arith.mulf %304, %313 : vector<32x32xf32>
    %315 = vector.broadcast %296 : vector<1x32xf32> to vector<32x32xf32>
    %316 = arith.mulf %315, %314 : vector<32x32xf32>
    %317 = vector.broadcast %298 : vector<1x32xf32> to vector<32x32xf32>
    %318 = arith.addf %316, %317 : vector<32x32xf32>
    %c0_157 = arith.constant 0 : index
    %c0_158 = arith.constant 0 : index
    %319 = vector.load %arg16[%c0_157, %c0_158] : memref<32x32xf32, #tpu.memory_space<vmem>>, vector<32x32xf32>
    tpu.vector_store %arg16[%c0_157, %c0_158], %318 {strides = array<i32>} : memref<32x32xf32, #tpu.memory_space<vmem>>, vector<32x32xf32>,
    return
  }
  func.func @transform_0(%arg0: i32) -> (i32, i32) {
    %c0_i32 = arith.constant 0 : i32
    %c0_i32_0 = arith.constant 0 : i32
    return %arg0, %c0_i32 : i32, i32
  }
  func.func @transform_1(%arg0: i32) -> (i32, i32) {
    %c0_i32 = arith.constant 0 : i32
    %c0_i32_0 = arith.constant 0 : i32
    return %arg0, %c0_i32 : i32, i32
  }
  func.func @transform_2(%arg0: i32) -> (i32, i32, i32) {
    %c0_i32 = arith.constant 0 : i32
    %c0_i32_0 = arith.constant 0 : i32
    %c0_i32_1 = arith.constant 0 : i32
    return %arg0, %c0_i32, %c0_i32_0 : i32, i32, i32
  }
  func.func @transform_3(%arg0: i32) -> (i32, i32, i32) {
    %c0_i32 = arith.constant 0 : i32
    %c0_i32_0 = arith.constant 0 : i32
    %c0_i32_1 = arith.constant 0 : i32
    return %arg0, %c0_i32, %c0_i32_0 : i32, i32, i32
  }
  func.func @transform_4(%arg0: i32) -> (i32, i32, i32) {
    %c0_i32 = arith.constant 0 : i32
    %c0_i32_0 = arith.constant 0 : i32
    %c0_i32_1 = arith.constant 0 : i32
    %c0_i32_2 = arith.constant 0 : i32
    return %c0_i32, %c0_i32_0, %c0_i32_1 : i32, i32, i32
  }
  func.func @transform_5(%arg0: i32) -> (i32, i32, i32) {
    %c0_i32 = arith.constant 0 : i32
    %c0_i32_0 = arith.constant 0 : i32
    %c0_i32_1 = arith.constant 0 : i32
    %c0_i32_2 = arith.constant 0 : i32
    return %c0_i32, %c0_i32_0, %c0_i32_1 : i32, i32, i32
  }
  func.func @transform_6(%arg0: i32) -> (i32, i32, i32) {
    %c0_i32 = arith.constant 0 : i32
    %c0_i32_0 = arith.constant 0 : i32
    %c0_i32_1 = arith.constant 0 : i32
    %c0_i32_2 = arith.constant 0 : i32
    return %c0_i32, %c0_i32_0, %c0_i32_1 : i32, i32, i32
  }
  func.func @transform_7(%arg0: i32) -> (i32, i32, i32) {
    %c0_i32 = arith.constant 0 : i32
    %c0_i32_0 = arith.constant 0 : i32
    %c0_i32_1 = arith.constant 0 : i32
    %c0_i32_2 = arith.constant 0 : i32
    return %c0_i32, %c0_i32_0, %c0_i32_1 : i32, i32, i32
  }
  func.func @transform_8(%arg0: i32) -> (i32, i32, i32, i32) {
    %c0_i32 = arith.constant 0 : i32
    %c0_i32_0 = arith.constant 0 : i32
    %c0_i32_1 = arith.constant 0 : i32
    %c0_i32_2 = arith.constant 0 : i32
    %c0_i32_3 = arith.constant 0 : i32
    return %c0_i32, %c0_i32_0, %c0_i32_1, %c0_i32_2 : i32, i32, i32, i32
  }
  func.func @transform_9(%arg0: i32) -> (i32, i32, i32) {
    %c0_i32 = arith.constant 0 : i32
    %c0_i32_0 = arith.constant 0 : i32
    %c0_i32_1 = arith.constant 0 : i32
    %c0_i32_2 = arith.constant 0 : i32
    return %c0_i32, %c0_i32_0, %c0_i32_1 : i32, i32, i32
  }
  func.func @transform_10(%arg0: i32) -> (i32, i32, i32) {
    %c0_i32 = arith.constant 0 : i32
    %c0_i32_0 = arith.constant 0 : i32
    %c0_i32_1 = arith.constant 0 : i32
    %c0_i32_2 = arith.constant 0 : i32
    return %c0_i32, %c0_i32_0, %c0_i32_1 : i32, i32, i32
  }
  func.func @transform_11(%arg0: i32) -> (i32, i32, i32) {
    %c0_i32 = arith.constant 0 : i32
    %c0_i32_0 = arith.constant 0 : i32
    %c0_i32_1 = arith.constant 0 : i32
    %c0_i32_2 = arith.constant 0 : i32
    return %c0_i32, %c0_i32_0, %c0_i32_1 : i32, i32, i32
  }
  func.func @transform_12(%arg0: i32) -> (i32, i32, i32) {
    %c0_i32 = arith.constant 0 : i32
    %c0_i32_0 = arith.constant 0 : i32
    %c0_i32_1 = arith.constant 0 : i32
    %c0_i32_2 = arith.constant 0 : i32
    return %c0_i32, %c0_i32_0, %c0_i32_1 : i32, i32, i32
  }
  func.func @transform_13(%arg0: i32) -> (i32, i32, i32) {
    %c0_i32 = arith.constant 0 : i32
    %c0_i32_0 = arith.constant 0 : i32
    %c0_i32_1 = arith.constant 0 : i32
    %c0_i32_2 = arith.constant 0 : i32
    return %c0_i32, %c0_i32_0, %c0_i32_1 : i32, i32, i32
  }
  func.func @transform_14(%arg0: i32) -> (i32, i32) {
    %c0_i32 = arith.constant 0 : i32
    %c0_i32_0 = arith.constant 0 : i32
    return %arg0, %c0_i32 : i32, i32
  }
  func.func @transform_15(%arg0: i32) -> (i32, i32) {
    %c0_i32 = arith.constant 0 : i32
    %c0_i32_0 = arith.constant 0 : i32
    return %arg0, %c0_i32 : i32, i32
  }
}

</mosaic_0001>

<bundles_post_ra>
// kernel: apply.1
= control target key start
LH: loop header
LB: loop body
LE: loop exit
PB: predicated region body
PF: predicated region fallthrough
CT: control target
= control target key end

     0   :  { %21 = vsyncpa [#allocation3], 0  ;;  %vm86_vm0 = vcmask 261120   ;;  %s15212_s0 = inlined_call_operand.vmem [shape: f32[64,32], index: 0, kind: input, shape index: {}]   ;;  %s15213_s1 = inlined_call_operand.vmem [shape: f32[32,32], index: 1, kind: input, shape index: {}]   ;;  %s15214_s2 = inlined_call_operand.vmem [shape: f32[1,64,96], index: 2, kind: input, shape index: {}]   ;;  %s15215_s3 = inlined_call_operand.vmem [shape: f32[1,32,96], index: 3, kind: input, shape index: {}]   ;;  %s15216_s4 = inlined_call_operand.vmem [shape: bf16[4,32,48], index: 4, kind: input, shape index: {}]   ;;  %s15217_s5 = inlined_call_operand.vmem [shape: f32[4,1,48], index: 5, kind: input, shape index: {}]   ;;  %s15218_s6 = inlined_call_operand.vmem [shape: bf16[4,32,48], index: 6, kind: input, shape index: {}]   ;;  %s15219_s7 = inlined_call_operand.vmem [shape: f32[4,1,48], index: 7, kind: input, shape index: {}]   ;;  %s15220_s8 = inlined_call_operand.vmem [shape: f32[2,4,8,32], index: 8, kind: input, shape index: {}]   ;;  %s15221_s9 = inlined_call_operand.vmem [shape: f32[2,1,32], index: 9, kind: input, shape index: {}]   ;;  %s15222_s10 = inlined_call_operand.vmem [shape: bf16[4,32,32], index: 10, kind: input, shape index: {}]   ;;  %s15223_s11 = inlined_call_operand.vmem [shape: f32[4,1,32], index: 11, kind: input, shape index: {}]   ;;  %s15224_s12 = inlined_call_operand.vmem [shape: f32[4,1,32], index: 12, kind: input, shape index: {}]   ;;  %s15225_s13 = inlined_call_operand.vmem [shape: f32[4,1,32], index: 13, kind: input, shape index: {}]   ;;  %s15226_s14 = inlined_call_operand.hbm [shape: f32[64,32], index: 14, kind: output, shape index: {0}]   ;;  %s15227_s15 = inlined_call_operand.hbm [shape: f32[32,32], index: 15, kind: output, shape index: {1}]  }
   0x1   :  { %v11048_v0 = vld [vmem:[%s15216_s4] sm:$0xff]   ;;  %v11049_v1 = vld [vmem:[%s15216_s4 + $0x10] sm:$0xff]   ;;  %v11050_v2 = vld [vmem:[%s15216_s4 + $0x8] sm:$0xff]  }
   0x2   :  { %9154 = vmatprep.subr.bf16.mxu0 %v11048_v0  ;;  %9166 = vmatprep.subr.bf16.mxu1 %v11049_v1  ;;  %v11051_v3 = vld [vmem:[%s15216_s4 + $0x18] sm:$0xff]   ;;  %v52_v4 = vld [vmem:[%s15212_s0] sm:$0xff]  ;;  %v53_v5 = vld [vmem:[%s15212_s0 + $0x8] sm:$0xff] }
   0x3   :  { %9155 = vmatpush3.bf16.msra.mxu0 %v11048_v0  ;;  %9167 = vmatpush3.bf16.msra.mxu1 %v11049_v1  ;;  %v54_v6 = vld [vmem:[%s15212_s0 + $0x10] sm:$0xff]  ;;  %v64_v7 = vpack.c.bf16 %v53_v5, %v52_v4  ;;  %v55_v8 = vld [vmem:[%s15212_s0 + $0x18] sm:$0xff]  ;;  %v56_v9 = vld [vmem:[%s15212_s0 + $0x20] sm:$0xff] }
   0x4   :  { %9156 = vmatprep.subr.bf16.mxu0 %v11050_v2  ;;  %9168 = vmatprep.subr.bf16.mxu1 %v11051_v3  ;;  %v57_v10 = vld [vmem:[%s15212_s0 + $0x28] sm:$0xff]  ;;  %v65_v11 = vpack.c.bf16 %v55_v8, %v54_v6  ;;  %v11052_v13 = vld [vmem:[%s15216_s4 + $0x20] sm:$0xff]   ;;  %v58_v15 = vld [vmem:[%s15212_s0 + $0x30] sm:$0xff] }
   0x5   :  { %9158 = vmatprep.mubr.msk.bf16.mxu0 %vm86_vm0, %v64_v7  ;;  %v66_v12 = vpack.c.bf16 %v57_v10, %v56_v9  ;;  %9170 = vmatprep.mubr.msk.bf16.mxu1 %vm86_vm0, %v64_v7  ;;  %v11053_v14 = vld [vmem:[%s15216_s4 + $0x28] sm:$0xff]   ;;  %v11054_v16 = vld [vmem:[%s15216_s4 + $0x30] sm:$0xff]   ;;  %v59_v17 = vld [vmem:[%s15212_s0 + $0x38] sm:$0xff] }
   0x6   :  { %v11055_v18 = vld [vmem:[%s15216_s4 + $0x38] sm:$0xff]   ;;  %v11056_v19 = vld [vmem:[%s15218_s6] sm:$0xff]   ;;  %v67_v20 = vpack.c.bf16 %v59_v17, %v58_v15  ;;  %v11057_v21 = vld [vmem:[%s15218_s6 + $0x10] sm:$0xff]  }
   0x7   :  { %9157 = vmatpush3.bf16.msra.mxu0 %v11050_v2  ;;  %9169 = vmatpush3.bf16.msra.mxu1 %v11051_v3  ;;  %v11058_v22 = vld [vmem:[%s15218_s6 + $0x8] sm:$0xff]  }
   0x8   :  { %9178 = vmatprep.subr.bf16.mxu0 %v11052_v13  ;;  %9190 = vmatprep.subr.bf16.mxu1 %v11054_v16 }
   0xa   :  { %9159 = vmatmul.mubr.msk.bf16.vlgmr.msra.gmra.mrb[0].mxu0 %vm86_vm0, %v65_v11  ;;  %9171 = vmatmul.mubr.msk.bf16.vlgmr.msra.gmra.mrb[0].mxu1 %vm86_vm0, %v65_v11 }
   0xb   :  { %9162 = vmatprep.mubr.msk.bf16.mxu0 %vm86_vm0, %v66_v12  ;;  %9179 = vmatpush3.bf16.msra.mxu0 %v11052_v13 }
   0xc   :  { %9174 = vmatprep.mubr.msk.bf16.mxu1 %vm86_vm0, %v66_v12  ;;  %9180 = vmatprep.subr.bf16.mxu0 %v11053_v14 }
   0xd   :  { %9191 = vmatpush3.bf16.msra.mxu1 %v11054_v16 }
   0xe   :  { %9192 = vmatprep.subr.bf16.mxu1 %v11055_v18 }
   0xf   :  { %9181 = vmatpush3.bf16.msra.mxu0 %v11053_v14 }
  0x10   :  { %9202 = vmatprep.subr.bf16.mxu0 %v11056_v19 }
  0x11   :  { %9193 = vmatpush3.bf16.msra.mxu1 %v11055_v18 }
  0x12   :  { %9163 = vmatmul.mubr.msk.bf16.gmra.mrb[4].mxu0 %vm86_vm0, %v67_v20  ;;  %9175 = vmatmul.mubr.msk.bf16.gmra.mrb[4].mxu1 %vm86_vm0, %v67_v20 }
  0x13   :  { %9182 = vmatprep.mubr.msk.bf16.mxu0 %vm86_vm0, %v64_v7  ;;  %9194 = vmatprep.mubr.msk.bf16.mxu1 %vm86_vm0, %v64_v7 }
  0x14   :  { %9210 = vmatprep.subr.bf16.mxu1 %v11057_v21 }
  0x15   :  { %22 = vsyncpa [#allocation5], 0  ;;  %v11059_v23 = vld [vmem:[%s15218_s6 + $0x18] sm:$0xff]   ;;  %v60_v24 = vld [vmem:[%s15213_s1] sm:$0xff]  ;;  %vm819_vm1 = vcmask 64512   ;;  %s11494_s30 = smov 120  }
  0x16   :  { %v61_v25 = vld [vmem:[%s15213_s1 + $0x8] sm:$0xff]  ;;  %v11060_v26 = vld [vmem:[%s15218_s6 + $0x20] sm:$0xff]   ;;  %v11061_v27 = vld [vmem:[%s15218_s6 + $0x30] sm:$0xff]   ;;  %s11496_s22 = smov 64   ;;  %s11497_s21 = smov 112   ;;  %vm2068_vm3 = vcmask 523264  }
  0x17   :  { %v68_v28 = vpack.c.bf16 %v61_v25, %v60_v24  ;;  %v62_v29 = vld [vmem:[%s15213_s1 + $0x10] sm:$0xff]  ;;  %v63_v30 = vld [vmem:[%s15213_s1 + $0x18] sm:$0xff]  ;;  %v11062_v32 = vld [vmem:[%s15218_s6 + $0x28] sm:$0xff]   ;;  %s11499_s17 = smov 88  }
  0x18   :  { %v69_v31 = vpack.c.bf16 %v63_v30, %v62_v29  ;;  %v11063_v33 = vld [vmem:[%s15218_s6 + $0x38] sm:$0xff]   ;;  %v8222_v34 = vld [vmem:[%s15217_s5] ss:$0 sm:$0xff]  ;;  %v8223_v36 = vld [vmem:[%s15217_s5 + $0x1] ss:$0 sm:$0xff]  ;;  %s11500_s6 = smov [#allocation2]  }
  0x19   :  { %v8224_v9 = vld [vmem:[%s15217_s5 + $0x2] ss:$0 sm:$0xff]  ;;  %v8225_v15 = vld [vmem:[%s15217_s5 + $0x3] ss:$0 sm:$0xff]  ;;  %s11495_s5 = smov 104   ;;  %vm12028_vm2 = vmpackc.low %vm819_vm1, %vm819_vm1 }
  0x1a   :  { %9183 = vmatmul.mubr.msk.bf16.vlgmr.msra.gmra.mrb[8].mxu0 %vm86_vm0, %v65_v11  ;;  %9195 = vmatmul.mubr.msk.bf16.vlgmr.msra.gmra.mrb[8].mxu1 %vm86_vm0, %v65_v11 }
  0x1b   :  { %9186 = vmatprep.mubr.msk.bf16.mxu0 %vm86_vm0, %v66_v12  ;;  %9198 = vmatprep.mubr.msk.bf16.mxu1 %vm86_vm0, %v66_v12 }
  0x1c   :  { %9203 = vmatpush3.bf16.msra.mxu0 %v11056_v19  ;;  %9211 = vmatpush3.bf16.msra.mxu1 %v11057_v21 }
  0x1d   :  { %9204 = vmatprep.subr.bf16.mxu0 %v11058_v22  ;;  %9212 = vmatprep.subr.bf16.mxu1 %v11059_v23 }
  0x20   :  { %9205 = vmatpush3.bf16.msra.mxu0 %v11058_v22  ;;  %9213 = vmatpush3.bf16.msra.mxu1 %v11059_v23 }
  0x21   :  { %9218 = vmatprep.subr.bf16.mxu0 %v11060_v26  ;;  %9226 = vmatprep.subr.bf16.mxu1 %v11061_v27 }
  0x22   :  { %9187 = vmatmul.mubr.msk.bf16.gmra.mrb[12].mxu0 %vm86_vm0, %v67_v20  ;;  %9199 = vmatmul.mubr.msk.bf16.gmra.mrb[12].mxu1 %vm86_vm0, %v67_v20 }
  0x23   :  { %9206 = vmatprep.mubr.msk.bf16.mxu0 %vm86_vm0, %v68_v28  ;;  %9214 = vmatprep.mubr.msk.bf16.mxu1 %vm86_vm0, %v68_v28 }
  0x2a   :  { %9207 = vmatmul.mubr.msk.bf16.vlgmr.msra.gmra.mrb[16].mxu0 %vm86_vm0, %v69_v31  ;;  %9215 = vmatmul.mubr.msk.bf16.vlgmr.msra.gmra.mrb[16].mxu1 %vm86_vm0, %v69_v31 }
  0x2b   :  { %9219 = vmatpush3.bf16.msra.mxu0 %v11060_v26  ;;  %9227 = vmatpush3.bf16.msra.mxu1 %v11061_v27 }
  0x2c   :  { %9220 = vmatprep.subr.bf16.mxu0 %v11062_v32  ;;  %9228 = vmatprep.subr.bf16.mxu1 %v11063_v33 }
  0x2d   :  { %9222 = vmatprep.mubr.msk.bf16.mxu0 %vm86_vm0, %v68_v28  ;;  %9230 = vmatprep.mubr.msk.bf16.mxu1 %vm86_vm0, %v68_v28 }
  0x2f   :  { %9221 = vmatpush3.bf16.msra.mxu0 %v11062_v32  ;;  %9229 = vmatpush3.bf16.msra.mxu1 %v11063_v33 }
  0x32   :  { %9223 = vmatmul.mubr.msk.bf16.vlgmr.msra.gmra.mrb[20].mxu0 %vm86_vm0, %v69_v31  ;;  %9231 = vmatmul.mubr.msk.bf16.vlgmr.msra.gmra.mrb[20].mxu1 %vm86_vm0, %v69_v31 }
  0xdd   :  { %v9160_v35 = vpop.f32.mrb[0].mxu0  ;;  %v9172_v37 = vpop.f32.mrb[0].mxu1 }
  0xde   :  { %v133_v38 = vpop.f32.mrb[1].mxu0  ;;  %v215_v40 = vpop.f32.mrb[1].mxu1  ;;  %v11720_v51 = vadd.f32 %v9160_v35, %v8222_v34  ;;  %v11726_v55 = vadd.f32 %v9172_v37, %v8223_v36 }
  0xdf   :  { %v11698_v39 = vadd.f32 %v8222_v34, %v133_v38  ;;  %v9161_v41 = vpop.f32.mrb[2].mxu0  ;;  %v11700_v42 = vadd.f32 %v8223_v36, %v215_v40  ;;  %v9173_v43 = vpop.f32.mrb[2].mxu1 }
  0xe0   :  { %v136_v44 = vpop.f32.mrb[3].mxu0  ;;  %v218_v46 = vpop.f32.mrb[3].mxu1  ;;  %v11710_v48 = vadd.f32 %v9161_v41, %v8222_v34  ;;  %v11728_v56 = vadd.f32 %v9173_v43, %v8223_v36 }
  0xe1   :  { %v11702_v45 = vadd.f32 %v8222_v34, %v136_v44  ;;  %9250 = vmatprep.mubr.msk.f32.mxu0 %vm819_vm1, %v11698_v39  ;;  %v11706_v47 = vadd.f32 %v8223_v36, %v218_v46  ;;  %9278 = vmatprep.mubr.msk.f32.mxu1 %vm819_vm1, %v11700_v42 }
  0xe2   :  { %v11734_v59 = vpack.i.bf16 %v11710_v48, %v11720_v51  ;;  %v11750_v5 = vpack.i.bf16 %v11728_v56, %v11726_v55 }
  0xe3   :  { %v11714_v49 = vpack.i.bf16 %v11702_v45, %v11698_v39  ;;  %v11718_v50 = vpack.i.bf16 %v11706_v47, %v11700_v42 }
  0xe4   :  { %15440 = vst [vmem:[#allocation10_spill] sm:$0xff] %v11734_v59  ;;  %15441 = vst [vmem:[#allocation11_spill] sm:$0xff] %v11750_v5 }
  0xe5   :  { %15438 = vst [vmem:[#allocation8_spill] sm:$0xff] %v11714_v49  ;;  %15439 = vst [vmem:[#allocation9_spill] sm:$0xff] %v11718_v50  ;;  %10609 = vrot.lane.b32.xlu0 %v11714_v49, %s11494_s30  ;;  %v9164_v52 = vpop.f32.mrb[4].mxu0  ;;  %10619 = vrot.lane.b32.xlu1 %v11718_v50, %s11494_s30  ;;  %v9176_v54 = vpop.f32.mrb[4].mxu1 }
  0xe6   :  { %v149_v53 = vpop.f32.mrb[5].mxu0  ;;  %v231_v60 = vpop.f32.mrb[5].mxu1  ;;  %v11736_v63 = vadd.f32 %v9164_v52, %v8222_v34  ;;  %v11756_v7 = vadd.f32 %v9176_v54, %v8223_v36 }
  0xe7   :  { %v11730_v57 = vadd.f32 %v8222_v34, %v149_v53  ;;  %v9165_v58 = vpop.f32.mrb[6].mxu0  ;;  %v9177_v62 = vpop.f32.mrb[6].mxu1  ;;  %v11744_v2 = vadd.f32 %v8223_v36, %v231_v60 }
  0xe8   :  { %v152_v61 = vpop.f32.mrb[7].mxu0  ;;  %v11738_v0 = vadd.f32 %v9165_v58, %v8222_v34  ;;  %v234_v3 = vpop.f32.mrb[7].mxu1  ;;  %v11758_v8 = vadd.f32 %v9177_v62, %v8223_v36 }
  0xe9   :  { %v11740_v1 = vadd.f32 %v8222_v34, %v152_v61  ;;  %10614 = vrot.lane.b32.xlu0 %v11734_v59, %s11494_s30  ;;  %v11746_v4 = vadd.f32 %v8223_v36, %v234_v3 }
  0xea   :  { %v11773_v12 = vpack.i.bf16 %v11738_v0, %v11736_v63  ;;  %v11784_v22 = vpack.i.bf16 %v11758_v8, %v11756_v7 }
  0xeb   :  { %v11754_v6 = vpack.i.bf16 %v11740_v1, %v11730_v57  ;;  %v11769_v11 = vpack.i.bf16 %v11746_v4, %v11744_v2 }
  0xec   :  { %15444 = vst [vmem:[#allocation14_spill] sm:$0xff] %v11773_v12  ;;  %15445 = vst [vmem:[#allocation15_spill] sm:$0xff] %v11784_v22 }
  0xed   :  { %15442 = vst [vmem:[#allocation12_spill] sm:$0xff] %v11754_v6  ;;  %10629 = vrot.lane.b32.xlu0 %v11750_v5, %s11494_s30  ;;  %10624 = vrot.lane.b32.xlu1 %v11754_v6, %s11494_s30  ;;  %v9184_v10 = vpop.f32.mrb[8].mxu0  ;;  %15443 = vst [vmem:[#allocation13_spill] sm:$0xff] %v11769_v11  ;;  %v9196_v14 = vpop.f32.mrb[8].mxu1 }
  0xee   :  { %v297_v13 = vpop.f32.mrb[9].mxu0  ;;  %v379_v18 = vpop.f32.mrb[9].mxu1  ;;  %v11780_v19 = vadd.f32 %v9184_v10, %v8224_v9  ;;  %v11802_v29 = vadd.f32 %v9196_v14, %v8225_v15 }
  0xef   :  { %v11778_v16 = vadd.f32 %v8224_v9, %v297_v13  ;;  %v9185_v17 = vpop.f32.mrb[10].mxu0  ;;  %v9197_v21 = vpop.f32.mrb[10].mxu1  ;;  %v11794_v25 = vadd.f32 %v8225_v15, %v379_v18 }
  0xf0   :  { %v300_v20 = vpop.f32.mrb[11].mxu0  ;;  %v11786_v23 = vadd.f32 %v9185_v17, %v8224_v9  ;;  %v382_v26 = vpop.f32.mrb[11].mxu1  ;;  %v11804_v30 = vadd.f32 %v9197_v21, %v8225_v15 }
  0xf1   :  { %v11788_v24 = vadd.f32 %v8224_v9, %v300_v20  ;;  %10639 = vrot.lane.b32.xlu0 %v11769_v11, %s11494_s30  ;;  %10634 = vrot.lane.b32.xlu1 %v11773_v12, %s11494_s30  ;;  %v11796_v27 = vadd.f32 %v8225_v15, %v382_v26 }
  0xf2   :  { %v11812_v32 = vpack.i.bf16 %v11786_v23, %v11780_v19  ;;  %v11824_v44 = vpack.i.bf16 %v11804_v30, %v11802_v29 }
  0xf3   :  { %v11800_v28 = vpack.i.bf16 %v11788_v24, %v11778_v16  ;;  %v11816_v33 = vpack.i.bf16 %v11796_v27, %v11794_v25 }
  0xf4   :  { %15447 = vst [vmem:[#allocation17_spill] sm:$0xff] %v11812_v32  ;;  %15449 = vst [vmem:[#allocation19_spill] sm:$0xff] %v11824_v44 }
  0xf5   :  { %15446 = vst [vmem:[#allocation16_spill] sm:$0xff] %v11800_v28  ;;  %10644 = vrot.lane.b32.xlu1 %v11784_v22, %s11494_s30  ;;  %10649 = vrot.lane.b32.xlu0 %v11800_v28, %s11494_s30  ;;  %v9188_v31 = vpop.f32.mrb[12].mxu0  ;;  %15448 = vst [vmem:[#allocation18_spill] sm:$0xff] %v11816_v33  ;;  %v9200_v35 = vpop.f32.mrb[12].mxu1 }
  0xf6   :  { %v313_v34 = vpop.f32.mrb[13].mxu0  ;;  %v395_v38 = vpop.f32.mrb[13].mxu1  ;;  %v11820_v40 = vadd.f32 %v9188_v31, %v8224_v9  ;;  %v11842_v61 = vadd.f32 %v9200_v35, %v8225_v15 }
  0xf7   :  { %v11818_v36 = vadd.f32 %v8224_v9, %v313_v34  ;;  %v9189_v37 = vpop.f32.mrb[14].mxu0  ;;  %v9201_v43 = vpop.f32.mrb[14].mxu1  ;;  %v11834_v53 = vadd.f32 %v8225_v15, %v395_v38 }
  0xf8   :  { %v316_v41 = vpop.f32.mrb[15].mxu0  ;;  %v11826_v46 = vadd.f32 %v9189_v37, %v8224_v9  ;;  %v398_v54 = vpop.f32.mrb[15].mxu1  ;;  %v11844_v62 = vadd.f32 %v9201_v43, %v8225_v15  ;;  %v11965_v43 = vld [vmem:[%s15214_s2] sm:$0xff] }
  0xf9   :  { %v11828_v52 = vadd.f32 %v8224_v9, %v316_v41  ;;  %10654 = vrot.lane.b32.xlu1 %v11812_v32, %s11494_s30  ;;  %10659 = vrot.lane.b32.xlu0 %v11816_v33, %s11494_s30  ;;  %v11836_v58 = vadd.f32 %v8225_v15, %v398_v54  ;;  %15454 = vst [vmem:[#allocation24_spill] sm:$0xff] %v11965_v43  ;;  %v11974_v54 = vld [vmem:[%s15214_s2 + $0x10] sm:$0xff]  ;;  %v11993_v32 = vld [vmem:[%s15214_s2 + $0x18] sm:$0xff] }
  0xfa   :  { %v11856_v9 = vpack.i.bf16 %v11826_v46, %v11820_v40  ;;  %v11864_v10 = vpack.i.bf16 %v11844_v62, %v11842_v61  ;;  %15455 = vst [vmem:[#allocation25_spill] sm:$0xff] %v11974_v54  ;;  %15458 = vst [vmem:[#allocation28_spill] sm:$0xff] %v11993_v32  ;;  %v12002_v33 = vld [vmem:[%s15214_s2 + $0x30] sm:$0xff] }
  0xfb   :  { %v11840_v60 = vpack.i.bf16 %v11828_v52, %v11818_v36  ;;  %v11852_v3 = vpack.i.bf16 %v11836_v58, %v11834_v53  ;;  %15459 = vst [vmem:[#allocation29_spill] sm:$0xff] %v12002_v33 }
  0xfc   :  { %15452 = vst [vmem:[#allocation22_spill] sm:$0xff] %v11856_v9  ;;  %15453 = vst [vmem:[#allocation23_spill] sm:$0xff] %v11864_v10 }
  0xfd   :  { %15450 = vst [vmem:[#allocation20_spill] sm:$0xff] %v11840_v60  ;;  %10664 = vrot.lane.b32.xlu0 %v11824_v44, %s11494_s30  ;;  %10669 = vrot.lane.b32.xlu1 %v11840_v60, %s11494_s30  ;;  %15451 = vst [vmem:[#allocation21_spill] sm:$0xff] %v11852_v3  ;;  %v11884_v13 = vpop.f32.mrb[16].mxu1  ;;  %v11988_v44 = vld [vmem:[%s15214_s2 + $0x20] sm:$0xff] }
  0xfe   :  { %v11888_v15 = vpop.f32.mrb[17].mxu1  ;;  %15457 = vst [vmem:[#allocation27_spill] sm:$0xff] %v11988_v44 }
  0xff   :  { %v11896_v18 = vpop.f32.mrb[18].mxu1 }
 0x100   :  { %v11898_v20 = vpop.f32.mrb[19].mxu1 }
 0x101   :  { %10684 = vrot.lane.b32.xlu0 %v11852_v3, %s11494_s30  ;;  %10674 = vrot.lane.b32.xlu1 %v11856_v9, %s11494_s30  ;;  %v12007_v3 = vld [vmem:[%s15214_s2 + $0x28] sm:$0xff]  ;;  %v12016_v9 = vld [vmem:[%s15214_s2 + $0x38] sm:$0xff] }
 0x102   :  { %15460 = vst [vmem:[#allocation30_spill] sm:$0xff] %v12007_v3  ;;  %15461 = vst [vmem:[#allocation31_spill] sm:$0xff] %v12016_v9 }
 0x105   :  { %1440 = vrot.lane.b32.xlu0 %v11698_v39, %s11495_s5  ;;  %10679 = vrot.lane.b32.xlu1 %v11864_v10, %s11494_s30  ;;  %v11882_v39 = vpop.f32.mrb[16].mxu0  ;;  %v11916_v26 = vpop.f32.mrb[20].mxu1  ;;  %v11979_v10 = vld [vmem:[%s15214_s2 + $0x8] sm:$0xff] }
 0x106   :  { %v11886_v14 = vpop.f32.mrb[17].mxu0  ;;  %v11924_v34 = vpop.f32.mrb[21].mxu1  ;;  %15456 = vst [vmem:[#allocation26_spill] sm:$0xff] %v11979_v10 }
 0x107   :  { %v11894_v17 = vpop.f32.mrb[18].mxu0  ;;  %v11928_v37 = vpop.f32.mrb[22].mxu1 }
 0x108   :  { %v11936_v41 = vpop.f32.mrb[23].mxu1 }
 0x109   :  { %1444 = vrot.lane.b32.xlu0 %v11720_v51, %s11495_s5  ;;  %1442 = vrot.lane.b32.xlu1 %v11702_v45, %s11495_s5 }
 0x10d   :  { %1448 = vrot.lane.b32.xlu0 %v11730_v57, %s11495_s5  ;;  %1446 = vrot.lane.b32.xlu1 %v11710_v48, %s11495_s5 }
 0x111   :  { %1450 = vrot.lane.b32.xlu0 %v11740_v1, %s11495_s5  ;;  %1621 = vrot.lane.b32.xlu1 %v11700_v42, %s11495_s5  ;;  %v11900_v42 = vpop.f32.mrb[19].mxu0 }
 0x112   :  { %v11914_v21 = vpop.f32.mrb[20].mxu0 }
 0x113   :  { %v11922_v31 = vpop.f32.mrb[21].mxu0 }
 0x114   :  { %v11926_v35 = vpop.f32.mrb[22].mxu0 }
 0x115   :  { %1452 = vrot.lane.b32.xlu0 %v11736_v63, %s11495_s5  ;;  %1623 = vrot.lane.b32.xlu1 %v11706_v47, %s11495_s5  ;;  %v11934_v38 = vpop.f32.mrb[23].mxu0 }
 0x119   :  { %1454 = vrot.lane.b32.xlu0 %v11738_v0, %s11495_s5  ;;  %1625 = vrot.lane.b32.xlu1 %v11726_v55, %s11495_s5 }
 0x11d   :  { %1629 = vrot.lane.b32.xlu0 %v11744_v2, %s11495_s5  ;;  %1627 = vrot.lane.b32.xlu1 %v11728_v56, %s11495_s5 }
 0x121   :  { %1631 = vrot.lane.b32.xlu0 %v11746_v4, %s11495_s5  ;;  %1770 = vrot.lane.b32.xlu1 %v11778_v16, %s11495_s5 }
 0x125   :  { %1633 = vrot.lane.b32.xlu0 %v11756_v7, %s11495_s5  ;;  %1772 = vrot.lane.b32.xlu1 %v11788_v24, %s11495_s5 }
 0x129   :  { %1635 = vrot.lane.b32.xlu0 %v11758_v8, %s11495_s5  ;;  %1774 = vrot.lane.b32.xlu1 %v11780_v19, %s11495_s5 }
 0x12d   :  { %1778 = vrot.lane.b32.xlu0 %v11818_v36, %s11495_s5  ;;  %1776 = vrot.lane.b32.xlu1 %v11786_v23, %s11495_s5 }
 0x131   :  { %1782 = vrot.lane.b32.xlu0 %v11820_v40, %s11495_s5  ;;  %1919 = vrot.lane.b32.xlu1 %v11794_v25, %s11495_s5 }
 0x135   :  { %1780 = vrot.lane.b32.xlu0 %v11828_v52, %s11495_s5  ;;  %1921 = vrot.lane.b32.xlu1 %v11796_v27, %s11495_s5 }
 0x139   :  { %1784 = vrot.lane.b32.xlu0 %v11826_v46, %s11495_s5  ;;  %1923 = vrot.lane.b32.xlu1 %v11802_v29, %s11495_s5 }
 0x13d   :  { %1927 = vrot.lane.b32.xlu0 %v11834_v53, %s11495_s5  ;;  %1925 = vrot.lane.b32.xlu1 %v11804_v30, %s11495_s5 }
 0x141   :  { %1931 = vrot.lane.b32.xlu0 %v11842_v61, %s11495_s5  ;;  %1929 = vrot.lane.b32.xlu1 %v11836_v58, %s11495_s5 }
 0x145   :  { %1464 = vrot.lane.b32.xlu0 %v11965_v43, %s11496_s22  ;;  %1933 = vrot.lane.b32.xlu1 %v11844_v62, %s11495_s5 }
 0x149   :  { %1468 = vrot.lane.b32.xlu0 %v11974_v54, %s11496_s22  ;;  %1466 = vrot.lane.b32.xlu1 %v11979_v10, %s11496_s22 }
 0x14d   :  { %1472 = vrot.lane.b32.xlu0 %v11988_v44, %s11496_s22  ;;  %1470 = vrot.lane.b32.xlu1 %v11993_v32, %s11496_s22 }
 0x151   :  { %1476 = vrot.lane.b32.xlu0 %v12002_v33, %s11496_s22  ;;  %1474 = vrot.lane.b32.xlu1 %v12007_v3, %s11496_s22  ;;  %v15462_v3 = vmov 0 }
 0x152   :  { %v15463_v3 = vsel %vm12028_vm2, 4294967295, %v15462_v3 }
 0x153   :  { %15464 = vst [vmem:[#allocation32_spill] sm:$0xff] %v15463_v3 }
 0x155   :  { %10694 = vrot.lane.b32.xlu0 %v11734_v59, %s11497_s21  ;;  %1478 = vrot.lane.b32.xlu1 %v12016_v9, %s11496_s22 }
 0x157   :  { %v10610_v60 = vpop.permute.xlu0 %10609  ;;  %v10620_v28 = vpop.permute.xlu1 %10619 }
 0x158   :  { %v10612_v22 = vunpack.i.h.bf16 %v10610_v60  ;;  %v10611_v44 = vunpack.i.l.bf16 %v10610_v60  ;;  %v10622_v33 = vunpack.i.h.bf16 %v10620_v28  ;;  %v10621_v54 = vunpack.i.l.bf16 %v10620_v28 }
 0x159   :  { %10699 = vrot.lane.b32.xlu0 %v11754_v6, %s11497_s21  ;;  %10689 = vrot.lane.b32.xlu1 %v11714_v49, %s11497_s21 }
 0x15a   :  { %v10034_v59 = vpack.c.bf16 %v10612_v22, %v10611_v44  ;;  %v10058_v9 = vpack.c.bf16 %v10622_v33, %v10621_v54 }
 0x15b   :  { %v10615_v43 = vpop.permute.xlu0 %10614 }
 0x15c   :  { %v10617_v32 = vunpack.i.h.bf16 %v10615_v43  ;;  %v10616_v10 = vunpack.i.l.bf16 %v10615_v43  ;;  %10036 = vmatprep.subr.msk.bf16.mxu0 %vm12028_vm2, %v10034_v59  ;;  %10060 = vmatprep.subr.msk.bf16.mxu1 %vm12028_vm2, %v10058_v9 }
 0x15d   :  { %10039 = vmatpush3.bf16.xpose.msk.msra.mxu0 %vm12028_vm2, %v10034_v59  ;;  %10063 = vmatpush3.bf16.xpose.msk.msra.mxu1 %vm12028_vm2, %v10058_v9  ;;  %v8254_v59 = vld [vmem:[%s15219_s7] ss:$0 sm:$0xff] }
 0x15e   :  { %v10040_v28 = vpack.c.bf16 %v10617_v32, %v10616_v10  ;;  %10704 = vrot.lane.b32.xlu0 %v11718_v50, %s11497_s21  ;;  %10709 = vrot.lane.b32.xlu1 %v11773_v12, %s11497_s21  ;;  %v8255_v32 = vld [vmem:[%s15219_s7 + $0x1] ss:$0 sm:$0xff]  ;;  %v12053_v9 = vadd.f32 %v11882_v39, %v8254_v59 }
 0x15f   :  { %v10630_v22 = vpop.permute.xlu0 %10629  ;;  %v10625_v33 = vpop.permute.xlu1 %10624  ;;  %v12056_v10 = vadd.f32 %v11884_v13, %v8255_v32 }
 0x160   :  { %v10632_v44 = vunpack.i.h.bf16 %v10630_v22  ;;  %v10631_v60 = vunpack.i.l.bf16 %v10630_v22  ;;  %v10627_v43 = vunpack.i.h.bf16 %v10625_v33  ;;  %v10626_v54 = vunpack.i.l.bf16 %v10625_v33  ;;  %10042 = vmatprep.subr.msk.bf16.mxu0 %vm12028_vm2, %v10040_v28  ;;  %15465 = vst [vmem:[#allocation33_spill] sm:$0xff] %v12053_v9 }
 0x161   :  { %15466 = vst [vmem:[#allocation34_spill] sm:$0xff] %v12056_v10  ;;  %v12059_v22 = vadd.f32 %v11894_v17, %v8254_v59  ;;  %v12062_v33 = vadd.f32 %v11896_v18, %v8255_v32 }
 0x162   :  { %v10064_v12 = vpack.c.bf16 %v10632_v44, %v10631_v60  ;;  %v10046_v6 = vpack.c.bf16 %v10627_v43, %v10626_v54  ;;  %10714 = vrot.lane.b32.xlu0 %v11750_v5, %s11497_s21  ;;  %10719 = vrot.lane.b32.xlu1 %v11769_v11, %s11497_s21  ;;  %v8256_v44 = vld [vmem:[%s15219_s7 + $0x2] ss:$0 sm:$0xff]  ;;  %v12084_v60 = vadd.f32 %v8254_v59, %v11886_v14 }
 0x163   :  { %v10640_v50 = vpop.permute.xlu0 %10639  ;;  %v10635_v39 = vpop.permute.xlu1 %10634  ;;  %v12070_v13 = vpack.i.bf16 %v12062_v33, %v12056_v10  ;;  %v12074_v17 = vpack.i.bf16 %v12059_v22, %v12053_v9  ;;  %v12087_v43 = vadd.f32 %v8254_v59, %v11900_v42  ;;  %v12090_v54 = vadd.f32 %v11914_v21, %v8256_v44 }
 0x164   :  { %v10642_v18 = vunpack.i.h.bf16 %v10640_v50  ;;  %v10641_v49 = vunpack.i.l.bf16 %v10640_v50  ;;  %10066 = vmatprep.subr.msk.bf16.mxu1 %vm12028_vm2, %v10064_v12  ;;  %v12093_v50 = vadd.f32 %v11926_v35, %v8256_v44  ;;  %v10636_v42 = vunpack.i.l.bf16 %v10635_v39 }
 0x165   :  { %15467 = vst [vmem:[#allocation35_spill] sm:$0xff] %v12070_v13  ;;  %15468 = vst [vmem:[#allocation36_spill] sm:$0xff] %v12074_v17  ;;  %10045 = vmatpush3.bf16.xpose.msk.msra.mxu0 %vm12028_vm2, %v10040_v28  ;;  %10069 = vmatpush3.bf16.xpose.msk.msra.mxu1 %vm12028_vm2, %v10064_v12  ;;  %v12103_v14 = vpack.i.bf16 %v12087_v43, %v12084_v60  ;;  %v10637_v12 = vunpack.i.h.bf16 %v10635_v39  ;;  %v12114_v59 = vadd.f32 %v8255_v32, %v11888_v15 }
 0x166   :  { %15469 = vst [vmem:[#allocation37_spill] sm:$0xff] %v12090_v54  ;;  %15470 = vst [vmem:[#allocation38_spill] sm:$0xff] %v12093_v50  ;;  %v10070_v11 = vpack.c.bf16 %v10642_v18, %v10641_v49  ;;  %10048 = vmatprep.subr.msk.bf16.mxu0 %vm12028_vm2, %v10046_v6  ;;  %10729 = vrot.lane.b32.xlu1 %v12070_v13, %s11494_s30  ;;  %v12109_v49 = vpack.i.bf16 %v12093_v50, %v12090_v54  ;;  %v8257_v13 = vld [vmem:[%s15219_s7 + $0x3] ss:$0 sm:$0xff]  ;;  %s11498_s7 = smov 96  }
 0x167   :  { %v10645_v28 = vpop.permute.xlu1 %10644  ;;  %v10650_v5 = vpop.permute.xlu0 %10649  ;;  %15471 = vst [vmem:[#allocation39_spill] sm:$0xff] %v12103_v14  ;;  %10724 = vrot.lane.b32.xlu0 %v12074_v17, %s11494_s30  ;;  %15473 = vst [vmem:[#allocation41_spill] sm:$0xff] %v12114_v59  ;;  %v12117_v18 = vadd.f32 %v8255_v32, %v11898_v20  ;;  %v12123_v17 = vadd.f32 %v11916_v26, %v8257_v13  ;;  %v12126_v39 = vadd.f32 %v11928_v37, %v8257_v13 }
 0x168   :  { %15472 = vst [vmem:[#allocation40_spill] sm:$0xff] %v12109_v49  ;;  %v10647_v21 = vunpack.i.h.bf16 %v10645_v28  ;;  %v10646_v35 = vunpack.i.l.bf16 %v10645_v28  ;;  %10072 = vmatprep.subr.msk.bf16.mxu1 %vm12028_vm2, %v10070_v11  ;;  %v10052_v20 = vpack.c.bf16 %v10637_v12, %v10636_v42  ;;  %v10652_v37 = vunpack.i.h.bf16 %v10650_v5 }
 0x169   :  { %15474 = vst [vmem:[#allocation42_spill] sm:$0xff] %v12123_v17  ;;  %15475 = vst [vmem:[#allocation43_spill] sm:$0xff] %v12126_v39  ;;  %v12132_v15 = vpack.i.bf16 %v12117_v18, %v12114_v59  ;;  %v12138_v26 = vpack.i.bf16 %v12126_v39, %v12123_v17  ;;  %v10651_v32 = vunpack.i.l.bf16 %v10650_v5  ;;  %v12150_v12 = vadd.f32 %v8256_v44, %v11934_v38 }
 0x16a   :  { %v10076_v28 = vpack.c.bf16 %v10647_v21, %v10646_v35  ;;  %10734 = vrot.lane.b32.xlu1 %v12103_v14, %s11494_s30  ;;  %v12147_v21 = vadd.f32 %v8256_v44, %v11922_v31  ;;  %v12163_v31 = vadd.f32 %v8257_v13, %v11924_v34  ;;  %v12166_v38 = vadd.f32 %v8257_v13, %v11936_v41 }
 0x16b   :  { %v10655_v50 = vpop.permute.xlu1 %10654  ;;  %v10660_v54 = vpop.permute.xlu0 %10659  ;;  %10744 = vrot.lane.b32.xlu0 %v12109_v49, %s11494_s30  ;;  %15476 = vst [vmem:[#allocation44_spill] sm:$0xff] %v12138_v26 }
 0x16c   :  { %15477 = vst [vmem:[#allocation45_spill] sm:$0xff] %v12147_v21  ;;  %v10662_v42 = vunpack.i.h.bf16 %v10660_v54  ;;  %v10661_v35 = vunpack.i.l.bf16 %v10660_v54  ;;  %v12160_v5 = vpack.i.bf16 %v12150_v12, %v12147_v21  ;;  %15479 = vst [vmem:[#allocation47_spill] sm:$0xff] %v12163_v31 }
 0x16d   :  { %10051 = vmatpush3.bf16.xpose.msk.msra.mxu0 %vm12028_vm2, %v10046_v6  ;;  %10075 = vmatpush3.bf16.xpose.msk.msra.mxu1 %vm12028_vm2, %v10070_v11  ;;  %v10082_v11 = vpack.c.bf16 %v10652_v37, %v10651_v32  ;;  %v10657_v32 = vunpack.i.h.bf16 %v10655_v50 }
 0x16e   :  { %10054 = vmatprep.subr.msk.bf16.mxu0 %vm12028_vm2, %v10052_v20  ;;  %10078 = vmatprep.subr.msk.bf16.mxu1 %vm12028_vm2, %v10076_v28  ;;  %15478 = vst [vmem:[#allocation46_spill] sm:$0xff] %v12160_v5  ;;  %v10106_v44 = vpack.c.bf16 %v10662_v42, %v10661_v35  ;;  %v10656_v42 = vunpack.i.l.bf16 %v10655_v50 }
 0x16f   :  { %v10665_v6 = vpop.permute.xlu0 %10664  ;;  %v10670_v49 = vpop.permute.xlu1 %10669  ;;  %10739 = vrot.lane.b32.xlu1 %v12132_v15, %s11494_s30  ;;  %10749 = vrot.lane.b32.xlu0 %v12138_v26, %s11494_s30  ;;  %v12172_v26 = vpack.i.bf16 %v12166_v38, %v12163_v31 }
 0x170   :  { %v10667_v13 = vunpack.i.h.bf16 %v10665_v6  ;;  %v10666_v37 = vunpack.i.l.bf16 %v10665_v6  ;;  %v10672_v50 = vunpack.i.h.bf16 %v10670_v49  ;;  %v10671_v6 = vunpack.i.l.bf16 %v10670_v49 }
 0x171   :  { %15480 = vst [vmem:[#allocation48_spill] sm:$0xff] %v12172_v26 }
 0x173   :  { %v10685_v54 = vpop.permute.xlu0 %10684  ;;  %v10675_v14 = vpop.permute.xlu1 %10674  ;;  %10754 = vrot.lane.b32.xlu0 %v12160_v5, %s11494_s30  ;;  %v10088_v5 = vpack.c.bf16 %v10657_v32, %v10656_v42 }
 0x175   :  { %10057 = vmatpush3.bf16.xpose.msk.msra.mxu0 %vm12028_vm2, %v10052_v20  ;;  %10081 = vmatpush3.bf16.xpose.msk.msra.mxu1 %vm12028_vm2, %v10076_v28  ;;  %v10112_v28 = vpack.c.bf16 %v10667_v13, %v10666_v37  ;;  %v10687_v13 = vunpack.i.h.bf16 %v10685_v54 }
 0x176   :  { %10084 = vmatprep.subr.msk.bf16.mxu0 %vm12028_vm2, %v10082_v11  ;;  %10108 = vmatprep.subr.msk.bf16.mxu1 %vm12028_vm2, %v10106_v44 }
 0x177   :  { %v12180_v34 = vpop.permute.xlu0 %1440  ;;  %v10680_v41 = vpop.permute.xlu1 %10679  ;;  %10759 = vrot.lane.b32.xlu0 %v12172_v26, %s11494_s30 }
 0x17b   :  { %v12186_v20 = vpop.permute.xlu0 %1444  ;;  %v12188_v35 = vpop.permute.xlu1 %1442 }
 0x17c   :  { %9251 = vmatmul.mubr.msk.f32.vlgmr.msra.gmra.mrb[24].mxu0 %vm819_vm1, %v11702_v45  ;;  %9279 = vmatmul.mubr.msk.f32.vlgmr.msra.gmra.mrb[24].mxu1 %vm819_vm1, %v11706_v47 }
 0x17d   :  { %9253 = vmatprep.mubr.msk.f32.mxu0 %vm819_vm1, %v11720_v51  ;;  %9281 = vmatprep.mubr.msk.f32.mxu1 %vm819_vm1, %v11726_v55  ;;  %v10686_v51 = vunpack.i.l.bf16 %v10685_v54  ;;  %v10094_v55 = vpack.c.bf16 %v10672_v50, %v10671_v6  ;;  %v10130_v54 = vpack.c.bf16 %v12087_v43, %v12084_v60  ;;  %v10136_v50 = vpack.c.bf16 %v12059_v22, %v12053_v9 }
 0x17e   :  { %10087 = vmatpush3.bf16.xpose.msk.msra.mxu0 %vm12028_vm2, %v10082_v11  ;;  %10111 = vmatpush3.bf16.xpose.msk.msra.mxu1 %vm12028_vm2, %v10106_v44  ;;  %v10148_v6 = vpack.c.bf16 %v12062_v33, %v12056_v10 }
 0x17f   :  { %10090 = vmatprep.subr.msk.bf16.mxu0 %vm12028_vm2, %v10088_v5  ;;  %v12204_v45 = vpop.permute.xlu0 %1448  ;;  %v12206_v47 = vpop.permute.xlu1 %1446  ;;  %10114 = vmatprep.subr.msk.bf16.mxu1 %vm12028_vm2, %v10112_v28  ;;  %v10118_v44 = vpack.c.bf16 %v10687_v13, %v10686_v51 }
 0x180   :  { %9254 = vmatmul.mubr.msk.f32.gmra.mrb[26].mxu0 %vm819_vm1, %v11710_v48  ;;  %9282 = vmatmul.mubr.msk.f32.gmra.mrb[26].mxu1 %vm819_vm1, %v11728_v56 }
 0x181   :  { %9256 = vmatprep.mubr.msk.f32.mxu0 %vm819_vm1, %v11730_v57  ;;  %9284 = vmatprep.mubr.msk.f32.mxu1 %vm819_vm1, %v11744_v2  ;;  %v10682_v57 = vunpack.i.h.bf16 %v10680_v41  ;;  %v10676_v2 = vunpack.i.l.bf16 %v10675_v14 }
 0x183   :  { %v12218_v49 = vpop.permute.xlu0 %1450  ;;  %v12220_v11 = vpop.permute.xlu1 %1621 }
 0x184   :  { %9257 = vmatmul.mubr.msk.f32.gmra.mrb[28].mxu0 %vm819_vm1, %v11740_v1  ;;  %9285 = vmatmul.mubr.msk.f32.gmra.mrb[28].mxu1 %vm819_vm1, %v11746_v4  ;;  %v10681_v1 = vunpack.i.l.bf16 %v10680_v41  ;;  %v10142_v41 = vpack.c.bf16 %v12117_v18, %v12114_v59 }
 0x185   :  { %9259 = vmatprep.mubr.msk.f32.mxu0 %vm819_vm1, %v11736_v63  ;;  %9287 = vmatprep.mubr.msk.f32.mxu1 %vm819_vm1, %v11756_v7  ;;  %v10677_v63 = vunpack.i.h.bf16 %v10675_v14 }
 0x186   :  { %10093 = vmatpush3.bf16.xpose.msk.msra.mxu0 %vm12028_vm2, %v10088_v5  ;;  %10117 = vmatpush3.bf16.xpose.msk.msra.mxu1 %vm12028_vm2, %v10112_v28  ;;  %v10124_v5 = vpack.c.bf16 %v10682_v57, %v10681_v1 }
 0x187   :  { %v12234_v48 = vpop.permute.xlu0 %1452  ;;  %v12236_v56 = vpop.permute.xlu1 %1623  ;;  %10096 = vmatprep.subr.msk.bf16.mxu0 %vm12028_vm2, %v10094_v55  ;;  %10120 = vmatprep.subr.msk.bf16.mxu1 %vm12028_vm2, %v10118_v44 }
 0x188   :  { %9260 = vmatmul.mubr.msk.f32.gmra.mrb[30].mxu0 %vm819_vm1, %v11738_v0  ;;  %9288 = vmatmul.mubr.msk.f32.gmra.mrb[30].mxu1 %vm819_vm1, %v11758_v8  ;;  %v10100_v0 = vpack.c.bf16 %v10677_v63, %v10676_v2 }
 0x189   :  { %9306 = vmatprep.mubr.msk.f32.mxu0 %vm819_vm1, %v11778_v16  ;;  %9334 = vmatprep.mubr.msk.f32.mxu1 %vm819_vm1, %v11794_v25 }
 0x18b   :  { %v12250_v4 = vpop.permute.xlu0 %1454  ;;  %v12252_v7 = vpop.permute.xlu1 %1625 }
 0x18e   :  { %10099 = vmatpush3.bf16.xpose.msk.msra.mxu0 %vm12028_vm2, %v10094_v55  ;;  %10123 = vmatpush3.bf16.xpose.msk.msra.mxu1 %vm12028_vm2, %v10118_v44 }
 0x18f   :  { %10102 = vmatprep.subr.msk.bf16.mxu0 %vm12028_vm2, %v10100_v0  ;;  %v12260_v8 = vpop.permute.xlu0 %1629  ;;  %v12262_v16 = vpop.permute.xlu1 %1627  ;;  %10126 = vmatprep.subr.msk.bf16.mxu1 %vm12028_vm2, %v10124_v5 }
 0x193   :  { %v12266_v25 = vpop.permute.xlu0 %1631  ;;  %v12268_v14 = vpop.permute.xlu1 %1770 }
 0x196   :  { %10105 = vmatpush3.bf16.xpose.msk.msra.mxu0 %vm12028_vm2, %v10100_v0  ;;  %10129 = vmatpush3.bf16.xpose.msk.msra.mxu1 %vm12028_vm2, %v10124_v5 }
 0x197   :  { %v12278_v37 = vpop.permute.xlu0 %1633  ;;  %v12280_v32 = vpop.permute.xlu1 %1772  ;;  %10132 = vmatprep.subr.msk.bf16.mxu0 %vm12028_vm2, %v10130_v54  ;;  %10144 = vmatprep.subr.msk.bf16.mxu1 %vm12028_vm2, %v10142_v41 }
 0x19b   :  { %v12286_v42 = vpop.permute.xlu0 %1635  ;;  %v12288_v28 = vpop.permute.xlu1 %1774 }
 0x19d   :  { %9307 = vmatmul.mubr.msk.f32.vlgmr.msra.gmra.mrb[32].mxu0 %vm819_vm1, %v11788_v24  ;;  %9335 = vmatmul.mubr.msk.f32.vlgmr.msra.gmra.mrb[32].mxu1 %vm819_vm1, %v11796_v27  ;;  %v10154_v27 = vpack.c.bf16 %v12150_v12, %v12147_v21 }
 0x19e   :  { %9309 = vmatprep.mubr.msk.f32.mxu0 %vm819_vm1, %v11780_v19  ;;  %9337 = vmatprep.mubr.msk.f32.mxu1 %vm819_vm1, %v11802_v29 }
 0x19f   :  { %10135 = vmatpush3.bf16.xpose.msk.msra.mxu0 %vm12028_vm2, %v10130_v54  ;;  %v12304_v13 = vpop.permute.xlu0 %1778  ;;  %v12306_v51 = vpop.permute.xlu1 %1776  ;;  %10147 = vmatpush3.bf16.xpose.msk.msra.mxu1 %vm12028_vm2, %v10142_v41 }
 0x1a0   :  { %10138 = vmatprep.subr.msk.bf16.mxu0 %vm12028_vm2, %v10136_v50  ;;  %10150 = vmatprep.subr.msk.bf16.mxu1 %vm12028_vm2, %v10148_v6 }
 0x1a1   :  { %9310 = vmatmul.mubr.msk.f32.gmra.mrb[34].mxu0 %vm819_vm1, %v11786_v23  ;;  %9338 = vmatmul.mubr.msk.f32.gmra.mrb[34].mxu1 %vm819_vm1, %v11804_v30  ;;  %v10166_v23 = vpack.c.bf16 %v12166_v38, %v12163_v31 }
 0x1a2   :  { %9312 = vmatprep.mubr.msk.f32.mxu0 %vm819_vm1, %v11818_v36  ;;  %9340 = vmatprep.mubr.msk.f32.mxu1 %vm819_vm1, %v11834_v53  ;;  %v15482_v53 = vld [vmem:[#allocation38_spill] sm:$0xff] }
 0x1a3   :  { %v12322_v19 = vpop.permute.xlu0 %1782  ;;  %v1920_v24 = vpop.permute.xlu1 %1919 }
 0x1a5   :  { %9313 = vmatmul.mubr.msk.f32.gmra.mrb[36].mxu0 %vm819_vm1, %v11828_v52  ;;  %9341 = vmatmul.mubr.msk.f32.gmra.mrb[36].mxu1 %vm819_vm1, %v11836_v58  ;;  %v15481_v52 = vld [vmem:[#allocation37_spill] sm:$0xff] }
 0x1a6   :  { %9315 = vmatprep.mubr.msk.f32.mxu0 %vm819_vm1, %v11820_v40  ;;  %9343 = vmatprep.mubr.msk.f32.mxu1 %vm819_vm1, %v11842_v61  ;;  %v10160_v58 = vpack.c.bf16 %v15482_v53, %v15481_v52 }
 0x1a7   :  { %10141 = vmatpush3.bf16.xpose.msk.msra.mxu0 %vm12028_vm2, %v10136_v50  ;;  %v1781_v29 = vpop.permute.xlu0 %1780  ;;  %v1922_v30 = vpop.permute.xlu1 %1921  ;;  %10153 = vmatpush3.bf16.xpose.msk.msra.mxu1 %vm12028_vm2, %v10148_v6 }
 0x1a8   :  { %10156 = vmatprep.subr.msk.bf16.mxu0 %vm12028_vm2, %v10154_v27  ;;  %10168 = vmatprep.subr.msk.bf16.mxu1 %vm12028_vm2, %v10166_v23 }
 0x1a9   :  { %9316 = vmatmul.mubr.msk.f32.gmra.mrb[38].mxu0 %vm819_vm1, %v11826_v46  ;;  %9344 = vmatmul.mubr.msk.f32.gmra.mrb[38].mxu1 %vm819_vm1, %v11844_v62  ;;  %v10172_v46 = vpack.c.bf16 %v12126_v39, %v12123_v17 }
 0x1aa   :  { %9354 = vmatprep.mubr.msk.f32.mxu0 %vm819_vm1, %v12180_v34  ;;  %9374 = vmatprep.mubr.msk.f32.mxu1 %vm819_vm1, %v12220_v11 }
 0x1ab   :  { %v1785_v36 = vpop.permute.xlu0 %1784  ;;  %v1924_v40 = vpop.permute.xlu1 %1923 }
 0x1ae   :  { %9355 = vmatmul.mubr.msk.f32.vlgmr.msra.gmra.mrb[40].mxu0 %vm819_vm1, %v12188_v35  ;;  %9375 = vmatmul.mubr.msk.f32.vlgmr.msra.gmra.mrb[40].mxu1 %vm819_vm1, %v12236_v56 }
 0x1af   :  { %9357 = vmatprep.mubr.msk.f32.mxu0 %vm819_vm1, %v12186_v20  ;;  %v1928_v61 = vpop.permute.xlu0 %1927  ;;  %v1926_v62 = vpop.permute.xlu1 %1925  ;;  %9377 = vmatprep.mubr.msk.f32.mxu1 %vm819_vm1, %v12252_v7 }
 0x1b0   :  { %10159 = vmatpush3.bf16.xpose.msk.msra.mxu0 %vm12028_vm2, %v10154_v27  ;;  %10171 = vmatpush3.bf16.xpose.msk.msra.mxu1 %vm12028_vm2, %v10166_v23 }
 0x1b1   :  { %10162 = vmatprep.subr.msk.bf16.mxu0 %vm12028_vm2, %v10160_v58  ;;  %10174 = vmatprep.subr.msk.bf16.mxu1 %vm12028_vm2, %v10172_v46 }
 0x1b2   :  { %9358 = vmatmul.mubr.msk.f32.gmra.mrb[42].mxu0 %vm819_vm1, %v12206_v47  ;;  %9378 = vmatmul.mubr.msk.f32.gmra.mrb[42].mxu1 %vm819_vm1, %v12262_v16 }
 0x1b3   :  { %9360 = vmatprep.mubr.msk.f32.mxu0 %vm819_vm1, %v12204_v45  ;;  %v1932_v34 = vpop.permute.xlu0 %1931  ;;  %v1930_v20 = vpop.permute.xlu1 %1929  ;;  %9380 = vmatprep.mubr.msk.f32.mxu1 %vm819_vm1, %v12260_v8 }
 0x1b6   :  { %9361 = vmatmul.mubr.msk.f32.gmra.mrb[44].mxu0 %vm819_vm1, %v12218_v49  ;;  %9381 = vmatmul.mubr.msk.f32.gmra.mrb[44].mxu1 %vm819_vm1, %v12266_v25 }
 0x1b7   :  { %9363 = vmatprep.mubr.msk.f32.mxu0 %vm819_vm1, %v12234_v48  ;;  %v12386_v35 = vpop.permute.xlu0 %1464  ;;  %v1934_v47 = vpop.permute.xlu1 %1933  ;;  %9383 = vmatprep.mubr.msk.f32.mxu1 %vm819_vm1, %v12278_v37 }
 0x1b8   :  { %10165 = vmatpush3.bf16.xpose.msk.msra.mxu0 %vm12028_vm2, %v10160_v58  ;;  %10177 = vmatpush3.bf16.xpose.msk.msra.mxu1 %vm12028_vm2, %v10172_v46 }
 0x1ba   :  { %9364 = vmatmul.mubr.msk.f32.gmra.mrb[46].mxu0 %vm819_vm1, %v12250_v4  ;;  %9384 = vmatmul.mubr.msk.f32.gmra.mrb[46].mxu1 %vm819_vm1, %v12286_v42 }
 0x1bb   :  { %9394 = vmatprep.mubr.msk.f32.mxu0 %vm819_vm1, %v12268_v14  ;;  %v12400_v45 = vpop.permute.xlu0 %1468  ;;  %v12402_v55 = vpop.permute.xlu1 %1466  ;;  %9414 = vmatprep.mubr.msk.f32.mxu1 %vm819_vm1, %v1920_v24 }
 0x1bf   :  { %9395 = vmatmul.mubr.msk.f32.vlgmr.msra.gmra.mrb[48].mxu0 %vm819_vm1, %v12280_v32  ;;  %v12407_v49 = vpop.permute.xlu0 %1472  ;;  %v12409_v11 = vpop.permute.xlu1 %1470  ;;  %9415 = vmatmul.mubr.msk.f32.vlgmr.msra.gmra.mrb[48].mxu1 %vm819_vm1, %v1922_v30 }
 0x1c0   :  { %9397 = vmatprep.mubr.msk.f32.mxu0 %vm819_vm1, %v12288_v28  ;;  %9417 = vmatprep.mubr.msk.f32.mxu1 %vm819_vm1, %v1924_v40 }
 0x1c3   :  { %9398 = vmatmul.mubr.msk.f32.gmra.mrb[50].mxu0 %vm819_vm1, %v12306_v51  ;;  %v12417_v44 = vpop.permute.xlu0 %1476  ;;  %v12419_v48 = vpop.permute.xlu1 %1474  ;;  %9418 = vmatmul.mubr.msk.f32.gmra.mrb[50].mxu1 %vm819_vm1, %v1926_v62 }
 0x1c4   :  { %9400 = vmatprep.mubr.msk.f32.mxu0 %vm819_vm1, %v12304_v13  ;;  %9420 = vmatprep.mubr.msk.f32.mxu1 %vm819_vm1, %v1928_v61 }
 0x1c7   :  { %9401 = vmatmul.mubr.msk.f32.gmra.mrb[52].mxu0 %vm819_vm1, %v1781_v29  ;;  %v12426_v56 = vpop.permute.xlu0 %10694  ;;  %v12428_v57 = vpop.permute.xlu1 %1478  ;;  %9421 = vmatmul.mubr.msk.f32.gmra.mrb[52].mxu1 %vm819_vm1, %v1930_v20 }
 0x1c8   :  { %15483 = vst [vmem:[#allocation38_spill] sm:$0xff] %v12426_v56  ;;  %9403 = vmatprep.mubr.msk.f32.mxu0 %vm819_vm1, %v12322_v19  ;;  %9423 = vmatprep.mubr.msk.f32.mxu1 %vm819_vm1, %v1932_v34  ;;  %v15488_v34 = vld [vmem:[#allocation26_spill] sm:$0xff] }
 0x1cb   :  { %9404 = vmatmul.mubr.msk.f32.gmra.mrb[54].mxu0 %vm819_vm1, %v1785_v36  ;;  %v12435_v1 = vpop.permute.xlu0 %10699  ;;  %v12437_v63 = vpop.permute.xlu1 %10689  ;;  %9424 = vmatmul.mubr.msk.f32.gmra.mrb[54].mxu1 %vm819_vm1, %v1934_v47 }
 0x1cc   :  { %15484 = vst [vmem:[#allocation49_spill] sm:$0xff] %v12435_v1 }
 0x1d0   :  { %v12440_v2 = vpop.permute.xlu0 %10704  ;;  %v12442_v4 = vpop.permute.xlu1 %10709 }
 0x1d1   :  { %15485 = vst [vmem:[#allocation50_spill] sm:$0xff] %v12442_v4 }
 0x1d4   :  { %v12444_v7 = vpop.permute.xlu0 %10714  ;;  %v12446_v5 = vpop.permute.xlu1 %10719 }
 0x1d5   :  { %15486 = vst [vmem:[#allocation51_spill] sm:$0xff] %v12444_v7  ;;  %15487 = vst [vmem:[#allocation52_spill] sm:$0xff] %v12446_v5 }
 0x1d8   :  { %v10730_v0 = vpop.permute.xlu1 %10729 }
 0x1d9   :  { %v10725_v8 = vpop.permute.xlu0 %10724  ;;  %v10732_v32 = vunpack.i.h.bf16 %v10730_v0  ;;  %v10731_v42 = vunpack.i.l.bf16 %v10730_v0 }
 0x1da   :  { %v10727_v16 = vunpack.i.h.bf16 %v10725_v8  ;;  %v10726_v25 = vunpack.i.l.bf16 %v10725_v8 }
 0x1db   :  { %v10190_v27 = vpack.c.bf16 %v10732_v32, %v10731_v42 }
 0x1dc   :  { %v10735_v14 = vpop.permute.xlu1 %10734  ;;  %v10182_v50 = vpack.c.bf16 %v10727_v16, %v10726_v25 }
 0x1dd   :  { %v12448_v54 = vpop.permute.xlu0 %10744  ;;  %v10737_v41 = vunpack.i.h.bf16 %v10735_v14  ;;  %v10736_v37 = vunpack.i.l.bf16 %v10735_v14 }
 0x1df   :  { %v10178_v28 = vpack.c.bf16 %v10737_v41, %v10736_v37  ;;  %v15491_v41 = vld [vmem:[#allocation28_spill] sm:$0xff] }
 0x1e1   :  { %v10740_v6 = vpop.permute.xlu1 %10739  ;;  %10179 = vmatprep.subr.bf16.mxu0 %v10178_v28  ;;  %v12450_v19 = vpop.permute.xlu0 %10749 }
 0x1e2   :  { %v10742_v13 = vunpack.i.h.bf16 %v10740_v6  ;;  %v10741_v51 = vunpack.i.l.bf16 %v10740_v6  ;;  %10181 = vmatpush3.bf16.msra.mxu0 %v10178_v28 }
 0x1e3   :  { %10183 = vmatprep.subr.bf16.mxu0 %v10182_v50 }
 0x1e4   :  { %v10186_v24 = vpack.c.bf16 %v10742_v13, %v10741_v51  ;;  %v15495_v13 = vld [vmem:[#allocation25_spill] sm:$0xff] }
 0x1e5   :  { %v10755_v23 = vpop.permute.xlu0 %10754 }
 0x1e6   :  { %10187 = vmatprep.subr.bf16.mxu1 %v10186_v24  ;;  %10185 = vmatpush3.bf16.msra.mxu0 %v10182_v50  ;;  %v10757_v29 = vunpack.i.h.bf16 %v10755_v23  ;;  %v10756_v30 = vunpack.i.l.bf16 %v10755_v23  ;;  %v15493_v50 = vld [vmem:[#allocation24_spill] sm:$0xff] }
 0x1e7   :  { %10189 = vmatpush3.bf16.msra.mxu1 %v10186_v24 }
 0x1e8   :  { %10191 = vmatprep.subr.bf16.mxu1 %v10190_v27  ;;  %v12452_v36 = vpack.c.bf16 %v10757_v29, %v10756_v30 }
 0x1e9   :  { %v10760_v40 = vpop.permute.xlu0 %10759 }
 0x1ea   :  { %v10762_v58 = vunpack.i.h.bf16 %v10760_v40  ;;  %v10761_v46 = vunpack.i.l.bf16 %v10760_v40  ;;  %10195 = vmatprep.subr.bf16.mxu0 %v12452_v36 }
 0x1eb   :  { %10193 = vmatpush3.bf16.msra.mxu1 %v10190_v27 }
 0x1ec   :  { %v12455_v61 = vpack.c.bf16 %v10762_v58, %v10761_v46  ;;  %v15498_v46 = vld [vmem:[#allocation30_spill] sm:$0xff] }
 0x1ee   :  { %10203 = vmatprep.subr.bf16.mxu1 %v12455_v61 }
 0x24f   :  { %v9252_v62 = vpop.f32.mrb[24].mxu0  ;;  %v9280_v47 = vpop.f32.mrb[24].mxu1 }
 0x250   :  { %v12459_v20 = vadd.f32 %v9252_v62, %v15488_v34  ;;  %v918_v0 = vpop.f32.mrb[25].mxu0  ;;  %v1079_v8 = vpop.f32.mrb[25].mxu1  ;;  %v12462_v16 = vadd.f32 %v9280_v47, %v15488_v34 }
 0x251   :  { %v12470_v6 = vadd.f32 %v918_v0, %v15493_v50  ;;  %v12480_v58 = vadd.f32 %v1079_v8, %v15493_v50 }
 0x252   :  { %15489 = vst [vmem:[#allocation26_spill] sm:$0xff] %v12459_v20  ;;  %15490 = vst [vmem:[#allocation53_spill] sm:$0xff] %v12462_v16  ;;  %v2072_v25 = vsel %vm2068_vm3, %v12459_v20, -inf  ;;  %v2096_v24 = vsel %vm2068_vm3, %v12462_v16, -inf }
 0x253   :  { %v9255_v14 = vpop.f32.mrb[26].mxu0  ;;  %2073 = vmax.xlane.f32.xlu0 %v2072_v25  ;;  %v9283_v32 = vpop.f32.mrb[26].mxu1  ;;  %15494 = vst [vmem:[#allocation24_spill] sm:$0xff] %v12470_v6  ;;  %15497 = vst [vmem:[#allocation54_spill] sm:$0xff] %v12480_v58  ;;  %v2069_v47 = vsel %vm2068_vm3, %v12470_v6, -inf }
 0x254   :  { %v12467_v37 = vadd.f32 %v9255_v14, %v15491_v41  ;;  %v928_v42 = vpop.f32.mrb[27].mxu0  ;;  %v1089_v28 = vpop.f32.mrb[27].mxu1 }
 0x255   :  { %v12473_v51 = vadd.f32 %v928_v42, %v15495_v13 }
 0x256   :  { %15492 = vst [vmem:[#allocation28_spill] sm:$0xff] %v12467_v37  ;;  %v2078_v27 = vsel %vm2068_vm3, %v12467_v37, -inf }
 0x257   :  { %15496 = vst [vmem:[#allocation25_spill] sm:$0xff] %v12473_v51  ;;  %v9258_v23 = vpop.f32.mrb[28].mxu0  ;;  %2097 = vmax.xlane.f32.xlu0 %v2096_v24  ;;  %2079 = vmax.xlane.f32.xlu1 %v2078_v27  ;;  %v9286_v29 = vpop.f32.mrb[28].mxu1  ;;  %v2075_v0 = vsel %vm2068_vm3, %v12473_v51, -inf  ;;  %v12490_v27 = vadd.f32 %v9283_v32, %v15491_v41 }
 0x258   :  { %v938_v30 = vpop.f32.mrb[29].mxu0  ;;  %v1099_v40 = vpop.f32.mrb[29].mxu1  ;;  %v12483_v62 = vadd.f32 %v9258_v23, %v15498_v46  ;;  %v12493_v8 = vadd.f32 %v9286_v29, %v15498_v46  ;;  %v2093_v23 = vsel %vm2068_vm3, %v12480_v58, -inf }
 0x259   :  { %15500 = vst [vmem:[#allocation55_spill] sm:$0xff] %v12490_v27  ;;  %v2102_v32 = vsel %vm2068_vm3, %v12490_v27, -inf }
 0x25a   :  { %15499 = vst [vmem:[#allocation30_spill] sm:$0xff] %v12483_v62  ;;  %15501 = vst [vmem:[#allocation56_spill] sm:$0xff] %v12493_v8  ;;  %v2084_v3 = vsel %vm2068_vm3, %v12483_v62, -inf  ;;  %v2108_v29 = vsel %vm2068_vm3, %v12493_v8, -inf }
 0x25b   :  { %v9261_v25 = vpop.f32.mrb[30].mxu0  ;;  %2070 = vmax.xlane.f32.xlu0 %v2069_v47  ;;  %2076 = vmax.xlane.f32.xlu1 %v2075_v0  ;;  %v9289_v14 = vpop.f32.mrb[30].mxu1  ;;  %v12500_v47 = vadd.f32 %v1089_v28, %v15495_v13  ;;  %v15503_v0 = vld [vmem:[#allocation27_spill] sm:$0xff] }
 0x25c   :  { %v948_v42 = vpop.f32.mrb[31].mxu0  ;;  %v1109_v24 = vpop.f32.mrb[31].mxu1  ;;  %v12503_v16 = vadd.f32 %v938_v30, %v15503_v0  ;;  %v12510_v58 = vadd.f32 %v1099_v40, %v15503_v0  ;;  %v15506_v30 = vld [vmem:[#allocation31_spill] sm:$0xff] }
 0x25d   :  { %15502 = vst [vmem:[#allocation57_spill] sm:$0xff] %v12500_v47 }
 0x25e   :  { %15504 = vst [vmem:[#allocation27_spill] sm:$0xff] %v12503_v16  ;;  %15505 = vst [vmem:[#allocation58_spill] sm:$0xff] %v12510_v58  ;;  %v2081_v28 = vsel %vm2068_vm3, %v12503_v16, -inf  ;;  %v2105_v27 = vsel %vm2068_vm3, %v12510_v58, -inf }
 0x25f   :  { %2094 = vmax.xlane.f32.xlu0 %v2093_v23  ;;  %2085 = vmax.xlane.f32.xlu1 %v2084_v3  ;;  %v2099_v3 = vsel %vm2068_vm3, %v12500_v47, -inf  ;;  %v12517_v23 = vadd.f32 %v9261_v25, %v15506_v30  ;;  %v15510_v47 = vld [vmem:[#allocation29_spill] sm:$0xff] }
 0x260   :  { %v12530_v25 = vadd.f32 %v948_v42, %v15510_v47  ;;  %v12540_v17 = vadd.f32 %v1109_v24, %v15510_v47 }
 0x261   :  { %15507 = vst [vmem:[#allocation31_spill] sm:$0xff] %v12517_v23  ;;  %v2090_v40 = vsel %vm2068_vm3, %v12517_v23, -inf }
 0x262   :  { %15511 = vst [vmem:[#allocation29_spill] sm:$0xff] %v12530_v25  ;;  %15513 = vst [vmem:[#allocation62_spill] sm:$0xff] %v12540_v17  ;;  %v2087_v16 = vsel %vm2068_vm3, %v12530_v25, -inf  ;;  %v2111_v37 = vsel %vm2068_vm3, %v12540_v17, -inf }
 0x263   :  { %2103 = vmax.xlane.f32.xlu0 %v2102_v32  ;;  %2109 = vmax.xlane.f32.xlu1 %v2108_v29  ;;  %v12522_v32 = vadd.f32 %v9289_v14, %v15506_v30 }
 0x265   :  { %15508 = vst [vmem:[#allocation59_spill] sm:$0xff] %v12522_v32 }
 0x267   :  { %2100 = vmax.xlane.f32.xlu0 %v2099_v3  ;;  %2082 = vmax.xlane.f32.xlu1 %v2081_v28 }
 0x26b   :  { %2106 = vmax.xlane.f32.xlu1 %v2105_v27  ;;  %v2114_v27 = vsel %vm2068_vm3, %v12522_v32, -inf }
 0x26f   :  { %2091 = vmax.xlane.f32.xlu1 %v2090_v40 }
 0x270   :  { %v9308_v29 = vpop.f32.mrb[32].mxu0  ;;  %v9336_v3 = vpop.f32.mrb[32].mxu1 }
 0x271   :  { %v12527_v8 = vadd.f32 %v9308_v29, %v15488_v34  ;;  %v1240_v28 = vpop.f32.mrb[33].mxu0  ;;  %v1401_v62 = vpop.f32.mrb[33].mxu1  ;;  %v12535_v14 = vadd.f32 %v9336_v3, %v15488_v34 }
 0x272   :  { %v12545_v32 = vadd.f32 %v1240_v28, %v15493_v50  ;;  %v12555_v25 = vadd.f32 %v1401_v62, %v15493_v50 }
 0x273   :  { %15509 = vst [vmem:[#allocation60_spill] sm:$0xff] %v12527_v8  ;;  %15512 = vst [vmem:[#allocation61_spill] sm:$0xff] %v12535_v14  ;;  %2115 = vmax.xlane.f32.xlu1 %v2114_v27  ;;  %v2120_v40 = vsel %vm2068_vm3, %v12527_v8, -inf  ;;  %v2144_v34 = vsel %vm2068_vm3, %v12535_v14, -inf }
 0x274   :  { %2121 = vmax.xlane.f32.xlu0 %v2120_v40  ;;  %v9311_v58 = vpop.f32.mrb[34].mxu0  ;;  %v9339_v29 = vpop.f32.mrb[34].mxu1  ;;  %15514 = vst [vmem:[#allocation63_spill] sm:$0xff] %v12545_v32  ;;  %15516 = vst [vmem:[#allocation65_spill] sm:$0xff] %v12555_v25 }
 0x275   :  { %v1250_v23 = vpop.f32.mrb[35].mxu0  ;;  %v1411_v42 = vpop.f32.mrb[35].mxu1  ;;  %v12550_v8 = vadd.f32 %v9339_v29, %v15491_v41  ;;  %v12567_v17 = vadd.f32 %v9311_v58, %v15491_v41 }
 0x276   :  { %v12560_v52 = vadd.f32 %v1411_v42, %v15495_v13 }
 0x277   :  { %2088 = vmax.xlane.f32.xlu1 %v2087_v16  ;;  %15515 = vst [vmem:[#allocation64_spill] sm:$0xff] %v12550_v8  ;;  %v2117_v16 = vsel %vm2068_vm3, %v12545_v32, -inf  ;;  %v2150_v51 = vsel %vm2068_vm3, %v12550_v8, -inf  ;;  %15518 = vst [vmem:[#allocation67_spill] sm:$0xff] %v12567_v17  ;;  %v12581_v8 = vadd.f32 %v1250_v23, %v15495_v13 }
 0x278   :  { %2145 = vmax.xlane.f32.xlu0 %v2144_v34  ;;  %v9314_v3 = vpop.f32.mrb[36].mxu0  ;;  %v9342_v27 = vpop.f32.mrb[36].mxu1  ;;  %15517 = vst [vmem:[#allocation66_spill] sm:$0xff] %v12560_v52  ;;  %v2147_v32 = vsel %vm2068_vm3, %v12560_v52, -inf }
 0x279   :  { %v1260_v40 = vpop.f32.mrb[37].mxu0  ;;  %v1421_v24 = vpop.f32.mrb[37].mxu1  ;;  %v12574_v62 = vadd.f32 %v9314_v3, %v15498_v46  ;;  %15520 = vst [vmem:[#allocation69_spill] sm:$0xff] %v12581_v8  ;;  %v12599_v23 = vadd.f32 %v9342_v27, %v15498_v46 }
 0x27b   :  { %2112 = vmax.xlane.f32.xlu1 %v2111_v37  ;;  %v2141_v37 = vsel %vm2068_vm3, %v12555_v25, -inf  ;;  %15519 = vst [vmem:[#allocation68_spill] sm:$0xff] %v12574_v62  ;;  %v2132_v13 = vsel %vm2068_vm3, %v12574_v62, -inf  ;;  %15522 = vst [vmem:[#allocation71_spill] sm:$0xff] %v12599_v23  ;;  %v12611_v62 = vadd.f32 %v1260_v40, %v15503_v0  ;;  %v2156_v27 = vsel %vm2068_vm3, %v12599_v23, -inf }
 0x27c   :  { %v9317_v28 = vpop.f32.mrb[38].mxu0  ;;  %2118 = vmax.xlane.f32.xlu0 %v2117_v16  ;;  %v9345_v34 = vpop.f32.mrb[38].mxu1 }
 0x27d   :  { %v1270_v14 = vpop.f32.mrb[39].mxu0  ;;  %v12562_v29 = vpop.f32.mrb[39].mxu1  ;;  %v12590_v3 = vadd.f32 %v9317_v28, %v15506_v30  ;;  %15523 = vst [vmem:[#allocation72_spill] sm:$0xff] %v12611_v62  ;;  %v12633_v10 = vadd.f32 %v9345_v34, %v15506_v30 }
 0x27e   :  { %v12651_v34 = vadd.f32 %v1270_v14, %v15510_v47  ;;  %v12666_v14 = vadd.f32 %v12562_v29, %v15510_v47 }
 0x27f   :  { %2151 = vmax.xlane.f32.xlu1 %v2150_v51  ;;  %v2126_v51 = vsel %vm2068_vm3, %v12567_v17, -inf  ;;  %15521 = vst [vmem:[#allocation70_spill] sm:$0xff] %v12590_v3  ;;  %v2138_v31 = vsel %vm2068_vm3, %v12590_v3, -inf  ;;  %v12621_v3 = vadd.f32 %v1421_v24, %v15503_v0  ;;  %15525 = vst [vmem:[#allocation74_spill] sm:$0xff] %v12633_v10 }
 0x280   :  { %2142 = vmax.xlane.f32.xlu0 %v2141_v37  ;;  %15526 = vst [vmem:[#allocation75_spill] sm:$0xff] %v12651_v34  ;;  %15527 = vst [vmem:[#allocation76_spill] sm:$0xff] %v12666_v14 }
 0x281   :  { %v12571_v50 = vpop.f32.mrb[40].mxu0  ;;  %v12576_v42 = vpop.f32.mrb[40].mxu1  ;;  %15524 = vst [vmem:[#allocation73_spill] sm:$0xff] %v12621_v3 }
 0x282   :  { %v1582_v16 = vpop.f32.mrb[41].mxu0  ;;  %v12583_v41 = vpop.f32.mrb[41].mxu1  ;;  %v12683_v47 = vadd.f32 %v12571_v50, %v12402_v55  ;;  %v12698_v50 = vadd.f32 %v12576_v42, %v12402_v55 }
 0x283   :  { %2148 = vmax.xlane.f32.xlu1 %v2147_v32  ;;  %v12606_v28 = vadd.f32 %v1582_v16, %v12386_v35 }
 0x284   :  { %2127 = vmax.xlane.f32.xlu0 %v2126_v51  ;;  %v2123_v51 = vsel %vm2068_vm3, %v12581_v8, -inf  ;;  %v2192_v42 = vsel %vm86_vm0, %v12698_v50, -inf }
 0x285   :  { %v12587_v58 = vpop.f32.mrb[42].mxu0  ;;  %v12592_v37 = vpop.f32.mrb[42].mxu1  ;;  %v2165_v6 = vsel %vm86_vm0, %v12606_v28, -inf }
 0x286   :  { %v12594_v25 = vpop.f32.mrb[43].mxu0  ;;  %v12601_v32 = vpop.f32.mrb[43].mxu1 }
 0x287   :  { %2133 = vmax.xlane.f32.xlu1 %v2132_v13 }
 0x288   :  { %2124 = vmax.xlane.f32.xlu0 %v2123_v51 }
 0x289   :  { %v9362_v52 = vpop.f32.mrb[44].mxu0  ;;  %v9382_v17 = vpop.f32.mrb[44].mxu1 }
 0x28a   :  { %v1602_v20 = vpop.f32.mrb[45].mxu0  ;;  %v1751_v46 = vpop.f32.mrb[45].mxu1  ;;  %v12616_v51 = vadd.f32 %v9362_v52, %v12419_v48 }
 0x28b   :  { %2139 = vmax.xlane.f32.xlu1 %v2138_v31  ;;  %v2129_v31 = vsel %vm2068_vm3, %v12611_v62, -inf }
 0x28c   :  { %2157 = vmax.xlane.f32.xlu0 %v2156_v27  ;;  %v12626_v27 = vadd.f32 %v9382_v17, %v12419_v48  ;;  %v2180_v52 = vsel %vm86_vm0, %v12616_v51, -inf  ;;  %v12644_v17 = vadd.f32 %v1602_v20, %v12407_v49  ;;  %v12658_v20 = vadd.f32 %v1751_v46, %v12407_v49 }
 0x28d   :  { %v9365_v13 = vpop.f32.mrb[46].mxu0  ;;  %v9385_v16 = vpop.f32.mrb[46].mxu1 }
 0x28e   :  { %v1612_v8 = vpop.f32.mrb[47].mxu0  ;;  %v1761_v40 = vpop.f32.mrb[47].mxu1  ;;  %v2204_v30 = vsel %vm86_vm0, %v12626_v27, -inf  ;;  %v2177_v4 = vsel %vm86_vm0, %v12644_v17, -inf  ;;  %v12677_v46 = vadd.f32 %v9365_v13, %v12428_v57  ;;  %v2201_v56 = vsel %vm86_vm0, %v12658_v20, -inf }
 0x28f   :  { %2166 = vmax.xlane.f32.xlu1 %v2165_v6  ;;  %v2153_v6 = vsel %vm2068_vm3, %v12621_v3, -inf  ;;  %v12692_v13 = vadd.f32 %v9385_v16, %v12428_v57  ;;  %v12709_v16 = vadd.f32 %v12583_v41, %v12386_v35 }
 0x290   :  { %2130 = vmax.xlane.f32.xlu0 %v2129_v31 }
 0x291   :  { %v2189_v41 = vsel %vm86_vm0, %v12709_v16, -inf }
 0x292   :  { %v12628_v23 = vpop.f32.mrb[48].mxu0  ;;  %v12635_v5 = vpop.f32.mrb[48].mxu1 }
 0x293   :  { %v12637_v0 = vpop.f32.mrb[49].mxu0  ;;  %2181 = vmax.xlane.f32.xlu1 %v2180_v52  ;;  %v12641_v24 = vpop.f32.mrb[49].mxu1  ;;  %v2162_v52 = vsel %vm2068_vm3, %v12633_v10, -inf }
 0x294   :  { %2154 = vmax.xlane.f32.xlu0 %v2153_v6 }
 0x296   :  { %v12646_v31 = vpop.f32.mrb[50].mxu0  ;;  %v9419_v62 = vpop.f32.mrb[50].mxu1 }
 0x297   :  { %v12653_v21 = vpop.f32.mrb[51].mxu0  ;;  %2205 = vmax.xlane.f32.xlu1 %v2204_v30  ;;  %v2039_v3 = vpop.f32.mrb[51].mxu1 }
 0x298   :  { %2163 = vmax.xlane.f32.xlu0 %v2162_v52  ;;  %v2135_v52 = vsel %vm2068_vm3, %v12651_v34, -inf  ;;  %v2159_v34 = vsel %vm2068_vm3, %v12666_v14, -inf  ;;  %v12703_v14 = vadd.f32 %v1612_v8, %v12417_v44  ;;  %v12720_v8 = vadd.f32 %v12587_v58, %v12409_v11 }
 0x29a   :  { %v12660_v6 = vpop.f32.mrb[52].mxu0  ;;  %v12668_v7 = vpop.f32.mrb[52].mxu1  ;;  %v2174_v58 = vsel %vm86_vm0, %v12720_v8, -inf }
 0x29b   :  { %v12670_v30 = vpop.f32.mrb[53].mxu0  ;;  %2178 = vmax.xlane.f32.xlu1 %v2177_v4  ;;  %v12674_v10 = vpop.f32.mrb[53].mxu1 }
 0x29c   :  { %2136 = vmax.xlane.f32.xlu0 %v2135_v52  ;;  %v2186_v52 = vsel %vm86_vm0, %v12677_v46, -inf }
 0x29e   :  { %v9405_v1 = vpop.f32.mrb[54].mxu0  ;;  %v12685_v29 = vpop.f32.mrb[54].mxu1 }
 0x29f   :  { %v1910_v4 = vpop.f32.mrb[55].mxu0  ;;  %2202 = vmax.xlane.f32.xlu1 %v2201_v56  ;;  %v12689_v9 = vpop.f32.mrb[55].mxu1  ;;  %v2168_v56 = vsel %vm86_vm0, %v12683_v47, -inf }
 0x2a0   :  { %2160 = vmax.xlane.f32.xlu0 %v2159_v34  ;;  %v2210_v34 = vsel %vm86_vm0, %v12692_v13, -inf }
 0x2a3   :  { %2187 = vmax.xlane.f32.xlu1 %v2186_v52  ;;  %v12714_v52 = vadd.f32 %v1761_v40, %v12417_v44  ;;  %v12731_v40 = vadd.f32 %v12592_v37, %v12409_v11 }
 0x2a4   :  { %2169 = vmax.xlane.f32.xlu0 %v2168_v56  ;;  %v2183_v56 = vsel %vm86_vm0, %v12703_v14, -inf }
 0x2a5   :  { %v2198_v37 = vsel %vm86_vm0, %v12731_v40, -inf }
 0x2a7   :  { %2211 = vmax.xlane.f32.xlu1 %v2210_v34  ;;  %v12725_v34 = vadd.f32 %v9419_v62, %v12409_v11  ;;  %v12742_v62 = vadd.f32 %v12594_v25, %v12400_v45 }
 0x2a8   :  { %2193 = vmax.xlane.f32.xlu0 %v2192_v42  ;;  %v2207_v42 = vsel %vm86_vm0, %v12714_v52, -inf }
 0x2a9   :  { %15528 = vst [vmem:[#allocation77_spill] sm:$0xff] %v12725_v34  ;;  %v2171_v25 = vsel %vm86_vm0, %v12742_v62, -inf }
 0x2ab   :  { %2184 = vmax.xlane.f32.xlu1 %v2183_v56  ;;  %v12736_v56 = vadd.f32 %v2039_v3, %v12400_v45  ;;  %v12753_v3 = vadd.f32 %v12601_v32, %v12400_v45 }
 0x2ac   :  { %2190 = vmax.xlane.f32.xlu0 %v2189_v41  ;;  %v2246_v41 = vsel %vm86_vm0, %v12725_v34, -inf  ;;  %v15545_v34 = vld [vmem:[#allocation22_spill] sm:$0xff] }
 0x2ad   :  { %15529 = vst [vmem:[#allocation78_spill] sm:$0xff] %v12736_v56  ;;  %v2195_v32 = vsel %vm86_vm0, %v12753_v3, -inf }
 0x2af   :  { %2208 = vmax.xlane.f32.xlu1 %v2207_v42  ;;  %v12747_v42 = vadd.f32 %v9405_v1, %v12428_v57  ;;  %v12764_v1 = vadd.f32 %v12628_v23, %v12402_v55  ;;  %v12778_v23 = vadd.f32 %v12637_v0, %v12386_v35 }
 0x2b0   :  { %2175 = vmax.xlane.f32.xlu0 %v2174_v58  ;;  %v2243_v58 = vsel %vm86_vm0, %v12736_v56, -inf }
 0x2b1   :  { %15530 = vst [vmem:[#allocation79_spill] sm:$0xff] %v12747_v42  ;;  %15533 = vst [vmem:[#allocation82_spill] sm:$0xff] %v12778_v23 }
 0x2b3   :  { %2247 = vmax.xlane.f32.xlu1 %v2246_v41  ;;  %v12758_v41 = vadd.f32 %v1910_v4, %v12417_v44  ;;  %v2216_v4 = vsel %vm86_vm0, %v12764_v1, -inf }
 0x2b4   :  { %2199 = vmax.xlane.f32.xlu0 %v2198_v37  ;;  %v2234_v37 = vsel %vm86_vm0, %v12747_v42, -inf  ;;  %v15542_v42 = vld [vmem:[#allocation16_spill] sm:$0xff] }
 0x2b5   :  { %15531 = vst [vmem:[#allocation80_spill] sm:$0xff] %v12758_v41 }
 0x2b7   :  { %2244 = vmax.xlane.f32.xlu1 %v2243_v58  ;;  %v2231_v58 = vsel %vm86_vm0, %v12758_v41, -inf }
 0x2b8   :  { %2172 = vmax.xlane.f32.xlu0 %v2171_v25  ;;  %v12772_v25 = vadd.f32 %v12635_v5, %v12402_v55  ;;  %v2213_v55 = vsel %vm86_vm0, %v12778_v23, -inf  ;;  %v12790_v5 = vadd.f32 %v12646_v31, %v12409_v11  ;;  %v12810_v31 = vadd.f32 %v12668_v7, %v12419_v48 }
 0x2b9   :  { %v12878_v23 = vadd.f32 %v12674_v10, %v12407_v49 }
 0x2ba   :  { %15532 = vst [vmem:[#allocation81_spill] sm:$0xff] %v12772_v25  ;;  %15535 = vst [vmem:[#allocation84_spill] sm:$0xff] %v12790_v5 }
 0x2bb   :  { %2235 = vmax.xlane.f32.xlu1 %v2234_v37  ;;  %v2240_v37 = vsel %vm86_vm0, %v12772_v25, -inf  ;;  %15539 = vst [vmem:[#allocation87_spill] sm:$0xff] %v12810_v31  ;;  %v15548_v25 = vld [vmem:[#allocation21_spill] sm:$0xff]  ;;  %15549 = vst [vmem:[#allocation93_spill] sm:$0xff] %v12878_v23 }
 0x2bc   :  { %2196 = vmax.xlane.f32.xlu0 %v2195_v32  ;;  %v12784_v32 = vadd.f32 %v12641_v24, %v12386_v35  ;;  %v2222_v35 = vsel %vm86_vm0, %v12790_v5, -inf  ;;  %v15537_v24 = vld [vmem:[#allocation15_spill] sm:$0xff] }
 0x2be   :  { %15534 = vst [vmem:[#allocation83_spill] sm:$0xff] %v12784_v32  ;;  %v2237_v0 = vsel %vm86_vm0, %v12784_v32, -inf }
 0x2bf   :  { %2232 = vmax.xlane.f32.xlu1 %v2231_v58  ;;  %v12796_v58 = vadd.f32 %v12653_v21, %v12400_v45  ;;  %v12816_v45 = vadd.f32 %v12670_v30, %v12407_v49  ;;  %v12834_v30 = vadd.f32 %v12689_v9, %v12417_v44  ;;  %v15556_v49 = vld [vmem:[#allocation9_spill] sm:$0xff] }
 0x2c0   :  { %2217 = vmax.xlane.f32.xlu0 %v2216_v4  ;;  %v12804_v4 = vadd.f32 %v12660_v6, %v12419_v48  ;;  %v2252_v6 = vsel %vm86_vm0, %v12810_v31, -inf }
 0x2c1   :  { %15536 = vst [vmem:[#allocation85_spill] sm:$0xff] %v12796_v58  ;;  %v2219_v11 = vsel %vm86_vm0, %v12796_v58, -inf  ;;  %15540 = vst [vmem:[#allocation88_spill] sm:$0xff] %v12816_v45 }
 0x2c2   :  { %15538 = vst [vmem:[#allocation86_spill] sm:$0xff] %v12804_v4  ;;  %v2228_v21 = vsel %vm86_vm0, %v12804_v4, -inf  ;;  %15541 = vst [vmem:[#allocation89_spill] sm:$0xff] %v12834_v30 }
 0x2c4   :  { %2241 = vmax.xlane.f32.xlu0 %v2240_v37  ;;  %v2225_v37 = vsel %vm86_vm0, %v12816_v45, -inf }
 0x2c8   :  { %2214 = vmax.xlane.f32.xlu0 %v2213_v55 }
 0x2cc   :  { %2238 = vmax.xlane.f32.xlu0 %v2237_v0 }
 0x2d0   :  { %2223 = vmax.xlane.f32.xlu0 %v2222_v35  ;;  %10769 = vrot.lane.b32.xlu1 %v15537_v24, %s11497_s21 }
 0x2d4   :  { %2220 = vmax.xlane.f32.xlu0 %v2219_v11 }
 0x2d8   :  { %2229 = vmax.xlane.f32.xlu0 %v2228_v21 }
 0x2dc   :  { %2253 = vmax.xlane.f32.xlu0 %v2252_v6 }
 0x2e0   :  { %2226 = vmax.xlane.f32.xlu0 %v2225_v37  ;;  %v12822_v55 = vpop.xlane.xlu0 %2073  ;;  %v2255_v37 = vsel %vm86_vm0, %v12834_v30, -inf }
 0x2e4   :  { %v12824_v48 = vpop.xlane.xlu1 %2079  ;;  %v12826_v7 = vpop.xlane.xlu0 %2097 }
 0x2e8   :  { %v12828_v0 = vpop.xlane.xlu1 %2076  ;;  %v2071_v35 = vpop.xlane.xlu0 %2070 }
 0x2ec   :  { %v12830_v11 = vpop.xlane.xlu1 %2085  ;;  %v12838_v6 = vpop.xlane.xlu0 %2094 }
 0x2f0   :  { %v12836_v21 = vpop.xlane.xlu1 %2109  ;;  %v12846_v45 = vpop.xlane.xlu0 %2103 }
 0x2f4   :  { %v12842_v31 = vpop.xlane.xlu1 %2082  ;;  %2256 = vmax.xlane.f32.xlu1 %v2255_v37  ;;  %v12852_v9 = vpop.xlane.xlu0 %2100  ;;  %v15543_v37 = vld [vmem:[#allocation20_spill] sm:$0xff] }
 0x2f6   :  { %10764 = vrot.lane.b32.xlu0 %v15542_v42, %s11497_s21 }
 0x2f8   :  { %v12848_v41 = vpop.xlane.xlu1 %2106 }
 0x2fc   :  { %v12850_v4 = vpop.xlane.xlu1 %2091 }
 0x300   :  { %v12854_v44 = vpop.xlane.xlu1 %2115 }
 0x301   :  { %v12856_v58 = vpop.xlane.xlu0 %2121 }
 0x304   :  { %v12858_v5 = vpop.xlane.xlu1 %2088 }
 0x305   :  { %v12860_v30 = vpop.xlane.xlu0 %2145  ;;  %10779 = vrot.lane.b32.xlu1 %v15543_v37, %s11497_s21 }
 0x308   :  { %v12864_v26 = vpop.xlane.xlu1 %2112 }
 0x309   :  { %v12866_v39 = vpop.xlane.xlu0 %2118  ;;  %10789 = vrot.lane.b32.xlu1 %v15545_v34, %s11497_s21  ;;  %v12888_v34 = vadd.f32 %v12685_v29, %v12428_v57  ;;  %v15559_v57 = vld [vmem:[#allocation11_spill] sm:$0xff] }
 0x30a   :  { %15544 = vst [vmem:[#allocation90_spill] sm:$0xff] %v12866_v39  ;;  %v15552_v39 = vld [vmem:[#allocation8_spill] sm:$0xff] }
 0x30b   :  { %15553 = vst [vmem:[#allocation96_spill] sm:$0xff] %v12888_v34 }
 0x30c   :  { %v12870_v32 = vpop.xlane.xlu1 %2151 }
 0x30d   :  { %15546 = vst [vmem:[#allocation91_spill] sm:$0xff] %v12870_v32  ;;  %v12872_v56 = vpop.xlane.xlu0 %2142  ;;  %10799 = vrot.lane.b32.xlu1 %v15548_v25, %s11497_s21  ;;  %v2249_v32 = vsel %vm86_vm0, %v12878_v23, -inf  ;;  %v15562_v23 = vld [vmem:[#allocation13_spill] sm:$0xff] }
 0x30e   :  { %15547 = vst [vmem:[#allocation92_spill] sm:$0xff] %v12872_v56 }
 0x310   :  { %v12880_v59 = vpop.xlane.xlu1 %2148 }
 0x311   :  { %15550 = vst [vmem:[#allocation94_spill] sm:$0xff] %v12880_v59  ;;  %v12882_v37 = vpop.xlane.xlu0 %2127  ;;  %10809 = vrot.lane.b32.xlu1 %v15552_v39, %s11498_s7  ;;  %v2258_v39 = vsel %vm86_vm0, %v12888_v34, -inf }
 0x312   :  { %15551 = vst [vmem:[#allocation95_spill] sm:$0xff] %v12882_v37 }
 0x314   :  { %v12890_v56 = vpop.xlane.xlu1 %2133 }
 0x315   :  { %15554 = vst [vmem:[#allocation97_spill] sm:$0xff] %v12890_v56  ;;  %2250 = vmax.xlane.f32.xlu0 %v2249_v32  ;;  %v12894_v10 = vpop.xlane.xlu0 %2124  ;;  %10819 = vrot.lane.b32.xlu1 %v15556_v49, %s11498_s7 }
 0x316   :  { %15555 = vst [vmem:[#allocation98_spill] sm:$0xff] %v12894_v10 }
 0x318   :  { %v12898_v37 = vpop.xlane.xlu1 %2139 }
 0x319   :  { %15557 = vst [vmem:[#allocation99_spill] sm:$0xff] %v12898_v37  ;;  %2259 = vmax.xlane.f32.xlu0 %v2258_v39  ;;  %v12902_v59 = vpop.xlane.xlu0 %2157  ;;  %10829 = vrot.lane.b32.xlu1 %v15559_v57, %s11498_s7  ;;  %v15566_v57 = vld [vmem:[#allocation18_spill] sm:$0xff] }
 0x31a   :  { %15558 = vst [vmem:[#allocation100_spill] sm:$0xff] %v12902_v59 }
 0x31c   :  { %v2167_v29 = vpop.xlane.xlu1 %2166 }
 0x31d   :  { %v12906_v56 = vmax.f32 %v2071_v35, %v2167_v29  ;;  %v12908_v32 = vpop.xlane.xlu0 %2130  ;;  %10839 = vrot.lane.b32.xlu1 %v15562_v23, %s11498_s7 }
 0x31e   :  { %15561 = vst [vmem:[#allocation102_spill] sm:$0xff] %v12908_v32 }
 0x31f   :  { %15560 = vst [vmem:[#allocation101_spill] sm:$0xff] %v12906_v56  ;;  %v2389_v49 = vsub.f32 %v12606_v28, %v12906_v56 }
 0x320   :  { %v2182_v37 = vpop.xlane.xlu1 %2181 }
 0x321   :  { %v2421_v10 = vmul.f32 1.442695, %v2389_v49  ;;  %v12914_v34 = vpop.xlane.xlu0 %2154  ;;  %10849 = vrot.lane.b32.xlu1 %v15542_v42, %s11498_s7 }
 0x322   :  { %15563 = vst [vmem:[#allocation103_spill] sm:$0xff] %v12914_v34  ;;  %v15570_v34 = vld [vmem:[#allocation19_spill] sm:$0xff] }
 0x323   :  { %11072 = vpow2.f32 %v2421_v10  ;;  %v15569_v10 = vld [vmem:[#allocation17_spill] sm:$0xff] }
 0x324   :  { %v12918_v39 = vpop.xlane.xlu1 %2205 }
 0x325   :  { %v12920_v35 = vpop.xlane.xlu0 %2163  ;;  %3951 = vrot.lane.b32.xlu1 %v12087_v43, %s11497_s21 }
 0x326   :  { %15564 = vst [vmem:[#allocation104_spill] sm:$0xff] %v12920_v35 }
 0x328   :  { %v2179_v28 = vpop.xlane.xlu1 %2178 }
 0x329   :  { %v12924_v29 = vpop.xlane.xlu0 %2136  ;;  %10859 = vrot.lane.b32.xlu1 %v15566_v57, %s11498_s7 }
 0x32a   :  { %15565 = vst [vmem:[#allocation105_spill] sm:$0xff] %v12924_v29 }
 0x32c   :  { %v2203_v35 = vpop.xlane.xlu1 %2202 }
 0x32d   :  { %v12928_v49 = vpop.xlane.xlu0 %2160  ;;  %4084 = vrot.lane.b32.xlu1 %v12117_v18, %s11497_s21  ;;  %v12932_v42 = vpop.eup %11072 }
 0x32e   :  { %15567 = vst [vmem:[#allocation106_spill] sm:$0xff] %v12928_v49  ;;  %15568 = vst [vmem:[#allocation107_spill] sm:$0xff] %v12932_v42  ;;  %9434 = vmatprep.mubr.msk.f32.mxu0 %vm86_vm0, %v12932_v42 }
 0x32f   :  { %10774 = vrot.lane.b32.xlu0 %v15569_v10, %s11497_s21 }
 0x330   :  { %v2188_v32 = vpop.xlane.xlu1 %2187 }
 0x331   :  { %v2170_v23 = vpop.xlane.xlu0 %2169  ;;  %10869 = vrot.lane.b32.xlu1 %v15570_v34, %s11498_s7 }
 0x332   :  { %v12941_v59 = vmax.f32 %v12822_v55, %v2170_v23 }
 0x333   :  { %10784 = vrot.lane.b32.xlu0 %v15566_v57, %s11497_s21 }
 0x334   :  { %15571 = vst [vmem:[#allocation108_spill] sm:$0xff] %v12941_v59  ;;  %v2390_v49 = vsub.f32 %v12683_v47, %v12941_v59 }
 0x335   :  { %v2194_v56 = vpop.xlane.xlu0 %2193  ;;  %10879 = vrot.lane.b32.xlu1 %v15548_v25, %s11498_s7  ;;  %v15574_v25 = vld [vmem:[#allocation39_spill] sm:$0xff] }
 0x336   :  { %v2423_v42 = vmul.f32 1.442695, %v2390_v49  ;;  %v12950_v29 = vmax.f32 %v12826_v7, %v2194_v56  ;;  %v15573_v49 = vld [vmem:[#allocation23_spill] sm:$0xff]  ;;  %v12965_v7 = vpop.xlane.xlu1 %2211 }
 0x337   :  { %10794 = vrot.lane.b32.xlu0 %v15570_v34, %s11497_s21 }
 0x338   :  { %15572 = vst [vmem:[#allocation109_spill] sm:$0xff] %v12950_v29  ;;  %11074 = vpow2.f32 %v2423_v42  ;;  %v2398_v47 = vsub.f32 %v12698_v50, %v12950_v29  ;;  %v10746_v50 = vunpack.i.l.bf16 %v12448_v54  ;;  %v12974_v29 = vmax.f32 %v12830_v11, %v2182_v37 }
 0x339   :  { %v2191_v23 = vpop.xlane.xlu0 %2190  ;;  %3955 = vrot.lane.b32.xlu1 %v12059_v22, %s11497_s21  ;;  %v12987_v11 = vmax.f32 %v12842_v31, %v2179_v28  ;;  %v10691_v37 = vunpack.i.l.bf16 %v12437_v63 }
 0x33a   :  { %v12957_v55 = vmax.f32 %v12838_v6, %v2191_v23  ;;  %v2439_v42 = vmul.f32 1.442695, %v2398_v47  ;;  %v15575_v6 = vld [vmem:[#allocation10_spill] sm:$0xff]  ;;  %v10747_v23 = vunpack.i.h.bf16 %v12448_v54  ;;  %v15576_v47 = vld [vmem:[#allocation12_spill] sm:$0xff]  ;;  %v10692_v54 = vunpack.i.h.bf16 %v12437_v63 }
 0x33b   :  { %10804 = vrot.lane.b32.xlu0 %v15573_v49, %s11497_s21 }
 0x33c   :  { %v2397_v56 = vsub.f32 %v12709_v16, %v12957_v55  ;;  %v2185_v16 = vpop.xlane.xlu1 %2184 }
 0x33d   :  { %v2176_v34 = vpop.xlane.xlu0 %2175  ;;  %10889 = vrot.lane.b32.xlu1 %v15574_v25, %s11498_s7  ;;  %v13013_v28 = vmax.f32 %v12858_v5, %v2185_v16  ;;  %v13027_v5 = vmax.f32 %v12836_v21, %v12918_v39 }
 0x33e   :  { %v2437_v57 = vmul.f32 1.442695, %v2397_v56  ;;  %v12979_v56 = vmax.f32 %v12824_v48, %v2176_v34  ;;  %v10198_v34 = vpack.c.bf16 %v10747_v23, %v10746_v50 }
 0x33f   :  { %10814 = vrot.lane.b32.xlu0 %v15575_v6, %s11498_s7  ;;  %v2395_v39 = vsub.f32 %v12703_v14, %v13013_v28 }
 0x340   :  { %11076 = vpow2.f32 %v2437_v57  ;;  %v2394_v57 = vsub.f32 %v12616_v51, %v12974_v29  ;;  %v2392_v63 = vsub.f32 %v12720_v8, %v12979_v56  ;;  %v2209_v8 = vpop.xlane.xlu1 %2208 }
 0x341   :  { %v2200_v59 = vpop.xlane.xlu0 %2199  ;;  %4217 = vrot.lane.b32.xlu1 %v12150_v12, %s11497_s21  ;;  %11078 = vpow2.f32 %v2439_v42  ;;  %v12993_v42 = vmax.f32 %v12848_v41, %v2203_v35  ;;  %v15578_v41 = vld [vmem:[#allocation14_spill] sm:$0xff]  ;;  %v2393_v35 = vsub.f32 %v12644_v17, %v12987_v11  ;;  %v10751_v17 = vunpack.i.l.bf16 %v12450_v19 }
 0x342   :  { %v12983_v6 = vpop.eup %11074  ;;  %v13006_v51 = vmax.f32 %v12846_v45, %v2200_v59  ;;  %v2431_v23 = vmul.f32 1.442695, %v2394_v57  ;;  %v13020_v45 = vpack.c.bf16 %v10692_v54, %v10691_v37  ;;  %v2427_v54 = vmul.f32 1.442695, %v2392_v63 }
 0x343   :  { %10824 = vrot.lane.b32.xlu0 %v15576_v47, %s11498_s7  ;;  %15577 = vst [vmem:[#allocation39_spill] sm:$0xff] %v12983_v6  ;;  %9435 = vmatmul.mubr.msk.f32.vlgmr.msra.gmra.mrb[56].mxu0 %vm86_vm0, %v12983_v6  ;;  %v2401_v59 = vsub.f32 %v12658_v20, %v12993_v42  ;;  %v13033_v20 = vmax.f32 %v12850_v4, %v2188_v32  ;;  %v2429_v21 = vmul.f32 1.442695, %v2393_v35  ;;  %v10706_v57 = vunpack.i.l.bf16 %v12440_v2 }
 0x344   :  { %10197 = vmatpush3.bf16.msra.mxu0 %v12452_v36  ;;  %v2400_v37 = vsub.f32 %v12731_v40, %v13006_v51  ;;  %v10707_v40 = vunpack.i.h.bf16 %v12440_v2  ;;  %11080 = vpow2.f32 %v2431_v23  ;;  %v13065_v63 = vmax.f32 %v12854_v44, %v12965_v7  ;;  %v2248_v35 = vpop.xlane.xlu1 %2247 }
 0x345   :  { %v2173_v48 = vpop.xlane.xlu0 %2172  ;;  %4088 = vrot.lane.b32.xlu1 %v12062_v33, %s11497_s21  ;;  %10199 = vmatprep.subr.bf16.mxu0 %v10198_v34  ;;  %v2396_v2 = vsub.f32 %v12677_v46, %v13033_v20 }
 0x346   :  { %v13001_v31 = vmax.f32 %v12828_v0, %v2173_v48  ;;  %v10752_v0 = vunpack.i.h.bf16 %v12450_v19 }
 0x347   :  { %10834 = vrot.lane.b32.xlu0 %v15578_v41, %s11498_s7  ;;  %v2435_v23 = vmul.f32 1.442695, %v2396_v2 }
 0x348   :  { %v2391_v36 = vsub.f32 %v12742_v62, %v13001_v31  ;;  %10201 = vmatpush3.bf16.msra.mxu0 %v10198_v34  ;;  %v2445_v34 = vmul.f32 1.442695, %v2401_v59  ;;  %v2404_v59 = vsub.f32 %v12692_v13, %v13065_v63 }
 0x349   :  { %v2197_v50 = vpop.xlane.xlu0 %2196  ;;  %10899 = vrot.lane.b32.xlu1 %v12132_v15, %s11498_s7  ;;  %10211 = vmatprep.subr.bf16.mxu0 %v13020_v45 }
 0x34a   :  { %v2425_v62 = vmul.f32 1.442695, %v2391_v36  ;;  %v13030_v16 = vmax.f32 %v12852_v9, %v2197_v50  ;;  %v13040_v19 = vpop.eup %11076  ;;  %v13045_v9 = vmax.f32 %v12864_v26, %v2209_v8  ;;  %v2402_v26 = vsub.f32 %v12626_v27, %v13027_v5  ;;  %v2245_v8 = vpop.xlane.xlu1 %2244 }
 0x34b   :  { %10844 = vrot.lane.b32.xlu0 %v15537_v24, %s11498_s7  ;;  %15579 = vst [vmem:[#allocation12_spill] sm:$0xff] %v13040_v19  ;;  %v13049_v32 = vpop.eup %11078  ;;  %9454 = vmatprep.mubr.msk.f32.mxu1 %vm86_vm0, %v13040_v19  ;;  %v2443_v36 = vmul.f32 1.442695, %v2400_v37  ;;  %v2433_v27 = vmul.f32 1.442695, %v2395_v39  ;;  %v15584_v39 = vld [vmem:[#allocation41_spill] sm:$0xff] }
 0x34c   :  { %v2399_v4 = vsub.f32 %v12753_v3, %v13030_v16  ;;  %15580 = vst [vmem:[#allocation14_spill] sm:$0xff] %v13049_v32  ;;  %11082 = vpow2.f32 %v2425_v62  ;;  %9455 = vmatmul.mubr.msk.f32.vlgmr.msra.gmra.mrb[56].mxu1 %vm86_vm0, %v13049_v32  ;;  %v10206_v3 = vpack.c.bf16 %v10752_v0, %v10751_v17  ;;  %v2403_v0 = vsub.f32 %v12714_v52, %v13045_v9  ;;  %v15582_v62 = vld [vmem:[#allocation90_spill] sm:$0xff] }
 0x34d   :  { %v2218_v48 = vpop.xlane.xlu0 %2217  ;;  %4350 = vrot.lane.b32.xlu1 %v12166_v38, %s11497_s21  ;;  %11084 = vpow2.f32 %v2427_v54  ;;  %10205 = vmatpush3.bf16.msra.mxu1 %v12455_v61  ;;  %v2447_v44 = vmul.f32 1.442695, %v2402_v26  ;;  %v13077_v61 = vpack.c.bf16 %v10707_v40, %v10706_v57  ;;  %v15586_v40 = vld [vmem:[#allocation94_spill] sm:$0xff] }
 0x34e   :  { %v2441_v14 = vmul.f32 1.442695, %v2399_v4  ;;  %11086 = vpow2.f32 %v2429_v21  ;;  %10207 = vmatprep.subr.bf16.mxu1 %v10206_v3  ;;  %v13075_v7 = vmax.f32 %v12856_v58, %v2218_v48  ;;  %v2449_v52 = vmul.f32 1.442695, %v2403_v0  ;;  %v15581_v58 = vld [vmem:[#allocation46_spill] sm:$0xff]  ;;  %v13094_v37 = vpop.eup %11080  ;;  %v15589_v48 = vld [vmem:[#allocation91_spill] sm:$0xff] }
 0x34f   :  { %3949 = vrot.lane.b32.xlu0 %v12084_v60, %s11497_s21  ;;  %11088 = vpow2.f32 %v2445_v34  ;;  %15583 = vst [vmem:[#allocation46_spill] sm:$0xff] %v13094_v37  ;;  %v2451_v21 = vmul.f32 1.442695, %v2404_v59  ;;  %v13101_v57 = vmax.f32 %v15586_v40, %v2245_v8  ;;  %v13108_v26 = vmax.f32 %v15589_v48, %v2248_v35  ;;  %v15596_v59 = vld [vmem:[#allocation78_spill] sm:$0xff]  ;;  %v15597_v8 = vld [vmem:[#allocation83_spill] sm:$0xff] }
 0x350   :  { %11090 = vpow2.f32 %v2441_v14  ;;  %v2406_v17 = vsub.f32 %v12764_v1, %v13075_v7  ;;  %v15587_v1 = vld [vmem:[#allocation82_spill] sm:$0xff] }
 0x351   :  { %v2242_v46 = vpop.xlane.xlu0 %2241  ;;  %4221 = vrot.lane.b32.xlu1 %v15482_v53, %s11497_s21  ;;  %11092 = vpow2.f32 %v2443_v36  ;;  %10209 = vmatpush3.bf16.msra.mxu1 %v10206_v3  ;;  %v15591_v36 = vld [vmem:[#allocation81_spill] sm:$0xff]  ;;  %v15613_v32 = vld [vmem:[#allocation38_spill] sm:$0xff] }
 0x352   :  { %11094 = vpow2.f32 %v2433_v27  ;;  %10227 = vmatprep.subr.bf16.mxu1 %v13077_v61  ;;  %v13089_v13 = vmax.f32 %v12860_v30, %v2242_v46  ;;  %v2455_v2 = vmul.f32 1.442695, %v2406_v17  ;;  %v15592_v46 = vld [vmem:[#allocation92_spill] sm:$0xff]  ;;  %v10697_v19 = vunpack.i.h.bf16 %v15613_v32 }
 0x353   :  { %10854 = vrot.lane.b32.xlu0 %v15569_v10, %s11498_s7  ;;  %11096 = vpow2.f32 %v2447_v44 }
 0x354   :  { %11098 = vpow2.f32 %v2435_v23  ;;  %v2414_v27 = vsub.f32 %v15591_v36, %v13089_v13  ;;  %v15602_v36 = vld [vmem:[#allocation95_spill] sm:$0xff] }
 0x355   :  { %v2215_v50 = vpop.xlane.xlu0 %2214  ;;  %10909 = vrot.lane.b32.xlu1 %v15581_v58, %s11498_s7  ;;  %11100 = vpow2.f32 %v2449_v52  ;;  %v2415_v52 = vsub.f32 %v15596_v59, %v13101_v57 }
 0x356   :  { %v13092_v54 = vmax.f32 %v15582_v62, %v2215_v50  ;;  %v13098_v4 = vpop.eup %11082  ;;  %11102 = vpow2.f32 %v2451_v21  ;;  %v15599_v62 = vld [vmem:[#allocation77_spill] sm:$0xff]  ;;  %v2471_v48 = vmul.f32 1.442695, %v2414_v27  ;;  %v15604_v27 = vld [vmem:[#allocation22_spill] sm:$0xff] }
 0x357   :  { %4082 = vrot.lane.b32.xlu0 %v15584_v39, %s11497_s21  ;;  %15585 = vst [vmem:[#allocation90_spill] sm:$0xff] %v13098_v4  ;;  %v13105_v34 = vpop.eup %11084  ;;  %9437 = vmatprep.mubr.msk.f32.mxu0 %vm86_vm0, %v13098_v4  ;;  %v2416_v40 = vsub.f32 %v15599_v62, %v13108_v26 }
 0x358   :  { %v2405_v30 = vsub.f32 %v15587_v1, %v13092_v54  ;;  %15588 = vst [vmem:[#allocation41_spill] sm:$0xff] %v13105_v34  ;;  %v13114_v3 = vpop.eup %11086  ;;  %9438 = vmatmul.mubr.msk.f32.gmra.mrb[58].mxu0 %vm86_vm0, %v13105_v34  ;;  %v15600_v1 = vld [vmem:[#allocation43_spill] sm:$0xff] }
 0x359   :  { %v2239_v14 = vpop.xlane.xlu0 %2238  ;;  %4483 = vrot.lane.b32.xlu1 %v12087_v43, %s11495_s5  ;;  %15590 = vst [vmem:[#allocation94_spill] sm:$0xff] %v13114_v3  ;;  %v13123_v44 = vpop.eup %11088  ;;  %9440 = vmatprep.mubr.msk.f32.mxu0 %vm86_vm0, %v13114_v3  ;;  %v15594_v43 = vld [vmem:[#allocation20_spill] sm:$0xff] }
 0x35a   :  { %v2453_v0 = vmul.f32 1.442695, %v2405_v30  ;;  %v13121_v35 = vmax.f32 %v15592_v46, %v2239_v14  ;;  %15593 = vst [vmem:[#allocation82_spill] sm:$0xff] %v13123_v44  ;;  %v13129_v23 = vpop.eup %11090 }
 0x35b   :  { %10864 = vrot.lane.b32.xlu0 %v15594_v43, %s11498_s7  ;;  %15595 = vst [vmem:[#allocation91_spill] sm:$0xff] %v13129_v23  ;;  %v13135_v17 = vpop.eup %11092  ;;  %9457 = vmatprep.mubr.msk.f32.mxu1 %vm86_vm0, %v13129_v23 }
 0x35c   :  { %v2413_v50 = vsub.f32 %v15597_v8, %v13121_v35  ;;  %15598 = vst [vmem:[#allocation81_spill] sm:$0xff] %v13135_v17  ;;  %11104 = vpow2.f32 %v2453_v0  ;;  %v13143_v30 = vpop.eup %11094  ;;  %9441 = vmatmul.mubr.msk.f32.gmra.mrb[60].mxu0 %vm86_vm0, %v13094_v37  ;;  %9458 = vmatmul.mubr.msk.f32.gmra.mrb[58].mxu1 %vm86_vm0, %v13135_v17 }
 0x35d   :  { %v2224_v21 = vpop.xlane.xlu0 %2223  ;;  %4354 = vrot.lane.b32.xlu1 %v15600_v1, %s11497_s21  ;;  %15601 = vst [vmem:[#allocation92_spill] sm:$0xff] %v13143_v30  ;;  %11106 = vpow2.f32 %v2455_v2  ;;  %9443 = vmatprep.mubr.msk.f32.mxu0 %vm86_vm0, %v13143_v30  ;;  %v13156_v46 = vpop.eup %11096  ;;  %v2473_v2 = vmul.f32 1.442695, %v2415_v52  ;;  %v15609_v52 = vld [vmem:[#allocation98_spill] sm:$0xff] }
 0x35e   :  { %v2469_v14 = vmul.f32 1.442695, %v2413_v50  ;;  %v13150_v0 = vmax.f32 %v15602_v36, %v2224_v21  ;;  %9460 = vmatprep.mubr.msk.f32.mxu1 %vm86_vm0, %v13123_v44  ;;  %15603 = vst [vmem:[#allocation78_spill] sm:$0xff] %v13156_v46  ;;  %v13160_v59 = vpop.eup %11098  ;;  %v15606_v50 = vld [vmem:[#allocation48_spill] sm:$0xff]  ;;  %v2475_v21 = vmul.f32 1.442695, %v2416_v40  ;;  %v2236_v36 = vpop.xlane.xlu1 %2235 }
 0x35f   :  { %10874 = vrot.lane.b32.xlu0 %v15604_v27, %s11498_s7  ;;  %15605 = vst [vmem:[#allocation83_spill] sm:$0xff] %v13160_v59  ;;  %v13164_v62 = vpop.eup %11100  ;;  %v15608_v44 = vld [vmem:[#allocation84_spill] sm:$0xff]  ;;  %v15610_v40 = vld [vmem:[#allocation85_spill] sm:$0xff] }
 0x360   :  { %11108 = vpow2.f32 %v2469_v14  ;;  %15607 = vst [vmem:[#allocation77_spill] sm:$0xff] %v13164_v62  ;;  %v2408_v17 = vsub.f32 %v15608_v44, %v13150_v0  ;;  %9444 = vmatmul.mubr.msk.f32.gmra.mrb[62].mxu0 %vm86_vm0, %v13160_v59  ;;  %9461 = vmatmul.mubr.msk.f32.gmra.mrb[60].mxu1 %vm86_vm0, %v13156_v46  ;;  %v13181_v44 = vpop.eup %11102  ;;  %v10696_v59 = vunpack.i.l.bf16 %v15613_v32  ;;  %v15616_v32 = vld [vmem:[#allocation49_spill] sm:$0xff] }
 0x361   :  { %v2221_v8 = vpop.xlane.xlu0 %2220  ;;  %10919 = vrot.lane.b32.xlu1 %v15606_v50, %s11498_s7  ;;  %11110 = vpow2.f32 %v2471_v48  ;;  %9463 = vmatprep.mubr.msk.f32.mxu1 %vm86_vm0, %v13164_v62  ;;  %v15611_v48 = vld [vmem:[#allocation33_spill] sm:$0xff]  ;;  %15612 = vst [vmem:[#allocation43_spill] sm:$0xff] %v13181_v44  ;;  %v10702_v30 = vunpack.i.h.bf16 %v15616_v32 }
 0x362   :  { %v13173_v14 = vmax.f32 %v15609_v52, %v2221_v8  ;;  %11112 = vpow2.f32 %v2473_v2  ;;  %v2459_v8 = vmul.f32 1.442695, %v2408_v17  ;;  %v2233_v62 = vpop.xlane.xlu1 %2232 }
 0x363   :  { %3953 = vrot.lane.b32.xlu0 %v15611_v48, %s11497_s21  ;;  %11114 = vpow2.f32 %v2475_v21  ;;  %v15617_v21 = vld [vmem:[#allocation51_spill] sm:$0xff] }
 0x364   :  { %v2407_v23 = vsub.f32 %v15610_v40, %v13173_v14  ;;  %9464 = vmatmul.mubr.msk.f32.gmra.mrb[62].mxu1 %vm86_vm0, %v13181_v44  ;;  %v10717_v44 = vunpack.i.h.bf16 %v15617_v21  ;;  %v10716_v37 = vunpack.i.l.bf16 %v15617_v21  ;;  %v15623_v21 = vld [vmem:[#allocation45_spill] sm:$0xff] }
 0x365   :  { %v2230_v46 = vpop.xlane.xlu0 %2229  ;;  %4616 = vrot.lane.b32.xlu1 %v12117_v18, %s11495_s5  ;;  %v10701_v18 = vunpack.i.l.bf16 %v15616_v32  ;;  %v15620_v32 = vld [vmem:[#allocation105_spill] sm:$0xff] }
 0x366   :  { %v2457_v52 = vmul.f32 1.442695, %v2407_v23  ;;  %v13189_v2 = vpop.eup %11104  ;;  %v10214_v23 = vpack.c.bf16 %v10697_v19, %v10696_v59  ;;  %v15622_v59 = vld [vmem:[#allocation50_spill] sm:$0xff]  ;;  %v10770_v6 = vpop.permute.xlu1 %10769 }
 0x367   :  { %15614 = vst [vmem:[#allocation95_spill] sm:$0xff] %v13189_v2  ;;  %v13191_v40 = vpop.eup %11106  ;;  %10884 = vrot.lane.b32.xlu0 %v15573_v49, %s11498_s7  ;;  %9474 = vmatprep.mubr.msk.f32.mxu0 %vm86_vm0, %v13189_v2  ;;  %v15618_v2 = vld [vmem:[#allocation97_spill] sm:$0xff]  ;;  %v10711_v34 = vunpack.i.l.bf16 %v15622_v59 }
 0x368   :  { %15615 = vst [vmem:[#allocation48_spill] sm:$0xff] %v13191_v40  ;;  %11116 = vpow2.f32 %v2457_v52  ;;  %9475 = vmatmul.mubr.msk.f32.vlgmr.msra.gmra.mrb[64].mxu0 %vm86_vm0, %v13191_v40  ;;  %v13208_v3 = vmax.f32 %v15618_v2, %v2230_v46  ;;  %v13214_v40 = vmax.f32 %v15620_v32, %v2233_v62  ;;  %v15624_v46 = vld [vmem:[#allocation52_spill] sm:$0xff]  ;;  %v15625_v2 = vld [vmem:[#allocation99_spill] sm:$0xff]  ;;  %v10218_v32 = vpack.c.bf16 %v10702_v30, %v10701_v18 }
 0x369   :  { %v13201_v17 = vpop.xlane.xlu0 %2253  ;;  %4487 = vrot.lane.b32.xlu1 %v12059_v22, %s11495_s5  ;;  %11118 = vpow2.f32 %v2459_v8  ;;  %10213 = vmatpush3.bf16.msra.mxu0 %v13020_v45  ;;  %v10712_v22 = vunpack.i.h.bf16 %v15622_v59  ;;  %v10722_v45 = vunpack.i.h.bf16 %v15624_v46  ;;  %v10721_v8 = vunpack.i.l.bf16 %v15624_v46 }
 0x36a   :  { %v13211_v52 = vpop.eup %11108  ;;  %10215 = vmatprep.subr.bf16.mxu0 %v10214_v23  ;;  %v13227_v62 = vmax.f32 %v15625_v2, %v2236_v36  ;;  %v10230_v46 = vpack.c.bf16 %v10717_v44, %v10716_v37  ;;  %v15628_v36 = vld [vmem:[#allocation102_spill] sm:$0xff]  ;;  %v15633_v37 = vld [vmem:[#allocation79_spill] sm:$0xff]  ;;  %v10772_v44 = vunpack.i.h.bf16 %v10770_v6 }
 0x36b   :  { %15619 = vst [vmem:[#allocation84_spill] sm:$0xff] %v13211_v52  ;;  %v13216_v19 = vpop.eup %11110  ;;  %4215 = vrot.lane.b32.xlu0 %v15623_v21, %s11497_s21  ;;  %9494 = vmatprep.mubr.msk.f32.mxu1 %vm86_vm0, %v13211_v52  ;;  %v15627_v52 = vld [vmem:[#allocation86_spill] sm:$0xff] }
 0x36c   :  { %15621 = vst [vmem:[#allocation98_spill] sm:$0xff] %v13216_v19  ;;  %9495 = vmatmul.mubr.msk.f32.vlgmr.msra.gmra.mrb[64].mxu1 %vm86_vm0, %v13216_v19  ;;  %v13233_v59 = vpop.eup %11112  ;;  %v2410_v49 = vsub.f32 %v15627_v52, %v13208_v3  ;;  %v15629_v19 = vld [vmem:[#allocation80_spill] sm:$0xff] }
 0x36d   :  { %v2227_v4 = vpop.xlane.xlu0 %2226  ;;  %4731 = vrot.lane.b32.xlu1 %v15623_v21, %s11495_s5  ;;  %15626 = vst [vmem:[#allocation85_spill] sm:$0xff] %v13233_v59  ;;  %10217 = vmatpush3.bf16.msra.mxu0 %v10214_v23  ;;  %v2411_v30 = vsub.f32 %v15629_v19, %v13214_v40  ;;  %v13245_v18 = vpop.eup %11114  ;;  %v15631_v21 = vld [vmem:[#allocation88_spill] sm:$0xff]  ;;  %v15632_v23 = vld [vmem:[#allocation34_spill] sm:$0xff]  ;;  %v10234_v19 = vpack.c.bf16 %v10722_v45, %v10721_v8 }
 0x36e   :  { %10229 = vmatpush3.bf16.msra.mxu1 %v13077_v61  ;;  %v13239_v2 = vmax.f32 %v15628_v36, %v2227_v4  ;;  %9497 = vmatprep.mubr.msk.f32.mxu1 %vm86_vm0, %v13233_v59  ;;  %15630 = vst [vmem:[#allocation33_spill] sm:$0xff] %v13245_v18  ;;  %v10222_v61 = vpack.c.bf16 %v10712_v22, %v10711_v34  ;;  %v10771_v36 = vunpack.i.l.bf16 %v10770_v6  ;;  %v2463_v27 = vmul.f32 1.442695, %v2410_v49  ;;  %v15634_v22 = vld [vmem:[#allocation101_spill] sm:$0xff]  ;;  %v15636_v45 = vld [vmem:[#allocation36_spill] sm:$0xff] }
 0x36f   :  { %10219 = vmatprep.subr.bf16.mxu0 %v10218_v32  ;;  %10231 = vmatprep.subr.bf16.mxu1 %v10230_v46  ;;  %v2412_v4 = vsub.f32 %v15633_v37, %v13227_v62  ;;  %v15635_v37 = vld [vmem:[#allocation24_spill] sm:$0xff]  ;;  %v2465_v6 = vmul.f32 1.442695, %v2411_v30 }
 0x370   :  { %v2409_v52 = vsub.f32 %v15631_v21, %v13239_v2  ;;  %4086 = vrot.lane.b32.xlu0 %v15632_v23, %s11497_s21  ;;  %9498 = vmatmul.mubr.msk.f32.gmra.mrb[66].mxu1 %vm86_vm0, %v13245_v18  ;;  %v2293_v10 = vsub.f32 %v15635_v37, %v15634_v22  ;;  %v10238_v8 = vpack.c.bf16 %v10772_v44, %v10771_v36  ;;  %v15640_v22 = vld [vmem:[#allocation25_spill] sm:$0xff]  ;;  %v15644_v36 = vld [vmem:[#allocation42_spill] sm:$0xff] }
 0x371   :  { %v10765_v59 = vpop.permute.xlu0 %10764  ;;  %4618 = vrot.lane.b32.xlu1 %v15632_v23, %s11495_s5  ;;  %10221 = vmatpush3.bf16.msra.mxu0 %v10218_v32  ;;  %v15637_v32 = vld [vmem:[#allocation47_spill] sm:$0xff] }
 0x372   :  { %v2461_v43 = vmul.f32 1.442695, %v2409_v52  ;;  %10233 = vmatpush3.bf16.msra.mxu1 %v10230_v46  ;;  %v10767_v21 = vunpack.i.h.bf16 %v10765_v59  ;;  %v10766_v24 = vunpack.i.l.bf16 %v10765_v59  ;;  %v13257_v34 = vpop.eup %11116  ;;  %10223 = vmatprep.subr.bf16.mxu0 %v10222_v61  ;;  %v15638_v59 = vld [vmem:[#allocation108_spill] sm:$0xff]  ;;  %v15639_v46 = vld [vmem:[#allocation26_spill] sm:$0xff]  ;;  %v2467_v52 = vmul.f32 1.442695, %v2412_v4 }
 0x373   :  { %10235 = vmatprep.subr.bf16.mxu1 %v10234_v19  ;;  %v13261_v18 = vpop.eup %11118  ;;  %9477 = vmatprep.mubr.msk.f32.mxu0 %vm86_vm0, %v13257_v34  ;;  %v2294_v30 = vsub.f32 %v15639_v46, %v15638_v59  ;;  %v2325_v23 = vmul.f32 1.442695, %v2293_v10  ;;  %v15642_v4 = vld [vmem:[#allocation28_spill] sm:$0xff]  ;;  %v15643_v10 = vld [vmem:[#allocation27_spill] sm:$0xff] }
 0x374   :  { %10894 = vrot.lane.b32.xlu0 %v15636_v45, %s11498_s7  ;;  %v13267_v49 = vpack.c.bf16 %v10767_v21, %v10766_v24  ;;  %11120 = vpow2.f32 %v2461_v43  ;;  %9478 = vmatmul.mubr.msk.f32.gmra.mrb[66].mxu0 %vm86_vm0, %v13261_v18  ;;  %v2295_v24 = vsub.f32 %v15640_v22, %v13001_v31  ;;  %v15641_v43 = vld [vmem:[#allocation37_spill] sm:$0xff]  ;;  %v2297_v31 = vsub.f32 %v15643_v10, %v12987_v11  ;;  %v15649_v46 = vld [vmem:[#allocation35_spill] sm:$0xff]  ;;  %v793_v22 = vld [vmem:[%s15215_s3 + $0x10] sm:$0xff] }
 0x375   :  { %4848 = vrot.lane.b32.xlu1 %v15637_v32, %s11495_s5  ;;  %11122 = vpow2.f32 %v2463_v27  ;;  %10225 = vmatpush3.bf16.msra.mxu0 %v10222_v61  ;;  %v2327_v44 = vmul.f32 1.442695, %v2294_v30  ;;  %v2296_v27 = vsub.f32 %v15642_v4, %v12979_v56  ;;  %v791_v56 = vld [vmem:[%s15215_s3] sm:$0xff]  ;;  %v15647_v11 = vld [vmem:[#allocation29_spill] sm:$0xff] }
 0x376   :  { %10237 = vmatpush3.bf16.msra.mxu1 %v10234_v19  ;;  %11124 = vpow2.f32 %v2465_v6  ;;  %10243 = vmatprep.subr.bf16.mxu0 %v13267_v49  ;;  %v2329_v61 = vmul.f32 1.442695, %v2295_v24  ;;  %v15645_v19 = vld [vmem:[#allocation30_spill] sm:$0xff] }
 0x377   :  { %10239 = vmatprep.subr.bf16.mxu1 %v10238_v8  ;;  %11126 = vpow2.f32 %v2467_v52  ;;  %v2298_v21 = vsub.f32 %v15645_v19, %v12974_v29  ;;  %v2331_v37 = vmul.f32 1.442695, %v2296_v27 }
 0x378   :  { %4348 = vrot.lane.b32.xlu0 %v15637_v32, %s11497_s21  ;;  %11128 = vpow2.f32 %v2325_v23  ;;  %v2299_v32 = vsub.f32 %v15647_v11, %v13013_v28  ;;  %v15651_v28 = vld [vmem:[#allocation31_spill] sm:$0xff]  ;;  %v15656_v11 = vld [vmem:[#allocation44_spill] sm:$0xff] }
 0x379   :  { %4735 = vrot.lane.b32.xlu1 %v15641_v43, %s11495_s5  ;;  %11130 = vpow2.f32 %v2327_v44  ;;  %v2335_v52 = vmul.f32 1.442695, %v2298_v21  ;;  %v2300_v23 = vsub.f32 %v15651_v28, %v13033_v20 }
 0x37a   :  { %10241 = vmatpush3.bf16.msra.mxu1 %v10238_v8  ;;  %v2333_v8 = vmul.f32 1.442695, %v2297_v31  ;;  %11132 = vpow2.f32 %v2329_v61  ;;  %v2337_v24 = vmul.f32 1.442695, %v2299_v32  ;;  %v15657_v32 = vld [vmem:[#allocation100_spill] sm:$0xff] }
 0x37b   :  { %11134 = vpow2.f32 %v2331_v37  ;;  %v2339_v10 = vmul.f32 1.442695, %v2300_v23 }
 0x37c   :  { %4219 = vrot.lane.b32.xlu0 %v15641_v43, %s11497_s21  ;;  %11136 = vpow2.f32 %v2333_v8  ;;  %v15652_v43 = vld [vmem:[#allocation63_spill] sm:$0xff] }
 0x37d   :  { %4852 = vrot.lane.b32.xlu1 %v15644_v36, %s11495_s5  ;;  %v2309_v44 = vsub.f32 %v15652_v43, %v13092_v54  ;;  %11138 = vpow2.f32 %v2335_v52  ;;  %v15658_v52 = vld [vmem:[#allocation106_spill] sm:$0xff] }
 0x37e   :  { %v13295_v6 = vpop.eup %11120  ;;  %11140 = vpow2.f32 %v2337_v24  ;;  %v15660_v24 = vld [vmem:[#allocation103_spill] sm:$0xff] }
 0x37f   :  { %15646 = vst [vmem:[#allocation38_spill] sm:$0xff] %v13295_v6  ;;  %v13299_v59 = vpop.eup %11122  ;;  %9480 = vmatprep.mubr.msk.f32.mxu0 %vm86_vm0, %v13295_v6  ;;  %v2357_v54 = vmul.f32 1.442695, %v2309_v44  ;;  %11142 = vpow2.f32 %v2339_v10 }
 0x380   :  { %15648 = vst [vmem:[#allocation49_spill] sm:$0xff] %v13299_v59  ;;  %10904 = vrot.lane.b32.xlu0 %v15649_v46, %s11498_s7  ;;  %v13305_v29 = vpop.eup %11124  ;;  %9481 = vmatmul.mubr.msk.f32.gmra.mrb[68].mxu0 %vm86_vm0, %v13299_v59 }
 0x381   :  { %15650 = vst [vmem:[#allocation51_spill] sm:$0xff] %v13305_v29  ;;  %4501 = vrot.lane.b32.xlu1 %v791_v56, %s11496_s22  ;;  %v2257_v30 = vpop.xlane.xlu1 %2256  ;;  %9483 = vmatprep.mubr.msk.f32.mxu0 %vm86_vm0, %v13305_v29  ;;  %v13319_v4 = vpop.eup %11126  ;;  %11144 = vpow2.f32 %v2357_v54  ;;  %v15664_v54 = vld [vmem:[#allocation13_spill] sm:$0xff]  ;;  %v15668_v29 = vld [vmem:[#allocation60_spill] sm:$0xff] }
 0x382   :  { %15653 = vst [vmem:[#allocation97_spill] sm:$0xff] %v13319_v4  ;;  %v13323_v27 = vpop.eup %11128  ;;  %v13406_v28 = vmax.f32 %v15658_v52, %v2257_v30 }
 0x383   :  { %v13332_v31 = vpop.eup %11130 }
 0x384   :  { %4481 = vrot.lane.b32.xlu0 %v12084_v60, %s11495_s5  ;;  %9484 = vmatmul.mubr.msk.f32.gmra.mrb[70].mxu0 %vm86_vm0, %v13319_v4  ;;  %v13336_v60 = vpop.eup %11132  ;;  %v15667_v4 = vld [vmem:[#allocation53_spill] sm:$0xff] }
 0x385   :  { %4505 = vrot.lane.b32.xlu1 %v793_v22, %s11496_s22  ;;  %v13328_v20 = vpop.permute.xlu1 %10779  ;;  %9522 = vmatprep.mubr.msk.f32.mxu0 %vm2068_vm3, %v13323_v27  ;;  %v13347_v19 = vpop.eup %11134 }
 0x386   :  { %v13351_v21 = vpop.eup %11136 }
 0x388   :  { %4352 = vrot.lane.b32.xlu0 %v15644_v36, %s11497_s21  ;;  %9523 = vmatmul.mubr.msk.f32.vlgmr.msra.gmra.mrb[56].mxu0 %vm2068_vm3, %v13332_v31  ;;  %v15654_v36 = vld [vmem:[#allocation40_spill] sm:$0xff] }
 0x389   :  { %10934 = vrot.lane.b32.xlu1 %v15636_v45, %s11499_s17  ;;  %v13342_v61 = vpop.permute.xlu1 %10789  ;;  %10245 = vmatpush3.bf16.msra.mxu0 %v13267_v49  ;;  %v13361_v49 = vpop.eup %11138 }
 0x38a   :  { %9525 = vmatprep.mubr.msk.f32.mxu0 %vm2068_vm3, %v13336_v60  ;;  %v13365_v37 = vpop.eup %11140 }
 0x38c   :  { %10914 = vrot.lane.b32.xlu0 %v15654_v36, %s11498_s7  ;;  %9526 = vmatmul.mubr.msk.f32.gmra.mrb[58].mxu0 %vm2068_vm3, %v13347_v19 }
 0x38d   :  { %10944 = vrot.lane.b32.xlu1 %v15581_v58, %s11499_s17  ;;  %v13357_v45 = vpop.permute.xlu1 %10799  ;;  %9528 = vmatprep.mubr.msk.f32.mxu0 %vm2068_vm3, %v13351_v21  ;;  %v13375_v58 = vpop.eup %11142 }
 0x38e   :  { %v13379_v8 = vpop.eup %11144 }
 0x38f   :  { %15655 = vst [vmem:[#allocation105_spill] sm:$0xff] %v13379_v8 }
 0x390   :  { %4614 = vrot.lane.b32.xlu0 %v15584_v39, %s11495_s5  ;;  %9529 = vmatmul.mubr.msk.f32.gmra.mrb[60].mxu0 %vm2068_vm3, %v13361_v49 }
 0x391   :  { %10949 = vrot.lane.b32.xlu1 %v15649_v46, %s11499_s17  ;;  %v13371_v56 = vpop.permute.xlu1 %10809  ;;  %9531 = vmatprep.mubr.msk.f32.mxu0 %vm2068_vm3, %v13365_v37  ;;  %v13403_v46 = vmax.f32 %v15657_v32, %v13201_v17  ;;  %v15661_v17 = vld [vmem:[#allocation89_spill] sm:$0xff] }
 0x392   :  { %v2419_v44 = vsub.f32 %v15661_v17, %v13406_v28  ;;  %v15666_v17 = vld [vmem:[#allocation109_spill] sm:$0xff] }
 0x394   :  { %4485 = vrot.lane.b32.xlu0 %v15611_v48, %s11495_s5  ;;  %9532 = vmatmul.mubr.msk.f32.gmra.mrb[62].mxu0 %vm2068_vm3, %v13375_v58 }
 0x395   :  { %10959 = vrot.lane.b32.xlu1 %v15606_v50, %s11499_s17  ;;  %v13385_v39 = vpop.permute.xlu1 %10819  ;;  %9578 = vmatprep.mubr.msk.f32.mxu0 %vm2068_vm3, %v13379_v8 }
 0x398   :  { %10924 = vrot.lane.b32.xlu0 %v15656_v11, %s11498_s7  ;;  %s8159_s7 = sshll.u32 %s11500_s6, 4  ;;  %s8160_s7 = int_to_ptr.vmem [resolvable:$true] %s8159_s7 }
 0x399   :  { %10969 = vrot.lane.b32.xlu1 %v15656_v11, %s11499_s17  ;;  %v13393_v48 = vpop.permute.xlu1 %10829  ;;  %s11446_s30 = scalar_lea.vmem %s8160_s7, 1024  ;;  %p11451_p1 = scmp.lt.s32.totalorder %s8160_s7, %s8160_s7 }
 0x39a   :  { %p11447_p0 = scmp.ne.s32.totalorder %s8160_s7, %s11446_s30  ;;  %p11452_p2 = scmp.lt.s32.totalorder %s11446_s30, %s11446_s30 }
 0x39c   :  { %4733 = vrot.lane.b32.xlu0 %v12150_v12, %s11495_s5  ;;  %p11453_p3 = por %p11452_p2, %p11451_p1 }
 0x39d   :  { %10979 = vrot.lane.b32.xlu1 %v15576_v47, %s11499_s17  ;;  %v13399_v50 = vpop.permute.xlu1 %10839  ;;  %v15659_v47 = vld [vmem:[#allocation87_spill] sm:$0xff] }
 0x39e   :  { %v2418_v22 = vsub.f32 %v15659_v47, %v13403_v46  ;;  %v15665_v47 = vld [vmem:[#allocation104_spill] sm:$0xff]  ;;  %p11454_p4 = pnand %p11453_p3, %p11447_p0 }
 0x3a0   :  { %4620 = vrot.lane.b32.xlu0 %v12062_v33, %s11495_s5  ;;  %v15662_v33 = vld [vmem:[#allocation54_spill] sm:$0xff]  ;;  %v2479_v52 = vmul.f32 1.442695, %v2418_v22  ;;  %v15670_v22 = vld [vmem:[#allocation96_spill] sm:$0xff] }
 0x3a1   :  { %10989 = vrot.lane.b32.xlu1 %v15578_v41, %s11499_s17  ;;  %v13412_v23 = vpop.permute.xlu1 %10849  ;;  %v2301_v30 = vsub.f32 %v15662_v33, %v12957_v55  ;;  %v15663_v41 = vld [vmem:[#allocation93_spill] sm:$0xff]  ;;  %v2310_v55 = vsub.f32 %v15668_v29, %v13075_v7  ;;  %v2481_v33 = vmul.f32 1.442695, %v2419_v44 }
 0x3a2   :  { %v2251_v12 = vpop.xlane.xlu0 %2250 }
 0x3a3   :  { %v13417_v43 = vmax.f32 %v15660_v24, %v2251_v12 }
 0x3a4   :  { %4850 = vrot.lane.b32.xlu0 %v12166_v38, %s11495_s5  ;;  %v2302_v38 = vsub.f32 %v15667_v4, %v15666_v17  ;;  %v10781_v4 = vunpack.i.l.bf16 %v13328_v20 }
 0x3a5   :  { %v2417_v10 = vsub.f32 %v15663_v41, %v13417_v43  ;;  %10999 = vrot.lane.b32.xlu1 %v15664_v54, %s11499_s17  ;;  %v13429_v11 = vpop.permute.xlu1 %3951  ;;  %v2341_v41 = vmul.f32 1.442695, %v2301_v30  ;;  %v15669_v54 = vld [vmem:[#allocation69_spill] sm:$0xff] }
 0x3a6   :  { %v2260_v32 = vpop.xlane.xlu0 %2259  ;;  %v2311_v8 = vsub.f32 %v15669_v54, %v13173_v14  ;;  %v15671_v30 = vld [vmem:[#allocation57_spill] sm:$0xff]  ;;  %v2359_v14 = vmul.f32 1.442695, %v2310_v55  ;;  %v15672_v54 = vld [vmem:[#allocation55_spill] sm:$0xff] }
 0x3a7   :  { %v2477_v12 = vmul.f32 1.442695, %v2417_v10  ;;  %v13432_v24 = vmax.f32 %v15665_v47, %v2260_v32  ;;  %v10782_v32 = vunpack.i.h.bf16 %v13328_v20  ;;  %v2303_v17 = vsub.f32 %v15671_v30, %v13030_v16  ;;  %v15673_v16 = vld [vmem:[#allocation67_spill] sm:$0xff] }
 0x3a8   :  { %4737 = vrot.lane.b32.xlu0 %v15482_v53, %s11495_s5  ;;  %v2343_v53 = vmul.f32 1.442695, %v2302_v38  ;;  %v2361_v20 = vmul.f32 1.442695, %v2311_v8  ;;  %v2312_v55 = vsub.f32 %v15673_v16, %v13150_v0  ;;  %v10791_v8 = vunpack.i.l.bf16 %v13342_v61  ;;  %v15676_v0 = vld [vmem:[#allocation58_spill] sm:$0xff] }
 0x3a9   :  { %v2420_v10 = vsub.f32 %v15670_v22, %v13432_v24  ;;  %v13444_v59 = vpop.permute.xlu1 %10859  ;;  %11146 = vpow2.f32 %v2477_v12  ;;  %v2304_v22 = vsub.f32 %v15672_v54, %v13006_v51  ;;  %v10792_v51 = vunpack.i.h.bf16 %v13342_v61  ;;  %v15675_v54 = vld [vmem:[#allocation56_spill] sm:$0xff]  ;;  %v13478_v61 = vld [vmem:[%s15215_s3 + $0x18] sm:$0xff] }
 0x3aa   :  { %v10775_v47 = vpop.permute.xlu0 %10774  ;;  %11148 = vpow2.f32 %v2479_v52  ;;  %v13459_v52 = vld [vmem:[%s15215_s3 + $0x8] sm:$0xff]  ;;  %v2306_v6 = vsub.f32 %v15675_v54, %v13027_v5  ;;  %v10811_v16 = vunpack.i.l.bf16 %v13371_v56 }
 0x3ab   :  { %v2483_v7 = vmul.f32 1.442695, %v2420_v10  ;;  %v10777_v29 = vunpack.i.h.bf16 %v10775_v47  ;;  %v10776_v44 = vunpack.i.l.bf16 %v10775_v47  ;;  %11150 = vpow2.f32 %v2481_v33  ;;  %v15674_v33 = vld [vmem:[#allocation72_spill] sm:$0xff] }
 0x3ac   :  { %4854 = vrot.lane.b32.xlu0 %v15600_v1, %s11495_s5  ;;  %11152 = vpow2.f32 %v2341_v41  ;;  %v2313_v10 = vsub.f32 %v15674_v33, %v13239_v2  ;;  %v10250_v41 = vpack.c.bf16 %v10782_v32, %v10781_v4  ;;  %v2305_v2 = vsub.f32 %v15676_v0, %v12993_v42 }
 0x3ad   :  { %v13454_v12 = vpop.permute.xlu1 %4084  ;;  %v10246_v38 = vpack.c.bf16 %v10777_v29, %v10776_v44  ;;  %11154 = vpow2.f32 %v2483_v7  ;;  %v2345_v29 = vmul.f32 1.442695, %v2303_v17  ;;  %v2347_v32 = vmul.f32 1.442695, %v2304_v22  ;;  %v15677_v7 = vld [vmem:[#allocation59_spill] sm:$0xff] }
 0x3ae   :  { %v10785_v1 = vpop.permute.xlu0 %10784  ;;  %11156 = vpow2.f32 %v2359_v14  ;;  %v2308_v44 = vsub.f32 %v15677_v7, %v13065_v63  ;;  %v2363_v17 = vmul.f32 1.442695, %v2312_v55  ;;  %v15678_v14 = vld [vmem:[#allocation68_spill] sm:$0xff]  ;;  %v10254_v33 = vpack.c.bf16 %v10792_v51, %v10791_v8  ;;  %v15680_v63 = vld [vmem:[#allocation75_spill] sm:$0xff]  ;;  %v15686_v7 = vld [vmem:[#allocation65_spill] sm:$0xff] }
 0x3af   :  { %v10787_v47 = vunpack.i.h.bf16 %v10785_v1  ;;  %v10786_v30 = vunpack.i.l.bf16 %v10785_v1  ;;  %10247 = vmatprep.subr.bf16.mxu0 %v10246_v38  ;;  %11158 = vpow2.f32 %v2361_v20  ;;  %v2314_v42 = vsub.f32 %v15678_v14, %v13208_v3 }
 0x3b0   :  { %4503 = vrot.lane.b32.xlu0 %v13459_v52, %s11496_s22  ;;  %10249 = vmatpush3.bf16.msra.mxu0 %v10246_v38  ;;  %11160 = vpow2.f32 %v2343_v53  ;;  %v2365_v20 = vmul.f32 1.442695, %v2313_v10  ;;  %v10812_v38 = vunpack.i.h.bf16 %v13371_v56  ;;  %v2315_v53 = vsub.f32 %v15680_v63, %v13214_v40  ;;  %v15682_v10 = vld [vmem:[#allocation62_spill] sm:$0xff] }
 0x3b1   :  { %10251 = vmatprep.subr.bf16.mxu0 %v10250_v41  ;;  %v13473_v4 = vpop.permute.xlu1 %10869  ;;  %v13480_v5 = vpack.c.bf16 %v10787_v47, %v10786_v30  ;;  %v2351_v47 = vmul.f32 1.442695, %v2306_v6  ;;  %11162 = vpow2.f32 %v2345_v29  ;;  %v2349_v55 = vmul.f32 1.442695, %v2305_v2 }
 0x3b2   :  { %v13486_v22 = vpop.permute.xlu0 %10794  ;;  %v2307_v56 = vsub.f32 %v15682_v10, %v13045_v9  ;;  %11164 = vpow2.f32 %v2347_v32  ;;  %v2355_v40 = vmul.f32 1.442695, %v2308_v44  ;;  %v15684_v9 = vld [vmem:[#allocation70_spill] sm:$0xff]  ;;  %v2367_v54 = vmul.f32 1.442695, %v2314_v42  ;;  %v15692_v10 = vld [vmem:[#allocation64_spill] sm:$0xff] }
 0x3b3   :  { %10259 = vmatprep.subr.bf16.mxu1 %v13480_v5  ;;  %v13491_v1 = vpop.eup %11146  ;;  %11166 = vpow2.f32 %v2363_v17  ;;  %v2316_v30 = vsub.f32 %v15684_v9, %v13227_v62  ;;  %v13515_v29 = vpack.c.bf16 %v10812_v38, %v10811_v16  ;;  %v2369_v2 = vmul.f32 1.442695, %v2315_v53  ;;  %v15690_v16 = vld [vmem:[#allocation61_spill] sm:$0xff] }
 0x3b4   :  { %15679 = vst [vmem:[#allocation50_spill] sm:$0xff] %v13491_v1  ;;  %4507 = vrot.lane.b32.xlu0 %v13478_v61, %s11496_s22  ;;  %10253 = vmatpush3.bf16.msra.mxu0 %v10250_v41  ;;  %v13497_v3 = vpop.eup %11148  ;;  %11168 = vpow2.f32 %v2365_v20  ;;  %v2353_v32 = vmul.f32 1.442695, %v2307_v56  ;;  %v2317_v62 = vsub.f32 %v15686_v7, %v13121_v35  ;;  %v10797_v42 = vunpack.i.h.bf16 %v13486_v22  ;;  %v15694_v7 = vld [vmem:[#allocation73_spill] sm:$0xff] }
 0x3b5   :  { %15681 = vst [vmem:[#allocation45_spill] sm:$0xff] %v13497_v3  ;;  %9500 = vmatprep.mubr.msk.f32.mxu1 %vm86_vm0, %v13491_v1  ;;  %10255 = vmatprep.subr.bf16.mxu0 %v10254_v33  ;;  %v13503_v6 = vpop.permute.xlu1 %10879  ;;  %v13505_v51 = vpop.eup %11150  ;;  %11170 = vpow2.f32 %v2351_v47  ;;  %v10796_v20 = vunpack.i.l.bf16 %v13486_v22  ;;  %v2371_v35 = vmul.f32 1.442695, %v2316_v30  ;;  %v15691_v22 = vld [vmem:[#allocation66_spill] sm:$0xff]  ;;  %v2320_v56 = vsub.f32 %v15692_v10, %v13108_v26  ;;  %v15698_v10 = vld [vmem:[#allocation76_spill] sm:$0xff] }
 0x3b6   :  { %15683 = vst [vmem:[#allocation52_spill] sm:$0xff] %v13505_v51  ;;  %9501 = vmatmul.mubr.msk.f32.gmra.mrb[68].mxu1 %vm86_vm0, %v13497_v3  ;;  %v13509_v41 = vpop.permute.xlu0 %10804  ;;  %v13511_v8 = vpop.eup %11152  ;;  %11172 = vpow2.f32 %v2349_v55  ;;  %v2319_v63 = vsub.f32 %v15691_v22, %v13101_v57  ;;  %v10801_v57 = vunpack.i.l.bf16 %v13357_v45  ;;  %v15696_v22 = vld [vmem:[#allocation71_spill] sm:$0xff] }
 0x3b7   :  { %9503 = vmatprep.mubr.msk.f32.mxu1 %vm86_vm0, %v13505_v51  ;;  %v13519_v0 = vpop.eup %11154  ;;  %11174 = vpow2.f32 %v2355_v40  ;;  %v10802_v40 = vunpack.i.h.bf16 %v13357_v45  ;;  %v10262_v9 = vpack.c.bf16 %v10797_v42, %v10796_v20 }
 0x3b8   :  { %15685 = vst [vmem:[#allocation99_spill] sm:$0xff] %v13519_v0  ;;  %10929 = vrot.lane.b32.xlu0 %v15574_v25, %s11499_s17  ;;  %10257 = vmatpush3.bf16.msra.mxu0 %v10254_v33  ;;  %v13530_v14 = vpop.eup %11156  ;;  %v2318_v33 = vsub.f32 %v15690_v16, %v13089_v13  ;;  %11176 = vpow2.f32 %v2367_v54  ;;  %v2373_v13 = vmul.f32 1.442695, %v2317_v62  ;;  %v2377_v45 = vmul.f32 1.442695, %v2319_v63 }
 0x3b9   :  { %10276 = vmatprep.subr.msk.bf16.mxu0 %vm12028_vm2, %v13515_v29  ;;  %v13528_v17 = vpop.permute.xlu1 %3955  ;;  %15688 = vst [vmem:[#allocation86_spill] sm:$0xff] %v13530_v14  ;;  %v13536_v38 = vpop.eup %11158  ;;  %11178 = vpow2.f32 %v2369_v2  ;;  %v2321_v62 = vsub.f32 %v15694_v7, %v13417_v43  ;;  %v10806_v16 = vunpack.i.l.bf16 %v13509_v41  ;;  %v10266_v43 = vpack.c.bf16 %v10802_v40, %v10801_v57 }
 0x3ba   :  { %9504 = vmatmul.mubr.msk.f32.gmra.mrb[70].mxu1 %vm86_vm0, %v13519_v0  ;;  %v10815_v25 = vpop.permute.xlu0 %10814  ;;  %15689 = vst [vmem:[#allocation102_spill] sm:$0xff] %v13536_v38  ;;  %v13544_v47 = vpop.eup %11160  ;;  %11180 = vpow2.f32 %v2353_v32  ;;  %v2375_v54 = vmul.f32 1.442695, %v2318_v33  ;;  %v2322_v63 = vsub.f32 %v15696_v22, %v13403_v46  ;;  %v15700_v46 = vld [vmem:[#allocation8_spill] sm:$0xff]  ;;  %v15702_v22 = vld [vmem:[#allocation74_spill] sm:$0xff] }
 0x3bb   :  { %9550 = vmatprep.mubr.msk.f32.mxu1 %vm2068_vm3, %v13511_v8  ;;  %9579 = vmatmul.mubr.msk.f32.vlgmr.msra.gmra.mrb[64].mxu0 %vm2068_vm3, %v13530_v14  ;;  %v13554_v55 = vpop.eup %11162  ;;  %11182 = vpow2.f32 %v2371_v35  ;;  %v10817_v2 = vunpack.i.h.bf16 %v10815_v25  ;;  %v10816_v32 = vunpack.i.l.bf16 %v10815_v25  ;;  %v2379_v25 = vmul.f32 1.442695, %v2320_v56 }
 0x3bc   :  { %10939 = vrot.lane.b32.xlu0 %v12132_v15, %s11499_s17  ;;  %9581 = vmatprep.mubr.msk.f32.mxu0 %vm2068_vm3, %v13536_v38  ;;  %v13564_v30 = vpop.eup %11164  ;;  %11184 = vpow2.f32 %v2373_v13  ;;  %v10807_v35 = vunpack.i.h.bf16 %v13509_v41  ;;  %v2323_v56 = vsub.f32 %v15698_v10, %v13406_v28  ;;  %v2381_v7 = vmul.f32 1.442695, %v2321_v62  ;;  %v15778_v38 = vld [vmem:[#allocation94_spill] sm:$0xff] }
 0x3bd   :  { %v13552_v53 = vpop.permute.xlu1 %10889  ;;  %v13569_v26 = vpop.eup %11166  ;;  %11186 = vpow2.f32 %v2375_v54  ;;  %v10280_v13 = vpack.c.bf16 %v10817_v2, %v10816_v32  ;;  %v10822_v62 = vunpack.i.h.bf16 %v13385_v39  ;;  %v2324_v10 = vsub.f32 %v15702_v22, %v13432_v24 }
 0x3be   :  { %9551 = vmatmul.mubr.msk.f32.vlgmr.msra.gmra.mrb[56].mxu1 %vm2068_vm3, %v13544_v47  ;;  %v13562_v15 = vpop.permute.xlu0 %10824  ;;  %15693 = vst [vmem:[#allocation80_spill] sm:$0xff] %v13569_v26  ;;  %v13575_v42 = vpop.eup %11168  ;;  %11188 = vpow2.f32 %v2377_v45  ;;  %v10270_v2 = vpack.c.bf16 %v10807_v35, %v10806_v16  ;;  %v2383_v45 = vmul.f32 1.442695, %v2322_v63  ;;  %v15704_v16 = vld [vmem:[#allocation10_spill] sm:$0xff]  ;;  %v10831_v22 = vunpack.i.l.bf16 %v13393_v48 }
 0x3bf   :  { %10261 = vmatpush3.bf16.msra.mxu1 %v13480_v5  ;;  %9553 = vmatprep.mubr.msk.f32.mxu1 %vm2068_vm3, %v13554_v55  ;;  %15695 = vst [vmem:[#allocation88_spill] sm:$0xff] %v13575_v42  ;;  %v13581_v20 = vpop.eup %11170  ;;  %11190 = vpow2.f32 %v2379_v25  ;;  %v10827_v28 = vunpack.i.h.bf16 %v13562_v15  ;;  %v10821_v25 = vunpack.i.l.bf16 %v13385_v39 }
 0x3c0   :  { %10263 = vmatprep.subr.bf16.mxu1 %v10262_v9  ;;  %10954 = vrot.lane.b32.xlu0 %v15654_v36, %s11499_s17  ;;  %v13591_v33 = vpop.eup %11172  ;;  %11192 = vpow2.f32 %v2381_v7  ;;  %v2387_v7 = vmul.f32 1.442695, %v2324_v10 }
 0x3c1   :  { %9582 = vmatmul.mubr.msk.f32.gmra.mrb[66].mxu0 %vm2068_vm3, %v13569_v26  ;;  %v13579_v5 = vpop.permute.xlu1 %4217  ;;  %v13598_v41 = vpop.eup %11174  ;;  %11194 = vpow2.f32 %v2383_v45 }
 0x3c2   :  { %9584 = vmatprep.mubr.msk.f32.mxu0 %vm2068_vm3, %v13575_v42  ;;  %9554 = vmatmul.mubr.msk.f32.gmra.mrb[58].mxu1 %vm2068_vm3, %v13564_v30  ;;  %v13589_v36 = vpop.permute.xlu0 %10834  ;;  %15697 = vst [vmem:[#allocation34_spill] sm:$0xff] %v13598_v41  ;;  %v13604_v40 = vpop.eup %11176 }
 0x3c3   :  { %10265 = vmatpush3.bf16.msra.mxu1 %v10262_v9  ;;  %10279 = vmatpush3.bf16.xpose.msk.msra.mxu0 %vm12028_vm2, %v13515_v29  ;;  %15699 = vst [vmem:[#allocation79_spill] sm:$0xff] %v13604_v40  ;;  %v13612_v57 = vpop.eup %11178  ;;  %v10826_v9 = vunpack.i.l.bf16 %v13562_v15  ;;  %v2385_v15 = vmul.f32 1.442695, %v2323_v56  ;;  %v10298_v56 = vpack.c.bf16 %v10822_v62, %v10821_v25  ;;  %v10836_v45 = vunpack.i.l.bf16 %v13589_v36 }
 0x3c4   :  { %9556 = vmatprep.mubr.msk.f32.mxu1 %vm2068_vm3, %v13591_v33  ;;  %10267 = vmatprep.subr.bf16.mxu1 %v10266_v43  ;;  %15701 = vst [vmem:[#allocation101_spill] sm:$0xff] %v13612_v57  ;;  %v13622_v32 = vpop.eup %11180  ;;  %v10832_v25 = vunpack.i.h.bf16 %v13393_v48 }
 0x3c5   :  { %10282 = vmatprep.subr.msk.bf16.mxu0 %vm12028_vm2, %v10280_v13  ;;  %10964 = vrot.lane.b32.xlu0 %v15700_v46, %s11499_s17  ;;  %v13610_v29 = vpop.permute.xlu1 %4088  ;;  %v13632_v35 = vpop.eup %11182  ;;  %v10286_v39 = vpack.c.bf16 %v10827_v28, %v10826_v9  ;;  %11196 = vpow2.f32 %v2385_v15  ;;  %v15707_v28 = vld [vmem:[#allocation9_spill] sm:$0xff]  ;;  %v15710_v15 = vld [vmem:[#allocation11_spill] sm:$0xff] }
 0x3c6   :  { %9585 = vmatmul.mubr.msk.f32.gmra.mrb[68].mxu0 %vm2068_vm3, %v13604_v40  ;;  %9557 = vmatmul.mubr.msk.f32.gmra.mrb[60].mxu1 %vm2068_vm3, %v13581_v20  ;;  %v13620_v54 = vpop.permute.xlu0 %10844  ;;  %15703 = vst [vmem:[#allocation24_spill] sm:$0xff] %v13632_v35  ;;  %11198 = vpow2.f32 %v2387_v7  ;;  %v10304_v0 = vpack.c.bf16 %v10832_v25, %v10831_v22  ;;  %v15713_v7 = vld [vmem:[#allocation16_spill] sm:$0xff]  ;;  %v10841_v22 = vunpack.i.l.bf16 %v13399_v50 }
 0x3c7   :  { %9587 = vmatprep.mubr.msk.f32.mxu0 %vm2068_vm3, %v13612_v57  ;;  %10269 = vmatpush3.bf16.msra.mxu1 %v10266_v43  ;;  %v13642_v43 = vpop.eup %11184  ;;  %v15772_v57 = vld [vmem:[#allocation23_spill] sm:$0xff] }
 0x3c8   :  { %9559 = vmatprep.mubr.msk.f32.mxu1 %vm2068_vm3, %v13622_v32  ;;  %10271 = vmatprep.subr.bf16.mxu1 %v10270_v2  ;;  %15705 = vst [vmem:[#allocation36_spill] sm:$0xff] %v13642_v43  ;;  %v13650_v46 = vpop.eup %11186 }
 0x3c9   :  { %10974 = vrot.lane.b32.xlu0 %v15704_v16, %s11499_s17  ;;  %v13636_v63 = vpop.permute.xlu1 %10899  ;;  %15706 = vst [vmem:[#allocation47_spill] sm:$0xff] %v13650_v46 }
 0x3ca   :  { %9588 = vmatmul.mubr.msk.f32.gmra.mrb[70].mxu0 %vm2068_vm3, %v13632_v35  ;;  %9560 = vmatmul.mubr.msk.f32.gmra.mrb[62].mxu1 %vm2068_vm3, %v13598_v41  ;;  %v3950_v24 = vpop.permute.xlu0 %3949 }
 0x3cb   :  { %10273 = vmatpush3.bf16.msra.mxu1 %v10270_v2  ;;  %10285 = vmatpush3.bf16.xpose.msk.msra.mxu0 %vm12028_vm2, %v10280_v13  ;;  %v13658_v2 = vpop.eup %11188  ;;  %v10837_v13 = vunpack.i.h.bf16 %v13589_v36 }
 0x3cc   :  { %9606 = vmatprep.mubr.msk.f32.mxu1 %vm2068_vm3, %v13642_v43  ;;  %10288 = vmatprep.subr.msk.bf16.mxu0 %vm12028_vm2, %v10286_v39  ;;  %15708 = vst [vmem:[#allocation108_spill] sm:$0xff] %v13658_v2  ;;  %v13669_v10 = vpop.eup %11190 }
 0x3cd   :  { %10300 = vmatprep.subr.msk.bf16.mxu1 %vm12028_vm2, %v10298_v56  ;;  %10984 = vrot.lane.b32.xlu0 %v15707_v28, %s11499_s17  ;;  %v13656_v9 = vpop.permute.xlu1 %4350  ;;  %15709 = vst [vmem:[#allocation26_spill] sm:$0xff] %v13669_v10  ;;  %v13673_v36 = vpop.eup %11192  ;;  %v10292_v16 = vpack.c.bf16 %v10837_v13, %v10836_v45  ;;  %v10851_v45 = vunpack.i.l.bf16 %v13412_v23 }
 0x3ce   :  { %9634 = vmatprep.mubr.msk.f32.mxu0 %vm819_vm1, %v3950_v24  ;;  %9607 = vmatmul.mubr.msk.f32.vlgmr.msra.gmra.mrb[64].mxu1 %vm2068_vm3, %v13650_v46  ;;  %v10855_v62 = vpop.permute.xlu0 %10854  ;;  %15711 = vst [vmem:[#allocation25_spill] sm:$0xff] %v13673_v36  ;;  %v13687_v48 = vpop.eup %11194 }
 0x3cf   :  { %9609 = vmatprep.mubr.msk.f32.mxu1 %vm2068_vm3, %v13658_v2  ;;  %15712 = vst [vmem:[#allocation37_spill] sm:$0xff] %v13687_v48  ;;  %v13693_v13 = vpop.eup %11196 }
 0x3d0   :  { %15714 = vst [vmem:[#allocation28_spill] sm:$0xff] %v13693_v13 }
 0x3d1   :  { %10994 = vrot.lane.b32.xlu0 %v15710_v15, %s11499_s17  ;;  %v13677_v24 = vpop.permute.xlu1 %4221 }
 0x3d2   :  { %9610 = vmatmul.mubr.msk.f32.gmra.mrb[66].mxu1 %vm2068_vm3, %v13669_v10  ;;  %v4083_v28 = vpop.permute.xlu0 %4082 }
 0x3d3   :  { %10291 = vmatpush3.bf16.xpose.msk.msra.mxu0 %vm12028_vm2, %v10286_v39  ;;  %9612 = vmatprep.mubr.msk.f32.mxu1 %vm2068_vm3, %v13673_v36  ;;  %v10852_v39 = vunpack.i.h.bf16 %v13412_v23 }
 0x3d4   :  { %10294 = vmatprep.subr.msk.bf16.mxu0 %vm12028_vm2, %v10292_v16  ;;  %10303 = vmatpush3.bf16.xpose.msk.msra.mxu1 %vm12028_vm2, %v10298_v56  ;;  %v10842_v56 = vunpack.i.h.bf16 %v13399_v50  ;;  %v10857_v50 = vunpack.i.h.bf16 %v10855_v62 }
 0x3d5   :  { %11004 = vrot.lane.b32.xlu0 %v15713_v7, %s11499_s17  ;;  %10306 = vmatprep.subr.msk.bf16.mxu1 %vm12028_vm2, %v10304_v0  ;;  %v13703_v15 = vpop.permute.xlu1 %10909  ;;  %v13705_v7 = vpop.eup %11198  ;;  %v10322_v36 = vpack.c.bf16 %v10852_v39, %v10851_v45  ;;  %v10856_v39 = vunpack.i.l.bf16 %v10855_v62 }
 0x3d6   :  { %9613 = vmatmul.mubr.msk.f32.gmra.mrb[68].mxu1 %vm2068_vm3, %v13687_v48  ;;  %v10865_v25 = vpop.permute.xlu0 %10864  ;;  %15715 = vst [vmem:[#allocation27_spill] sm:$0xff] %v13705_v7  ;;  %v10310_v10 = vpack.c.bf16 %v10842_v56, %v10841_v22  ;;  %v10847_v56 = vunpack.i.h.bf16 %v13620_v54 }
 0x3d7   :  { %9615 = vmatprep.mubr.msk.f32.mxu1 %vm2068_vm3, %v13693_v13  ;;  %v10328_v22 = vpack.c.bf16 %v10857_v50, %v10856_v39  ;;  %v10862_v50 = vunpack.i.h.bf16 %v13444_v59 }
 0x3d9   :  { %v13718_v45 = vpop.permute.xlu1 %4483 }
 0x3da   :  { %9616 = vmatmul.mubr.msk.f32.gmra.mrb[70].mxu1 %vm2068_vm3, %v13705_v7  ;;  %v10875_v23 = vpop.permute.xlu0 %10874 }
 0x3db   :  { %10297 = vmatpush3.bf16.xpose.msk.msra.mxu0 %vm12028_vm2, %v10292_v16  ;;  %9656 = vmatprep.mubr.msk.f32.mxu1 %vm819_vm1, %v4083_v28  ;;  %v10846_v16 = vunpack.i.l.bf16 %v13620_v54  ;;  %v10866_v54 = vunpack.i.l.bf16 %v10865_v25 }
 0x3dc   :  { %10309 = vmatpush3.bf16.xpose.msk.msra.mxu1 %vm12028_vm2, %v10304_v0  ;;  %10324 = vmatprep.subr.msk.bf16.mxu0 %vm12028_vm2, %v10322_v36 }
 0x3dd   :  { %10312 = vmatprep.subr.msk.bf16.mxu1 %vm12028_vm2, %v10310_v10  ;;  %v10316_v28 = vpack.c.bf16 %v10847_v56, %v10846_v16  ;;  %v13729_v62 = vpop.permute.xlu1 %4354 }
 0x3de   :  { %v3954_v7 = vpop.permute.xlu0 %3953 }
 0x3e2   :  { %9635 = vmatmul.mubr.msk.f32.vlgmr.msra.gmra.mrb[72].mxu0 %vm819_vm1, %v13429_v11  ;;  %v13724_v0 = vpop.permute.xlu0 %10884  ;;  %v10867_v11 = vunpack.i.h.bf16 %v10865_v25 }
 0x3e3   :  { %9637 = vmatprep.mubr.msk.f32.mxu0 %vm819_vm1, %v3954_v7  ;;  %10327 = vmatpush3.bf16.xpose.msk.msra.mxu0 %vm12028_vm2, %v10322_v36  ;;  %v10861_v36 = vunpack.i.l.bf16 %v13444_v59  ;;  %v10877_v59 = vunpack.i.h.bf16 %v10875_v23 }
 0x3e4   :  { %10315 = vmatpush3.bf16.xpose.msk.msra.mxu1 %vm12028_vm2, %v10310_v10  ;;  %10330 = vmatprep.subr.msk.bf16.mxu0 %vm12028_vm2, %v10328_v22  ;;  %v10334_v39 = vpack.c.bf16 %v10867_v11, %v10866_v54  ;;  %v13742_v10 = vpop.permute.xlu1 %10919  ;;  %v10872_v11 = vunpack.i.h.bf16 %v13473_v4  ;;  %v10871_v54 = vunpack.i.l.bf16 %v13473_v4  ;;  %v10892_v4 = vunpack.i.h.bf16 %v13552_v53 }
 0x3e5   :  { %10318 = vmatprep.subr.msk.bf16.mxu1 %vm12028_vm2, %v10316_v28  ;;  %v10346_v16 = vpack.c.bf16 %v10862_v50, %v10861_v36 }
 0x3e6   :  { %9638 = vmatmul.mubr.msk.f32.gmra.mrb[74].mxu0 %vm819_vm1, %v13528_v17  ;;  %v4216_v7 = vpop.permute.xlu0 %4215  ;;  %v10876_v17 = vunpack.i.l.bf16 %v10875_v23  ;;  %v10891_v23 = vunpack.i.l.bf16 %v13552_v53 }
 0x3e7   :  { %9678 = vmatprep.mubr.msk.f32.mxu0 %vm819_vm1, %v4216_v7 }
 0x3e8   :  { %v13754_v7 = vpop.permute.xlu1 %4616  ;;  %v10340_v50 = vpack.c.bf16 %v10877_v59, %v10876_v17 }
 0x3ea   :  { %v4087_v56 = vpop.permute.xlu0 %4086 }
 0x3eb   :  { %10333 = vmatpush3.bf16.xpose.msk.msra.mxu0 %vm12028_vm2, %v10328_v22 }
 0x3ec   :  { %10321 = vmatpush3.bf16.xpose.msk.msra.mxu1 %vm12028_vm2, %v10316_v28  ;;  %10336 = vmatprep.subr.msk.bf16.mxu0 %vm12028_vm2, %v10334_v39  ;;  %v10352_v28 = vpack.c.bf16 %v10872_v11, %v10871_v54  ;;  %v13767_v36 = vpop.permute.xlu1 %4487  ;;  %v10887_v54 = vunpack.i.h.bf16 %v13724_v0 }
 0x3ed   :  { %10348 = vmatprep.subr.msk.bf16.mxu1 %vm12028_vm2, %v10346_v16 }
 0x3ee   :  { %v10895_v25 = vpop.permute.xlu0 %10894 }
 0x3ef   :  { %v10896_v11 = vunpack.i.l.bf16 %v10895_v25 }
 0x3f0   :  { %v4732_v17 = vpop.permute.xlu1 %4731 }
 0x3f2   :  { %v4349_v22 = vpop.permute.xlu0 %4348 }
 0x3f3   :  { %9657 = vmatmul.mubr.msk.f32.vlgmr.msra.gmra.mrb[72].mxu1 %vm819_vm1, %v13454_v12  ;;  %10339 = vmatpush3.bf16.xpose.msk.msra.mxu0 %vm12028_vm2, %v10334_v39  ;;  %v10882_v39 = vunpack.i.h.bf16 %v13503_v6 }
 0x3f4   :  { %9659 = vmatprep.mubr.msk.f32.mxu1 %vm819_vm1, %v4087_v56  ;;  %10342 = vmatprep.subr.msk.bf16.mxu0 %vm12028_vm2, %v10340_v50  ;;  %v10881_v56 = vunpack.i.l.bf16 %v13503_v6 }
 0x3f5   :  { %10351 = vmatpush3.bf16.xpose.msk.msra.mxu1 %vm12028_vm2, %v10346_v16  ;;  %v10370_v16 = vpack.c.bf16 %v10892_v4, %v10891_v23 }
 0x3f6   :  { %10354 = vmatprep.subr.msk.bf16.mxu1 %vm12028_vm2, %v10352_v28  ;;  %v4220_v12 = vpop.permute.xlu0 %4219  ;;  %v10358_v53 = vpack.c.bf16 %v10882_v39, %v10881_v56  ;;  %v10901_v39 = vunpack.i.l.bf16 %v13636_v63 }
 0x3f7   :  { %9660 = vmatmul.mubr.msk.f32.gmra.mrb[74].mxu1 %vm819_vm1, %v13610_v29  ;;  %v10897_v29 = vunpack.i.h.bf16 %v10895_v25 }
 0x3f8   :  { %9700 = vmatprep.mubr.msk.f32.mxu1 %vm819_vm1, %v4349_v22  ;;  %v10886_v22 = vunpack.i.l.bf16 %v13724_v0  ;;  %v10912_v0 = vunpack.i.h.bf16 %v13703_v15 }
 0x3f9   :  { %v10376_v4 = vpack.c.bf16 %v10897_v29, %v10896_v11 }
 0x3fa   :  { %v10905_v59 = vpop.permute.xlu0 %10904  ;;  %v10364_v25 = vpack.c.bf16 %v10887_v54, %v10886_v22 }
 0x3fb   :  { %10345 = vmatpush3.bf16.xpose.msk.msra.mxu0 %vm12028_vm2, %v10340_v50  ;;  %v13786_v50 = vpop.permute.xlu1 %4618  ;;  %v10906_v54 = vunpack.i.l.bf16 %v10905_v59 }
 0x3fc   :  { %10372 = vmatprep.subr.msk.bf16.mxu0 %vm12028_vm2, %v10370_v16 }
 0x3fd   :  { %10357 = vmatpush3.bf16.xpose.msk.msra.mxu1 %vm12028_vm2, %v10352_v28  ;;  %v10911_v28 = vunpack.i.l.bf16 %v13703_v15 }
 0x3fe   :  { %10360 = vmatprep.subr.msk.bf16.mxu1 %vm12028_vm2, %v10358_v53  ;;  %v4482_v6 = vpop.permute.xlu0 %4481 }
 0x3ff   :  { %v4849_v56 = vpop.permute.xlu1 %4848 }
 0x402   :  { %9679 = vmatmul.mubr.msk.f32.vlgmr.msra.gmra.mrb[76].mxu0 %vm819_vm1, %v13579_v5  ;;  %v4353_v23 = vpop.permute.xlu0 %4352 }
 0x403   :  { %9681 = vmatprep.mubr.msk.f32.mxu0 %vm819_vm1, %v4220_v12  ;;  %10375 = vmatpush3.bf16.xpose.msk.msra.mxu0 %vm12028_vm2, %v10370_v16  ;;  %v10902_v12 = vunpack.i.h.bf16 %v13636_v63  ;;  %v10394_v16 = vpack.c.bf16 %v10912_v0, %v10911_v28 }
 0x404   :  { %10378 = vmatprep.subr.msk.bf16.mxu0 %vm12028_vm2, %v10376_v4 }
 0x405   :  { %10363 = vmatpush3.bf16.xpose.msk.msra.mxu1 %vm12028_vm2, %v10358_v53  ;;  %v10382_v15 = vpack.c.bf16 %v10902_v12, %v10901_v39 }
 0x406   :  { %10366 = vmatprep.subr.msk.bf16.mxu1 %vm12028_vm2, %v10364_v25  ;;  %9682 = vmatmul.mubr.msk.f32.gmra.mrb[78].mxu0 %vm819_vm1, %v13677_v24  ;;  %v10915_v5 = vpop.permute.xlu0 %10914  ;;  %v4736_v24 = vpop.permute.xlu1 %4735 }
 0x407   :  { %9714 = vmatprep.mubr.msk.f32.mxu0 %vm819_vm1, %v4482_v6  ;;  %v10917_v29 = vunpack.i.h.bf16 %v10915_v5  ;;  %v10916_v11 = vunpack.i.l.bf16 %v10915_v5  ;;  %v10907_v6 = vunpack.i.h.bf16 %v10905_v59  ;;  %v10922_v59 = vunpack.i.h.bf16 %v13742_v10 }
 0x409   :  { %v10400_v22 = vpack.c.bf16 %v10917_v29, %v10916_v11 }
 0x40a   :  { %v4615_v53 = vpop.permute.xlu0 %4614  ;;  %v4853_v0 = vpop.permute.xlu1 %4852 }
 0x40b   :  { %10381 = vmatpush3.bf16.xpose.msk.msra.mxu0 %vm12028_vm2, %v10376_v4 }
 0x40c   :  { %10396 = vmatprep.subr.msk.bf16.mxu0 %vm12028_vm2, %v10394_v16 }
 0x40d   :  { %10369 = vmatpush3.bf16.xpose.msk.msra.mxu1 %vm12028_vm2, %v10364_v25  ;;  %v10388_v25 = vpack.c.bf16 %v10907_v6, %v10906_v54 }
 0x40e   :  { %10384 = vmatprep.subr.msk.bf16.mxu1 %vm12028_vm2, %v10382_v15  ;;  %v4486_v63 = vpop.permute.xlu0 %4485 }
 0x412   :  { %9715 = vmatmul.mubr.msk.f32.vlgmr.msra.gmra.mrb[80].mxu0 %vm819_vm1, %v13718_v45  ;;  %v10925_v4 = vpop.permute.xlu0 %10924 }
 0x413   :  { %9717 = vmatprep.mubr.msk.f32.mxu0 %vm819_vm1, %v4486_v63  ;;  %10399 = vmatpush3.bf16.xpose.msk.msra.mxu0 %vm12028_vm2, %v10394_v16 }
 0x414   :  { %9701 = vmatmul.mubr.msk.f32.vlgmr.msra.gmra.mrb[76].mxu1 %vm819_vm1, %v13656_v9  ;;  %10402 = vmatprep.subr.msk.bf16.mxu0 %vm12028_vm2, %v10400_v22  ;;  %v10921_v9 = vunpack.i.l.bf16 %v13742_v10 }
 0x415   :  { %9703 = vmatprep.mubr.msk.f32.mxu1 %vm819_vm1, %v4353_v23  ;;  %10387 = vmatpush3.bf16.xpose.msk.msra.mxu1 %vm12028_vm2, %v10382_v15  ;;  %v13836_v23 = vpop.permute.xlu1 %4501 }
 0x416   :  { %10390 = vmatprep.subr.msk.bf16.mxu1 %vm12028_vm2, %v10388_v25  ;;  %9718 = vmatmul.mubr.msk.f32.gmra.mrb[82].mxu0 %vm819_vm1, %v13767_v36  ;;  %v4734_v45 = vpop.permute.xlu0 %4733  ;;  %v10406_v5 = vpack.c.bf16 %v10922_v59, %v10921_v9 }
 0x417   :  { %9742 = vmatprep.mubr.msk.f32.mxu0 %vm819_vm1, %v4732_v17  ;;  %v10927_v17 = vunpack.i.h.bf16 %v10925_v4 }
 0x418   :  { %9704 = vmatmul.mubr.msk.f32.gmra.mrb[78].mxu1 %vm819_vm1, %v13729_v62  ;;  %v10926_v62 = vunpack.i.l.bf16 %v10925_v4 }
 0x419   :  { %9728 = vmatprep.mubr.msk.f32.mxu1 %vm819_vm1, %v4615_v53  ;;  %v13844_v10 = vpop.permute.xlu1 %4505 }
 0x41a   :  { %v4621_v28 = vpop.permute.xlu0 %4620  ;;  %v10412_v39 = vpack.c.bf16 %v10927_v17, %v10926_v62 }
 0x41b   :  { %10405 = vmatpush3.bf16.xpose.msk.msra.mxu0 %vm12028_vm2, %v10400_v22 }
 0x41d   :  { %10393 = vmatpush3.bf16.xpose.msk.msra.mxu1 %vm12028_vm2, %v10388_v25  ;;  %v10935_v16 = vpop.permute.xlu1 %10934 }
 0x41e   :  { %10408 = vmatprep.subr.msk.bf16.mxu1 %vm12028_vm2, %v10406_v5  ;;  %v4851_v36 = vpop.permute.xlu0 %4850  ;;  %v10936_v29 = vunpack.i.l.bf16 %v10935_v16 }
 0x422   :  { %9743 = vmatmul.mubr.msk.f32.vlgmr.msra.gmra.mrb[84].mxu0 %vm819_vm1, %v4734_v45  ;;  %v4738_v12 = vpop.permute.xlu0 %4737 }
 0x423   :  { %9745 = vmatprep.mubr.msk.f32.mxu0 %vm819_vm1, %v4736_v24  ;;  %v10937_v24 = vunpack.i.h.bf16 %v10935_v16 }
 0x424   :  { %9729 = vmatmul.mubr.msk.f32.vlgmr.msra.gmra.mrb[80].mxu1 %vm819_vm1, %v13754_v7  ;;  %v10945_v7 = vpop.permute.xlu1 %10944 }
 0x425   :  { %9731 = vmatprep.mubr.msk.f32.mxu1 %vm819_vm1, %v13786_v50  ;;  %10411 = vmatpush3.bf16.xpose.msk.msra.mxu1 %vm12028_vm2, %v10406_v5  ;;  %v10946_v4 = vunpack.i.l.bf16 %v10945_v7  ;;  %v10422_v45 = vpack.c.bf16 %v10937_v24, %v10936_v29 }
 0x426   :  { %10414 = vmatprep.subr.msk.bf16.mxu1 %vm12028_vm2, %v10412_v39  ;;  %9746 = vmatmul.mubr.msk.f32.gmra.mrb[86].mxu0 %vm819_vm1, %v4738_v12  ;;  %v4855_v53 = vpop.permute.xlu0 %4854 }
 0x428   :  { %9732 = vmatmul.mubr.msk.f32.gmra.mrb[82].mxu1 %vm819_vm1, %v4621_v28  ;;  %v10950_v11 = vpop.permute.xlu1 %10949 }
 0x429   :  { %9756 = vmatprep.mubr.msk.f32.mxu1 %vm819_vm1, %v4849_v56  ;;  %v10947_v56 = vunpack.i.h.bf16 %v10945_v7  ;;  %v10952_v59 = vunpack.i.h.bf16 %v10950_v11  ;;  %v10951_v44 = vunpack.i.l.bf16 %v10950_v11 }
 0x42a   :  { %v13859_v15 = vpop.permute.xlu0 %4503 }
 0x42b   :  { %v13868_v12 = vpack.c.bf16 %v10947_v56, %v10946_v4 }
 0x42c   :  { %v10960_v5 = vpop.permute.xlu1 %10959 }
 0x42d   :  { %10417 = vmatpush3.bf16.xpose.msk.msra.mxu1 %vm12028_vm2, %v10412_v39  ;;  %v10962_v62 = vunpack.i.h.bf16 %v10960_v5 }
 0x42e   :  { %v13863_v50 = vpop.permute.xlu0 %4507 }
 0x432   :  { %v10930_v63 = vpop.permute.xlu0 %10929 }
 0x433   :  { %v10932_v6 = vunpack.i.h.bf16 %v10930_v63  ;;  %v10931_v54 = vunpack.i.l.bf16 %v10930_v63 }
 0x434   :  { %9757 = vmatmul.mubr.msk.f32.vlgmr.msra.gmra.mrb[84].mxu1 %vm819_vm1, %v4851_v36  ;;  %v10961_v36 = vunpack.i.l.bf16 %v10960_v5 }
 0x435   :  { %9759 = vmatprep.mubr.msk.f32.mxu1 %vm819_vm1, %v4853_v0  ;;  %v10418_v22 = vpack.c.bf16 %v10932_v6, %v10931_v54  ;;  %v10430_v0 = vpack.c.bf16 %v10952_v59, %v10951_v44 }
 0x436   :  { %v10940_v25 = vpop.permute.xlu0 %10939  ;;  %v13871_v39 = vpack.c.bf16 %v10962_v62, %v10961_v36 }
 0x437   :  { %v10942_v9 = vunpack.i.h.bf16 %v10940_v25  ;;  %v10941_v28 = vunpack.i.l.bf16 %v10940_v25  ;;  %10419 = vmatprep.subr.bf16.mxu0 %v10418_v22 }
 0x438   :  { %9760 = vmatmul.mubr.msk.f32.gmra.mrb[86].mxu1 %vm819_vm1, %v4855_v53  ;;  %10421 = vmatpush3.bf16.msra.mxu0 %v10418_v22 }
 0x439   :  { %10423 = vmatprep.subr.bf16.mxu0 %v10422_v45  ;;  %v10426_v17 = vpack.c.bf16 %v10942_v9, %v10941_v28 }
 0x43b   :  { %10427 = vmatprep.subr.bf16.mxu1 %v10426_v17 }
 0x43c   :  { %10425 = vmatpush3.bf16.msra.mxu0 %v10422_v45  ;;  %10429 = vmatpush3.bf16.msra.mxu1 %v10426_v17 }
 0x43d   :  { %10431 = vmatprep.subr.bf16.mxu1 %v10430_v0  ;;  %10435 = vmatprep.subr.bf16.mxu0 %v13868_v12 }
 0x440   :  { %10433 = vmatpush3.bf16.msra.mxu1 %v10430_v0 }
 0x441   :  { %10443 = vmatprep.subr.bf16.mxu1 %v13871_v39 }
 0x45b   :  { %v13874_v16 = vpop.f32.mrb[56].mxu0 }
 0x45c   :  { %15716 = vst [vmem:[#allocation42_spill] sm:$0xff] %v13874_v16  ;;  %v13876_v53 = vpop.f32.mrb[57].mxu0 }
 0x45d   :  { %15717 = vst [vmem:[#allocation30_spill] sm:$0xff] %v13876_v53 }
 0x45f   :  { %v13878_v7 = vpop.f32.mrb[58].mxu0 }
 0x460   :  { %15718 = vst [vmem:[#allocation29_spill] sm:$0xff] %v13878_v7  ;;  %v13880_v24 = vpop.f32.mrb[59].mxu0 }
 0x461   :  { %15719 = vst [vmem:[#allocation35_spill] sm:$0xff] %v13880_v24 }
 0x463   :  { %v13882_v29 = vpop.f32.mrb[60].mxu0 }
 0x464   :  { %15720 = vst [vmem:[#allocation31_spill] sm:$0xff] %v13882_v29  ;;  %v13884_v11 = vpop.f32.mrb[61].mxu0 }
 0x465   :  { %15721 = vst [vmem:[#allocation63_spill] sm:$0xff] %v13884_v11 }
 0x467   :  { %v13886_v63 = vpop.f32.mrb[62].mxu0 }
 0x468   :  { %15722 = vst [vmem:[#allocation40_spill] sm:$0xff] %v13886_v63  ;;  %v13888_v6 = vpop.f32.mrb[63].mxu0 }
 0x469   :  { %15723 = vst [vmem:[#allocation44_spill] sm:$0xff] %v13888_v6 }
 0x48e   :  { %v13890_v54 = vpop.f32.mrb[64].mxu0 }
 0x48f   :  { %15724 = vst [vmem:[#allocation100_spill] sm:$0xff] %v13890_v54  ;;  %v13892_v22 = vpop.f32.mrb[65].mxu0 }
 0x490   :  { %15725 = vst [vmem:[#allocation106_spill] sm:$0xff] %v13892_v22 }
 0x491   :  { %v13894_v56 = vpop.f32.mrb[56].mxu1 }
 0x492   :  { %15726 = vst [vmem:[#allocation87_spill] sm:$0xff] %v13894_v56  ;;  %v13896_v4 = vpop.f32.mrb[57].mxu1 }
 0x493   :  { %15727 = vst [vmem:[#allocation103_spill] sm:$0xff] %v13896_v4 }
 0x494   :  { %v13898_v25 = vpop.f32.mrb[66].mxu0 }
 0x495   :  { %15728 = vst [vmem:[#allocation89_spill] sm:$0xff] %v13898_v25  ;;  %v13900_v45 = vpop.f32.mrb[67].mxu0  ;;  %v13902_v59 = vpop.f32.mrb[58].mxu1 }
 0x496   :  { %15729 = vst [vmem:[#allocation54_spill] sm:$0xff] %v13900_v45  ;;  %15730 = vst [vmem:[#allocation93_spill] sm:$0xff] %v13902_v59  ;;  %v13904_v44 = vpop.f32.mrb[59].mxu1 }
 0x497   :  { %15731 = vst [vmem:[#allocation13_spill] sm:$0xff] %v13904_v44 }
 0x499   :  { %v13906_v9 = vpop.f32.mrb[68].mxu0  ;;  %v13908_v28 = vpop.f32.mrb[60].mxu1 }
 0x49a   :  { %15732 = vst [vmem:[#allocation104_spill] sm:$0xff] %v13906_v9  ;;  %15733 = vst [vmem:[#allocation109_spill] sm:$0xff] %v13908_v28  ;;  %v13910_v5 = vpop.f32.mrb[69].mxu0  ;;  %v13912_v17 = vpop.f32.mrb[61].mxu1 }
 0x49b   :  { %15734 = vst [vmem:[#allocation53_spill] sm:$0xff] %v13910_v5  ;;  %15735 = vst [vmem:[#allocation60_spill] sm:$0xff] %v13912_v17 }
 0x49d   :  { %v13914_v62 = vpop.f32.mrb[70].mxu0  ;;  %v13916_v36 = vpop.f32.mrb[62].mxu1 }
 0x49e   :  { %15736 = vst [vmem:[#allocation69_spill] sm:$0xff] %v13914_v62  ;;  %15737 = vst [vmem:[#allocation96_spill] sm:$0xff] %v13916_v36  ;;  %v13918_v0 = vpop.f32.mrb[71].mxu0  ;;  %v13920_v25 = vpop.f32.mrb[63].mxu1 }
 0x49f   :  { %15738 = vst [vmem:[#allocation57_spill] sm:$0xff] %v13918_v0  ;;  %15739 = vst [vmem:[#allocation55_spill] sm:$0xff] %v13920_v25 }
 0x4a1   :  { %v13922_v45 = vpop.f32.mrb[64].mxu1 }
 0x4a2   :  { %15740 = vst [vmem:[#allocation67_spill] sm:$0xff] %v13922_v45  ;;  %v13924_v54 = vpop.f32.mrb[65].mxu1  ;;  %v11432_v45 = vld [vmem:[%s15215_s3] sm:$0xff] }
 0x4a3   :  { %15741 = vst [vmem:[#allocation72_spill] sm:$0xff] %v13924_v54 }
 0x4a5   :  { %v13926_v22 = vpop.f32.mrb[66].mxu1 }
 0x4a6   :  { %15742 = vst [vmem:[#allocation56_spill] sm:$0xff] %v13926_v22  ;;  %v13928_v9 = vpop.f32.mrb[67].mxu1 }
 0x4a7   :  { %15743 = vst [vmem:[#allocation58_spill] sm:$0xff] %v13928_v9 }
 0x4a9   :  { %v13930_v28 = vpop.f32.mrb[68].mxu1 }
 0x4aa   :  { %15744 = vst [vmem:[#allocation59_spill] sm:$0xff] %v13930_v28  ;;  %v13932_v5 = vpop.f32.mrb[69].mxu1 }
 0x4ab   :  { %15745 = vst [vmem:[#allocation68_spill] sm:$0xff] %v13932_v5 }
 0x4ad   :  { %v13934_v17 = vpop.f32.mrb[70].mxu1 }
 0x4ae   :  { %15746 = vst [vmem:[#allocation75_spill] sm:$0xff] %v13934_v17  ;;  %v13936_v62 = vpop.f32.mrb[71].mxu1 }
 0x4af   :  { %15747 = vst [vmem:[#allocation62_spill] sm:$0xff] %v13936_v62 }
 0x4b5   :  { %v9636_v36 = vpop.f32.mrb[72].mxu0 }
 0x4b6   :  { %v13939_v0 = vadd.f32 %v9636_v36, %v13459_v52  ;;  %v4063_v25 = vpop.f32.mrb[73].mxu0 }
 0x4b7   :  { %v13944_v22 = vadd.f32 %v11432_v45, %v4063_v25 }
 0x4b8   :  { %v4968_v28 = vsel %vm2068_vm3, %v13939_v0, -inf }
 0x4b9   :  { %4969 = vmax.xlane.f32.xlu0 %v4968_v28  ;;  %v9639_v5 = vpop.f32.mrb[74].mxu0  ;;  %v4965_v17 = vsel %vm2068_vm3, %v13944_v22, -inf }
 0x4ba   :  { %v4073_v62 = vpop.f32.mrb[75].mxu0  ;;  %4966 = vmax.xlane.f32.xlu1 %v4965_v17  ;;  %v13958_v28 = vadd.f32 %v9639_v5, %v13478_v61 }
 0x4bc   :  { %15750 = vst [vmem:[#allocation32_spill] sm:$0xff] %v13958_v28 }
 0x4c6   :  { %v9658_v9 = vpop.f32.mrb[72].mxu1 }
 0x4c7   :  { %v13951_v36 = vadd.f32 %v9658_v9, %v13459_v52  ;;  %v4196_v54 = vpop.f32.mrb[73].mxu1  ;;  %v11433_v9 = vld [vmem:[%s15215_s3 + $0x10] sm:$0xff] }
 0x4c8   :  { %v13953_v59 = vadd.f32 %v11432_v45, %v4196_v54  ;;  %v4974_v54 = vsel %vm2068_vm3, %v13958_v28, -inf }
 0x4c9   :  { %15748 = vst [vmem:[#allocation70_spill] sm:$0xff] %v13951_v36  ;;  %v4980_v25 = vsel %vm2068_vm3, %v13951_v36, -inf }
 0x4ca   :  { %15749 = vst [vmem:[#allocation65_spill] sm:$0xff] %v13953_v59  ;;  %v9661_v44 = vpop.f32.mrb[74].mxu1  ;;  %4981 = vmax.xlane.f32.xlu0 %v4980_v25  ;;  %v4977_v4 = vsel %vm2068_vm3, %v13953_v59, -inf  ;;  %v13970_v25 = vadd.f32 %v11433_v9, %v4073_v62  ;;  %v15774_v59 = vld [vmem:[#allocation39_spill] sm:$0xff] }
 0x4cb   :  { %v4206_v56 = vpop.f32.mrb[75].mxu1  ;;  %v13963_v17 = vadd.f32 %v9661_v44, %v13478_v61 }
 0x4cc   :  { %15752 = vst [vmem:[#allocation66_spill] sm:$0xff] %v13970_v25  ;;  %v13981_v29 = vadd.f32 %v11433_v9, %v4206_v56  ;;  %v4971_v62 = vsel %vm2068_vm3, %v13970_v25, -inf  ;;  %v15788_v25 = vld [vmem:[#allocation81_spill] sm:$0xff] }
 0x4cd   :  { %15751 = vst [vmem:[#allocation61_spill] sm:$0xff] %v13963_v17  ;;  %v4986_v5 = vsel %vm2068_vm3, %v13963_v17, -inf }
 0x4ce   :  { %4978 = vmax.xlane.f32.xlu0 %v4977_v4  ;;  %15755 = vst [vmem:[#allocation71_spill] sm:$0xff] %v13981_v29 }
 0x4d2   :  { %4975 = vmax.xlane.f32.xlu0 %v4974_v54 }
 0x4d5   :  { %v9680_v63 = vpop.f32.mrb[76].mxu0 }
 0x4d6   :  { %v13975_v6 = vadd.f32 %v9680_v63, %v13459_v52  ;;  %4987 = vmax.xlane.f32.xlu0 %v4986_v5  ;;  %v4329_v4 = vpop.f32.mrb[77].mxu0  ;;  %v4983_v5 = vsel %vm2068_vm3, %v13981_v29, -inf  ;;  %v14124_v29 = vpop.permute.xlu1 %10969 }
 0x4d7   :  { %v13977_v44 = vadd.f32 %v11432_v45, %v4329_v4 }
 0x4d8   :  { %15753 = vst [vmem:[#allocation64_spill] sm:$0xff] %v13975_v6  ;;  %v4992_v54 = vsel %vm2068_vm3, %v13975_v6, -inf  ;;  %v15777_v6 = vld [vmem:[#allocation41_spill] sm:$0xff] }
 0x4d9   :  { %15754 = vst [vmem:[#allocation73_spill] sm:$0xff] %v13977_v44  ;;  %v9683_v11 = vpop.f32.mrb[78].mxu0  ;;  %4993 = vmax.xlane.f32.xlu1 %v4992_v54  ;;  %v4989_v63 = vsel %vm2068_vm3, %v13977_v44, -inf }
 0x4da   :  { %v4339_v7 = vpop.f32.mrb[79].mxu0  ;;  %4972 = vmax.xlane.f32.xlu0 %v4971_v62 }
 0x4dd   :  { %4990 = vmax.xlane.f32.xlu1 %v4989_v63 }
 0x4de   :  { %4984 = vmax.xlane.f32.xlu0 %v4983_v5  ;;  %v13999_v5 = vadd.f32 %v9683_v11, %v13478_v61 }
 0x4e0   :  { %15759 = vst [vmem:[#allocation10_spill] sm:$0xff] %v13999_v5 }
 0x4e5   :  { %v9716_v4 = vpop.f32.mrb[80].mxu0 }
 0x4e6   :  { %v4595_v24 = vpop.f32.mrb[81].mxu0 }
 0x4e7   :  { %v9702_v16 = vpop.f32.mrb[76].mxu1 }
 0x4e8   :  { %v13990_v56 = vadd.f32 %v9702_v16, %v13459_v52  ;;  %v4462_v54 = vpop.f32.mrb[77].mxu1  ;;  %v14004_v16 = vadd.f32 %v9716_v4, %v13859_v15 }
 0x4e9   :  { %v9719_v53 = vpop.f32.mrb[82].mxu0  ;;  %v13992_v13 = vadd.f32 %v11432_v45, %v4462_v54 }
 0x4ea   :  { %15756 = vst [vmem:[#allocation76_spill] sm:$0xff] %v13990_v56  ;;  %v4605_v48 = vpop.f32.mrb[83].mxu0  ;;  %v5004_v62 = vsel %vm2068_vm3, %v13990_v56, -inf  ;;  %v14014_v11 = vadd.f32 %v9719_v53, %v13863_v50 }
 0x4eb   :  { %15757 = vst [vmem:[#allocation8_spill] sm:$0xff] %v13992_v13  ;;  %v9705_v2 = vpop.f32.mrb[78].mxu1  ;;  %5005 = vmax.xlane.f32.xlu0 %v5004_v62  ;;  %v5001_v52 = vsel %vm2068_vm3, %v13992_v13, -inf  ;;  %v4998_v62 = vsel %vm2068_vm3, %v13999_v5, -inf  ;;  %v14036_v43 = vadd.f32 %v4605_v48, %v13844_v10 }
 0x4ec   :  { %v4472_v63 = vpop.f32.mrb[79].mxu1  ;;  %v14009_v54 = vadd.f32 %v9705_v2, %v13478_v61  ;;  %v5022_v2 = vsel %vm86_vm0, %v14014_v11, -inf }
 0x4ed   :  { %v13996_v46 = vadd.f32 %v11433_v9, %v4472_v63  ;;  %v5016_v63 = vsel %vm86_vm0, %v14004_v16, -inf  ;;  %v5019_v48 = vsel %vm86_vm0, %v14036_v43, -inf }
 0x4ee   :  { %15760 = vst [vmem:[#allocation9_spill] sm:$0xff] %v14009_v54 }
 0x4ef   :  { %15758 = vst [vmem:[#allocation74_spill] sm:$0xff] %v13996_v46  ;;  %5002 = vmax.xlane.f32.xlu0 %v5001_v52  ;;  %v5007_v45 = vsel %vm2068_vm3, %v13996_v46, -inf  ;;  %v14018_v52 = vadd.f32 %v11433_v9, %v4339_v7 }
 0x4f0   :  { %5008 = vmax.xlane.f32.xlu1 %v5007_v45  ;;  %v5010_v45 = vsel %vm2068_vm3, %v14009_v54, -inf }
 0x4f1   :  { %15761 = vst [vmem:[#allocation11_spill] sm:$0xff] %v14018_v52  ;;  %v4995_v7 = vsel %vm2068_vm3, %v14018_v52, -inf }
 0x4f3   :  { %4999 = vmax.xlane.f32.xlu0 %v4998_v62 }
 0x4f4   :  { %5017 = vmax.xlane.f32.xlu1 %v5016_v63 }
 0x4f5   :  { %v9744_v4 = vpop.f32.mrb[84].mxu0 }
 0x4f6   :  { %v4829_v56 = vpop.f32.mrb[85].mxu0  ;;  %v14053_v3 = vadd.f32 %v9744_v4, %v13859_v15 }
 0x4f7   :  { %v9730_v61 = vpop.f32.mrb[80].mxu1  ;;  %5011 = vmax.xlane.f32.xlu0 %v5010_v45  ;;  %v14033_v45 = vadd.f32 %v4595_v24, %v13836_v23  ;;  %v14065_v35 = vadd.f32 %v4829_v56, %v13836_v23 }
 0x4f8   :  { %v4712_v46 = vpop.f32.mrb[81].mxu1  ;;  %5023 = vmax.xlane.f32.xlu1 %v5022_v2  ;;  %v14025_v62 = vadd.f32 %v9730_v61, %v13859_v15 }
 0x4f9   :  { %v9747_v53 = vpop.f32.mrb[86].mxu0  ;;  %v5013_v24 = vsel %vm86_vm0, %v14033_v45, -inf }
 0x4fa   :  { %v4839_v51 = vpop.f32.mrb[87].mxu0  ;;  %v5028_v61 = vsel %vm86_vm0, %v14025_v62, -inf }
 0x4fb   :  { %v9733_v9 = vpop.f32.mrb[82].mxu1  ;;  %4996 = vmax.xlane.f32.xlu0 %v4995_v7  ;;  %v14043_v7 = vadd.f32 %v4712_v46, %v13836_v23 }
 0x4fc   :  { %v14030_v63 = vadd.f32 %v9733_v9, %v13863_v50  ;;  %v4722_v54 = vpop.f32.mrb[83].mxu1 }
 0x4fd   :  { %v14046_v9 = vadd.f32 %v4722_v54, %v13844_v10 }
 0x4fe   :  { %v5034_v2 = vsel %vm86_vm0, %v14030_v63, -inf }
 0x4ff   :  { %5029 = vmax.xlane.f32.xlu0 %v5028_v61  ;;  %5035 = vmax.xlane.f32.xlu1 %v5034_v2  ;;  %v5025_v61 = vsel %vm86_vm0, %v14043_v7, -inf  ;;  %v5031_v46 = vsel %vm86_vm0, %v14046_v9, -inf }
 0x503   :  { %5014 = vmax.xlane.f32.xlu0 %v5013_v24  ;;  %5020 = vmax.xlane.f32.xlu1 %v5019_v48  ;;  %v5040_v24 = vsel %vm86_vm0, %v14053_v3, -inf }
 0x507   :  { %v9758_v2 = vpop.f32.mrb[84].mxu1  ;;  %5026 = vmax.xlane.f32.xlu0 %v5025_v61  ;;  %5032 = vmax.xlane.f32.xlu1 %v5031_v46  ;;  %v14075_v46 = vadd.f32 %v9747_v53, %v13863_v50 }
 0x508   :  { %v4946_v54 = vpop.f32.mrb[85].mxu1  ;;  %v14060_v13 = vadd.f32 %v9758_v2, %v13859_v15  ;;  %v5037_v15 = vsel %vm86_vm0, %v14065_v35, -inf }
 0x509   :  { %v14070_v61 = vadd.f32 %v4946_v54, %v13836_v23  ;;  %v15763_v23 = vld [vmem:[#allocation17_spill] sm:$0xff]  ;;  %v14087_v54 = vadd.f32 %v4839_v51, %v13844_v10  ;;  %v15766_v51 = vld [vmem:[#allocation20_spill] sm:$0xff] }
 0x50a   :  { %v5052_v17 = vsel %vm86_vm0, %v14060_v13, -inf }
 0x50b   :  { %v9761_v48 = vpop.f32.mrb[86].mxu1  ;;  %5041 = vmax.xlane.f32.xlu1 %v5040_v24  ;;  %v5049_v2 = vsel %vm86_vm0, %v14070_v61, -inf  ;;  %v15764_v24 = vld [vmem:[#allocation18_spill] sm:$0xff] }
 0x50c   :  { %v4956_v4 = vpop.f32.mrb[87].mxu1  ;;  %v14080_v56 = vadd.f32 %v9761_v48, %v13863_v50  ;;  %v5043_v50 = vsel %vm86_vm0, %v14087_v54, -inf  ;;  %v14095_v48 = vpop.permute.xlu0 %10954 }
 0x50e   :  { %15762 = vst [vmem:[#allocation16_spill] sm:$0xff] %v14080_v56  ;;  %v5058_v53 = vsel %vm86_vm0, %v14080_v56, -inf }
 0x50f   :  { %5053 = vmax.xlane.f32.xlu1 %v5052_v17  ;;  %v5046_v17 = vsel %vm86_vm0, %v14075_v46, -inf }
 0x513   :  { %5038 = vmax.xlane.f32.xlu1 %v5037_v15  ;;  %v15765_v15 = vld [vmem:[#allocation15_spill] sm:$0xff] }
 0x517   :  { %5050 = vmax.xlane.f32.xlu1 %v5049_v2  ;;  %v14099_v2 = vpop.permute.xlu0 %10964 }
 0x51b   :  { %5047 = vmax.xlane.f32.xlu1 %v5046_v17  ;;  %v14104_v17 = vadd.f32 %v4956_v4, %v13844_v10  ;;  %v15771_v4 = vld [vmem:[#allocation19_spill] sm:$0xff] }
 0x51d   :  { %11014 = vrot.lane.b32.xlu0 %v15763_v23, %s11499_s17  ;;  %15767 = vst [vmem:[#allocation17_spill] sm:$0xff] %v14104_v17  ;;  %v15768_v23 = vld [vmem:[#allocation22_spill] sm:$0xff] }
 0x51f   :  { %5059 = vmax.xlane.f32.xlu1 %v5058_v53  ;;  %v14108_v53 = vpop.permute.xlu0 %10974 }
 0x521   :  { %11024 = vrot.lane.b32.xlu0 %v15764_v24, %s11499_s17  ;;  %v5055_v24 = vsel %vm86_vm0, %v14104_v17, -inf  ;;  %v2485_v17 = vsel %vm2068_vm3, %v13323_v27, 0.0  ;;  %v2590_v27 = vsel %vm86_vm0, %v15777_v6, 0.0  ;;  %v15781_v6 = vld [vmem:[#allocation92_spill] sm:$0xff] }
 0x523   :  { %5044 = vmax.xlane.f32.xlu1 %v5043_v50  ;;  %v15769_v50 = vld [vmem:[#allocation21_spill] sm:$0xff] }
 0x534   :  { %11009 = vrot.lane.b32.xlu1 %v15765_v15, %s11499_s17  ;;  %v14114_v15 = vpop.permute.xlu0 %10984 }
 0x538   :  { %11019 = vrot.lane.b32.xlu1 %v15766_v51, %s11499_s17  ;;  %v14116_v1 = vpop.permute.xlu0 %10994 }
 0x53c   :  { %11029 = vrot.lane.b32.xlu1 %v15768_v23, %s11499_s17  ;;  %v14118_v51 = vpop.permute.xlu0 %11004 }
 0x53d   :  { %15770 = vst [vmem:[#allocation18_spill] sm:$0xff] %v14118_v51 }
 0x540   :  { %5056 = vmax.xlane.f32.xlu0 %v5055_v24  ;;  %11039 = vrot.lane.b32.xlu1 %v15769_v50, %s11499_s17  ;;  %v14130_v50 = vpop.permute.xlu1 %10979 }
 0x544   :  { %v14134_v40 = vpop.permute.xlu1 %10989 }
 0x545   :  { %15773 = vst [vmem:[#allocation15_spill] sm:$0xff] %v14134_v40 }
 0x546   :  { %v4970_v10 = vpop.xlane.xlu0 %4969 }
 0x548   :  { %v14140_v42 = vpop.permute.xlu1 %10999 }
 0x549   :  { %15775 = vst [vmem:[#allocation20_spill] sm:$0xff] %v14140_v42 }
 0x54c   :  { %v4967_v52 = vpop.xlane.xlu1 %4966 }
 0x556   :  { %11034 = vrot.lane.b32.xlu0 %v15771_v4, %s11499_s17  ;;  %v2584_v4 = vsel %vm86_vm0, %v15774_v59, 0.0  ;;  %v2593_v59 = vsel %vm86_vm0, %v15778_v38, 0.0  ;;  %v2488_v38 = vsel %vm2068_vm3, %v13332_v31, 0.0  ;;  %v2494_v31 = vsel %vm2068_vm3, %v13347_v19, 0.0 }
 0x557   :  { %v14122_v23 = vpop.xlane.xlu0 %4981 }
 0x55a   :  { %11044 = vrot.lane.b32.xlu0 %v15772_v57, %s11499_s17  ;;  %v15776_v57 = vld [vmem:[#allocation90_spill] sm:$0xff] }
 0x55b   :  { %v14128_v24 = vpop.xlane.xlu0 %4978  ;;  %v2587_v5 = vsel %vm86_vm0, %v15776_v57, 0.0 }
 0x55f   :  { %v4976_v36 = vpop.xlane.xlu0 %4975 }
 0x563   :  { %v14138_v56 = vpop.xlane.xlu0 %4987 }
 0x564   :  { %2486 = vadd.xlane.f32.xlu1 %v2485_v17 }
 0x566   :  { %v14146_v17 = vpop.xlane.xlu1 %4993 }
 0x567   :  { %v4973_v26 = vpop.xlane.xlu0 %4972 }
 0x568   :  { %2585 = vadd.xlane.f32.xlu1 %v2584_v4  ;;  %v15779_v4 = vld [vmem:[#allocation46_spill] sm:$0xff] }
 0x569   :  { %v2596_v51 = vsel %vm86_vm0, %v15779_v4, 0.0  ;;  %v15783_v4 = vld [vmem:[#allocation83_spill] sm:$0xff] }
 0x56a   :  { %v14158_v28 = vpop.xlane.xlu1 %4990 }
 0x56b   :  { %v14150_v14 = vpop.xlane.xlu0 %4984 }
 0x56c   :  { %2588 = vadd.xlane.f32.xlu1 %v2587_v5  ;;  %v15780_v5 = vld [vmem:[#allocation107_spill] sm:$0xff] }
 0x56d   :  { %v2581_v57 = vsel %vm86_vm0, %v15780_v5, 0.0  ;;  %v2491_v5 = vsel %vm2068_vm3, %v13336_v60, 0.0  ;;  %v2497_v60 = vsel %vm2068_vm3, %v13351_v21, 0.0 }
 0x570   :  { %2591 = vadd.xlane.f32.xlu1 %v2590_v27  ;;  %v2599_v27 = vsel %vm86_vm0, %v15781_v6, 0.0  ;;  %v15784_v6 = vld [vmem:[#allocation12_spill] sm:$0xff] }
 0x574   :  { %2594 = vadd.xlane.f32.xlu1 %v2593_v59 }
 0x578   :  { %v14154_v44 = vpop.xlane.xlu0 %5005  ;;  %2597 = vadd.xlane.f32.xlu1 %v2596_v51  ;;  %v2602_v51 = vsel %vm86_vm0, %v15783_v4, 0.0 }
 0x579   :  { %2582 = vadd.xlane.f32.xlu0 %v2581_v57 }
 0x57c   :  { %v14162_v42 = vpop.xlane.xlu0 %5002  ;;  %2600 = vadd.xlane.f32.xlu1 %v2599_v27  ;;  %v2605_v27 = vsel %vm86_vm0, %v15784_v6, 0.0 }
 0x57d   :  { %2489 = vadd.xlane.f32.xlu0 %v2488_v38  ;;  %v14166_v59 = vpop.xlane.xlu1 %5008  ;;  %v15786_v38 = vld [vmem:[#allocation14_spill] sm:$0xff] }
 0x57e   :  { %15782 = vst [vmem:[#allocation22_spill] sm:$0xff] %v14166_v59  ;;  %v2608_v4 = vsel %vm86_vm0, %v15786_v38, 0.0 }
 0x580   :  { %v14170_v41 = vpop.xlane.xlu0 %4999  ;;  %2603 = vadd.xlane.f32.xlu1 %v2602_v51 }
 0x581   :  { %2492 = vadd.xlane.f32.xlu0 %v2491_v5  ;;  %v5018_v57 = vpop.xlane.xlu1 %5017  ;;  %v15787_v5 = vld [vmem:[#allocation91_spill] sm:$0xff] }
 0x582   :  { %v2611_v6 = vsel %vm86_vm0, %v15787_v5, 0.0 }
 0x584   :  { %v14176_v40 = vpop.xlane.xlu0 %5011  ;;  %2606 = vadd.xlane.f32.xlu1 %v2605_v27 }
 0x585   :  { %15785 = vst [vmem:[#allocation21_spill] sm:$0xff] %v14176_v40  ;;  %2495 = vadd.xlane.f32.xlu0 %v2494_v31  ;;  %v5024_v59 = vpop.xlane.xlu1 %5023  ;;  %v14188_v40 = vmax.f32 %v4970_v10, %v5018_v57  ;;  %v2500_v31 = vsel %vm2068_vm3, %v13361_v49, 0.0  ;;  %v2503_v10 = vsel %vm2068_vm3, %v13365_v37, 0.0 }
 0x586   :  { %v14192_v38 = vmax.f32 %v4976_v36, %v5024_v59 }
 0x587   :  { %v5126_v21 = vsub.f32 %v14004_v16, %v14188_v40  ;;  %v15789_v16 = vld [vmem:[#allocation82_spill] sm:$0xff] }
 0x588   :  { %v14182_v51 = vpop.xlane.xlu0 %4996  ;;  %2609 = vadd.xlane.f32.xlu1 %v2608_v4  ;;  %v2614_v4 = vsel %vm86_vm0, %v15788_v25, 0.0  ;;  %v5128_v36 = vsub.f32 %v14014_v11, %v14192_v38  ;;  %v2617_v59 = vsel %vm86_vm0, %v15789_v16, 0.0 }
 0x589   :  { %2498 = vadd.xlane.f32.xlu0 %v2497_v60 }
 0x58c   :  { %v5030_v27 = vpop.xlane.xlu0 %5029  ;;  %2612 = vadd.xlane.f32.xlu1 %v2611_v6  ;;  %v5036_v19 = vpop.xlane.xlu1 %5035 }
 0x58d   :  { %2501 = vadd.xlane.f32.xlu0 %v2500_v31  ;;  %v14201_v57 = vmax.f32 %v14122_v23, %v5030_v27  ;;  %v5143_v31 = vmul.f32 1.442695, %v5126_v21  ;;  %v14220_v11 = vmax.f32 %v14138_v56, %v5036_v19 }
 0x58f   :  { %v5130_v27 = vsub.f32 %v14025_v62, %v14201_v57 }
 0x590   :  { %v5015_v60 = vpop.xlane.xlu0 %5014  ;;  %2615 = vadd.xlane.f32.xlu1 %v2614_v4  ;;  %v5021_v5 = vpop.xlane.xlu1 %5020 }
 0x591   :  { %v14203_v6 = vmax.f32 %v4967_v52, %v5015_v60  ;;  %2504 = vadd.xlane.f32.xlu0 %v2503_v10  ;;  %v14205_v49 = vmax.f32 %v4973_v26, %v5021_v5  ;;  %v2506_v26 = vsel %vm2068_vm3, %v13375_v58, 0.0  ;;  %v5147_v60 = vmul.f32 1.442695, %v5128_v36  ;;  %v15790_v58 = vld [vmem:[#allocation78_spill] sm:$0xff] }
 0x592   :  { %v2620_v10 = vsel %vm86_vm0, %v15790_v58, 0.0  ;;  %v5151_v19 = vmul.f32 1.442695, %v5130_v27  ;;  %v2515_v27 = vsel %vm2068_vm3, %v13554_v55, 0.0  ;;  %v10971_v58 = vunpack.i.l.bf16 %v14124_v29 }
 0x593   :  { %v5125_v25 = vsub.f32 %v14033_v45, %v14203_v6  ;;  %v5127_v37 = vsub.f32 %v14036_v43, %v14205_v49 }
 0x594   :  { %v5027_v23 = vpop.xlane.xlu0 %5026  ;;  %2618 = vadd.xlane.f32.xlu1 %v2617_v59  ;;  %v5033_v52 = vpop.xlane.xlu1 %5032  ;;  %v2512_v59 = vsel %vm2068_vm3, %v13544_v47, 0.0 }
 0x595   :  { %v5141_v45 = vmul.f32 1.442695, %v5125_v25  ;;  %v14223_v4 = vmax.f32 %v14128_v24, %v5027_v23  ;;  %2507 = vadd.xlane.f32.xlu0 %v2506_v26  ;;  %v5145_v21 = vmul.f32 1.442695, %v5127_v37  ;;  %v14226_v43 = vmax.f32 %v14150_v14, %v5033_v52 }
 0x596   :  { %v2509_v24 = vsel %vm2068_vm3, %v13511_v8, 0.0  ;;  %v5132_v14 = vsub.f32 %v14030_v63, %v14220_v11  ;;  %v15792_v63 = vld [vmem:[#allocation43_spill] sm:$0xff]  ;;  %v10957_v23 = vunpack.i.h.bf16 %v14095_v48  ;;  %v10956_v52 = vunpack.i.l.bf16 %v14095_v48 }
 0x597   :  { %v5129_v5 = vsub.f32 %v14043_v7, %v14223_v4  ;;  %11200 = vpow2.f32 %v5141_v45  ;;  %v5131_v62 = vsub.f32 %v14046_v9, %v14226_v43  ;;  %v15791_v7 = vld [vmem:[#allocation77_spill] sm:$0xff]  ;;  %v2626_v37 = vsel %vm86_vm0, %v15792_v63, 0.0 }
 0x598   :  { %2621 = vadd.xlane.f32.xlu1 %v2620_v10  ;;  %v5042_v56 = vpop.xlane.xlu1 %5041  ;;  %11202 = vpow2.f32 %v5143_v31  ;;  %v2623_v25 = vsel %vm86_vm0, %v15791_v7, 0.0  ;;  %v5155_v8 = vmul.f32 1.442695, %v5132_v14  ;;  %v10967_v10 = vunpack.i.h.bf16 %v14099_v2 }
 0x599   :  { %v5149_v36 = vmul.f32 1.442695, %v5129_v5  ;;  %2510 = vadd.xlane.f32.xlu0 %v2509_v24  ;;  %11204 = vpow2.f32 %v5145_v21  ;;  %v5153_v16 = vmul.f32 1.442695, %v5131_v62  ;;  %v14243_v31 = vmax.f32 %v14146_v17, %v5042_v56 }
 0x59a   :  { %11206 = vpow2.f32 %v5147_v60  ;;  %v10972_v60 = vunpack.i.h.bf16 %v14124_v29  ;;  %v10966_v62 = vunpack.i.l.bf16 %v14099_v2 }
 0x59b   :  { %11208 = vpow2.f32 %v5149_v36  ;;  %v5134_v47 = vsub.f32 %v14053_v3, %v14243_v31  ;;  %v15793_v3 = vld [vmem:[#allocation95_spill] sm:$0xff] }
 0x59c   :  { %2624 = vadd.xlane.f32.xlu1 %v2623_v25  ;;  %v5054_v9 = vpop.xlane.xlu1 %5053  ;;  %11210 = vpow2.f32 %v5151_v19  ;;  %v10987_v25 = vunpack.i.h.bf16 %v14114_v15 }
 0x59d   :  { %2513 = vadd.xlane.f32.xlu0 %v2512_v59  ;;  %11212 = vpow2.f32 %v5153_v16  ;;  %v14254_v17 = vmax.f32 %v14154_v44, %v5054_v9  ;;  %v2629_v44 = vsel %vm86_vm0, %v15793_v3, 0.0  ;;  %v5159_v19 = vmul.f32 1.442695, %v5134_v47 }
 0x59e   :  { %11214 = vpow2.f32 %v5155_v8  ;;  %v10446_v16 = vpack.c.bf16 %v10972_v60, %v10971_v58  ;;  %v10450_v8 = vpack.c.bf16 %v10967_v10, %v10966_v62  ;;  %v10976_v47 = vunpack.i.l.bf16 %v14108_v53 }
 0x5a0   :  { %2627 = vadd.xlane.f32.xlu1 %v2626_v37  ;;  %v5039_v26 = vpop.xlane.xlu1 %5038  ;;  %v2521_v37 = vsel %vm2068_vm3, %v13591_v33, 0.0  ;;  %v2524_v33 = vsel %vm2068_vm3, %v13581_v20, 0.0  ;;  %v5077_v20 = vsub.f32 %v13944_v22, %v14203_v6  ;;  %v15795_v22 = vld [vmem:[#allocation38_spill] sm:$0xff] }
 0x5a1   :  { %v14257_v45 = vmax.f32 %v14158_v28, %v5039_v26  ;;  %2516 = vadd.xlane.f32.xlu0 %v2515_v27  ;;  %v14259_v21 = vpop.eup %11200  ;;  %v2518_v28 = vsel %vm2068_vm3, %v13564_v30, 0.0  ;;  %v5138_v30 = vsub.f32 %v14060_v13, %v14254_v17  ;;  %v15794_v13 = vld [vmem:[#allocation48_spill] sm:$0xff]  ;;  %v2635_v26 = vsel %vm86_vm0, %v13257_v34, 0.0 }
 0x5a2   :  { %v14261_v48 = vpop.eup %11202  ;;  %9770 = vmatprep.mubr.msk.f32.mxu0 %vm86_vm0, %v14259_v21  ;;  %v10977_v27 = vunpack.i.h.bf16 %v14108_v53  ;;  %v10982_v53 = vunpack.i.h.bf16 %v14130_v50  ;;  %v2641_v6 = vsel %vm86_vm0, %v15795_v22, 0.0 }
 0x5a3   :  { %v5133_v55 = vsub.f32 %v14065_v35, %v14257_v45  ;;  %v14272_v5 = vpop.eup %11204  ;;  %9771 = vmatmul.mubr.msk.f32.vlgmr.msra.gmra.mrb[88].mxu0 %vm86_vm0, %v14261_v48  ;;  %v10438_v35 = vpack.c.bf16 %v10957_v23, %v10956_v52 }
 0x5a4   :  { %2630 = vadd.xlane.f32.xlu1 %v2629_v44  ;;  %v5051_v56 = vpop.xlane.xlu1 %5050  ;;  %v14279_v24 = vpop.eup %11206  ;;  %10437 = vmatpush3.bf16.msra.mxu0 %v13868_v12  ;;  %v2632_v12 = vsel %vm86_vm0, %v15794_v13, 0.0  ;;  %v10454_v58 = vpack.c.bf16 %v10977_v27, %v10976_v47 }
 0x5a5   :  { %v5157_v14 = vmul.f32 1.442695, %v5133_v55  ;;  %9773 = vmatprep.mubr.msk.f32.mxu0 %vm86_vm0, %v14272_v5  ;;  %v14287_v29 = vmax.f32 %v14162_v42, %v5051_v56  ;;  %v14289_v2 = vpop.eup %11208  ;;  %10439 = vmatprep.subr.bf16.mxu0 %v10438_v35  ;;  %v10986_v42 = vunpack.i.l.bf16 %v14114_v15  ;;  %v15796_v56 = vld [vmem:[#allocation66_spill] sm:$0xff]  ;;  %v14363_v13 = vpop.permute.xlu0 %11014 }
 0x5a6   :  { %2519 = vadd.xlane.f32.xlu0 %v2518_v28  ;;  %v14291_v36 = vpop.eup %11210  ;;  %9784 = vmatprep.mubr.msk.f32.mxu1 %vm86_vm0, %v14289_v2  ;;  %v10981_v28 = vunpack.i.l.bf16 %v14130_v50  ;;  %v10996_v50 = vunpack.i.l.bf16 %v14116_v1 }
 0x5a7   :  { %v5137_v7 = vsub.f32 %v14070_v61, %v14287_v29  ;;  %11216 = vpow2.f32 %v5157_v14  ;;  %9774 = vmatmul.mubr.msk.f32.gmra.mrb[90].mxu0 %vm86_vm0, %v14279_v24  ;;  %9785 = vmatmul.mubr.msk.f32.vlgmr.msra.gmra.mrb[88].mxu1 %vm86_vm0, %v14291_v36  ;;  %v5167_v61 = vmul.f32 1.442695, %v5138_v30  ;;  %v14306_v63 = vpop.eup %11212  ;;  %v15797_v14 = vld [vmem:[#allocation15_spill] sm:$0xff] }
 0x5a8   :  { %v5048_v9 = vpop.xlane.xlu1 %5047  ;;  %11218 = vpow2.f32 %v5159_v19  ;;  %10441 = vmatpush3.bf16.msra.mxu0 %v10438_v35  ;;  %10445 = vmatpush3.bf16.msra.mxu1 %v13871_v39  ;;  %v14308_v15 = vpop.eup %11214  ;;  %v10466_v39 = vpack.c.bf16 %v10987_v25, %v10986_v42  ;;  %v5093_v35 = vmul.f32 1.442695, %v5077_v20  ;;  %v5079_v19 = vsub.f32 %v15796_v56, %v14205_v49  ;;  %v15800_v42 = vld [vmem:[#allocation20_spill] sm:$0xff] }
 0x5a9   :  { %v5165_v59 = vmul.f32 1.442695, %v5137_v7  ;;  %10447 = vmatprep.subr.bf16.mxu1 %v10446_v16  ;;  %2633 = vadd.xlane.f32.xlu1 %v2632_v12  ;;  %v14319_v52 = vmax.f32 %v14170_v41, %v5048_v9  ;;  %v2638_v41 = vsel %vm86_vm0, %v13261_v18, 0.0  ;;  %v2527_v18 = vsel %vm2068_vm3, %v13622_v32, 0.0 }
 0x5aa   :  { %9787 = vmatprep.mubr.msk.f32.mxu1 %vm86_vm0, %v14306_v63  ;;  %10451 = vmatprep.subr.bf16.mxu0 %v10450_v8  ;;  %v10992_v7 = vunpack.i.h.bf16 %v15797_v14  ;;  %v10458_v25 = vpack.c.bf16 %v10982_v53, %v10981_v28  ;;  %v10991_v49 = vunpack.i.l.bf16 %v15797_v14  ;;  %v11001_v9 = vunpack.i.l.bf16 %v15800_v42 }
 0x5ab   :  { %11220 = vpow2.f32 %v5165_v59  ;;  %2522 = vadd.xlane.f32.xlu0 %v2521_v37  ;;  %9788 = vmatmul.mubr.msk.f32.gmra.mrb[90].mxu1 %vm86_vm0, %v14308_v15  ;;  %v5136_v55 = vsub.f32 %v14075_v46, %v14319_v52  ;;  %v15801_v59 = vld [vmem:[#allocation32_spill] sm:$0xff] }
 0x5ac   :  { %v14316_v23 = vpop.xlane.xlu1 %5059  ;;  %11222 = vpow2.f32 %v5167_v61  ;;  %10449 = vmatpush3.bf16.msra.mxu1 %v10446_v16  ;;  %v11002_v16 = vunpack.i.h.bf16 %v15800_v42  ;;  %v10462_v28 = vpack.c.bf16 %v10992_v7, %v10991_v49  ;;  %v11016_v49 = vunpack.i.l.bf16 %v14363_v13 }
 0x5ad   :  { %10467 = vmatprep.subr.bf16.mxu1 %v10466_v39  ;;  %2636 = vadd.xlane.f32.xlu1 %v2635_v26  ;;  %v5163_v10 = vmul.f32 1.442695, %v5136_v55  ;;  %v5097_v26 = vmul.f32 1.442695, %v5079_v19 }
 0x5af   :  { %2525 = vadd.xlane.f32.xlu0 %v2524_v33  ;;  %v15802_v33 = vld [vmem:[#allocation73_spill] sm:$0xff] }
 0x5b0   :  { %v5045_v60 = vpop.xlane.xlu1 %5044  ;;  %v5085_v27 = vsub.f32 %v15802_v33, %v14257_v45  ;;  %v11025_v45 = vpop.permute.xlu0 %11024 }
 0x5b1   :  { %v14332_v3 = vmax.f32 %v14182_v51, %v5045_v60  ;;  %v14334_v34 = vpop.eup %11216  ;;  %2639 = vadd.xlane.f32.xlu1 %v2638_v41  ;;  %v10997_v51 = vunpack.i.h.bf16 %v14116_v1  ;;  %v15798_v1 = vld [vmem:[#allocation34_spill] sm:$0xff]  ;;  %v15803_v60 = vld [vmem:[#allocation105_spill] sm:$0xff]  ;;  %v15804_v41 = vld [vmem:[#allocation51_spill] sm:$0xff] }
 0x5b2   :  { %v14338_v44 = vpop.eup %11218  ;;  %9798 = vmatprep.mubr.msk.f32.mxu0 %vm86_vm0, %v14334_v34  ;;  %v2533_v55 = vsel %vm2068_vm3, %v15803_v60, 0.0  ;;  %v2647_v20 = vsel %vm86_vm0, %v15804_v41, 0.0 }
 0x5b3   :  { %v5135_v46 = vsub.f32 %v14087_v54, %v14332_v3  ;;  %2528 = vadd.xlane.f32.xlu0 %v2527_v18  ;;  %9799 = vmatmul.mubr.msk.f32.vlgmr.msra.gmra.mrb[92].mxu0 %vm86_vm0, %v14338_v44  ;;  %v5078_v54 = vsub.f32 %v13939_v0, %v14188_v40  ;;  %v2530_v40 = vsel %vm2068_vm3, %v15798_v1, 0.0  ;;  %v15799_v0 = vld [vmem:[#allocation49_spill] sm:$0xff]  ;;  %v10470_v37 = vpack.c.bf16 %v10997_v51, %v10996_v50 }
 0x5b4   :  { %10453 = vmatpush3.bf16.msra.mxu0 %v10450_v8  ;;  %v2644_v12 = vsel %vm86_vm0, %v15799_v0, 0.0  ;;  %v5080_v8 = vsub.f32 %v15801_v59, %v14192_v38  ;;  %v11010_v47 = vpop.permute.xlu1 %11009  ;;  %v15805_v38 = vld [vmem:[#allocation18_spill] sm:$0xff] }
 0x5b5   :  { %v5161_v32 = vmul.f32 1.442695, %v5135_v46  ;;  %v14356_v62 = vpop.eup %11220  ;;  %2642 = vadd.xlane.f32.xlu1 %v2641_v6  ;;  %10455 = vmatprep.subr.bf16.mxu0 %v10454_v58  ;;  %v5095_v61 = vmul.f32 1.442695, %v5078_v54  ;;  %v11007_v53 = vunpack.i.h.bf16 %v15805_v38  ;;  %v10474_v46 = vpack.c.bf16 %v11002_v16, %v11001_v9  ;;  %v15809_v16 = vld [vmem:[#allocation64_spill] sm:$0xff] }
 0x5b6   :  { %v14360_v30 = vpop.eup %11222  ;;  %9812 = vmatprep.mubr.msk.f32.mxu1 %vm86_vm0, %v14356_v62  ;;  %v5099_v18 = vmul.f32 1.442695, %v5080_v8  ;;  %v11012_v51 = vunpack.i.h.bf16 %v11010_v47  ;;  %v11011_v22 = vunpack.i.l.bf16 %v11010_v47  ;;  %v5109_v6 = vmul.f32 1.442695, %v5085_v27  ;;  %v15811_v8 = vld [vmem:[#allocation11_spill] sm:$0xff] }
 0x5b7   :  { %11224 = vpow2.f32 %v5161_v32  ;;  %2531 = vadd.xlane.f32.xlu0 %v2530_v40  ;;  %9813 = vmatmul.mubr.msk.f32.vlgmr.msra.gmra.mrb[92].mxu1 %vm86_vm0, %v14360_v30  ;;  %v11027_v54 = vunpack.i.h.bf16 %v11025_v45  ;;  %v15808_v40 = vld [vmem:[#allocation102_spill] sm:$0xff]  ;;  %v5086_v9 = vsub.f32 %v15809_v16, %v14243_v31 }
 0x5b8   :  { %11226 = vpow2.f32 %v5163_v10  ;;  %10457 = vmatpush3.bf16.msra.mxu0 %v10454_v58  ;;  %10469 = vmatpush3.bf16.msra.mxu1 %v10466_v39  ;;  %v11006_v39 = vunpack.i.l.bf16 %v15805_v38  ;;  %v15806_v58 = vld [vmem:[#allocation86_spill] sm:$0xff]  ;;  %v11026_v10 = vunpack.i.l.bf16 %v11025_v45  ;;  %v10478_v19 = vpack.c.bf16 %v11012_v51, %v11011_v22  ;;  %v11020_v1 = vpop.permute.xlu1 %11019  ;;  %v15816_v45 = vld [vmem:[#allocation88_spill] sm:$0xff] }
 0x5b9   :  { %11228 = vpow2.f32 %v5093_v35  ;;  %2645 = vadd.xlane.f32.xlu1 %v2644_v12  ;;  %10459 = vmatprep.subr.bf16.mxu0 %v10458_v25  ;;  %v2536_v50 = vsel %vm2068_vm3, %v15806_v58, 0.0  ;;  %v15807_v35 = vld [vmem:[#allocation97_spill] sm:$0xff]  ;;  %v2539_v0 = vsel %vm2068_vm3, %v15808_v40, 0.0  ;;  %v11022_v31 = vunpack.i.h.bf16 %v11020_v1  ;;  %v15814_v38 = vld [vmem:[#allocation98_spill] sm:$0xff] }
 0x5ba   :  { %10471 = vmatprep.subr.bf16.mxu1 %v10470_v37  ;;  %11230 = vpow2.f32 %v5095_v61  ;;  %v10482_v32 = vpack.c.bf16 %v11007_v53, %v11006_v39  ;;  %v2650_v56 = vsel %vm86_vm0, %v15807_v35, 0.0  ;;  %v14404_v42 = vpack.c.bf16 %v11027_v54, %v11026_v10  ;;  %v15810_v61 = vld [vmem:[#allocation84_spill] sm:$0xff]  ;;  %v15815_v39 = vld [vmem:[#allocation21_spill] sm:$0xff] }
 0x5bb   :  { %2534 = vadd.xlane.f32.xlu0 %v2533_v55  ;;  %11232 = vpow2.f32 %v5097_v26  ;;  %v2653_v59 = vsel %vm86_vm0, %v15810_v61, 0.0  ;;  %v15812_v26 = vld [vmem:[#allocation80_spill] sm:$0xff]  ;;  %v11021_v47 = vunpack.i.l.bf16 %v11020_v1  ;;  %v5111_v55 = vmul.f32 1.442695, %v5086_v9  ;;  %v15820_v1 = vld [vmem:[#allocation65_spill] sm:$0xff] }
 0x5bc   :  { %10461 = vmatpush3.bf16.msra.mxu0 %v10458_v25  ;;  %10473 = vmatpush3.bf16.msra.mxu1 %v10470_v37  ;;  %11234 = vpow2.f32 %v5099_v18  ;;  %v11017_v25 = vunpack.i.h.bf16 %v14363_v13  ;;  %v5087_v37 = vsub.f32 %v15811_v8, %v14332_v3  ;;  %v2542_v33 = vsel %vm2068_vm3, %v15812_v26, 0.0  ;;  %v15813_v3 = vld [vmem:[#allocation10_spill] sm:$0xff]  ;;  %v15823_v61 = vld [vmem:[#allocation33_spill] sm:$0xff] }
 0x5bd   :  { %2648 = vadd.xlane.f32.xlu1 %v2647_v20  ;;  %10463 = vmatprep.subr.bf16.mxu0 %v10462_v28  ;;  %11236 = vpow2.f32 %v5109_v6  ;;  %v5088_v41 = vsub.f32 %v15813_v3, %v14319_v52  ;;  %v11030_v20 = vpop.permute.xlu1 %11029  ;;  %v2656_v53 = vsel %vm86_vm0, %v15814_v38, 0.0  ;;  %v2545_v52 = vsel %vm2068_vm3, %v15816_v45, 0.0  ;;  %v15824_v8 = vld [vmem:[#allocation70_spill] sm:$0xff]  ;;  %v15828_v38 = vld [vmem:[#allocation61_spill] sm:$0xff] }
 0x5be   :  { %10475 = vmatprep.subr.bf16.mxu1 %v10474_v46  ;;  %v10486_v60 = vpack.c.bf16 %v11017_v25, %v11016_v49  ;;  %v11032_v22 = vunpack.i.h.bf16 %v11030_v20  ;;  %v11031_v6 = vunpack.i.l.bf16 %v11030_v20  ;;  %v10490_v58 = vpack.c.bf16 %v11022_v31, %v11021_v47  ;;  %v15822_v49 = vld [vmem:[#allocation17_spill] sm:$0xff] }
 0x5bf   :  { %2537 = vadd.xlane.f32.xlu0 %v2536_v50  ;;  %11238 = vpow2.f32 %v5111_v55  ;;  %v15817_v50 = vld [vmem:[#allocation85_spill] sm:$0xff]  ;;  %v5081_v40 = vsub.f32 %v15820_v1, %v14223_v4  ;;  %v15826_v55 = vld [vmem:[#allocation71_spill] sm:$0xff] }
 0x5c0   :  { %10465 = vmatpush3.bf16.msra.mxu0 %v10462_v28  ;;  %10477 = vmatpush3.bf16.msra.mxu1 %v10474_v46  ;;  %v14431_v28 = vmax.f32 %v15815_v39, %v14316_v23  ;;  %v5113_v46 = vmul.f32 1.442695, %v5087_v37  ;;  %v5115_v23 = vmul.f32 1.442695, %v5088_v41  ;;  %v2659_v54 = vsel %vm86_vm0, %v15817_v50, 0.0  ;;  %v15825_v31 = vld [vmem:[#allocation101_spill] sm:$0xff] }
 0x5c1   :  { %v14390_v14 = vpop.eup %11224  ;;  %2651 = vadd.xlane.f32.xlu1 %v2650_v56  ;;  %10483 = vmatprep.subr.bf16.mxu0 %v10482_v32  ;;  %v15819_v56 = vld [vmem:[#allocation22_spill] sm:$0xff]  ;;  %v10494_v9 = vpack.c.bf16 %v11032_v22, %v11031_v6  ;;  %v5082_v37 = vsub.f32 %v15824_v8, %v14201_v57  ;;  %v5101_v4 = vmul.f32 1.442695, %v5081_v40  ;;  %v2551_v47 = vsel %vm2068_vm3, %v15825_v31, 0.0  ;;  %v15830_v6 = vld [vmem:[#allocation8_spill] sm:$0xff] }
 0x5c2   :  { %v14392_v7 = vpop.eup %11226  ;;  %10479 = vmatprep.subr.bf16.mxu1 %v10478_v19  ;;  %9801 = vmatprep.mubr.msk.f32.mxu0 %vm86_vm0, %v14390_v14  ;;  %11240 = vpow2.f32 %v5113_v46  ;;  %v5083_v3 = vsub.f32 %v15826_v55, %v14226_v43  ;;  %v15827_v41 = vld [vmem:[#allocation50_spill] sm:$0xff]  ;;  %v15829_v46 = vld [vmem:[#allocation24_spill] sm:$0xff]  ;;  %v14478_v43 = vld [vmem:[%s15220_s8 + $0x8] sm:$0xff] }
 0x5c3   :  { %v14398_v12 = vpop.eup %11228  ;;  %2540 = vadd.xlane.f32.xlu0 %v2539_v0  ;;  %9802 = vmatmul.mubr.msk.f32.gmra.mrb[94].mxu0 %vm86_vm0, %v14392_v7  ;;  %v15821_v0 = vld [vmem:[#allocation79_spill] sm:$0xff]  ;;  %11242 = vpow2.f32 %v5115_v23  ;;  %v2665_v57 = vsel %vm86_vm0, %v15827_v41, 0.0  ;;  %v5103_v20 = vmul.f32 1.442695, %v5082_v37  ;;  %v2554_v45 = vsel %vm2068_vm3, %v15829_v46, 0.0  ;;  %v15836_v37 = vld [vmem:[#allocation76_spill] sm:$0xff] }
 0x5c4   :  { %10481 = vmatpush3.bf16.msra.mxu1 %v10478_v19  ;;  %9834 = vmatprep.mubr.msk.f32.mxu0 %vm2068_vm3, %v14398_v12  ;;  %v14415_v13 = vpop.eup %11230  ;;  %v2548_v25 = vsel %vm2068_vm3, %v15821_v0, 0.0  ;;  %v5105_v22 = vmul.f32 1.442695, %v5083_v3  ;;  %v15834_v0 = vld [vmem:[#allocation47_spill] sm:$0xff] }
 0x5c5   :  { %2654 = vadd.xlane.f32.xlu1 %v2653_v59  ;;  %10499 = vmatprep.subr.bf16.mxu1 %v14404_v42  ;;  %v14419_v27 = vpop.eup %11232  ;;  %v2662_v59 = vsel %vm86_vm0, %v15823_v61, 0.0 }
 0x5c6   :  { %v14433_v18 = vpop.eup %11234 }
 0x5c7   :  { %2543 = vadd.xlane.f32.xlu0 %v2542_v33  ;;  %9835 = vmatmul.mubr.msk.f32.vlgmr.msra.gmra.mrb[88].mxu0 %vm2068_vm3, %v14415_v13  ;;  %v14437_v51 = vpop.eup %11236 }
 0x5c8   :  { %10485 = vmatpush3.bf16.msra.mxu0 %v10482_v32  ;;  %9837 = vmatprep.mubr.msk.f32.mxu0 %vm2068_vm3, %v14419_v27  ;;  %v15818_v32 = vld [vmem:[#allocation16_spill] sm:$0xff] }
 0x5c9   :  { %2657 = vadd.xlane.f32.xlu1 %v2656_v53  ;;  %10487 = vmatprep.subr.bf16.mxu0 %v10486_v60  ;;  %v5140_v35 = vsub.f32 %v15818_v32, %v14431_v28  ;;  %v5084_v53 = vsub.f32 %v15828_v38, %v14220_v11  ;;  %v14471_v39 = vpop.eup %11238  ;;  %v5089_v11 = vsub.f32 %v15830_v6, %v14287_v29 }
 0x5cb   :  { %2546 = vadd.xlane.f32.xlu0 %v2545_v52  ;;  %9838 = vmatmul.mubr.msk.f32.gmra.mrb[90].mxu0 %vm2068_vm3, %v14433_v18  ;;  %v5171_v26 = vmul.f32 1.442695, %v5140_v35  ;;  %v5107_v50 = vmul.f32 1.442695, %v5084_v53  ;;  %v5117_v32 = vmul.f32 1.442695, %v5089_v11 }
 0x5cc   :  { %10489 = vmatpush3.bf16.msra.mxu0 %v10486_v60  ;;  %9878 = vmatprep.mubr.msk.f32.mxu0 %vm2068_vm3, %v14437_v51  ;;  %v6237_v60 = vld [vmem:[%s15220_s8] sm:$0xff]  ;;  %v14480_v52 = vpop.eup %11240 }
 0x5cd   :  { %v5057_v10 = vpop.xlane.xlu0 %5056  ;;  %2660 = vadd.xlane.f32.xlu1 %v2659_v54  ;;  %10491 = vmatprep.subr.bf16.mxu0 %v10490_v58  ;;  %v14491_v54 = vpop.eup %11242  ;;  %v15833_v35 = vld [vmem:[#allocation52_spill] sm:$0xff] }
 0x5ce   :  { %v14448_v19 = vmax.f32 %v15819_v56, %v5057_v10  ;;  %v15832_v10 = vld [vmem:[#allocation36_spill] sm:$0xff]  ;;  %v2671_v56 = vsel %vm86_vm0, %v15833_v35, 0.0  ;;  %v15842_v35 = vld [vmem:[#allocation37_spill] sm:$0xff] }
 0x5cf   :  { %2549 = vadd.xlane.f32.xlu0 %v2548_v25  ;;  %v2557_v29 = vsel %vm2068_vm3, %v15832_v10, 0.0  ;;  %v2560_v25 = vsel %vm2068_vm3, %v15834_v0, 0.0  ;;  %v15841_v10 = vld [vmem:[#allocation25_spill] sm:$0xff] }
 0x5d0   :  { %v5139_v16 = vsub.f32 %v15822_v49, %v14448_v19  ;;  %10493 = vmatpush3.bf16.msra.mxu0 %v10490_v58  ;;  %v15831_v58 = vld [vmem:[#allocation45_spill] sm:$0xff] }
 0x5d1   :  { %2663 = vadd.xlane.f32.xlu1 %v2662_v59  ;;  %10495 = vmatprep.subr.bf16.mxu0 %v10494_v9  ;;  %v2668_v23 = vsel %vm86_vm0, %v15831_v58, 0.0  ;;  %v11035_v1 = vpop.permute.xlu0 %11034  ;;  %v15835_v59 = vld [vmem:[#allocation99_spill] sm:$0xff] }
 0x5d2   :  { %v5169_v33 = vmul.f32 1.442695, %v5139_v16  ;;  %v11036_v61 = vunpack.i.l.bf16 %v11035_v1  ;;  %v2674_v8 = vsel %vm86_vm0, %v15835_v59, 0.0  ;;  %v5230_v59 = vsel %vm86_vm0, %v14279_v24, 0.0 }
 0x5d3   :  { %2552 = vadd.xlane.f32.xlu0 %v2551_v47  ;;  %v15838_v47 = vld [vmem:[#allocation108_spill] sm:$0xff]  ;;  %v5176_v24 = vsel %vm2068_vm3, %v14415_v13, 0.0  ;;  %v5248_v13 = vsel %vm86_vm0, %v14338_v44, 0.0  ;;  %v5257_v44 = vsel %vm86_vm0, %v14356_v62, 0.0  ;;  %v5179_v62 = vsel %vm2068_vm3, %v14419_v27, 0.0  ;;  %v15846_v27 = vld [vmem:[#allocation42_spill] sm:$0xff] }
 0x5d4   :  { %11244 = vpow2.f32 %v5169_v33  ;;  %10497 = vmatpush3.bf16.msra.mxu0 %v10494_v9  ;;  %v11037_v9 = vunpack.i.h.bf16 %v11035_v1  ;;  %v11040_v33 = vpop.permute.xlu1 %11039  ;;  %v5233_v1 = vsel %vm86_vm0, %v14289_v2, 0.0  ;;  %v15844_v2 = vld [vmem:[#allocation27_spill] sm:$0xff] }
 0x5d5   :  { %11246 = vpow2.f32 %v5171_v26  ;;  %2666 = vadd.xlane.f32.xlu1 %v2665_v57  ;;  %9906 = vmatprep.subr.mxu0 %v6237_v60  ;;  %v5090_v26 = vsub.f32 %v15836_v37, %v14254_v17  ;;  %v11042_v3 = vunpack.i.h.bf16 %v11040_v33  ;;  %v11041_v41 = vunpack.i.l.bf16 %v11040_v33  ;;  %v11045_v46 = vpop.permute.xlu0 %11044 }
 0x5d6   :  { %11248 = vpow2.f32 %v5101_v4  ;;  %v15837_v4 = vld [vmem:[#allocation74_spill] sm:$0xff]  ;;  %v5224_v57 = vsel %vm86_vm0, %v14261_v48, 0.0  ;;  %v10502_v17 = vpack.c.bf16 %v11037_v9, %v11036_v61  ;;  %v11047_v11 = vunpack.i.h.bf16 %v11045_v46 }
 0x5d7   :  { %2555 = vadd.xlane.f32.xlu0 %v2554_v45  ;;  %9879 = vmatmul.mubr.msk.f32.vlgmr.msra.gmra.mrb[92].mxu0 %vm2068_vm3, %v14471_v39  ;;  %11250 = vpow2.f32 %v5103_v20  ;;  %v5091_v31 = vsub.f32 %v15837_v4, %v14448_v19  ;;  %v5119_v38 = vmul.f32 1.442695, %v5090_v26  ;;  %v15839_v19 = vld [vmem:[#allocation9_spill] sm:$0xff]  ;;  %v11046_v58 = vunpack.i.l.bf16 %v11045_v46 }
 0x5d8   :  { %9881 = vmatprep.mubr.msk.f32.mxu0 %vm2068_vm3, %v14480_v52  ;;  %9907 = vmatpush3.msra.mxu0 %v6237_v60  ;;  %11252 = vpow2.f32 %v5105_v22  ;;  %v2563_v60 = vsel %vm2068_vm3, %v15838_v47, 0.0  ;;  %v5092_v53 = vsub.f32 %v15839_v19, %v14431_v28  ;;  %v15840_v22 = vld [vmem:[#allocation26_spill] sm:$0xff]  ;;  %v5236_v28 = vsel %vm86_vm0, %v14291_v36, 0.0 }
 0x5d9   :  { %2669 = vadd.xlane.f32.xlu1 %v2668_v23  ;;  %9920 = vmatprep.subr.mxu0 %v14478_v43  ;;  %11254 = vpow2.f32 %v5107_v50  ;;  %v5121_v45 = vmul.f32 1.442695, %v5091_v31  ;;  %v2566_v6 = vsel %vm2068_vm3, %v15840_v22, 0.0  ;;  %v5221_v36 = vsel %vm86_vm0, %v14259_v21, 0.0 }
 0x5da   :  { %11256 = vpow2.f32 %v5117_v32  ;;  %v5123_v50 = vmul.f32 1.442695, %v5092_v53  ;;  %v10510_v32 = vpack.c.bf16 %v11047_v11, %v11046_v58  ;;  %v2578_v37 = vsel %vm2068_vm3, %v15844_v2, 0.0 }
 0x5db   :  { %2558 = vadd.xlane.f32.xlu0 %v2557_v29  ;;  %9882 = vmatmul.mubr.msk.f32.gmra.mrb[94].mxu0 %vm2068_vm3, %v14491_v54  ;;  %11258 = vpow2.f32 %v5119_v38  ;;  %v2569_v29 = vsel %vm2068_vm3, %v15841_v10, 0.0  ;;  %v5242_v33 = vsel %vm86_vm0, %v14308_v15, 0.0  ;;  %v5227_v31 = vsel %vm86_vm0, %v14272_v5, 0.0 }
 0x5dc   :  { %11260 = vpow2.f32 %v5121_v45  ;;  %v5173_v15 = vsel %vm2068_vm3, %v14398_v12, 0.0  ;;  %v5182_v12 = vsel %vm2068_vm3, %v14433_v18, 0.0 }
 0x5dd   :  { %2672 = vadd.xlane.f32.xlu1 %v2671_v56  ;;  %11262 = vpow2.f32 %v5123_v50  ;;  %v2572_v56 = vsel %vm2068_vm3, %v15842_v35, 0.0  ;;  %v5260_v35 = vsel %vm86_vm0, %v14360_v30, 0.0 }
 0x5de   :  { %v14499_v40 = vpop.eup %11244 }
 0x5df   :  { %v14503_v49 = vpop.eup %11246  ;;  %2561 = vadd.xlane.f32.xlu0 %v2560_v25  ;;  %9815 = vmatprep.mubr.msk.f32.mxu1 %vm86_vm0, %v14499_v40  ;;  %v15843_v25 = vld [vmem:[#allocation28_spill] sm:$0xff] }
 0x5e0   :  { %v14507_v16 = vpop.eup %11248  ;;  %9816 = vmatmul.mubr.msk.f32.gmra.mrb[94].mxu1 %vm86_vm0, %v14503_v49  ;;  %v2575_v9 = vsel %vm2068_vm3, %v15843_v25, 0.0 }
 0x5e1   :  { %2675 = vadd.xlane.f32.xlu1 %v2674_v8  ;;  %9856 = vmatprep.mubr.msk.f32.mxu1 %vm2068_vm3, %v14507_v16  ;;  %v14521_v55 = vpop.eup %11250 }
 0x5e2   :  { %v14527_v20 = vpop.eup %11252 }
 0x5e3   :  { %2564 = vadd.xlane.f32.xlu0 %v2563_v60  ;;  %v14536_v48 = vpop.eup %11254  ;;  %v5188_v60 = vsel %vm2068_vm3, %v14521_v55, 0.0 }
 0x5e4   :  { %9857 = vmatmul.mubr.msk.f32.vlgmr.msra.gmra.mrb[88].mxu1 %vm2068_vm3, %v14521_v55  ;;  %v14542_v23 = vpop.eup %11256  ;;  %v5194_v45 = vsel %vm2068_vm3, %v14536_v48, 0.0 }
 0x5e5   :  { %5225 = vadd.xlane.f32.xlu1 %v5224_v57  ;;  %10501 = vmatpush3.bf16.msra.mxu1 %v14404_v42  ;;  %v10506_v42 = vpack.c.bf16 %v11042_v3, %v11041_v41  ;;  %v14556_v61 = vpop.eup %11258  ;;  %v5239_v3 = vsel %vm86_vm0, %v14306_v63, 0.0  ;;  %v5245_v63 = vsel %vm86_vm0, %v14334_v34, 0.0  ;;  %v5254_v34 = vsel %vm86_vm0, %v14392_v7, 0.0 }
 0x5e6   :  { %9859 = vmatprep.mubr.msk.f32.mxu1 %vm2068_vm3, %v14527_v20  ;;  %10503 = vmatprep.subr.bf16.mxu1 %v10502_v17  ;;  %v14558_v21 = vpop.eup %11260 }
 0x5e7   :  { %2567 = vadd.xlane.f32.xlu0 %v2566_v6  ;;  %v14568_v26 = vpop.eup %11262 }
 0x5e8   :  { %9860 = vmatmul.mubr.msk.f32.gmra.mrb[90].mxu1 %vm2068_vm3, %v14536_v48  ;;  %v5251_v48 = vsel %vm86_vm0, %v14390_v14, 0.0  ;;  %v14616_v14 = vld [vmem:[%s15220_s8 + $0x10] sm:$0xff] }
 0x5e9   :  { %5237 = vadd.xlane.f32.xlu1 %v5236_v28  ;;  %10505 = vmatpush3.bf16.msra.mxu1 %v10502_v17  ;;  %v5185_v17 = vsel %vm2068_vm3, %v14507_v16, 0.0  ;;  %v15845_v28 = vld [vmem:[#allocation30_spill] sm:$0xff] }
 0x5ea   :  { %10507 = vmatprep.subr.bf16.mxu1 %v10506_v42  ;;  %9900 = vmatprep.mubr.msk.f32.mxu1 %vm2068_vm3, %v14542_v23 }
 0x5eb   :  { %2570 = vadd.xlane.f32.xlu0 %v2569_v29  ;;  %v5191_v29 = vsel %vm2068_vm3, %v14527_v20, 0.0  ;;  %v5200_v20 = vsel %vm2068_vm3, %v14471_v39, 0.0  ;;  %v5197_v39 = vsel %vm2068_vm3, %v14437_v51, 0.0  ;;  %v5209_v51 = vsel %vm2068_vm3, %v14542_v23, 0.0 }
 0x5ed   :  { %5222 = vadd.xlane.f32.xlu1 %v5221_v36  ;;  %10509 = vmatpush3.bf16.msra.mxu1 %v10506_v42 }
 0x5ee   :  { %10511 = vmatprep.subr.bf16.mxu1 %v10510_v32 }
 0x5ef   :  { %2573 = vadd.xlane.f32.xlu0 %v2572_v56 }
 0x5f1   :  { %v2487_v0 = vpop.xlane.xlu1 %2486  ;;  %5234 = vadd.xlane.f32.xlu1 %v5233_v1  ;;  %10513 = vmatpush3.bf16.msra.mxu1 %v10510_v32 }
 0x5f3   :  { %2576 = vadd.xlane.f32.xlu0 %v2575_v9  ;;  %v15847_v9 = vld [vmem:[#allocation35_spill] sm:$0xff] }
 0x5f4   :  { %9901 = vmatmul.mubr.msk.f32.vlgmr.msra.gmra.mrb[92].mxu1 %vm2068_vm3, %v14556_v61 }
 0x5f5   :  { %v2586_v8 = vpop.xlane.xlu1 %2585  ;;  %5231 = vadd.xlane.f32.xlu1 %v5230_v59  ;;  %9903 = vmatprep.mubr.msk.f32.mxu1 %vm2068_vm3, %v14558_v21  ;;  %v5263_v59 = vsel %vm86_vm0, %v14499_v40, 0.0  ;;  %v5266_v40 = vsel %vm86_vm0, %v14503_v49, 0.0 }
 0x5f7   :  { %2579 = vadd.xlane.f32.xlu0 %v2578_v37 }
 0x5f8   :  { %9904 = vmatmul.mubr.msk.f32.gmra.mrb[94].mxu1 %vm2068_vm3, %v14568_v26 }
 0x5f9   :  { %v2589_v4 = vpop.xlane.xlu1 %2588  ;;  %5243 = vadd.xlane.f32.xlu1 %v5242_v33 }
 0x5fb   :  { %5177 = vadd.xlane.f32.xlu0 %v5176_v24  ;;  %v8579_v24 = vld [vmem:[%s15220_s8 + $0x20] sm:$0xff] }
 0x5fc   :  { %9962 = vmatprep.subr.mxu1 %v8579_v24 }
 0x5fd   :  { %v2592_v47 = vpop.xlane.xlu1 %2591  ;;  %5228 = vadd.xlane.f32.xlu1 %v5227_v31  ;;  %9963 = vmatpush3.msra.mxu1 %v8579_v24 }
 0x5ff   :  { %5189 = vadd.xlane.f32.xlu0 %v5188_v60 }
 0x601   :  { %v2595_v41 = vpop.xlane.xlu1 %2594  ;;  %5240 = vadd.xlane.f32.xlu1 %v5239_v3 }
 0x603   :  { %5174 = vadd.xlane.f32.xlu0 %v5173_v15 }
 0x605   :  { %v2598_v57 = vpop.xlane.xlu1 %2597  ;;  %5249 = vadd.xlane.f32.xlu1 %v5248_v13 }
 0x606   :  { %v2583_v5 = vpop.xlane.xlu0 %2582 }
 0x607   :  { %v2677_v55 = vadd.f32 %v2583_v5, %v2487_v0  ;;  %5186 = vadd.xlane.f32.xlu0 %v5185_v17  ;;  %v5206_v5 = vsel %vm2068_vm3, %v14491_v54, 0.0 }
 0x609   :  { %11264 = vrcp.f32 %v2677_v55  ;;  %v2601_v38 = vpop.xlane.xlu1 %2600  ;;  %5246 = vadd.xlane.f32.xlu1 %v5245_v63  ;;  %v15850_v55 = vld [vmem:[#allocation31_spill] sm:$0xff] }
 0x60a   :  { %v2490_v19 = vpop.xlane.xlu0 %2489 }
 0x60b   :  { %v2678_v53 = vadd.f32 %v2586_v8, %v2490_v19  ;;  %5183 = vadd.xlane.f32.xlu0 %v5182_v12  ;;  %v5203_v12 = vsel %vm2068_vm3, %v14480_v52, 0.0 }
 0x60d   :  { %11266 = vrcp.f32 %v2678_v53  ;;  %v2604_v46 = vpop.xlane.xlu1 %2603  ;;  %5258 = vadd.xlane.f32.xlu1 %v5257_v44  ;;  %v15851_v44 = vld [vmem:[#allocation44_spill] sm:$0xff] }
 0x60e   :  { %v2493_v16 = vpop.xlane.xlu0 %2492 }
 0x60f   :  { %v2679_v22 = vadd.f32 %v2589_v4, %v2493_v16  ;;  %5195 = vadd.xlane.f32.xlu0 %v5194_v45 }
 0x611   :  { %11268 = vrcp.f32 %v2679_v22  ;;  %v14598_v6 = vpop.xlane.xlu1 %2606  ;;  %5255 = vadd.xlane.f32.xlu1 %v5254_v34  ;;  %v5212_v22 = vsel %vm2068_vm3, %v14556_v61, 0.0 }
 0x612   :  { %v2496_v18 = vpop.xlane.xlu0 %2495 }
 0x613   :  { %v11265_v11 = vpop.eup %11264  ;;  %v2680_v58 = vadd.f32 %v2592_v47, %v2496_v18  ;;  %5180 = vadd.xlane.f32.xlu0 %v5179_v62  ;;  %v5215_v62 = vsel %vm2068_vm3, %v14558_v21, 0.0  ;;  %v14664_v21 = vld [vmem:[%s15220_s8 + $0x18] sm:$0xff] }
 0x614   :  { %v3917_v42 = vmul.f32 %v11265_v11, %v15845_v28 }
 0x615   :  { %11270 = vrcp.f32 %v2680_v58  ;;  %v14605_v50 = vpop.xlane.xlu1 %2609  ;;  %5252 = vadd.xlane.f32.xlu1 %v5251_v48 }
 0x616   :  { %v2499_v7 = vpop.xlane.xlu0 %2498  ;;  %9908 = vmatprep.mubr.msk.f32.mxu0 %vm819_vm1, %v3917_v42  ;;  %v15853_v42 = vld [vmem:[#allocation103_spill] sm:$0xff] }
 0x617   :  { %v11267_v10 = vpop.eup %11266  ;;  %v2681_v36 = vadd.f32 %v2595_v41, %v2499_v7  ;;  %5192 = vadd.xlane.f32.xlu0 %v5191_v29  ;;  %v15849_v41 = vld [vmem:[#allocation63_spill] sm:$0xff] }
 0x618   :  { %v3918_v32 = vmul.f32 %v11267_v10, %v15846_v27  ;;  %v15854_v10 = vld [vmem:[#allocation87_spill] sm:$0xff] }
 0x619   :  { %11272 = vrcp.f32 %v2681_v36  ;;  %v2613_v56 = vpop.xlane.xlu1 %2612  ;;  %5261 = vadd.xlane.f32.xlu1 %v5260_v35 }
 0x61a   :  { %v2502_v1 = vpop.xlane.xlu0 %2501  ;;  %9909 = vmatmul.mubr.msk.f32.vlgmr.msra.gmra.mrb[96].mxu0 %vm819_vm1, %v3918_v32 }
 0x61b   :  { %v11269_v0 = vpop.eup %11268  ;;  %v2682_v25 = vadd.f32 %v2598_v57, %v2502_v1  ;;  %9921 = vmatpush3.msra.mxu0 %v14478_v43  ;;  %5201 = vadd.xlane.f32.xlu0 %v5200_v20  ;;  %v15848_v43 = vld [vmem:[#allocation29_spill] sm:$0xff] }
 0x61c   :  { %v3919_v30 = vmul.f32 %v11269_v0, %v15847_v9  ;;  %9934 = vmatprep.subr.mxu0 %v14616_v14 }
 0x61d   :  { %11274 = vrcp.f32 %v2682_v25  ;;  %v2616_v8 = vpop.xlane.xlu1 %2615  ;;  %5264 = vadd.xlane.f32.xlu1 %v5263_v59 }
 0x61e   :  { %v2505_v2 = vpop.xlane.xlu0 %2504  ;;  %9911 = vmatprep.mubr.msk.f32.mxu0 %vm819_vm1, %v3919_v30  ;;  %v15856_v30 = vld [vmem:[#allocation93_spill] sm:$0xff] }
 0x61f   :  { %v11271_v37 = vpop.eup %11270  ;;  %v2683_v33 = vadd.f32 %v2601_v38, %v2505_v2  ;;  %5198 = vadd.xlane.f32.xlu0 %v5197_v39 }
 0x620   :  { %v3920_v4 = vmul.f32 %v11271_v37, %v15848_v43 }
 0x621   :  { %11276 = vrcp.f32 %v2683_v33  ;;  %v2619_v31 = vpop.xlane.xlu1 %2618  ;;  %5267 = vadd.xlane.f32.xlu1 %v5266_v40 }
 0x622   :  { %v2508_v47 = vpop.xlane.xlu0 %2507  ;;  %9912 = vmatmul.mubr.msk.f32.gmra.mrb[98].mxu0 %vm819_vm1, %v3920_v4  ;;  %v15857_v4 = vld [vmem:[#allocation60_spill] sm:$0xff] }
 0x623   :  { %v11273_v60 = vpop.eup %11272  ;;  %v2684_v3 = vadd.f32 %v2604_v46, %v2508_v47  ;;  %5210 = vadd.xlane.f32.xlu0 %v5209_v51  ;;  %v15858_v51 = vld [vmem:[#allocation109_spill] sm:$0xff] }
 0x624   :  { %v3921_v15 = vmul.f32 %v11273_v60, %v15849_v41 }
 0x625   :  { %11278 = vrcp.f32 %v2684_v3  ;;  %v2622_v13 = vpop.xlane.xlu1 %2621 }
 0x626   :  { %v2511_v57 = vpop.xlane.xlu0 %2510  ;;  %9914 = vmatprep.mubr.msk.f32.mxu0 %vm819_vm1, %v3921_v15 }
 0x627   :  { %v11275_v49 = vpop.eup %11274  ;;  %v2685_v17 = vadd.f32 %v14598_v6, %v2511_v57  ;;  %5207 = vadd.xlane.f32.xlu0 %v5206_v5  ;;  %v15852_v6 = vld [vmem:[#allocation40_spill] sm:$0xff] }
 0x628   :  { %v3922_v63 = vmul.f32 %v11275_v49, %v15850_v55  ;;  %v15859_v49 = vld [vmem:[#allocation55_spill] sm:$0xff] }
 0x629   :  { %11280 = vrcp.f32 %v2685_v17  ;;  %v2625_v23 = vpop.xlane.xlu1 %2624 }
 0x62a   :  { %v2514_v38 = vpop.xlane.xlu0 %2513  ;;  %9915 = vmatmul.mubr.msk.f32.gmra.mrb[100].mxu0 %vm819_vm1, %v3922_v63 }
 0x62b   :  { %v11277_v19 = vpop.eup %11276  ;;  %v2686_v53 = vadd.f32 %v14605_v50, %v2514_v38  ;;  %5204 = vadd.xlane.f32.xlu0 %v5203_v12  ;;  %v5218_v50 = vsel %vm2068_vm3, %v14568_v26, 0.0  ;;  %v14671_v26 = vld [vmem:[%s15220_s8 + $0x28] sm:$0xff]  ;;  %v15860_v38 = vld [vmem:[#allocation96_spill] sm:$0xff] }
 0x62c   :  { %v3923_v46 = vmul.f32 %v11277_v19, %v15851_v44  ;;  %9970 = vmatprep.subr.mxu1 %v14671_v26 }
 0x62d   :  { %11282 = vrcp.f32 %v2686_v53  ;;  %v2628_v54 = vpop.xlane.xlu1 %2627 }
 0x62e   :  { %v2517_v16 = vpop.xlane.xlu0 %2516  ;;  %9917 = vmatprep.mubr.msk.f32.mxu0 %vm819_vm1, %v3923_v46 }
 0x62f   :  { %v11279_v45 = vpop.eup %11278  ;;  %v2687_v34 = vadd.f32 %v2613_v56, %v2517_v16  ;;  %5213 = vadd.xlane.f32.xlu0 %v5212_v22  ;;  %v15855_v56 = vld [vmem:[#allocation13_spill] sm:$0xff] }
 0x630   :  { %v3924_v18 = vmul.f32 %v11279_v45, %v15852_v6  ;;  %v15862_v6 = vld [vmem:[#allocation100_spill] sm:$0xff] }
 0x631   :  { %11284 = vrcp.f32 %v2687_v34  ;;  %v2631_v52 = vpop.xlane.xlu1 %2630 }
 0x632   :  { %9918 = vmatmul.mubr.msk.f32.gmra.mrb[102].mxu0 %vm819_vm1, %v3924_v18 }
 0x633   :  { %v11281_v11 = vpop.eup %11280  ;;  %v2520_v58 = vpop.xlane.xlu0 %2519  ;;  %5216 = vadd.xlane.f32.xlu0 %v5215_v62 }
 0x634   :  { %v2688_v28 = vadd.f32 %v2616_v8, %v2520_v58  ;;  %v3925_v48 = vmul.f32 %v11281_v11, %v15853_v42  ;;  %v15863_v42 = vld [vmem:[#allocation54_spill] sm:$0xff] }
 0x636   :  { %11286 = vrcp.f32 %v2688_v28  ;;  %9922 = vmatprep.mubr.msk.f32.mxu0 %vm819_vm1, %v3925_v48  ;;  %v2634_v7 = vpop.xlane.xlu1 %2633 }
 0x637   :  { %v11283_v61 = vpop.eup %11282  ;;  %5219 = vadd.xlane.f32.xlu0 %v5218_v50 }
 0x638   :  { %v3926_v29 = vmul.f32 %v11283_v61, %v15854_v10  ;;  %v2523_v36 = vpop.xlane.xlu0 %2522 }
 0x639   :  { %v2689_v27 = vadd.f32 %v2619_v31, %v2523_v36 }
 0x63a   :  { %9923 = vmatmul.mubr.msk.f32.vlgmr.msra.gmra.mrb[96].mxu0 %vm819_vm1, %v3926_v29  ;;  %v2637_v35 = vpop.xlane.xlu1 %2636  ;;  %v15864_v29 = vld [vmem:[#allocation89_spill] sm:$0xff] }
 0x63b   :  { %v11285_v32 = vpop.eup %11284  ;;  %9935 = vmatpush3.msra.mxu0 %v14616_v14  ;;  %11288 = vrcp.f32 %v2689_v27 }
 0x63c   :  { %v3927_v1 = vmul.f32 %v11285_v32, %v15855_v56  ;;  %9948 = vmatprep.subr.mxu0 %v14664_v21  ;;  %v2526_v0 = vpop.xlane.xlu0 %2525 }
 0x63d   :  { %v2690_v20 = vadd.f32 %v2622_v13, %v2526_v0 }
 0x63e   :  { %9925 = vmatprep.mubr.msk.f32.mxu0 %vm819_vm1, %v3927_v1  ;;  %v2640_v25 = vpop.xlane.xlu1 %2639 }
 0x63f   :  { %11290 = vrcp.f32 %v2690_v20 }
 0x640   :  { %v11287_v9 = vpop.eup %11286  ;;  %v2529_v14 = vpop.xlane.xlu0 %2528 }
 0x641   :  { %v3928_v59 = vmul.f32 %v11287_v9, %v15856_v30  ;;  %v2691_v8 = vadd.f32 %v2625_v23, %v2529_v14  ;;  %v15866_v14 = vld [vmem:[#allocation104_spill] sm:$0xff] }
 0x642   :  { %v2643_v2 = vpop.xlane.xlu1 %2642 }
 0x643   :  { %9926 = vmatmul.mubr.msk.f32.gmra.mrb[98].mxu0 %vm819_vm1, %v3928_v59  ;;  %11292 = vrcp.f32 %v2691_v8 }
 0x644   :  { %v2532_v37 = vpop.xlane.xlu0 %2531 }
 0x645   :  { %v11289_v39 = vpop.eup %11288  ;;  %v2692_v33 = vadd.f32 %v2628_v54, %v2532_v37  ;;  %v15861_v54 = vld [vmem:[#allocation106_spill] sm:$0xff] }
 0x646   :  { %v2646_v43 = vpop.xlane.xlu1 %2645  ;;  %v3929_v24 = vmul.f32 %v11289_v39, %v15857_v4  ;;  %v15867_v39 = vld [vmem:[#allocation57_spill] sm:$0xff] }
 0x647   :  { %11294 = vrcp.f32 %v2692_v33 }
 0x648   :  { %v2535_v40 = vpop.xlane.xlu0 %2534  ;;  %9928 = vmatprep.mubr.msk.f32.mxu0 %vm819_vm1, %v3929_v24 }
 0x649   :  { %v11291_v31 = vpop.eup %11290  ;;  %v2693_v47 = vadd.f32 %v2631_v52, %v2535_v40 }
 0x64a   :  { %v2649_v60 = vpop.xlane.xlu1 %2648  ;;  %v3930_v3 = vmul.f32 %v11291_v31, %v15858_v51  ;;  %v15868_v31 = vld [vmem:[#allocation69_spill] sm:$0xff] }
 0x64b   :  { %11296 = vrcp.f32 %v2693_v47 }
 0x64c   :  { %v2538_v41 = vpop.xlane.xlu0 %2537  ;;  %9929 = vmatmul.mubr.msk.f32.gmra.mrb[100].mxu0 %vm819_vm1, %v3930_v3 }
 0x64d   :  { %v11293_v15 = vpop.eup %11292  ;;  %v2694_v13 = vadd.f32 %v2634_v7, %v2538_v41 }
 0x64e   :  { %v2652_v57 = vpop.xlane.xlu1 %2651  ;;  %v3931_v5 = vmul.f32 %v11293_v15, %v15859_v49  ;;  %v15869_v15 = vld [vmem:[#allocation72_spill] sm:$0xff] }
 0x64f   :  { %11298 = vrcp.f32 %v2694_v13 }
 0x650   :  { %v2541_v17 = vpop.xlane.xlu0 %2540  ;;  %9931 = vmatprep.mubr.msk.f32.mxu0 %vm819_vm1, %v3931_v5 }
 0x651   :  { %v11295_v55 = vpop.eup %11294  ;;  %v2695_v63 = vadd.f32 %v2637_v35, %v2541_v17  ;;  %v15870_v17 = vld [vmem:[#allocation67_spill] sm:$0xff] }
 0x652   :  { %v2655_v23 = vpop.xlane.xlu1 %2654  ;;  %v3932_v19 = vmul.f32 %v11295_v55, %v15860_v38 }
 0x653   :  { %11300 = vrcp.f32 %v2695_v63 }
 0x654   :  { %v2544_v12 = vpop.xlane.xlu0 %2543  ;;  %9932 = vmatmul.mubr.msk.f32.gmra.mrb[102].mxu0 %vm819_vm1, %v3932_v19 }
 0x655   :  { %v11297_v53 = vpop.eup %11296  ;;  %v2696_v44 = vadd.f32 %v2640_v25, %v2544_v12 }
 0x656   :  { %v2658_v46 = vpop.xlane.xlu1 %2657  ;;  %v3933_v16 = vmul.f32 %v11297_v53, %v15861_v54  ;;  %v15871_v53 = vld [vmem:[#allocation58_spill] sm:$0xff] }
 0x657   :  { %11302 = vrcp.f32 %v2696_v44 }
 0x658   :  { %v2547_v45 = vpop.xlane.xlu0 %2546  ;;  %9936 = vmatprep.mubr.msk.f32.mxu0 %vm819_vm1, %v3933_v16 }
 0x659   :  { %v11299_v22 = vpop.eup %11298  ;;  %v2697_v34 = vadd.f32 %v2643_v2, %v2547_v45 }
 0x65a   :  { %v3934_v18 = vmul.f32 %v11299_v22, %v15862_v6  ;;  %v2661_v52 = vpop.xlane.xlu1 %2660  ;;  %v15872_v22 = vld [vmem:[#allocation56_spill] sm:$0xff] }
 0x65b   :  { %11304 = vrcp.f32 %v2697_v34 }
 0x65c   :  { %v2550_v11 = vpop.xlane.xlu0 %2549  ;;  %9937 = vmatmul.mubr.msk.f32.vlgmr.msra.gmra.mrb[96].mxu0 %vm819_vm1, %v3934_v18 }
 0x65d   :  { %v11301_v62 = vpop.eup %11300  ;;  %v2698_v58 = vadd.f32 %v2646_v43, %v2550_v11  ;;  %9949 = vmatpush3.msra.mxu0 %v14664_v21  ;;  %v15865_v21 = vld [vmem:[#allocation53_spill] sm:$0xff]  ;;  %v15873_v11 = vld [vmem:[#allocation68_spill] sm:$0xff] }
 0x65e   :  { %v2664_v28 = vpop.xlane.xlu1 %2663  ;;  %v3935_v48 = vmul.f32 %v11301_v62, %v15863_v42 }
 0x65f   :  { %11306 = vrcp.f32 %v2698_v58 }
 0x660   :  { %v2553_v61 = vpop.xlane.xlu0 %2552  ;;  %9939 = vmatprep.mubr.msk.f32.mxu0 %vm819_vm1, %v3935_v48  ;;  %v15874_v48 = vld [vmem:[#allocation59_spill] sm:$0xff] }
 0x661   :  { %v11303_v50 = vpop.eup %11302  ;;  %v2699_v7 = vadd.f32 %v2649_v60, %v2553_v61 }
 0x662   :  { %v2667_v10 = vpop.xlane.xlu1 %2666  ;;  %v3936_v36 = vmul.f32 %v11303_v50, %v15864_v29  ;;  %v15875_v29 = vld [vmem:[#allocation62_spill] sm:$0xff] }
 0x663   :  { %11308 = vrcp.f32 %v2699_v7 }
 0x664   :  { %v2556_v27 = vpop.xlane.xlu0 %2555  ;;  %9940 = vmatmul.mubr.msk.f32.gmra.mrb[98].mxu0 %vm819_vm1, %v3936_v36 }
 0x665   :  { %v11305_v32 = vpop.eup %11304  ;;  %v2700_v35 = vadd.f32 %v2652_v57, %v2556_v27 }
 0x666   :  { %v2670_v56 = vpop.xlane.xlu1 %2669  ;;  %v3937_v1 = vmul.f32 %v11305_v32, %v15865_v21  ;;  %v15876_v21 = vld [vmem:[#allocation75_spill] sm:$0xff] }
 0x667   :  { %11310 = vrcp.f32 %v2700_v35 }
 0x668   :  { %v2559_v0 = vpop.xlane.xlu0 %2558  ;;  %9942 = vmatprep.mubr.msk.f32.mxu0 %vm819_vm1, %v3937_v1 }
 0x669   :  { %v11307_v20 = vpop.eup %11306  ;;  %v2701_v25 = vadd.f32 %v2655_v23, %v2559_v0 }
 0x66a   :  { %v2673_v9 = vpop.xlane.xlu1 %2672  ;;  %v3938_v30 = vmul.f32 %v11307_v20, %v15866_v14 }
 0x66b   :  { %11312 = vrcp.f32 %v2701_v25 }
 0x66c   :  { %v2562_v59 = vpop.xlane.xlu0 %2561  ;;  %9943 = vmatmul.mubr.msk.f32.gmra.mrb[100].mxu0 %vm819_vm1, %v3938_v30 }
 0x66d   :  { %v11309_v8 = vpop.eup %11308  ;;  %v2702_v2 = vadd.f32 %v2658_v46, %v2562_v59 }
 0x66e   :  { %v2676_v37 = vpop.xlane.xlu1 %2675  ;;  %v3939_v33 = vmul.f32 %v11309_v8, %v15867_v39 }
 0x66f   :  { %11314 = vrcp.f32 %v2702_v2 }
 0x670   :  { %v2565_v43 = vpop.xlane.xlu0 %2564  ;;  %9945 = vmatprep.mubr.msk.f32.mxu0 %vm819_vm1, %v3939_v33 }
 0x671   :  { %v11311_v4 = vpop.eup %11310  ;;  %v2703_v24 = vadd.f32 %v2661_v52, %v2565_v43 }
 0x672   :  { %v5226_v40 = vpop.xlane.xlu1 %5225  ;;  %v3940_v47 = vmul.f32 %v11311_v4, %v15868_v31  ;;  %v8581_v31 = vld [vmem:[%s15220_s8 + $0x30] sm:$0xff] }
 0x673   :  { %11316 = vrcp.f32 %v2703_v24 }
 0x674   :  { %v2568_v60 = vpop.xlane.xlu0 %2567  ;;  %9946 = vmatmul.mubr.msk.f32.gmra.mrb[102].mxu0 %vm819_vm1, %v3940_v47 }
 0x675   :  { %v11313_v51 = vpop.eup %11312  ;;  %v2704_v3 = vadd.f32 %v2664_v28, %v2568_v60 }
 0x676   :  { %v14704_v41 = vpop.xlane.xlu1 %5237  ;;  %v3941_v13 = vmul.f32 %v11313_v51, %v15869_v15 }
 0x677   :  { %11318 = vrcp.f32 %v2704_v3 }
 0x678   :  { %v2571_v57 = vpop.xlane.xlu0 %2570  ;;  %9950 = vmatprep.mubr.msk.f32.mxu0 %vm819_vm1, %v3941_v13 }
 0x679   :  { %v11315_v49 = vpop.eup %11314  ;;  %v2705_v5 = vadd.f32 %v2667_v10, %v2571_v57 }
 0x67a   :  { %v3942_v55 = vmul.f32 %v11315_v49, %v15870_v17  ;;  %v5223_v63 = vpop.xlane.xlu1 %5222 }
 0x67b   :  { %11320 = vrcp.f32 %v2705_v5 }
 0x67c   :  { %v2574_v23 = vpop.xlane.xlu0 %2573  ;;  %9951 = vmatmul.mubr.msk.f32.vlgmr.msra.gmra.mrb[96].mxu0 %vm819_vm1, %v3942_v55 }
 0x67d   :  { %v11317_v38 = vpop.eup %11316  ;;  %v2706_v19 = vadd.f32 %v2670_v56, %v2574_v23 }
 0x67e   :  { %v5235_v12 = vpop.xlane.xlu1 %5234  ;;  %v3943_v44 = vmul.f32 %v11317_v38, %v15871_v53 }
 0x67f   :  { %11322 = vrcp.f32 %v2706_v19 }
 0x680   :  { %v2577_v46 = vpop.xlane.xlu0 %2576  ;;  %9953 = vmatprep.mubr.msk.f32.mxu0 %vm819_vm1, %v3943_v44 }
 0x681   :  { %v11319_v54 = vpop.eup %11318  ;;  %v2707_v16 = vadd.f32 %v2673_v9, %v2577_v46 }
 0x682   :  { %v5232_v45 = vpop.xlane.xlu1 %5231  ;;  %v3944_v34 = vmul.f32 %v11319_v54, %v15872_v22 }
 0x683   :  { %11324 = vrcp.f32 %v2707_v16 }
 0x684   :  { %v2580_v6 = vpop.xlane.xlu0 %2579  ;;  %9954 = vmatmul.mubr.msk.f32.gmra.mrb[98].mxu0 %vm819_vm1, %v3944_v34 }
 0x685   :  { %v11321_v18 = vpop.eup %11320  ;;  %v2708_v52 = vadd.f32 %v2676_v37, %v2580_v6 }
 0x686   :  { %v3945_v62 = vmul.f32 %v11321_v18, %v15873_v11  ;;  %v5244_v58 = vpop.xlane.xlu1 %5243 }
 0x687   :  { %11326 = vrcp.f32 %v2708_v52 }
 0x688   :  { %v5178_v28 = vpop.xlane.xlu0 %5177  ;;  %9956 = vmatprep.mubr.msk.f32.mxu0 %vm819_vm1, %v3945_v62 }
 0x689   :  { %v11323_v42 = vpop.eup %11322  ;;  %v5270_v27 = vadd.f32 %v5226_v40, %v5178_v28 }
 0x68a   :  { %v3946_v61 = vmul.f32 %v11323_v42, %v15874_v48  ;;  %v5229_v10 = vpop.xlane.xlu1 %5228 }
 0x68c   :  { %v5190_v50 = vpop.xlane.xlu0 %5189  ;;  %9957 = vmatmul.mubr.msk.f32.gmra.mrb[100].mxu0 %vm819_vm1, %v3946_v61 }
 0x68d   :  { %v11325_v7 = vpop.eup %11324  ;;  %v5274_v57 = vadd.f32 %v14704_v41, %v5190_v50  ;;  %v8582_v50 = vld [vmem:[%s15220_s8 + $0x38] sm:$0xff] }
 0x68e   :  { %v3947_v36 = vmul.f32 %v11325_v7, %v15875_v29  ;;  %v5241_v0 = vpop.xlane.xlu1 %5240 }
 0x690   :  { %v5175_v32 = vpop.xlane.xlu0 %5174  ;;  %9959 = vmatprep.mubr.msk.f32.mxu0 %vm819_vm1, %v3947_v36 }
 0x691   :  { %v11327_v35 = vpop.eup %11326  ;;  %v5269_v56 = vadd.f32 %v5223_v63, %v5175_v32 }
 0x692   :  { %v3948_v1 = vmul.f32 %v11327_v35, %v15876_v21  ;;  %v5250_v9 = vpop.xlane.xlu1 %5249 }
 0x693   :  { %11328 = vrcp.f32 %v5269_v56 }
 0x694   :  { %11330 = vrcp.f32 %v5270_v27  ;;  %v5187_v20 = vpop.xlane.xlu0 %5186  ;;  %9960 = vmatmul.mubr.msk.f32.gmra.mrb[102].mxu0 %vm819_vm1, %v3948_v1 }
 0x695   :  { %v5273_v15 = vadd.f32 %v5235_v12, %v5187_v20 }
 0x696   :  { %v5247_v43 = vpop.xlane.xlu1 %5246 }
 0x698   :  { %v5184_v25 = vpop.xlane.xlu0 %5183 }
 0x699   :  { %v5272_v37 = vadd.f32 %v5232_v45, %v5184_v25 }
 0x69a   :  { %v9836_v14 = vpop.f32.mrb[88].mxu0  ;;  %v5259_v51 = vpop.xlane.xlu1 %5258 }
 0x69b   :  { %v5839_v30 = vpop.f32.mrb[89].mxu0  ;;  %11332 = vrcp.f32 %v5272_v37 }
 0x69c   :  { %v5196_v59 = vpop.xlane.xlu0 %5195 }
 0x69d   :  { %v11329_v8 = vpop.eup %11328  ;;  %v5276_v53 = vadd.f32 %v5244_v58, %v5196_v59 }
 0x69e   :  { %v11331_v2 = vpop.eup %11330  ;;  %v6221_v39 = vmul.f32 %v11329_v8, %v5839_v30  ;;  %v9839_v33 = vpop.f32.mrb[90].mxu0 }
 0x69f   :  { %v6222_v4 = vmul.f32 %v11331_v2, %v9836_v14  ;;  %v5849_v24 = vpop.f32.mrb[91].mxu0  ;;  %v5256_v49 = vpop.xlane.xlu1 %5255 }
 0x6a0   :  { %v5181_v40 = vpop.xlane.xlu0 %5180  ;;  %9964 = vmatprep.mubr.msk.f32.mxu1 %vm819_vm1, %v6221_v39 }
 0x6a1   :  { %v5271_v47 = vadd.f32 %v5229_v10, %v5181_v40  ;;  %9965 = vmatmul.mubr.msk.f32.vlgmr.msra.gmra.mrb[96].mxu1 %vm819_vm1, %v6222_v4 }
 0x6a2   :  { %9971 = vmatpush3.msra.mxu1 %v14671_v26 }
 0x6a3   :  { %11334 = vrcp.f32 %v5271_v47  ;;  %9978 = vmatprep.subr.mxu1 %v8581_v31  ;;  %v5253_v54 = vpop.xlane.xlu1 %5252 }
 0x6a4   :  { %v5193_v60 = vpop.xlane.xlu0 %5192  ;;  %11336 = vrcp.f32 %v5273_v15 }
 0x6a5   :  { %v11333_v17 = vpop.eup %11332  ;;  %v5275_v23 = vadd.f32 %v5241_v0, %v5193_v60  ;;  %11338 = vrcp.f32 %v5274_v57 }
 0x6a6   :  { %v6224_v44 = vmul.f32 %v11333_v17, %v9839_v33 }
 0x6a7   :  { %11340 = vrcp.f32 %v5275_v23  ;;  %v5262_v22 = vpop.xlane.xlu1 %5261  ;;  %v11435_v23 = vld [vmem:[%s15212_s0] sm:$0xff] }
 0x6a8   :  { %v5202_v3 = vpop.xlane.xlu0 %5201 }
 0x6a9   :  { %v5278_v41 = vadd.f32 %v5250_v9, %v5202_v3 }
 0x6aa   :  { %v14728_v13 = vpop.f32.mrb[92].mxu0 }
 0x6ab   :  { %v6081_v5 = vpop.f32.mrb[93].mxu0  ;;  %v5265_v35 = vpop.xlane.xlu1 %5264 }
 0x6ac   :  { %v5199_v55 = vpop.xlane.xlu0 %5198 }
 0x6ad   :  { %v11335_v63 = vpop.eup %11334  ;;  %v5277_v19 = vadd.f32 %v5247_v43, %v5199_v55  ;;  %v11434_v55 = vld [vmem:[%s15212_s0 + $0x8] sm:$0xff] }
 0x6ae   :  { %v6223_v38 = vmul.f32 %v11335_v63, %v5849_v24  ;;  %v14731_v26 = vpop.f32.mrb[94].mxu0  ;;  %v11337_v6 = vpop.eup %11336 }
 0x6af   :  { %v6091_v46 = vpop.f32.mrb[95].mxu0  ;;  %11342 = vrcp.f32 %v5277_v19  ;;  %v11339_v11 = vpop.eup %11338 }
 0x6b0   :  { %v5211_v12 = vpop.xlane.xlu0 %5210  ;;  %9967 = vmatprep.mubr.msk.f32.mxu1 %vm819_vm1, %v6223_v38  ;;  %11344 = vrcp.f32 %v5276_v53  ;;  %v5268_v14 = vpop.xlane.xlu1 %5267 }
 0x6b1   :  { %9968 = vmatmul.mubr.msk.f32.gmra.mrb[98].mxu1 %vm819_vm1, %v6224_v44  ;;  %11346 = vrcp.f32 %v5278_v41  ;;  %v5281_v28 = vadd.f32 %v5259_v51, %v5211_v12  ;;  %v11341_v48 = vpop.eup %11340 }
 0x6b4   :  { %v5208_v16 = vpop.xlane.xlu0 %5207 }
 0x6b5   :  { %v5280_v45 = vadd.f32 %v5256_v49, %v5208_v16  ;;  %v11437_v16 = vld [vmem:[%s15212_s0 + $0x10] sm:$0xff] }
 0x6b7   :  { %v9858_v34 = vpop.f32.mrb[88].mxu1  ;;  %11348 = vrcp.f32 %v5280_v45 }
 0x6b8   :  { %v5205_v18 = vpop.xlane.xlu0 %5204  ;;  %v5960_v52 = vpop.f32.mrb[89].mxu1  ;;  %v6226_v42 = vmul.f32 %v11339_v11, %v9858_v34 }
 0x6b9   :  { %v5279_v62 = vadd.f32 %v5253_v54, %v5205_v18  ;;  %v6225_v58 = vmul.f32 %v11337_v6, %v5960_v52  ;;  %v11343_v7 = vpop.eup %11342  ;;  %v11436_v54 = vld [vmem:[%s15212_s0 + $0x18] sm:$0xff] }
 0x6ba   :  { %v11345_v36 = vpop.eup %11344  ;;  %v6229_v1 = vmul.f32 %v11343_v7, %v6081_v5 }
 0x6bb   :  { %11350 = vrcp.f32 %v5279_v62  ;;  %v9861_v61 = vpop.f32.mrb[90].mxu1  ;;  %9972 = vmatprep.mubr.msk.f32.mxu1 %vm819_vm1, %v6225_v58  ;;  %v11347_v21 = vpop.eup %11346  ;;  %v11438_v62 = vld [vmem:[%s15212_s0 + $0x28] sm:$0xff] }
 0x6bc   :  { %v5214_v10 = vpop.xlane.xlu0 %5213  ;;  %v5970_v29 = vpop.f32.mrb[91].mxu1  ;;  %9973 = vmatmul.mubr.msk.f32.vlgmr.msra.gmra.mrb[96].mxu1 %vm819_vm1, %v6226_v42  ;;  %11352 = vrcp.f32 %v5281_v28  ;;  %v6228_v56 = vmul.f32 %v11345_v36, %v9861_v61  ;;  %v6230_v25 = vmul.f32 %v11347_v21, %v14728_v13  ;;  %v8578_v13 = vld [vmem:[%s15221_s9] ss:$0 sm:$0xff]  ;;  %v11440_v36 = vld [vmem:[%s15212_s0 + $0x38] sm:$0xff] }
 0x6bd   :  { %v5282_v27 = vadd.f32 %v5262_v22, %v5214_v10  ;;  %v6227_v32 = vmul.f32 %v11341_v48, %v5970_v29  ;;  %9979 = vmatpush3.msra.mxu1 %v8581_v31  ;;  %v11439_v28 = vld [vmem:[%s15212_s0 + $0x20] sm:$0xff] }
 0x6be   :  { %9986 = vmatprep.subr.mxu1 %v8582_v50 }
 0x6bf   :  { %11354 = vrcp.f32 %v5282_v27  ;;  %9975 = vmatprep.mubr.msk.f32.mxu1 %vm819_vm1, %v6227_v32  ;;  %v11441_v32 = vld [vmem:[%s15212_s0 + $0x30] sm:$0xff] }
 0x6c0   :  { %v5217_v0 = vpop.xlane.xlu0 %5216  ;;  %9976 = vmatmul.mubr.msk.f32.gmra.mrb[98].mxu1 %vm819_vm1, %v6228_v56 }
 0x6c1   :  { %v5283_v20 = vadd.f32 %v5265_v35, %v5217_v0  ;;  %9980 = vmatprep.mubr.msk.f32.mxu1 %vm819_vm1, %v6229_v1  ;;  %v11349_v9 = vpop.eup %11348  ;;  %v8600_v1 = vld [vmem:[%s15221_s9 + $0x1] ss:$0 sm:$0xff] }
 0x6c2   :  { %v6232_v39 = vmul.f32 %v11349_v9, %v14731_v26 }
 0x6c3   :  { %11356 = vrcp.f32 %v5283_v20 }
 0x6c4   :  { %v5220_v30 = vpop.xlane.xlu0 %5219  ;;  %9981 = vmatmul.mubr.msk.f32.vlgmr.msra.gmra.mrb[96].mxu1 %vm819_vm1, %v6230_v25 }
 0x6c5   :  { %v11351_v59 = vpop.eup %11350  ;;  %v5284_v8 = vadd.f32 %v5268_v14, %v5220_v30  ;;  %9987 = vmatpush3.msra.mxu1 %v8582_v50  ;;  %v11442_v14 = vld [vmem:[%s15213_s1 + $0x8] sm:$0xff] }
 0x6c6   :  { %v6231_v2 = vmul.f32 %v11351_v59, %v6091_v46  ;;  %v11353_v33 = vpop.eup %11352  ;;  %v11443_v59 = vld [vmem:[%s15213_s1] sm:$0xff] }
 0x6c7   :  { %11358 = vrcp.f32 %v5284_v8  ;;  %v9902_v37 = vpop.f32.mrb[92].mxu1 }
 0x6c8   :  { %9983 = vmatprep.mubr.msk.f32.mxu1 %vm819_vm1, %v6231_v2  ;;  %v6202_v43 = vpop.f32.mrb[93].mxu1 }
 0x6c9   :  { %v11355_v4 = vpop.eup %11354  ;;  %v6233_v24 = vmul.f32 %v11353_v33, %v6202_v43  ;;  %9984 = vmatmul.mubr.msk.f32.gmra.mrb[98].mxu1 %vm819_vm1, %v6232_v39 }
 0x6ca   :  { %v6234_v40 = vmul.f32 %v11355_v4, %v9902_v37 }
 0x6cb   :  { %v9905_v31 = vpop.f32.mrb[94].mxu1  ;;  %9988 = vmatprep.mubr.msk.f32.mxu1 %vm819_vm1, %v6233_v24  ;;  %v11444_v24 = vld [vmem:[%s15213_s1 + $0x18] sm:$0xff] }
 0x6cc   :  { %v6212_v47 = vpop.f32.mrb[95].mxu1 }
 0x6cd   :  { %v11357_v60 = vpop.eup %11356  ;;  %9989 = vmatmul.mubr.msk.f32.vlgmr.msra.gmra.mrb[96].mxu1 %vm819_vm1, %v6234_v40 }
 0x6ce   :  { %v6235_v51 = vmul.f32 %v11357_v60, %v6212_v47 }
 0x6d0   :  { %9991 = vmatprep.mubr.msk.f32.mxu1 %vm819_vm1, %v6235_v51 }
 0x6d1   :  { %v11359_v3 = vpop.eup %11358 }
 0x6d2   :  { %v6236_v15 = vmul.f32 %v11359_v3, %v9905_v31  ;;  %v11445_v31 = vld [vmem:[%s15213_s1 + $0x10] sm:$0xff] }
 0x6d4   :  { %9992 = vmatmul.mubr.msk.f32.gmra.mrb[98].mxu1 %vm819_vm1, %v6236_v15 }
 0x74f   :  { %v9952_v57 = vpop.f32.mrb[96].mxu0 }
 0x750   :  { %v6789_v49 = vadd.f32 %v9952_v57, %v8578_v13  ;;  %v6719_v5 = vpop.f32.mrb[97].mxu0 }
 0x751   :  { %v6788_v17 = vadd.f32 %v8578_v13, %v6719_v5 }
 0x752   :  { %v14758_v63 = vadd.f32 %v11434_v55, %v6789_v49 }
 0x753   :  { %v14763_v38 = vadd.f32 %v11435_v23, %v6788_v17 }
 0x754   :  { %v7226_v19 = vsel %vm86_vm0, %v14758_v63, 0.0 }
 0x755   :  { %7227 = vadd.xlane.f32.xlu1 %v7226_v19  ;;  %v7223_v26 = vsel %vm86_vm0, %v14763_v38, 0.0 }
 0x756   :  { %7224 = vadd.xlane.f32.xlu0 %v7223_v26 }
 0x757   :  { %v9955_v53 = vpop.f32.mrb[98].mxu0 }
 0x758   :  { %v6791_v44 = vadd.f32 %v9955_v53, %v8578_v13  ;;  %v6729_v46 = vpop.f32.mrb[99].mxu0 }
 0x759   :  { %v6790_v12 = vadd.f32 %v8578_v13, %v6729_v46 }
 0x75a   :  { %v14772_v41 = vadd.f32 %v11436_v54, %v6791_v44 }
 0x75b   :  { %v14777_v45 = vadd.f32 %v11437_v16, %v6790_v12 }
 0x75c   :  { %v7232_v22 = vsel %vm86_vm0, %v14772_v41, 0.0 }
 0x75d   :  { %7233 = vadd.xlane.f32.xlu1 %v7232_v22  ;;  %v7229_v34 = vsel %vm86_vm0, %v14777_v45, 0.0 }
 0x75e   :  { %7230 = vadd.xlane.f32.xlu0 %v7229_v34 }
 0x75f   :  { %v9958_v6 = vpop.f32.mrb[100].mxu0 }
 0x760   :  { %v6793_v18 = vadd.f32 %v9958_v6, %v8578_v13  ;;  %v6739_v52 = vpop.f32.mrb[101].mxu0 }
 0x761   :  { %v6792_v11 = vadd.f32 %v8578_v13, %v6739_v52 }
 0x762   :  { %v14786_v58 = vadd.f32 %v11438_v62, %v6793_v18 }
 0x763   :  { %v14791_v42 = vadd.f32 %v11439_v28, %v6792_v11 }
 0x764   :  { %v7238_v48 = vsel %vm86_vm0, %v14786_v58, 0.0 }
 0x765   :  { %7239 = vadd.xlane.f32.xlu1 %v7238_v48  ;;  %v7235_v61 = vsel %vm86_vm0, %v14791_v42, 0.0 }
 0x766   :  { %7236 = vadd.xlane.f32.xlu0 %v7235_v61 }
 0x767   :  { %v9961_v50 = vpop.f32.mrb[102].mxu0 }
 0x768   :  { %v6795_v7 = vadd.f32 %v9961_v50, %v8578_v13  ;;  %v6749_v10 = vpop.f32.mrb[103].mxu0 }
 0x769   :  { %v6794_v29 = vadd.f32 %v8578_v13, %v6749_v10 }
 0x76a   :  { %v14800_v27 = vadd.f32 %v11440_v36, %v6795_v7 }
 0x76b   :  { %v14805_v35 = vadd.f32 %v11441_v32, %v6794_v29 }
 0x76c   :  { %v7244_v56 = vsel %vm86_vm0, %v14800_v27, 0.0 }
 0x76d   :  { %7245 = vadd.xlane.f32.xlu1 %v7244_v56  ;;  %v7241_v21 = vsel %vm86_vm0, %v14805_v35, 0.0 }
 0x76e   :  { %7242 = vadd.xlane.f32.xlu0 %v7241_v21 }
 0x7a0   :  { %v9990_v0 = vpop.f32.mrb[96].mxu1 }
 0x7a1   :  { %v7210_v20 = vadd.f32 %v9990_v0, %v8600_v1  ;;  %v7172_v25 = vpop.f32.mrb[97].mxu1 }
 0x7a2   :  { %v7209_v9 = vadd.f32 %v8600_v1, %v7172_v25 }
 0x7a3   :  { %v14817_v30 = vadd.f32 %v11442_v14, %v7210_v20 }
 0x7a4   :  { %v14822_v8 = vadd.f32 %v11443_v59, %v7209_v9 }
 0x7a5   :  { %v7801_v2 = vsel %vm86_vm0, %v14817_v30, 0.0 }
 0x7a6   :  { %7802 = vadd.xlane.f32.xlu1 %v7801_v2  ;;  %v7798_v37 = vsel %vm86_vm0, %v14822_v8, 0.0 }
 0x7a7   :  { %v9993_v39 = vpop.f32.mrb[98].mxu1  ;;  %7799 = vadd.xlane.f32.xlu0 %v7798_v37 }
 0x7a8   :  { %v7212_v33 = vadd.f32 %v9993_v39, %v8600_v1  ;;  %v7182_v43 = vpop.f32.mrb[99].mxu1 }
 0x7a9   :  { %v7211_v4 = vadd.f32 %v8600_v1, %v7182_v43 }
 0x7aa   :  { %v14831_v40 = vadd.f32 %v11444_v24, %v7212_v33 }
 0x7ab   :  { %v14836_v47 = vadd.f32 %v11445_v31, %v7211_v4 }
 0x7ac   :  { %v7807_v60 = vsel %vm86_vm0, %v14831_v40, 0.0 }
 0x7ad   :  { %7808 = vadd.xlane.f32.xlu1 %v7807_v60  ;;  %v7804_v51 = vsel %vm86_vm0, %v14836_v47, 0.0 }
 0x7ae   :  { %7805 = vadd.xlane.f32.xlu0 %v7804_v51 }
 0x7e2   :  { %v7228_v3 = vpop.xlane.xlu1 %7227 }
 0x7e3   :  { %v7249_v15 = vmul.f32 0.03125, %v7228_v3  ;;  %v7225_v13 = vpop.xlane.xlu0 %7224 }
 0x7e4   :  { %v7248_v57 = vmul.f32 0.03125, %v7225_v13 }
 0x7e5   :  { %v14843_v49 = vsub.f32 %v14758_v63, %v7249_v15 }
 0x7e6   :  { %v14846_v5 = vsub.f32 %v14763_v38, %v7248_v57 }
 0x7e7   :  { %v7265_v17 = vmul.f32 %v14843_v49, %v14843_v49 }
 0x7e8   :  { %v7264_v55 = vmul.f32 %v14846_v5, %v14846_v5 }
 0x7e9   :  { %v7275_v23 = vsel %vm86_vm0, %v7265_v17, 0.0 }
 0x7ea   :  { %v7234_v19 = vpop.xlane.xlu1 %7233  ;;  %7276 = vadd.xlane.f32.xlu1 %v7275_v23  ;;  %v7272_v26 = vsel %vm86_vm0, %v7264_v55, 0.0 }
 0x7eb   :  { %v7251_v53 = vmul.f32 0.03125, %v7234_v19  ;;  %v7231_v44 = vpop.xlane.xlu0 %7230  ;;  %7273 = vadd.xlane.f32.xlu0 %v7272_v26 }
 0x7ec   :  { %v7250_v63 = vmul.f32 0.03125, %v7231_v44 }
 0x7ed   :  { %v14855_v46 = vsub.f32 %v14772_v41, %v7251_v53 }
 0x7ee   :  { %v14858_v38 = vsub.f32 %v14777_v45, %v7250_v63 }
 0x7ef   :  { %v7267_v12 = vmul.f32 %v14855_v46, %v14855_v46 }
 0x7f0   :  { %v7266_v54 = vmul.f32 %v14858_v38, %v14858_v38 }
 0x7f1   :  { %v7281_v16 = vsel %vm86_vm0, %v7267_v12, 0.0 }
 0x7f2   :  { %v7240_v22 = vpop.xlane.xlu1 %7239  ;;  %7282 = vadd.xlane.f32.xlu1 %v7281_v16  ;;  %v7278_v34 = vsel %vm86_vm0, %v7266_v54, 0.0  ;;  %v8601_v54 = vld [vmem:[%s15224_s12] ss:$0 sm:$0xff] }
 0x7f3   :  { %v7253_v6 = vmul.f32 0.03125, %v7240_v22  ;;  %v7237_v18 = vpop.xlane.xlu0 %7236  ;;  %7279 = vadd.xlane.f32.xlu0 %v7278_v34 }
 0x7f4   :  { %v7252_v41 = vmul.f32 0.03125, %v7237_v18  ;;  %v8602_v18 = vld [vmem:[%s15225_s13] ss:$0 sm:$0xff] }
 0x7f5   :  { %v14867_v52 = vsub.f32 %v14786_v58, %v7253_v6 }
 0x7f6   :  { %v14870_v45 = vsub.f32 %v14791_v42, %v7252_v41 }
 0x7f7   :  { %v7269_v11 = vmul.f32 %v14867_v52, %v14867_v52 }
 0x7f8   :  { %v7268_v62 = vmul.f32 %v14870_v45, %v14870_v45 }
 0x7f9   :  { %v7287_v28 = vsel %vm86_vm0, %v7269_v11, 0.0 }
 0x7fa   :  { %v7246_v48 = vpop.xlane.xlu1 %7245  ;;  %7288 = vadd.xlane.f32.xlu1 %v7287_v28  ;;  %v7284_v61 = vsel %vm86_vm0, %v7268_v62, 0.0 }
 0x7fb   :  { %v7255_v50 = vmul.f32 0.03125, %v7246_v48  ;;  %v7243_v7 = vpop.xlane.xlu0 %7242  ;;  %7285 = vadd.xlane.f32.xlu0 %v7284_v61 }
 0x7fc   :  { %v7254_v58 = vmul.f32 0.03125, %v7243_v7 }
 0x7fd   :  { %v14879_v10 = vsub.f32 %v14800_v27, %v7255_v50  ;;  %v11064_v27 = vld [vmem:[%s15222_s10] sm:$0xff]  }
 0x7fe   :  { %v14882_v42 = vsub.f32 %v14805_v35, %v7254_v58  ;;  %9994 = vmatprep.subr.bf16.mxu1 %v11064_v27  ;;  %v11065_v35 = vld [vmem:[%s15222_s10 + $0x8] sm:$0xff]  }
 0x7ff   :  { %v7271_v29 = vmul.f32 %v14879_v10, %v14879_v10  ;;  %9995 = vmatpush3.bf16.msra.mxu1 %v11064_v27 }
 0x800   :  { %v7270_v36 = vmul.f32 %v14882_v42, %v14882_v42  ;;  %9996 = vmatprep.subr.bf16.mxu1 %v11065_v35 }
 0x801   :  { %v7293_v32 = vsel %vm86_vm0, %v7271_v29, 0.0 }
 0x802   :  { %7294 = vadd.xlane.f32.xlu1 %v7293_v32  ;;  %v7290_v56 = vsel %vm86_vm0, %v7270_v36, 0.0 }
 0x803   :  { %7291 = vadd.xlane.f32.xlu0 %v7290_v56  ;;  %9997 = vmatpush3.bf16.msra.mxu1 %v11065_v35 }
 0x833   :  { %v7803_v21 = vpop.xlane.xlu1 %7802 }
 0x834   :  { %v7811_v1 = vmul.f32 0.03125, %v7803_v21  ;;  %v7800_v0 = vpop.xlane.xlu0 %7799 }
 0x835   :  { %v7810_v20 = vmul.f32 0.03125, %v7800_v0 }
 0x836   :  { %v14897_v25 = vsub.f32 %v14817_v30, %v7811_v1 }
 0x837   :  { %v14900_v9 = vsub.f32 %v14822_v8, %v7810_v20 }
 0x838   :  { %v7819_v14 = vmul.f32 %v14897_v25, %v14897_v25 }
 0x839   :  { %v7818_v59 = vmul.f32 %v14900_v9, %v14900_v9 }
 0x83a   :  { %v7809_v2 = vpop.xlane.xlu1 %7808  ;;  %v7825_v37 = vsel %vm86_vm0, %v7819_v14, 0.0 }
 0x83b   :  { %v7813_v39 = vmul.f32 0.03125, %v7809_v2  ;;  %v7806_v33 = vpop.xlane.xlu0 %7805  ;;  %7826 = vadd.xlane.f32.xlu1 %v7825_v37  ;;  %v7822_v43 = vsel %vm86_vm0, %v7818_v59, 0.0 }
 0x83c   :  { %v7812_v4 = vmul.f32 0.03125, %v7806_v33  ;;  %7823 = vadd.xlane.f32.xlu0 %v7822_v43 }
 0x83d   :  { %v14909_v30 = vsub.f32 %v14831_v40, %v7813_v39  ;;  %v11066_v40 = vld [vmem:[%s15222_s10 + $0x20] sm:$0xff]  }
 0x83e   :  { %v14912_v8 = vsub.f32 %v14836_v47, %v7812_v4  ;;  %v11067_v47 = vld [vmem:[%s15222_s10 + $0x28] sm:$0xff]   ;;  %10018 = vmatprep.subr.bf16.mxu0 %v11066_v40 }
 0x83f   :  { %v7821_v24 = vmul.f32 %v14909_v30, %v14909_v30  ;;  %10019 = vmatpush3.bf16.msra.mxu0 %v11066_v40 }
 0x840   :  { %v7820_v31 = vmul.f32 %v14912_v8, %v14912_v8  ;;  %10020 = vmatprep.subr.bf16.mxu0 %v11067_v47 }
 0x841   :  { %v7831_v60 = vsel %vm86_vm0, %v7821_v24, 0.0 }
 0x842   :  { %7832 = vadd.xlane.f32.xlu1 %v7831_v60  ;;  %v7828_v51 = vsel %vm86_vm0, %v7820_v31, 0.0 }
 0x843   :  { %7829 = vadd.xlane.f32.xlu0 %v7828_v51  ;;  %10021 = vmatpush3.bf16.msra.mxu0 %v11067_v47 }
 0x877   :  { %v7277_v3 = vpop.xlane.xlu1 %7276 }
 0x878   :  { %v7297_v15 = vmul.f32 0.03125, %v7277_v3  ;;  %v7274_v13 = vpop.xlane.xlu0 %7273 }
 0x879   :  { %v7296_v57 = vmul.f32 0.03125, %v7274_v13 }
 0x87a   :  { %v7305_v17 = vadd.f32 1e-12, %v7297_v15 }
 0x87b   :  { %v7304_v55 = vadd.f32 1e-12, %v7296_v57 }
 0x87c   :  { %11360 = vrsqrt.f32 %v7305_v17 }
 0x87d   :  { %11362 = vrsqrt.f32 %v7304_v55 }
 0x87f   :  { %v7283_v23 = vpop.xlane.xlu1 %7282 }
 0x880   :  { %v7299_v19 = vmul.f32 0.03125, %v7283_v23  ;;  %v7280_v26 = vpop.xlane.xlu0 %7279 }
 0x881   :  { %v7298_v53 = vmul.f32 0.03125, %v7280_v26 }
 0x882   :  { %v7307_v44 = vadd.f32 1e-12, %v7299_v19 }
 0x883   :  { %v7306_v63 = vadd.f32 1e-12, %v7298_v53 }
 0x884   :  { %11364 = vrsqrt.f32 %v7307_v44 }
 0x885   :  { %11366 = vrsqrt.f32 %v7306_v63 }
 0x886   :  { %v11361_v12 = vpop.eup %11360 }
 0x887   :  { %v11363_v16 = vpop.eup %11362  ;;  %v7321_v22 = vmul.f32 %v11361_v12, %v14843_v49  ;;  %v7289_v34 = vpop.xlane.xlu1 %7288 }
 0x888   :  { %v7320_v6 = vmul.f32 %v11363_v16, %v14846_v5  ;;  %v7301_v41 = vmul.f32 0.03125, %v7289_v34  ;;  %v7286_v11 = vpop.xlane.xlu0 %7285 }
 0x889   :  { %v7300_v62 = vmul.f32 0.03125, %v7286_v11  ;;  %v7335_v28 = vmul.f32 %v8601_v54, %v7321_v22  ;;  %v8628_v22 = vld [vmem:[%s15224_s12 + $0x2] ss:$0 sm:$0xff] }
 0x88a   :  { %v7309_v48 = vadd.f32 1e-12, %v7301_v41  ;;  %v7334_v61 = vmul.f32 %v8601_v54, %v7320_v6  ;;  %v8629_v41 = vld [vmem:[%s15225_s13 + $0x2] ss:$0 sm:$0xff] }
 0x88b   :  { %v7308_v50 = vadd.f32 1e-12, %v7300_v62  ;;  %v14934_v7 = vadd.f32 %v8602_v18, %v7335_v28 }
 0x88c   :  { %11368 = vrsqrt.f32 %v7309_v48  ;;  %v14936_v58 = vadd.f32 %v8602_v18, %v7334_v61 }
 0x88d   :  { %11370 = vrsqrt.f32 %v7308_v50 }
 0x88e   :  { %v11365_v49 = vpop.eup %11364  ;;  %v7368_v5 = vpack.c.bf16 %v14934_v7, %v14936_v58 }
 0x88f   :  { %v11367_v29 = vpop.eup %11366  ;;  %v7323_v36 = vmul.f32 %v11365_v49, %v14855_v46  ;;  %v7295_v32 = vpop.xlane.xlu1 %7294 }
 0x890   :  { %v7322_v56 = vmul.f32 %v11367_v29, %v14858_v38  ;;  %v7303_v27 = vmul.f32 0.03125, %v7295_v32  ;;  %9998 = vmatprep.mubr.msk.bf16.mxu1 %vm86_vm0, %v7368_v5  ;;  %v7292_v35 = vpop.xlane.xlu0 %7291 }
 0x891   :  { %v7337_v21 = vmul.f32 %v8601_v54, %v7323_v36  ;;  %v7302_v1 = vmul.f32 0.03125, %v7292_v35  ;;  %v8608_v35 = vld [vmem:[%s15223_s11] ss:$0 sm:$0xff] }
 0x892   :  { %v7336_v0 = vmul.f32 %v8601_v54, %v7322_v56  ;;  %v7311_v20 = vadd.f32 1e-12, %v7303_v27  ;;  %v15001_v27 = vld [vmem:[%s15222_s10 + $0x30] sm:$0xff]  }
 0x893   :  { %v14943_v14 = vadd.f32 %v8602_v18, %v7337_v21  ;;  %v7310_v59 = vadd.f32 1e-12, %v7302_v1 }
 0x894   :  { %v14945_v2 = vadd.f32 %v8602_v18, %v7336_v0  ;;  %11372 = vrsqrt.f32 %v7311_v20 }
 0x895   :  { %11374 = vrsqrt.f32 %v7310_v59 }
 0x896   :  { %v11369_v37 = vpop.eup %11368  ;;  %v7369_v46 = vpack.c.bf16 %v14943_v14, %v14945_v2 }
 0x897   :  { %v11371_v38 = vpop.eup %11370  ;;  %v7325_v39 = vmul.f32 %v11369_v37, %v14867_v52 }
 0x898   :  { %v7324_v33 = vmul.f32 %v11371_v38, %v14870_v45  ;;  %9999 = vmatmul.mubr.msk.bf16.vlgmr.msra.gmra.mrb[100].mxu1 %vm86_vm0, %v7369_v46 }
 0x899   :  { %v7339_v43 = vmul.f32 %v8601_v54, %v7325_v39 }
 0x89a   :  { %v7338_v4 = vmul.f32 %v8601_v54, %v7324_v33 }
 0x89b   :  { %v14952_v24 = vadd.f32 %v8602_v18, %v7339_v43 }
 0x89c   :  { %v14954_v31 = vadd.f32 %v8602_v18, %v7338_v4 }
 0x89e   :  { %v11373_v60 = vpop.eup %11372  ;;  %v7370_v51 = vpack.c.bf16 %v14952_v24, %v14954_v31 }
 0x89f   :  { %v11375_v40 = vpop.eup %11374  ;;  %v7327_v47 = vmul.f32 %v11373_v60, %v14879_v10 }
 0x8a0   :  { %v7326_v3 = vmul.f32 %v11375_v40, %v14882_v42  ;;  %10002 = vmatprep.mubr.msk.bf16.mxu1 %vm86_vm0, %v7370_v51 }
 0x8a1   :  { %v7341_v52 = vmul.f32 %v8601_v54, %v7327_v47 }
 0x8a2   :  { %v7340_v45 = vmul.f32 %v8601_v54, %v7326_v3 }
 0x8a3   :  { %v14961_v15 = vadd.f32 %v8602_v18, %v7341_v52 }
 0x8a4   :  { %v14963_v13 = vadd.f32 %v8602_v18, %v7340_v45 }
 0x8a6   :  { %v7371_v57 = vpack.c.bf16 %v14961_v15, %v14963_v13 }
 0x8a8   :  { %10003 = vmatmul.mubr.msk.bf16.gmra.mrb[104].mxu1 %vm86_vm0, %v7371_v57 }
 0x8c8   :  { %v7827_v17 = vpop.xlane.xlu1 %7826 }
 0x8c9   :  { %v7835_v55 = vmul.f32 0.03125, %v7827_v17  ;;  %v7824_v23 = vpop.xlane.xlu0 %7823 }
 0x8ca   :  { %v7834_v19 = vmul.f32 0.03125, %v7824_v23 }
 0x8cb   :  { %v7839_v10 = vadd.f32 1e-12, %v7835_v55 }
 0x8cc   :  { %v7838_v26 = vadd.f32 1e-12, %v7834_v19 }
 0x8cd   :  { %11376 = vrsqrt.f32 %v7839_v10 }
 0x8ce   :  { %11378 = vrsqrt.f32 %v7838_v26 }
 0x8cf   :  { %v7833_v42 = vpop.xlane.xlu1 %7832 }
 0x8d0   :  { %v7837_v53 = vmul.f32 0.03125, %v7833_v42  ;;  %v7830_v44 = vpop.xlane.xlu0 %7829 }
 0x8d1   :  { %v7836_v63 = vmul.f32 0.03125, %v7830_v44 }
 0x8d2   :  { %v7841_v12 = vadd.f32 1e-12, %v7837_v53 }
 0x8d3   :  { %v7840_v54 = vadd.f32 1e-12, %v7836_v63 }
 0x8d4   :  { %11380 = vrsqrt.f32 %v7841_v12 }
 0x8d5   :  { %11382 = vrsqrt.f32 %v7840_v54 }
 0x8d7   :  { %v11377_v16 = vpop.eup %11376 }
 0x8d8   :  { %v11379_v34 = vpop.eup %11378  ;;  %v7847_v6 = vmul.f32 %v11377_v16, %v14897_v25 }
 0x8d9   :  { %v7846_v18 = vmul.f32 %v11379_v34, %v14900_v9 }
 0x8da   :  { %v7857_v11 = vmul.f32 %v8628_v22, %v7847_v6 }
 0x8db   :  { %v7856_v62 = vmul.f32 %v8628_v22, %v7846_v18 }
 0x8dc   :  { %v14976_v28 = vadd.f32 %v8629_v41, %v7857_v11 }
 0x8dd   :  { %v14978_v48 = vadd.f32 %v8629_v41, %v7856_v62 }
 0x8de   :  { %v11381_v61 = vpop.eup %11380 }
 0x8df   :  { %v11383_v50 = vpop.eup %11382  ;;  %v7849_v49 = vmul.f32 %v11381_v61, %v14909_v30  ;;  %v7884_v5 = vpack.c.bf16 %v14976_v28, %v14978_v48  ;;  %v11068_v30 = vld [vmem:[%s15222_s10 + $0x10] sm:$0xff]  }
 0x8e0   :  { %v7848_v25 = vmul.f32 %v11383_v50, %v14912_v8  ;;  %v11069_v8 = vld [vmem:[%s15222_s10 + $0x18] sm:$0xff]   ;;  %10006 = vmatprep.subr.bf16.mxu1 %v11068_v30 }
 0x8e1   :  { %v7859_v9 = vmul.f32 %v8628_v22, %v7849_v49  ;;  %10022 = vmatprep.mubr.msk.bf16.mxu0 %vm86_vm0, %v7884_v5  ;;  %10007 = vmatpush3.bf16.msra.mxu1 %v11068_v30 }
 0x8e2   :  { %v7858_v29 = vmul.f32 %v8628_v22, %v7848_v25  ;;  %10008 = vmatprep.subr.bf16.mxu1 %v11069_v8 }
 0x8e3   :  { %v14985_v36 = vadd.f32 %v8629_v41, %v7859_v9 }
 0x8e4   :  { %v14987_v32 = vadd.f32 %v8629_v41, %v7858_v29 }
 0x8e5   :  { %10009 = vmatpush3.bf16.msra.mxu1 %v11069_v8 }
 0x8e6   :  { %v7885_v56 = vpack.c.bf16 %v14985_v36, %v14987_v32  ;;  %10026 = vmatprep.subr.bf16.mxu1 %v15001_v27 }
 0x8e8   :  { %10023 = vmatmul.mubr.msk.bf16.vlgmr.msra.gmra.mrb[104].mxu0 %vm86_vm0, %v7885_v56 }
 0x96b   :  { %v10000_v21 = vpop.f32.mrb[100].mxu1 }
 0x96c   :  { %v7445_v1 = vadd.f32 %v10000_v21, %v8608_v35  ;;  %v7436_v0 = vpop.f32.mrb[101].mxu1 }
 0x96d   :  { %v7437_v20 = vadd.f32 %v8608_v35, %v7436_v0  ;;  %v10001_v59 = vpop.f32.mrb[102].mxu1 }
 0x96e   :  { %v7477_v37 = vmul.f32 0.044715, %v7445_v1  ;;  %v7448_v46 = vadd.f32 %v10001_v59, %v8608_v35  ;;  %v7439_v38 = vpop.f32.mrb[103].mxu1  ;;  %v7469_v29 = vmul.f32 0.5, %v7445_v1 }
 0x96f   :  { %v7475_v39 = vmul.f32 0.044715, %v7437_v20  ;;  %v7440_v33 = vadd.f32 %v8608_v35, %v7439_v38 }
 0x970   :  { %v7485_v43 = vmul.f32 %v7477_v37, %v7445_v1  ;;  %v7478_v4 = vmul.f32 0.044715, %v7448_v46  ;;  %v7467_v37 = vmul.f32 0.5, %v7437_v20 }
 0x971   :  { %v7483_v60 = vmul.f32 %v7475_v39, %v7437_v20  ;;  %v7476_v51 = vmul.f32 0.044715, %v7440_v33 }
 0x972   :  { %v7493_v40 = vmul.f32 %v7485_v43, %v7445_v1  ;;  %v7486_v47 = vmul.f32 %v7478_v4, %v7448_v46  ;;  %v7470_v43 = vmul.f32 0.5, %v7448_v46 }
 0x973   :  { %v7491_v3 = vmul.f32 %v7483_v60, %v7437_v20  ;;  %v7484_v52 = vmul.f32 %v7476_v51, %v7440_v33 }
 0x974   :  { %v7501_v45 = vadd.f32 %v7493_v40, %v7445_v1  ;;  %v7494_v57 = vmul.f32 %v7486_v47, %v7448_v46  ;;  %v7468_v47 = vmul.f32 0.5, %v7440_v33 }
 0x975   :  { %v7499_v17 = vadd.f32 %v7491_v3, %v7437_v20  ;;  %v7492_v55 = vmul.f32 %v7484_v52, %v7440_v33 }
 0x976   :  { %v7509_v23 = vmul.f32 0.7978846, %v7501_v45  ;;  %v7502_v19 = vadd.f32 %v7494_v57, %v7448_v46 }
 0x977   :  { %v7507_v10 = vmul.f32 0.7978846, %v7499_v17  ;;  %v7500_v26 = vadd.f32 %v7492_v55, %v7440_v33 }
 0x978   :  { %11384 = vtanh.f32 %v7509_v23  ;;  %v7510_v42 = vmul.f32 0.7978846, %v7502_v19 }
 0x979   :  { %11386 = vtanh.f32 %v7507_v10  ;;  %v7508_v53 = vmul.f32 0.7978846, %v7500_v26  ;;  %v11071_v10 = vld [vmem:[%s15222_s10 + $0x38] sm:$0xff]  }
 0x97a   :  { %11388 = vtanh.f32 %v7510_v42 }
 0x97b   :  { %11390 = vtanh.f32 %v7508_v53  ;;  %v10004_v44 = vpop.f32.mrb[104].mxu1 }
 0x97c   :  { %v7461_v63 = vadd.f32 %v10004_v44, %v8608_v35  ;;  %v7452_v12 = vpop.f32.mrb[105].mxu1 }
 0x97d   :  { %v7453_v54 = vadd.f32 %v8608_v35, %v7452_v12  ;;  %v10005_v16 = vpop.f32.mrb[106].mxu1 }
 0x97e   :  { %v7481_v22 = vmul.f32 0.044715, %v7461_v63  ;;  %v7464_v34 = vadd.f32 %v10005_v16, %v8608_v35  ;;  %v7455_v6 = vpop.f32.mrb[107].mxu1  ;;  %v7473_v16 = vmul.f32 0.5, %v7461_v63 }
 0x97f   :  { %v7479_v18 = vmul.f32 0.044715, %v7453_v54  ;;  %v7456_v41 = vadd.f32 %v8608_v35, %v7455_v6 }
 0x980   :  { %v7489_v11 = vmul.f32 %v7481_v22, %v7461_v63  ;;  %v7482_v62 = vmul.f32 0.044715, %v7464_v34  ;;  %v7474_v22 = vmul.f32 0.5, %v7464_v34 }
 0x981   :  { %v7487_v61 = vmul.f32 %v7479_v18, %v7453_v54  ;;  %v7480_v50 = vmul.f32 0.044715, %v7456_v41  ;;  %v7471_v18 = vmul.f32 0.5, %v7453_v54 }
 0x982   :  { %v11385_v49 = vpop.eup %11384  ;;  %v7497_v5 = vmul.f32 %v7489_v11, %v7461_v63  ;;  %v7490_v25 = vmul.f32 %v7482_v62, %v7464_v34  ;;  %v7472_v11 = vmul.f32 0.5, %v7456_v41 }
 0x983   :  { %v11387_v9 = vpop.eup %11386  ;;  %v7525_v56 = vadd.f32 1.0, %v11385_v49  ;;  %v7495_v30 = vmul.f32 %v7487_v61, %v7453_v54  ;;  %v7488_v8 = vmul.f32 %v7480_v50, %v7456_v41 }
 0x984   :  { %v11389_v21 = vpop.eup %11388  ;;  %v7505_v0 = vadd.f32 %v7497_v5, %v7461_v63  ;;  %v7498_v59 = vmul.f32 %v7490_v25, %v7464_v34  ;;  %v7523_v38 = vadd.f32 1.0, %v11387_v9  ;;  %v8640_v9 = vld [vmem:[%s15223_s11 + $0x2] ss:$0 sm:$0xff] }
 0x985   :  { %v11391_v39 = vpop.eup %11390  ;;  %v7526_v35 = vadd.f32 1.0, %v11389_v21  ;;  %v7503_v4 = vadd.f32 %v7495_v30, %v7453_v54  ;;  %v7496_v60 = vmul.f32 %v7488_v8, %v7456_v41  ;;  %v7533_v52 = vmul.f32 %v7525_v56, %v7469_v29 }
 0x986   :  { %v7513_v51 = vmul.f32 0.7978846, %v7505_v0  ;;  %v7506_v40 = vadd.f32 %v7498_v59, %v7464_v34  ;;  %v7524_v3 = vadd.f32 1.0, %v11391_v39  ;;  %v7531_v55 = vmul.f32 %v7523_v38, %v7467_v37 }
 0x987   :  { %v7534_v45 = vmul.f32 %v7526_v35, %v7470_v43  ;;  %v7511_v1 = vmul.f32 0.7978846, %v7503_v4  ;;  %v7504_v57 = vadd.f32 %v7496_v60, %v7456_v41 }
 0x988   :  { %11392 = vtanh.f32 %v7513_v51  ;;  %v7514_v17 = vmul.f32 0.7978846, %v7506_v40  ;;  %v7532_v23 = vmul.f32 %v7524_v3, %v7468_v47 }
 0x989   :  { %v7540_v19 = vpack.c.bf16 %v7534_v45, %v7533_v52  ;;  %11394 = vtanh.f32 %v7511_v1  ;;  %v7512_v20 = vmul.f32 0.7978846, %v7504_v57 }
 0x98a   :  { %11396 = vtanh.f32 %v7514_v17  ;;  %v7539_v46 = vpack.c.bf16 %v7532_v23, %v7531_v55 }
 0x98b   :  { %11398 = vtanh.f32 %v7512_v20 }
 0x98c   :  { %10010 = vmatprep.mubr.msk.bf16.mxu1 %vm86_vm0, %v7539_v46 }
 0x98d   :  { %10011 = vmatmul.mubr.msk.bf16.vlgmr.msra.gmra.mrb[108].mxu1 %vm86_vm0, %v7540_v19 }
 0x98e   :  { %10027 = vmatpush3.bf16.msra.mxu1 %v15001_v27 }
 0x98f   :  { %10028 = vmatprep.subr.bf16.mxu1 %v11071_v10 }
 0x992   :  { %v11393_v33 = vpop.eup %11392  ;;  %10029 = vmatpush3.bf16.msra.mxu1 %v11071_v10 }
 0x993   :  { %v11395_v26 = vpop.eup %11394  ;;  %v7529_v42 = vadd.f32 1.0, %v11393_v33 }
 0x994   :  { %v11397_v53 = vpop.eup %11396  ;;  %v7527_v44 = vadd.f32 1.0, %v11395_v26 }
 0x995   :  { %v11399_v12 = vpop.eup %11398  ;;  %v7530_v6 = vadd.f32 1.0, %v11397_v53  ;;  %v7537_v61 = vmul.f32 %v7529_v42, %v7473_v16 }
 0x996   :  { %v7528_v62 = vadd.f32 1.0, %v11399_v12  ;;  %v7535_v49 = vmul.f32 %v7527_v44, %v7471_v18 }
 0x997   :  { %v7538_v50 = vmul.f32 %v7530_v6, %v7474_v22 }
 0x998   :  { %v7536_v5 = vmul.f32 %v7528_v62, %v7472_v11 }
 0x999   :  { %v7542_v25 = vpack.c.bf16 %v7538_v50, %v7537_v61  ;;  %v8615_v50 = vld [vmem:[%s15223_s11 + $0x1] ss:$0 sm:$0xff] }
 0x99a   :  { %v7541_v27 = vpack.c.bf16 %v7536_v5, %v7535_v49 }
 0x99c   :  { %10014 = vmatprep.mubr.msk.bf16.mxu1 %vm86_vm0, %v7541_v27 }
 0x99d   :  { %10015 = vmatmul.mubr.msk.bf16.gmra.mrb[112].mxu1 %vm86_vm0, %v7542_v25 }
 0x9bb   :  { %v10024_v63 = vpop.f32.mrb[104].mxu0 }
 0x9bc   :  { %v7953_v34 = vadd.f32 %v10024_v63, %v8640_v9  ;;  %v7944_v29 = vpop.f32.mrb[105].mxu0 }
 0x9bd   :  { %v7945_v54 = vadd.f32 %v8640_v9, %v7944_v29  ;;  %v10025_v41 = vpop.f32.mrb[106].mxu0 }
 0x9be   :  { %v7965_v56 = vmul.f32 0.044715, %v7953_v34  ;;  %v7956_v30 = vadd.f32 %v10025_v41, %v8640_v9  ;;  %v7947_v8 = vpop.f32.mrb[107].mxu0  ;;  %v7961_v26 = vmul.f32 0.5, %v7953_v34 }
 0x9bf   :  { %v7963_v21 = vmul.f32 0.044715, %v7945_v54  ;;  %v7948_v0 = vadd.f32 %v8640_v9, %v7947_v8  ;;  %v7959_v44 = vmul.f32 0.5, %v7945_v54 }
 0x9c0   :  { %v7969_v59 = vmul.f32 %v7965_v56, %v7953_v34  ;;  %v7966_v37 = vmul.f32 0.044715, %v7956_v30  ;;  %v7962_v42 = vmul.f32 0.5, %v7956_v30 }
 0x9c1   :  { %v7967_v38 = vmul.f32 %v7963_v21, %v7945_v54  ;;  %v7964_v39 = vmul.f32 0.044715, %v7948_v0  ;;  %v7960_v12 = vmul.f32 0.5, %v7948_v0 }
 0x9c2   :  { %v7973_v43 = vmul.f32 %v7969_v59, %v7953_v34  ;;  %v7970_v35 = vmul.f32 %v7966_v37, %v7956_v30 }
 0x9c3   :  { %v7971_v4 = vmul.f32 %v7967_v38, %v7945_v54  ;;  %v7968_v60 = vmul.f32 %v7964_v39, %v7948_v0 }
 0x9c4   :  { %v7977_v51 = vadd.f32 %v7973_v43, %v7953_v34  ;;  %v7974_v40 = vmul.f32 %v7970_v35, %v7956_v30 }
 0x9c5   :  { %v7975_v47 = vadd.f32 %v7971_v4, %v7945_v54  ;;  %v7972_v3 = vmul.f32 %v7968_v60, %v7948_v0 }
 0x9c6   :  { %v7981_v52 = vmul.f32 0.7978846, %v7977_v51  ;;  %v7978_v45 = vadd.f32 %v7974_v40, %v7956_v30 }
 0x9c7   :  { %v7979_v1 = vmul.f32 0.7978846, %v7975_v47  ;;  %v7976_v57 = vadd.f32 %v7972_v3, %v7948_v0 }
 0x9c8   :  { %11400 = vtanh.f32 %v7981_v52  ;;  %v7982_v17 = vmul.f32 0.7978846, %v7978_v45 }
 0x9c9   :  { %11402 = vtanh.f32 %v7979_v1  ;;  %v7980_v55 = vmul.f32 0.7978846, %v7976_v57 }
 0x9ca   :  { %11404 = vtanh.f32 %v7982_v17 }
 0x9cb   :  { %11406 = vtanh.f32 %v7980_v55 }
 0x9d2   :  { %v11401_v23 = vpop.eup %11400 }
 0x9d3   :  { %v11403_v19 = vpop.eup %11402  ;;  %v7989_v20 = vadd.f32 1.0, %v11401_v23 }
 0x9d4   :  { %v11405_v46 = vpop.eup %11404  ;;  %v7987_v10 = vadd.f32 1.0, %v11403_v19 }
 0x9d5   :  { %v11407_v33 = vpop.eup %11406  ;;  %v7990_v53 = vadd.f32 1.0, %v11405_v46  ;;  %v7993_v22 = vmul.f32 %v7989_v20, %v7961_v26 }
 0x9d6   :  { %v7988_v16 = vadd.f32 1.0, %v11407_v33  ;;  %v7991_v18 = vmul.f32 %v7987_v10, %v7959_v44 }
 0x9d7   :  { %v7994_v6 = vmul.f32 %v7990_v53, %v7962_v42 }
 0x9d8   :  { %v7992_v11 = vmul.f32 %v7988_v16, %v7960_v12 }
 0x9d9   :  { %v7996_v62 = vpack.c.bf16 %v7994_v6, %v7993_v22 }
 0x9da   :  { %v7995_v61 = vpack.c.bf16 %v7992_v11, %v7991_v18 }
 0x9dc   :  { %10030 = vmatprep.mubr.msk.bf16.mxu1 %vm86_vm0, %v7995_v61 }
 0x9dd   :  { %10031 = vmatmul.mubr.msk.bf16.vlgmr.msra.gmra.mrb[116].mxu1 %vm86_vm0, %v7996_v62 }
 0xa60   :  { %v10012_v49 = vpop.f32.mrb[108].mxu1 }
 0xa61   :  { %v7616_v5 = vadd.f32 %v10012_v49, %v8615_v50  ;;  %v7607_v25 = vpop.f32.mrb[109].mxu1 }
 0xa62   :  { %v7608_v27 = vadd.f32 %v8615_v50, %v7607_v25  ;;  %v10013_v9 = vpop.f32.mrb[110].mxu1 }
 0xa63   :  { %v15024_v63 = vadd.f32 %v7616_v5, %v14945_v2  ;;  %v7619_v34 = vadd.f32 %v10013_v9, %v8615_v50  ;;  %v7610_v29 = vpop.f32.mrb[111].mxu1 }
 0xa64   :  { %v7611_v54 = vadd.f32 %v8615_v50, %v7610_v29  ;;  %v7638_v41 = vadd.f32 %v7608_v27, %v14936_v58 }
 0xa65   :  { %v7641_v56 = vadd.f32 %v7619_v34, %v14943_v14  ;;  %v7656_v30 = vsel %vm86_vm0, %v15024_v63, 0.0 }
 0xa66   :  { %7657 = vadd.xlane.f32.xlu0 %v7656_v30  ;;  %v7639_v8 = vadd.f32 %v7611_v54, %v14934_v7  ;;  %v7650_v0 = vsel %vm86_vm0, %v7638_v41, 0.0 }
 0xa67   :  { %v7659_v21 = vsel %vm86_vm0, %v7641_v56, 0.0 }
 0xa68   :  { %7660 = vadd.xlane.f32.xlu1 %v7659_v21  ;;  %v7653_v2 = vsel %vm86_vm0, %v7639_v8, 0.0 }
 0xa6a   :  { %7651 = vadd.xlane.f32.xlu0 %v7650_v0 }
 0xa6c   :  { %7654 = vadd.xlane.f32.xlu1 %v7653_v2 }
 0xa70   :  { %v10016_v59 = vpop.f32.mrb[112].mxu1 }
 0xa71   :  { %v7632_v37 = vadd.f32 %v10016_v59, %v8615_v50  ;;  %v7623_v58 = vpop.f32.mrb[113].mxu1 }
 0xa72   :  { %v7624_v38 = vadd.f32 %v8615_v50, %v7623_v58  ;;  %v10017_v14 = vpop.f32.mrb[114].mxu1 }
 0xa73   :  { %v15035_v39 = vadd.f32 %v7632_v37, %v14963_v13  ;;  %v7635_v43 = vadd.f32 %v10017_v14, %v8615_v50  ;;  %v7626_v35 = vpop.f32.mrb[115].mxu1 }
 0xa74   :  { %v7627_v7 = vadd.f32 %v8615_v50, %v7626_v35  ;;  %v15038_v4 = vadd.f32 %v7624_v38, %v14954_v31 }
 0xa75   :  { %v15041_v60 = vadd.f32 %v7635_v43, %v14961_v15  ;;  %v7668_v51 = vsel %vm86_vm0, %v15035_v39, 0.0  ;;  %v8645_v15 = vld [vmem:[%s15223_s11 + $0x3] ss:$0 sm:$0xff] }
 0xa76   :  { %7669 = vadd.xlane.f32.xlu0 %v7668_v51  ;;  %v15046_v40 = vadd.f32 %v7627_v7, %v14952_v24  ;;  %v7662_v47 = vsel %vm86_vm0, %v15038_v4, 0.0 }
 0xa77   :  { %v7671_v13 = vsel %vm86_vm0, %v15041_v60, 0.0 }
 0xa78   :  { %7672 = vadd.xlane.f32.xlu1 %v7671_v13  ;;  %v7665_v31 = vsel %vm86_vm0, %v15046_v40, 0.0 }
 0xa7a   :  { %7663 = vadd.xlane.f32.xlu0 %v7662_v47 }
 0xa7c   :  { %7666 = vadd.xlane.f32.xlu1 %v7665_v31 }
 0xab0   :  { %v10032_v3 = vpop.f32.mrb[116].mxu1 }
 0xab1   :  { %v8055_v52 = vpop.f32.mrb[117].mxu1  ;;  %v8064_v24 = vadd.f32 %v10032_v3, %v8645_v15 }
 0xab2   :  { %v8056_v45 = vadd.f32 %v8645_v15, %v8055_v52  ;;  %v10033_v1 = vpop.f32.mrb[118].mxu1 }
 0xab3   :  { %v8058_v57 = vpop.f32.mrb[119].mxu1  ;;  %v8067_v55 = vadd.f32 %v10033_v1, %v8645_v15  ;;  %v15061_v19 = vadd.f32 %v8064_v24, %v14987_v32 }
 0xab4   :  { %v15058_v17 = vadd.f32 %v8056_v45, %v14978_v48  ;;  %v8059_v23 = vadd.f32 %v8645_v15, %v8058_v57 }
 0xab5   :  { %v15069_v10 = vadd.f32 %v8067_v55, %v14985_v36  ;;  %v8084_v48 = vsel %vm86_vm0, %v15061_v19, 0.0 }
 0xab6   :  { %v15064_v20 = vadd.f32 %v8059_v23, %v14976_v28  ;;  %v8078_v46 = vsel %vm86_vm0, %v15058_v17, 0.0 }
 0xab7   :  { %8079 = vadd.xlane.f32.xlu0 %v8078_v46  ;;  %v8087_v32 = vsel %vm86_vm0, %v15069_v10, 0.0 }
 0xab8   :  { %v8081_v33 = vsel %vm86_vm0, %v15064_v20, 0.0 }
 0xab9   :  { %8082 = vadd.xlane.f32.xlu1 %v8081_v33 }
 0xabb   :  { %8085 = vadd.xlane.f32.xlu0 %v8084_v48 }
 0xabd   :  { %8088 = vadd.xlane.f32.xlu1 %v8087_v32 }
 0xaf3   :  { %v7658_v28 = vpop.xlane.xlu0 %7657 }
 0xaf4   :  { %v7676_v42 = vmul.f32 0.03125, %v7658_v28 }
 0xaf5   :  { %v7661_v26 = vpop.xlane.xlu1 %7660 }
 0xaf6   :  { %v7677_v44 = vmul.f32 0.03125, %v7661_v26  ;;  %v15078_v16 = vsub.f32 %v15024_v63, %v7676_v42 }
 0xaf7   :  { %v7652_v53 = vpop.xlane.xlu0 %7651 }
 0xaf8   :  { %v7674_v12 = vmul.f32 0.03125, %v7652_v53  ;;  %v15082_v18 = vsub.f32 %v7641_v56, %v7677_v44  ;;  %v7692_v49 = vmul.f32 %v15078_v16, %v15078_v16 }
 0xaf9   :  { %v7655_v36 = vpop.xlane.xlu1 %7654 }
 0xafa   :  { %v15080_v22 = vsub.f32 %v7638_v41, %v7674_v12  ;;  %v7675_v6 = vmul.f32 0.03125, %v7655_v36  ;;  %v7693_v25 = vmul.f32 %v15082_v18, %v15082_v18  ;;  %v7704_v27 = vsel %vm86_vm0, %v7692_v49, 0.0 }
 0xafc   :  { %v15084_v11 = vsub.f32 %v7639_v8, %v7675_v6  ;;  %v7690_v62 = vmul.f32 %v15080_v22, %v15080_v22  ;;  %v7707_v63 = vsel %vm86_vm0, %v7693_v25, 0.0  ;;  %v8625_v25 = vld [vmem:[%s15225_s13 + $0x1] ss:$0 sm:$0xff] }
 0xafe   :  { %v7698_v61 = vsel %vm86_vm0, %v7690_v62, 0.0  ;;  %v7691_v50 = vmul.f32 %v15084_v11, %v15084_v11 }
 0xaff   :  { %7699 = vadd.xlane.f32.xlu0 %v7698_v61  ;;  %v8624_v61 = vld [vmem:[%s15224_s12 + $0x1] ss:$0 sm:$0xff] }
 0xb00   :  { %v7701_v5 = vsel %vm86_vm0, %v7691_v50, 0.0 }
 0xb01   :  { %7702 = vadd.xlane.f32.xlu1 %v7701_v5 }
 0xb03   :  { %7705 = vadd.xlane.f32.xlu0 %v7704_v27  ;;  %v7670_v9 = vpop.xlane.xlu0 %7669 }
 0xb04   :  { %v7680_v29 = vmul.f32 0.03125, %v7670_v9 }
 0xb05   :  { %v7673_v34 = vpop.xlane.xlu1 %7672  ;;  %7708 = vadd.xlane.f32.xlu1 %v7707_v63 }
 0xb06   :  { %v7681_v41 = vmul.f32 0.03125, %v7673_v34  ;;  %v15099_v8 = vsub.f32 %v15035_v39, %v7680_v29 }
 0xb07   :  { %v7664_v54 = vpop.xlane.xlu0 %7663 }
 0xb08   :  { %v7678_v56 = vmul.f32 0.03125, %v7664_v54  ;;  %v15105_v2 = vsub.f32 %v15041_v60, %v7681_v41  ;;  %v7696_v14 = vmul.f32 %v15099_v8, %v15099_v8 }
 0xb09   :  { %v7667_v30 = vpop.xlane.xlu1 %7666 }
 0xb0a   :  { %v15102_v21 = vsub.f32 %v15038_v4, %v7678_v56  ;;  %v7679_v0 = vmul.f32 0.03125, %v7667_v30  ;;  %v7697_v43 = vmul.f32 %v15105_v2, %v15105_v2  ;;  %v7716_v35 = vsel %vm86_vm0, %v7696_v14, 0.0 }
 0xb0c   :  { %v15108_v59 = vsub.f32 %v15046_v40, %v7679_v0  ;;  %v7694_v37 = vmul.f32 %v15102_v21, %v15102_v21  ;;  %v7719_v7 = vsel %vm86_vm0, %v7697_v43, 0.0 }
 0xb0e   :  { %v7710_v58 = vsel %vm86_vm0, %v7694_v37, 0.0  ;;  %v7695_v38 = vmul.f32 %v15108_v59, %v15108_v59 }
 0xb0f   :  { %7711 = vadd.xlane.f32.xlu0 %v7710_v58 }
 0xb10   :  { %v7713_v39 = vsel %vm86_vm0, %v7695_v38, 0.0 }
 0xb11   :  { %7714 = vadd.xlane.f32.xlu1 %v7713_v39 }
 0xb13   :  { %7717 = vadd.xlane.f32.xlu0 %v7716_v35 }
 0xb15   :  { %7720 = vadd.xlane.f32.xlu1 %v7719_v7 }
 0xb44   :  { %v8080_v4 = vpop.xlane.xlu0 %8079 }
 0xb45   :  { %v8090_v60 = vmul.f32 0.03125, %v8080_v4 }
 0xb46   :  { %v8083_v51 = vpop.xlane.xlu1 %8082 }
 0xb47   :  { %v15123_v40 = vsub.f32 %v15058_v17, %v8090_v60  ;;  %v8091_v13 = vmul.f32 0.03125, %v8083_v51 }
 0xb48   :  { %v8086_v47 = vpop.xlane.xlu0 %8085 }
 0xb49   :  { %v15126_v31 = vsub.f32 %v15064_v20, %v8091_v13  ;;  %v8092_v15 = vmul.f32 0.03125, %v8086_v47  ;;  %v8098_v3 = vmul.f32 %v15123_v40, %v15123_v40 }
 0xb4a   :  { %v8089_v52 = vpop.xlane.xlu1 %8088 }
 0xb4b   :  { %v15131_v24 = vsub.f32 %v15061_v19, %v8092_v15  ;;  %v8093_v45 = vmul.f32 0.03125, %v8089_v52  ;;  %v8102_v1 = vsel %vm86_vm0, %v8098_v3, 0.0  ;;  %v8099_v57 = vmul.f32 %v15126_v31, %v15126_v31 }
 0xb4c   :  { %8103 = vadd.xlane.f32.xlu0 %v8102_v1 }
 0xb4d   :  { %v15137_v17 = vsub.f32 %v15069_v10, %v8093_v45  ;;  %v8105_v55 = vsel %vm86_vm0, %v8099_v57, 0.0  ;;  %v8100_v23 = vmul.f32 %v15131_v24, %v15131_v24 }
 0xb4e   :  { %8106 = vadd.xlane.f32.xlu1 %v8105_v55 }
 0xb4f   :  { %v8108_v20 = vsel %vm86_vm0, %v8100_v23, 0.0  ;;  %v8101_v19 = vmul.f32 %v15137_v17, %v15137_v17 }
 0xb50   :  { %8109 = vadd.xlane.f32.xlu0 %v8108_v20 }
 0xb51   :  { %v8111_v46 = vsel %vm86_vm0, %v8101_v19, 0.0 }
 0xb52   :  { %8112 = vadd.xlane.f32.xlu1 %v8111_v46 }
 0xb8c   :  { %v7700_v33 = vpop.xlane.xlu0 %7699 }
 0xb8d   :  { %v7722_v48 = vmul.f32 0.03125, %v7700_v33 }
 0xb8e   :  { %v7703_v32 = vpop.xlane.xlu1 %7702 }
 0xb8f   :  { %v7730_v10 = vadd.f32 1e-12, %v7722_v48  ;;  %v7723_v28 = vmul.f32 0.03125, %v7703_v32 }
 0xb90   :  { %v7706_v26 = vpop.xlane.xlu0 %7705 }
 0xb91   :  { %11408 = vrsqrt.f32 %v7730_v10  ;;  %v7731_v42 = vadd.f32 1e-12, %v7723_v28  ;;  %v7724_v53 = vmul.f32 0.03125, %v7706_v26 }
 0xb92   :  { %v7709_v44 = vpop.xlane.xlu1 %7708 }
 0xb93   :  { %11410 = vrsqrt.f32 %v7731_v42  ;;  %v7732_v12 = vadd.f32 1e-12, %v7724_v53  ;;  %v7725_v36 = vmul.f32 0.03125, %v7709_v44 }
 0xb95   :  { %11412 = vrsqrt.f32 %v7732_v12  ;;  %v7733_v6 = vadd.f32 1e-12, %v7725_v36 }
 0xb97   :  { %11414 = vrsqrt.f32 %v7733_v6 }
 0xb9b   :  { %v11409_v62 = vpop.eup %11408 }
 0xb9c   :  { %v7746_v50 = vmul.f32 %v11409_v62, %v15080_v22  ;;  %v7712_v49 = vpop.xlane.xlu0 %7711 }
 0xb9d   :  { %v11411_v5 = vpop.eup %11410  ;;  %v7726_v27 = vmul.f32 0.03125, %v7712_v49 }
 0xb9e   :  { %v7760_v9 = vmul.f32 %v8624_v61, %v7746_v50  ;;  %v7747_v63 = vmul.f32 %v11411_v5, %v15084_v11  ;;  %v7715_v34 = vpop.xlane.xlu1 %7714 }
 0xb9f   :  { %v11413_v29 = vpop.eup %11412  ;;  %v7734_v54 = vadd.f32 1e-12, %v7726_v27  ;;  %v7727_v41 = vmul.f32 0.03125, %v7715_v34 }
 0xba0   :  { %v7774_v56 = vadd.f32 %v8625_v25, %v7760_v9  ;;  %v7761_v30 = vmul.f32 %v8624_v61, %v7747_v63  ;;  %v7748_v0 = vmul.f32 %v11413_v29, %v15078_v16  ;;  %v7718_v37 = vpop.xlane.xlu0 %7717 }
 0xba1   :  { %v11415_v22 = vpop.eup %11414  ;;  %11416 = vrsqrt.f32 %v7734_v54  ;;  %v7735_v58 = vadd.f32 1e-12, %v7727_v41  ;;  %v7728_v38 = vmul.f32 0.03125, %v7718_v37 }
 0xba2   :  { %7782 = vst.msk [vmem:[#allocation2] sm:$0xff] %vm86_vm0, %v7774_v56  ;;  %v7775_v14 = vadd.f32 %v8625_v25, %v7761_v30  ;;  %v7762_v39 = vmul.f32 %v8624_v61, %v7748_v0  ;;  %v7749_v43 = vmul.f32 %v11415_v22, %v15082_v18  ;;  %v7721_v11 = vpop.xlane.xlu1 %7720 }
 0xba3   :  { %11418 = vrsqrt.f32 %v7735_v58  ;;  %v7736_v35 = vadd.f32 1e-12, %v7728_v38  ;;  %v7729_v7 = vmul.f32 0.03125, %v7721_v11 }
 0xba4   :  { %7783 = vst.msk [vmem:[#allocation2 + $0x8] sm:$0xff] %vm86_vm0, %v7775_v14  ;;  %v7776_v4 = vadd.f32 %v8625_v25, %v7762_v39  ;;  %v7763_v60 = vmul.f32 %v8624_v61, %v7749_v43 }
 0xba5   :  { %11420 = vrsqrt.f32 %v7736_v35  ;;  %v7737_v16 = vadd.f32 1e-12, %v7729_v7 }
 0xba6   :  { %7784 = vst.msk [vmem:[#allocation2 + $0x10] sm:$0xff] %vm86_vm0, %v7776_v4  ;;  %v7777_v51 = vadd.f32 %v8625_v25, %v7763_v60 }
 0xba7   :  { %11422 = vrsqrt.f32 %v7737_v16 }
 0xba8   :  { %7785 = vst.msk [vmem:[#allocation2 + $0x18] sm:$0xff] %vm86_vm0, %v7777_v51 }
 0xbab   :  { %v11417_v13 = vpop.eup %11416 }
 0xbac   :  { %v7750_v47 = vmul.f32 %v11417_v13, %v15102_v21 }
 0xbad   :  { %v11419_v18 = vpop.eup %11418 }
 0xbae   :  { %v7764_v15 = vmul.f32 %v8624_v61, %v7750_v47  ;;  %v7751_v3 = vmul.f32 %v11419_v18, %v15108_v59 }
 0xbaf   :  { %v11421_v52 = vpop.eup %11420 }
 0xbb0   :  { %v7778_v45 = vadd.f32 %v8625_v25, %v7764_v15  ;;  %v7765_v1 = vmul.f32 %v8624_v61, %v7751_v3  ;;  %v7752_v57 = vmul.f32 %v11421_v52, %v15099_v8 }
 0xbb1   :  { %v11423_v55 = vpop.eup %11422 }
 0xbb2   :  { %7786 = vst.msk [vmem:[#allocation2 + $0x20] sm:$0xff] %vm86_vm0, %v7778_v45  ;;  %v7779_v23 = vadd.f32 %v8625_v25, %v7765_v1  ;;  %v7766_v20 = vmul.f32 %v8624_v61, %v7752_v57  ;;  %v7753_v19 = vmul.f32 %v11423_v55, %v15105_v2 }
 0xbb4   :  { %7787 = vst.msk [vmem:[#allocation2 + $0x28] sm:$0xff] %vm86_vm0, %v7779_v23  ;;  %v7780_v21 = vadd.f32 %v8625_v25, %v7766_v20  ;;  %v7767_v46 = vmul.f32 %v8624_v61, %v7753_v19 }
 0xbb6   :  { %7788 = vst.msk [vmem:[#allocation2 + $0x30] sm:$0xff] %vm86_vm0, %v7780_v21  ;;  %v7781_v59 = vadd.f32 %v8625_v25, %v7767_v46 }
 0xbb8   :  { %7789 = vst.msk [vmem:[#allocation2 + $0x38] sm:$0xff] %vm86_vm0, %v7781_v59 }
 0xbb9   :  { %11457 = shalt.err (!%p11454_p4)
}
 0xbba   :  { %s11458_s16 = scalar_lea.hbm %s15226_s14, 1024 }
 0xbbb   :  { %p11459_p5 = scmp.ne.s32.totalorder %s15226_s14, %s11458_s16  ;;  %p11462_p6 = scmp.lt.u32.totalorder %s11458_s16, %s15226_s14 }
 0xbbd   :  { %p11464_p7 = pnand %p11462_p6, %p11459_p5 }
 0xbbf   :  { %11467 = shalt.err (!%p11464_p7)
}
 0xbc0   :  { %s11501_s5 = smov 128   ;;  %s11502_s8 = smov 8   ;;  %v8652_v6 = vld [vmem:[%s15224_s12 + $0x3] ss:$0 sm:$0xff] }
 0xbc1   :  { %8165 = dma.vmem_to_hbm [thread:$0]  %s8160_s7, 1024, %s15226_s14, [#allocation3], %s11501_s5, %s11501_s5, %s11502_s8  }
 0xbc2   :  { %v8653_v50 = vld [vmem:[%s15225_s13 + $0x3] ss:$0 sm:$0xff]  ;;  %s11503_s12 = smov [#allocation4]  }
 0xbc3   :  { %s8171_s10 = sshll.u32 %s11503_s12, 4  ;;  %s8172_s10 = int_to_ptr.vmem [resolvable:$true] %s8171_s10 }
 0xbc4   :  { %s11468_s13 = scalar_lea.vmem %s8172_s10, 512  ;;  %p11473_p9 = scmp.lt.s32.totalorder %s8172_s10, %s8172_s10 }
 0xbc5   :  { %p11469_p8 = scmp.ne.s32.totalorder %s8172_s10, %s11468_s13  ;;  %p11474_p10 = scmp.lt.s32.totalorder %s11468_s13, %s11468_s13 }
 0xbc7   :  { %p11475_p11 = por %p11474_p10, %p11473_p9 }
 0xbc9   :  { %p11476_p12 = pnand %p11475_p11, %p11469_p8 }
 0xbd9   :  { %v8104_v8 = vpop.xlane.xlu0 %8103 }
 0xbda   :  { %v8114_v2 = vmul.f32 0.03125, %v8104_v8 }
 0xbdb   :  { %v8107_v33 = vpop.xlane.xlu1 %8106 }
 0xbdc   :  { %v8118_v48 = vadd.f32 1e-12, %v8114_v2  ;;  %v8115_v32 = vmul.f32 0.03125, %v8107_v33 }
 0xbdd   :  { %v8110_v10 = vpop.xlane.xlu0 %8109 }
 0xbde   :  { %11424 = vrsqrt.f32 %v8118_v48  ;;  %v8119_v28 = vadd.f32 1e-12, %v8115_v32  ;;  %v8116_v26 = vmul.f32 0.03125, %v8110_v10 }
 0xbdf   :  { %v8113_v42 = vpop.xlane.xlu1 %8112 }
 0xbe0   :  { %11426 = vrsqrt.f32 %v8119_v28  ;;  %v8120_v53 = vadd.f32 1e-12, %v8116_v26  ;;  %v8117_v44 = vmul.f32 0.03125, %v8113_v42 }
 0xbe2   :  { %11428 = vrsqrt.f32 %v8120_v53  ;;  %v8121_v12 = vadd.f32 1e-12, %v8117_v44 }
 0xbe4   :  { %11430 = vrsqrt.f32 %v8121_v12 }
 0xbe8   :  { %v11425_v36 = vpop.eup %11424 }
 0xbe9   :  { %v8126_v62 = vmul.f32 %v11425_v36, %v15123_v40 }
 0xbea   :  { %v11427_v61 = vpop.eup %11426 }
 0xbeb   :  { %v8136_v49 = vmul.f32 %v8652_v6, %v8126_v62  ;;  %v8127_v5 = vmul.f32 %v11427_v61, %v15126_v31 }
 0xbec   :  { %v11429_v25 = vpop.eup %11428 }
 0xbed   :  { %v8146_v27 = vadd.f32 %v8653_v50, %v8136_v49  ;;  %v8137_v9 = vmul.f32 %v8652_v6, %v8127_v5  ;;  %v8128_v63 = vmul.f32 %v11429_v25, %v15131_v24 }
 0xbee   :  { %v11431_v34 = vpop.eup %11430 }
 0xbef   :  { %8150 = vst.msk [vmem:[#allocation4] sm:$0xff] %vm86_vm0, %v8146_v27  ;;  %v8147_v29 = vadd.f32 %v8653_v50, %v8137_v9  ;;  %v8138_v54 = vmul.f32 %v8652_v6, %v8128_v63  ;;  %v8129_v40 = vmul.f32 %v11431_v34, %v15137_v17 }
 0xbf1   :  { %8151 = vst.msk [vmem:[#allocation4 + $0x8] sm:$0xff] %vm86_vm0, %v8147_v29  ;;  %v8148_v41 = vadd.f32 %v8653_v50, %v8138_v54  ;;  %v8139_v56 = vmul.f32 %v8652_v6, %v8129_v40 }
 0xbf3   :  { %8152 = vst.msk [vmem:[#allocation4 + $0x10] sm:$0xff] %vm86_vm0, %v8148_v41  ;;  %v8149_v31 = vadd.f32 %v8653_v50, %v8139_v56 }
 0xbf5   :  { %8153 = vst.msk [vmem:[#allocation4 + $0x18] sm:$0xff] %vm86_vm0, %v8149_v31 }
 0xbf6   :  { %11479 = shalt.err (!%p11476_p12)
}
 0xbf7   :  { %s11480_s3 = scalar_lea.hbm %s15227_s15, 512 }
 0xbf8   :  { %p11481_p13 = scmp.ne.s32.totalorder %s15227_s15, %s11480_s3  ;;  %p11484_p0 = scmp.lt.u32.totalorder %s11480_s3, %s15227_s15 }
 0xbfa   :  { %p11486_p1 = pnand %p11484_p0, %p11481_p13 }
 0xbfc   :  { %11489 = shalt.err (!%p11486_p1)
}
 0xbfd   :  { %8177 = dma.vmem_to_hbm [thread:$0]  %s8172_s10, 512, %s15227_s15, [#allocation5], %s11501_s5, %s11501_s5, %s11502_s8  }
 0xbfe   :  { %11490 = dma.done.wait [#allocation3], 1024  }
 0xbff   :  { %11491 = vsyncadd [#allocation3], 4294966272 }
 0xc00   :  { %11492 = dma.done.wait [#allocation5], 512  }
 0xc01   :  { %11493 = vsyncadd [#allocation5], 4294966784 }
 0xc02   :  { %8184 = vsyncpa [#allocation3], 1 }
 0xc03   :  { %8185 = vsyncpa [#allocation5], 1 }

</bundles_post_ra>
